<compile_context>
chip_gen: v7x
topology: tpu7x:2x2x1
jax: 0.10.0
libtpu: 0.0.40
codegen_flags: <defaults>
</compile_context>

<pallas_src>
import functools

import jax
import jax.numpy as jnp
from jax import lax
from jax.experimental import pallas as pl
from jax.experimental.pallas import tpu as pltpu

LANES = 128  # activation channel / feature axes are zero-padded to the TPU lane width


def _rup8(x):
    return ((x + 7) // 8) * 8


# ------------------------------ fused kernel -------------------------------

def _fused_forward_kernel(
    xp_ref,    # (N, H+2, W+2, 128)  padded NHWC input (zero halo + zero-padded channels)
    w1p_ref,   # (9, K1, 128)        conv1 taps: [kh*3+kw, cin_cmp, cout_pad]  (compact K)
    b1p_ref,   # (1, 128)
    w2p_ref,   # (9, K2, 128)        conv2 taps (compact K)
    b2p_ref,   # (1, 128)
    w1b_ref,   # (Hp*Wp, Kf1, 128)   fc1: one (cin_cmp, f_pad) block per pooled position
    b1f_ref,   # (1, 128)
    w2f_ref,   # (Kf2, 128)
    b2f_ref,   # (1, 128)
    w3f_ref,   # (Kf3, 128)
    b3f_ref,   # (1, 128)
    o_ref,     # (N, 128)
    sh1_ref,   # scratch (N, H//2, W, 128)            conv1 output after H-direction pool
    xp2_ref,   # scratch (N, W//2+2, H//2+2, 128)     stage-2 padded input (W-major layout)
    sh2_ref,   # scratch (NB, W//4, H//2, 128)        conv2 output after W-direction pool
    *, N, H, W, NB,
):
    f32 = jnp.float32
    C = LANES
    H2, W2 = H // 2, W // 2
    Hp, Wp = H // 4, W // 4
    # Compact contraction widths come straight from the packed weight shapes.
    K1 = w1p_ref.shape[1]
    K2 = w2p_ref.shape[1]
    Kf1 = w1b_ref.shape[1]
    Kf2 = w2f_ref.shape[0]
    Kf3 = w3f_ref.shape[0]

    # ---------------- stage 1: conv3x3(pad=1) + ReLU + H-direction 2:1 pool --------------
    # Work in chunks of 8 output rows so live values stay ~16-48 vregs.
    b1 = b1p_ref[...]                                                     # hoisted (1, C)
    for n in range(N):
        for hb in range(H // 8):
            h0 = hb * 8
            acc = jnp.zeros((8 * W, C), f32)
            for kh in range(3):
                for kw in range(3):
                    # only the first K1 lanes of xp are (possibly) nonzero channels
                    lhs = xp_ref[n, h0 + kh:h0 + kh + 8, kw:kw + W, 0:K1]  # (8, W, K1)
                    acc = acc + jnp.dot(lhs.reshape(8 * W, K1),
                                        w1p_ref[kh * 3 + kw],
                                        preferred_element_type=f32)
            y = jnp.maximum(acc + b1, 0.0)                                 # (8*W, C)
            # pool over the H axis (row pairs of this chunk): 8 rows -> 4
            hmax = jnp.max(y.reshape(4, 2, W, C), axis=1)                  # (4, W, C)
            sh1_ref[n, hb * 4:hb * 4 + 4, :, :] = hmax

    # ------- stage-1 W-direction pool, written as the zero-padded stage-2 input ----------
    # xp2 uses a W-major layout (n, w+1, h+1, c) so stage-2's pooling/flatten never needs
    # strided or sublane-crossing accesses.
    xp2_ref[...] = jnp.zeros((N, W2 + 2, H2 + 2, C), f32)
    for ww in range(W2):
        pair = sh1_ref[:, :, pl.ds(2 * ww, 2), :]        # (N, H2, 2, C) contiguous columns
        col = jnp.max(pair, axis=2)                      # (N, H2, C)   -> pool1[:, :, ww, :]
        xp2_ref[:, 1 + ww, 1:1 + H2, :] = col

    # ---------------- stage 2: conv3x3(pad=1) + ReLU + W-direction 2:1 pool --------------
    acc2 = jnp.zeros((N * W2 * H2, C), f32)              # rows ordered (n, w, h)
    for kh in range(3):
        for kw in range(3):
            lhs = xp2_ref[:, kw:kw + W2, kh:kh + H2, 0:K2]   # (N, W2, H2, K2)
            acc2 = acc2 + jnp.dot(lhs.reshape(N * W2 * H2, K2),
                                  w2p_ref[kh * 3 + kw],
                                  preferred_element_type=f32)
    y2 = jnp.maximum(acc2 + b2p_ref[...], 0.0)
    # pool over the W axis (leading dim); batch rows padded to NB (zeros) for aligned matmuls
    sh2_ref[...] = jnp.zeros((NB, Wp, H2, C), f32)
    sh2_ref[0:N, :, :, :] = jnp.max(y2.reshape(N, Wp, 2, H2, C), axis=2)   # (N, Wp, H2, C)

    # ------- classifier: fc1 (with H-direction pool + NCHW flatten folded in), fc2, fc3 ---
    fc1 = jnp.zeros((NB, C), f32)
    for hh in range(Hp):
        for ww in range(Wp):
            pair = sh2_ref[:, ww, pl.ds(2 * hh, 2), 0:Kf1]   # (NB, 2, Kf1)
            vec = jnp.max(pair, axis=1)                      # (NB, Kf1) pooled feature @ (hh, ww)
            fc1 = fc1 + jnp.dot(vec, w1b_ref[hh * Wp + ww], preferred_element_type=f32)
    h1 = jnp.maximum(fc1 + b1f_ref[...], 0.0)                # Dropout (eval) = identity
    h2 = jnp.maximum(jnp.dot(h1[:, 0:Kf2], w2f_ref[...],
                             preferred_element_type=f32) + b2f_ref[...], 0.0)
    out = jnp.dot(h2[:, 0:Kf3], w3f_ref[...], preferred_element_type=f32) + b3f_ref[...]
    o_ref[...] = out[0:N, :].astype(o_ref.dtype)


def _full_spec(shape):
    nd = len(shape)
    return pl.BlockSpec(shape, lambda i, _nd=nd: (0,) * _nd)


def fused_forward(xp, packed, *, N, H, W):
    C = LANES
    H2, W2 = H // 2, W // 2
    Hp, Wp = H // 4, W // 4
    NB = max(8, ((N + 7) // 8) * 8)   # pad classifier batch rows to a sublane multiple
    ins = (xp, packed["w1p"], packed["b1p"], packed["w2p"], packed["b2p"],
           packed["w1b"], packed["b1f"], packed["w2f"], packed["b2f"],
           packed["w3f"], packed["b3f"])
    kernel = functools.partial(_fused_forward_kernel, N=N, H=H, W=W, NB=NB)
    K1 = packed["w1p"].shape[1]
    K2 = packed["w2p"].shape[1]
    Kf1 = packed["w1b"].shape[1]
    Kf2 = packed["w2f"].shape[0]
    Kf3 = packed["w3f"].shape[0]
    flops = 2 * C * (N * H * W * 9 * K1 + N * H2 * W2 * 9 * K2
                     + NB * Hp * Wp * Kf1 + NB * Kf2 + NB * Kf3)
    bytes_accessed = sum(int(a.size) * 4 for a in ins) + N * C * 4
    return pl.pallas_call(
        kernel,
        out_shape=jax.ShapeDtypeStruct((N, C), jnp.float32),
        grid=(1,),
        in_specs=[_full_spec(a.shape) for a in ins],
        out_specs=_full_spec((N, C)),
        scratch_shapes=[
            pltpu.VMEM((N, H2, W, C), jnp.float32),
            pltpu.VMEM((N, W2 + 2, H2 + 2, C), jnp.float32),
            pltpu.VMEM((NB, Wp, H2, C), jnp.float32),
        ],
        compiler_params=pltpu.CompilerParams(dimension_semantics=("arbitrary",)),
        cost_estimate=pl.CostEstimate(flops=flops, transcendentals=0,
                                      bytes_accessed=bytes_accessed),
    )(*ins)


# ------------------------- parameter packing (one time) --------------------------

def pack_params(params, *, hp, wp):
    """Pack weights with a COMPACT contraction axis (rounded up to 8 sublanes) and a
    128-lane output axis; fold torch's NCHW flatten into per-position fc1 blocks."""
    C = LANES
    f32 = jnp.float32
    (w1, b1), (w2, b2) = params["features"]            # HWIO conv weights
    cin, c1 = w1.shape[2], w1.shape[3]
    c2 = w2.shape[3]
    k1, k2 = _rup8(cin), _rup8(c1)
    w1p = jnp.zeros((9, k1, C), f32).at[:, :cin, :c1].set(w1.reshape(9, cin, c1))
    b1p = jnp.zeros((1, C), f32).at[0, :c1].set(b1)
    w2p = jnp.zeros((9, k2, C), f32).at[:, :c1, :c2].set(w2.reshape(9, c1, c2))
    b2p = jnp.zeros((1, C), f32).at[0, :c2].set(b2)

    fc1_w, fc1_b = params["fc1_w"], params["fc1_b"]     # rows indexed c*hp*wp + h*wp + w (NCHW)
    f1 = fc1_w.shape[1]
    kf1 = _rup8(c2)
    blk = fc1_w.reshape(c2, hp, wp, f1).transpose(1, 2, 0, 3).reshape(hp * wp, c2, f1)
    w1b = jnp.zeros((hp * wp, kf1, C), f32).at[:, :c2, :f1].set(blk)
    b1f = jnp.zeros((1, C), f32).at[0, :f1].set(fc1_b)

    f2 = params["fc2_w"].shape[1]
    kf2 = _rup8(f1)
    w2f = jnp.zeros((kf2, C), f32).at[:f1, :f2].set(params["fc2_w"])
    b2f = jnp.zeros((1, C), f32).at[0, :f2].set(params["fc2_b"])
    f3 = params["fc3_w"].shape[1]
    kf3 = _rup8(f2)
    w3f = jnp.zeros((kf3, C), f32).at[:f2, :f3].set(params["fc3_w"])
    b3f = jnp.zeros((1, C), f32).at[0, :f3].set(params["fc3_b"])
    return dict(w1p=w1p, b1p=b1p, w2p=w2p, b2p=b2p, w1b=w1b, b1f=b1f,
                w2f=w2f, b2f=b2f, w3f=w3f, b3f=b3f)


def image_model_forward(x_nchw, packed, out_size):
    N, cin, H, W = x_nchw.shape
    assert H % 8 == 0 and W % 8 == 0, "kernel assumes spatial dims divisible by 8"
    x = jnp.transpose(x_nchw, (0, 2, 3, 1))                        # NCHW -> NHWC
    xp = jnp.pad(x, ((0, 0), (1, 1), (1, 1), (0, LANES - cin)))    # conv halo + lane padding
    out = fused_forward(xp, packed, N=N, H=H, W=W)                 # (N, 128)
    return out[:, :out_size]


# ----------------------------- pure-JAX reference --------------------------------

def reference_forward(x_nchw, params):
    N = x_nchw.shape[0]
    x = jnp.transpose(x_nchw, (0, 2, 3, 1))
    for (w, b) in params["features"]:
        x = lax.conv_general_dilated(
            x, w, window_strides=(1, 1), padding="SAME",
            dimension_numbers=("NHWC", "HWIO", "NHWC")) + b
        x = jnp.maximum(x, 0.0)
        x = lax.reduce_window(x, -jnp.inf, lax.max,
                              window_dimensions=(1, 2, 2, 1),
                              window_strides=(1, 2, 2, 1), padding="VALID")
    feat = jnp.transpose(x, (0, 3, 1, 2)).reshape(N, -1)
    h = jnp.maximum(feat @ params["fc1_w"] + params["fc1_b"], 0.0)
    h = jnp.maximum(h @ params["fc2_w"] + params["fc2_b"], 0.0)
    return h @ params["fc3_w"] + params["fc3_b"]


# ------------------------------------ main ----------------------------------------

def make_params(key, out_size=10):
    ks = jax.random.split(key, 10)
    s = 0.1
    return {
        "features": [
            (jax.random.normal(ks[0], (3, 3, 4, 8), jnp.float32) * s,
             jax.random.normal(ks[1], (8,), jnp.float32) * s),
            (jax.random.normal(ks[2], (3, 3, 8, 16), jnp.float32) * s,
             jax.random.normal(ks[3], (16,), jnp.float32) * s),
        ],
        # after features: (N, 16, 4, 4) NCHW -> 256 flattened features
        "fc1_w": jax.random.normal(ks[4], (256, 64), jnp.float32) * s,
        "fc1_b": jax.random.normal(ks[5], (64,), jnp.float32) * s,
        "fc2_w": jax.random.normal(ks[6], (64, 64), jnp.float32) * s,
        "fc2_b": jax.random.normal(ks[7], (64,), jnp.float32) * s,
        "fc3_w": jax.random.normal(ks[8], (64, out_size), jnp.float32) * s,
        "fc3_b": jax.random.normal(ks[9], (out_size,), jnp.float32) * s,
    }


if __name__ == "__main__":
    key = jax.random.PRNGKey(0)
    k_x, k_p = jax.random.split(key)
    x = jax.random.normal(k_x, (2, 4, 16, 16), jnp.float32)   # NCHW, like PyTorch
    params = make_params(k_p, out_size=10)

    N, _, H, W = x.shape
    packed = pack_params(params, hp=H // 4, wp=W // 4)        # one-time packing / padding

    fwd = jax.jit(functools.partial(image_model_forward, out_size=10))
    out = fwd(x, packed)
    out = jax.block_until_ready(out)

    ref = reference_forward(x, params)
    assert out.shape == (2, 10), out.shape
    assert jnp.allclose(out, ref, atol=1e-4, rtol=1e-4), "mismatch vs reference"
    print("KERNEL_OK")
</pallas_src>

<mosaic_0001>
module attributes {stable_mosaic.version = 11 : i64} {
  func.func @_fused_forward_kernel(%arg0: i32, %arg1: memref<2x18x18x128xf32, #tpu.memory_space<vmem>>, %arg2: memref<9x8x128xf32, #tpu.memory_space<vmem>>, %arg3: memref<1x128xf32, #tpu.memory_space<vmem>>, %arg4: memref<9x8x128xf32, #tpu.memory_space<vmem>>, %arg5: memref<1x128xf32, #tpu.memory_space<vmem>>, %arg6: memref<16x16x128xf32, #tpu.memory_space<vmem>>, %arg7: memref<1x128xf32, #tpu.memory_space<vmem>>, %arg8: memref<64x128xf32, #tpu.memory_space<vmem>>, %arg9: memref<1x128xf32, #tpu.memory_space<vmem>>, %arg10: memref<64x128xf32, #tpu.memory_space<vmem>>, %arg11: memref<1x128xf32, #tpu.memory_space<vmem>>, %arg12: memref<2x128xf32, #tpu.memory_space<vmem>>, %arg13: memref<2x8x16x128xf32, #tpu.memory_space<vmem>>, %arg14: memref<2x10x10x128xf32, #tpu.memory_space<vmem>>, %arg15: memref<8x4x8x128xf32, #tpu.memory_space<vmem>>) attributes {dimension_semantics = [#tpu.dimension_semantics<arbitrary>], iteration_bounds = array<i64: 1>, scalar_prefetch = 0 : i64, scratch_operands = 3 : i64, tpu.core_type = #tpu.core_type<tc>, window_params = [{pipeline_mode = #tpu.pipeline_mode<synchronous>, transform_indices = @transform_0, window_bounds = array<i64: 2, 18, 18, 128>}, {pipeline_mode = #tpu.pipeline_mode<synchronous>, transform_indices = @transform_1, window_bounds = array<i64: 9, 8, 128>}, {pipeline_mode = #tpu.pipeline_mode<synchronous>, transform_indices = @transform_2, window_bounds = array<i64: 1, 128>}, {pipeline_mode = #tpu.pipeline_mode<synchronous>, transform_indices = @transform_3, window_bounds = array<i64: 9, 8, 128>}, {pipeline_mode = #tpu.pipeline_mode<synchronous>, transform_indices = @transform_4, window_bounds = array<i64: 1, 128>}, {pipeline_mode = #tpu.pipeline_mode<synchronous>, transform_indices = @transform_5, window_bounds = array<i64: 16, 16, 128>}, {pipeline_mode = #tpu.pipeline_mode<synchronous>, transform_indices = @transform_6, window_bounds = array<i64: 1, 128>}, {pipeline_mode = #tpu.pipeline_mode<synchronous>, transform_indices = @transform_7, window_bounds = array<i64: 64, 128>}, {pipeline_mode = #tpu.pipeline_mode<synchronous>, transform_indices = @transform_8, window_bounds = array<i64: 1, 128>}, {pipeline_mode = #tpu.pipeline_mode<synchronous>, transform_indices = @transform_9, window_bounds = array<i64: 64, 128>}, {pipeline_mode = #tpu.pipeline_mode<synchronous>, transform_indices = @transform_10, window_bounds = array<i64: 1, 128>}, {pipeline_mode = #tpu.pipeline_mode<synchronous>, transform_indices = @transform_11, window_bounds = array<i64: 2, 128>}]} {
    %c0 = arith.constant 0 : index
    %c0_0 = arith.constant 0 : index
    %0 = vector.load %arg3[%c0, %c0_0] : memref<1x128xf32, #tpu.memory_space<vmem>>, vector<1x128xf32>
    %cst = arith.constant 0.000000e+00 : f32
    %1 = vector.broadcast %cst : f32 to vector<128x128xf32>
    %c0_1 = arith.constant 0 : index
    %c0_2 = arith.constant 0 : index
    %c0_3 = arith.constant 0 : index
    %c0_4 = arith.constant 0 : index
    %2 = vector.load %arg1[%c0_1, %c0_2, %c0_3, %c0_4] : memref<2x18x18x128xf32, #tpu.memory_space<vmem>>, vector<1x8x16x8xf32>
    %3 = vector.shape_cast %2 : vector<1x8x16x8xf32> to vector<8x16x8xf32>
    %4 = vector.shape_cast %3 : vector<8x16x8xf32> to vector<128x8xf32>
    %c0_5 = arith.constant 0 : index
    %c0_6 = arith.constant 0 : index
    %c0_7 = arith.constant 0 : index
    %5 = vector.load %arg2[%c0_5, %c0_6, %c0_7] : memref<9x8x128xf32, #tpu.memory_space<vmem>>, vector<1x8x128xf32>
    %6 = vector.shape_cast %5 : vector<1x8x128xf32> to vector<8x128xf32>
    %cst_8 = arith.constant dense<0.000000e+00> : vector<128x128xf32>
    %7 = tpu.matmul %4, %6, %cst_8 {dimension_numbers = #tpu.dot_dimension_numbers<[1], [0], [0], [1], [0, 0, 1, 1], [], []>} : vector<128x8xf32>, vector<8x128xf32>, vector<128x128xf32> -> vector<128x128xf32>
    %8 = arith.addf %1, %7 : vector<128x128xf32>
    %c0_9 = arith.constant 0 : index
    %c0_10 = arith.constant 0 : index
    %c1 = arith.constant 1 : index
    %c0_11 = arith.constant 0 : index
    %9 = vector.load %arg1[%c0_9, %c0_10, %c1, %c0_11] : memref<2x18x18x128xf32, #tpu.memory_space<vmem>>, vector<1x8x16x8xf32>
    %10 = vector.shape_cast %9 : vector<1x8x16x8xf32> to vector<8x16x8xf32>
    %11 = vector.shape_cast %10 : vector<8x16x8xf32> to vector<128x8xf32>
    %c1_12 = arith.constant 1 : index
    %c0_13 = arith.constant 0 : index
    %c0_14 = arith.constant 0 : index
    %12 = vector.load %arg2[%c1_12, %c0_13, %c0_14] : memref<9x8x128xf32, #tpu.memory_space<vmem>>, vector<1x8x128xf32>
    %13 = vector.shape_cast %12 : vector<1x8x128xf32> to vector<8x128xf32>
    %cst_15 = arith.constant dense<0.000000e+00> : vector<128x128xf32>
    %14 = tpu.matmul %11, %13, %cst_15 {dimension_numbers = #tpu.dot_dimension_numbers<[1], [0], [0], [1], [0, 0, 1, 1], [], []>} : vector<128x8xf32>, vector<8x128xf32>, vector<128x128xf32> -> vector<128x128xf32>
    %15 = arith.addf %8, %14 : vector<128x128xf32>
    %c0_16 = arith.constant 0 : index
    %c0_17 = arith.constant 0 : index
    %c2 = arith.constant 2 : index
    %c0_18 = arith.constant 0 : index
    %16 = vector.load %arg1[%c0_16, %c0_17, %c2, %c0_18] : memref<2x18x18x128xf32, #tpu.memory_space<vmem>>, vector<1x8x16x8xf32>
    %17 = vector.shape_cast %16 : vector<1x8x16x8xf32> to vector<8x16x8xf32>
    %18 = vector.shape_cast %17 : vector<8x16x8xf32> to vector<128x8xf32>
    %c2_19 = arith.constant 2 : index
    %c0_20 = arith.constant 0 : index
    %c0_21 = arith.constant 0 : index
    %19 = vector.load %arg2[%c2_19, %c0_20, %c0_21] : memref<9x8x128xf32, #tpu.memory_space<vmem>>, vector<1x8x128xf32>
    %20 = vector.shape_cast %19 : vector<1x8x128xf32> to vector<8x128xf32>
    %cst_22 = arith.constant dense<0.000000e+00> : vector<128x128xf32>
    %21 = tpu.matmul %18, %20, %cst_22 {dimension_numbers = #tpu.dot_dimension_numbers<[1], [0], [0], [1], [0, 0, 1, 1], [], []>} : vector<128x8xf32>, vector<8x128xf32>, vector<128x128xf32> -> vector<128x128xf32>
    %22 = arith.addf %15, %21 : vector<128x128xf32>
    %c0_23 = arith.constant 0 : index
    %c1_24 = arith.constant 1 : index
    %c0_25 = arith.constant 0 : index
    %c0_26 = arith.constant 0 : index
    %23 = vector.load %arg1[%c0_23, %c1_24, %c0_25, %c0_26] : memref<2x18x18x128xf32, #tpu.memory_space<vmem>>, vector<1x8x16x8xf32>
    %24 = vector.shape_cast %23 : vector<1x8x16x8xf32> to vector<8x16x8xf32>
    %25 = vector.shape_cast %24 : vector<8x16x8xf32> to vector<128x8xf32>
    %c3 = arith.constant 3 : index
    %c0_27 = arith.constant 0 : index
    %c0_28 = arith.constant 0 : index
    %26 = vector.load %arg2[%c3, %c0_27, %c0_28] : memref<9x8x128xf32, #tpu.memory_space<vmem>>, vector<1x8x128xf32>
    %27 = vector.shape_cast %26 : vector<1x8x128xf32> to vector<8x128xf32>
    %cst_29 = arith.constant dense<0.000000e+00> : vector<128x128xf32>
    %28 = tpu.matmul %25, %27, %cst_29 {dimension_numbers = #tpu.dot_dimension_numbers<[1], [0], [0], [1], [0, 0, 1, 1], [], []>} : vector<128x8xf32>, vector<8x128xf32>, vector<128x128xf32> -> vector<128x128xf32>
    %29 = arith.addf %22, %28 : vector<128x128xf32>
    %c0_30 = arith.constant 0 : index
    %c1_31 = arith.constant 1 : index
    %c1_32 = arith.constant 1 : index
    %c0_33 = arith.constant 0 : index
    %30 = vector.load %arg1[%c0_30, %c1_31, %c1_32, %c0_33] : memref<2x18x18x128xf32, #tpu.memory_space<vmem>>, vector<1x8x16x8xf32>
    %31 = vector.shape_cast %30 : vector<1x8x16x8xf32> to vector<8x16x8xf32>
    %32 = vector.shape_cast %31 : vector<8x16x8xf32> to vector<128x8xf32>
    %c4 = arith.constant 4 : index
    %c0_34 = arith.constant 0 : index
    %c0_35 = arith.constant 0 : index
    %33 = vector.load %arg2[%c4, %c0_34, %c0_35] : memref<9x8x128xf32, #tpu.memory_space<vmem>>, vector<1x8x128xf32>
    %34 = vector.shape_cast %33 : vector<1x8x128xf32> to vector<8x128xf32>
    %cst_36 = arith.constant dense<0.000000e+00> : vector<128x128xf32>
    %35 = tpu.matmul %32, %34, %cst_36 {dimension_numbers = #tpu.dot_dimension_numbers<[1], [0], [0], [1], [0, 0, 1, 1], [], []>} : vector<128x8xf32>, vector<8x128xf32>, vector<128x128xf32> -> vector<128x128xf32>
    %36 = arith.addf %29, %35 : vector<128x128xf32>
    %c0_37 = arith.constant 0 : index
    %c1_38 = arith.constant 1 : index
    %c2_39 = arith.constant 2 : index
    %c0_40 = arith.constant 0 : index
    %37 = vector.load %arg1[%c0_37, %c1_38, %c2_39, %c0_40] : memref<2x18x18x128xf32, #tpu.memory_space<vmem>>, vector<1x8x16x8xf32>
    %38 = vector.shape_cast %37 : vector<1x8x16x8xf32> to vector<8x16x8xf32>
    %39 = vector.shape_cast %38 : vector<8x16x8xf32> to vector<128x8xf32>
    %c5 = arith.constant 5 : index
    %c0_41 = arith.constant 0 : index
    %c0_42 = arith.constant 0 : index
    %40 = vector.load %arg2[%c5, %c0_41, %c0_42] : memref<9x8x128xf32, #tpu.memory_space<vmem>>, vector<1x8x128xf32>
    %41 = vector.shape_cast %40 : vector<1x8x128xf32> to vector<8x128xf32>
    %cst_43 = arith.constant dense<0.000000e+00> : vector<128x128xf32>
    %42 = tpu.matmul %39, %41, %cst_43 {dimension_numbers = #tpu.dot_dimension_numbers<[1], [0], [0], [1], [0, 0, 1, 1], [], []>} : vector<128x8xf32>, vector<8x128xf32>, vector<128x128xf32> -> vector<128x128xf32>
    %43 = arith.addf %36, %42 : vector<128x128xf32>
    %c0_44 = arith.constant 0 : index
    %c2_45 = arith.constant 2 : index
    %c0_46 = arith.constant 0 : index
    %c0_47 = arith.constant 0 : index
    %44 = vector.load %arg1[%c0_44, %c2_45, %c0_46, %c0_47] : memref<2x18x18x128xf32, #tpu.memory_space<vmem>>, vector<1x8x16x8xf32>
    %45 = vector.shape_cast %44 : vector<1x8x16x8xf32> to vector<8x16x8xf32>
    %46 = vector.shape_cast %45 : vector<8x16x8xf32> to vector<128x8xf32>
    %c6 = arith.constant 6 : index
    %c0_48 = arith.constant 0 : index
    %c0_49 = arith.constant 0 : index
    %47 = vector.load %arg2[%c6, %c0_48, %c0_49] : memref<9x8x128xf32, #tpu.memory_space<vmem>>, vector<1x8x128xf32>
    %48 = vector.shape_cast %47 : vector<1x8x128xf32> to vector<8x128xf32>
    %cst_50 = arith.constant dense<0.000000e+00> : vector<128x128xf32>
    %49 = tpu.matmul %46, %48, %cst_50 {dimension_numbers = #tpu.dot_dimension_numbers<[1], [0], [0], [1], [0, 0, 1, 1], [], []>} : vector<128x8xf32>, vector<8x128xf32>, vector<128x128xf32> -> vector<128x128xf32>
    %50 = arith.addf %43, %49 : vector<128x128xf32>
    %c0_51 = arith.constant 0 : index
    %c2_52 = arith.constant 2 : index
    %c1_53 = arith.constant 1 : index
    %c0_54 = arith.constant 0 : index
    %51 = vector.load %arg1[%c0_51, %c2_52, %c1_53, %c0_54] : memref<2x18x18x128xf32, #tpu.memory_space<vmem>>, vector<1x8x16x8xf32>
    %52 = vector.shape_cast %51 : vector<1x8x16x8xf32> to vector<8x16x8xf32>
    %53 = vector.shape_cast %52 : vector<8x16x8xf32> to vector<128x8xf32>
    %c7 = arith.constant 7 : index
    %c0_55 = arith.constant 0 : index
    %c0_56 = arith.constant 0 : index
    %54 = vector.load %arg2[%c7, %c0_55, %c0_56] : memref<9x8x128xf32, #tpu.memory_space<vmem>>, vector<1x8x128xf32>
    %55 = vector.shape_cast %54 : vector<1x8x128xf32> to vector<8x128xf32>
    %cst_57 = arith.constant dense<0.000000e+00> : vector<128x128xf32>
    %56 = tpu.matmul %53, %55, %cst_57 {dimension_numbers = #tpu.dot_dimension_numbers<[1], [0], [0], [1], [0, 0, 1, 1], [], []>} : vector<128x8xf32>, vector<8x128xf32>, vector<128x128xf32> -> vector<128x128xf32>
    %57 = arith.addf %50, %56 : vector<128x128xf32>
    %c0_58 = arith.constant 0 : index
    %c2_59 = arith.constant 2 : index
    %c2_60 = arith.constant 2 : index
    %c0_61 = arith.constant 0 : index
    %58 = vector.load %arg1[%c0_58, %c2_59, %c2_60, %c0_61] : memref<2x18x18x128xf32, #tpu.memory_space<vmem>>, vector<1x8x16x8xf32>
    %59 = vector.shape_cast %58 : vector<1x8x16x8xf32> to vector<8x16x8xf32>
    %60 = vector.shape_cast %59 : vector<8x16x8xf32> to vector<128x8xf32>
    %c8 = arith.constant 8 : index
    %c0_62 = arith.constant 0 : index
    %c0_63 = arith.constant 0 : index
    %61 = vector.load %arg2[%c8, %c0_62, %c0_63] : memref<9x8x128xf32, #tpu.memory_space<vmem>>, vector<1x8x128xf32>
    %62 = vector.shape_cast %61 : vector<1x8x128xf32> to vector<8x128xf32>
    %cst_64 = arith.constant dense<0.000000e+00> : vector<128x128xf32>
    %63 = tpu.matmul %60, %62, %cst_64 {dimension_numbers = #tpu.dot_dimension_numbers<[1], [0], [0], [1], [0, 0, 1, 1], [], []>} : vector<128x8xf32>, vector<8x128xf32>, vector<128x128xf32> -> vector<128x128xf32>
    %64 = arith.addf %57, %63 : vector<128x128xf32>
    %65 = vector.broadcast %0 : vector<1x128xf32> to vector<128x128xf32>
    %66 = arith.addf %64, %65 : vector<128x128xf32>
    %cst_65 = arith.constant 0.000000e+00 : f32
    %67 = vector.broadcast %cst_65 : f32 to vector<128x128xf32>
    %68 = arith.maximumf %66, %67 : vector<128x128xf32>
    %69 = vector.shape_cast %68 : vector<128x128xf32> to vector<4x2x16x128xf32>
    %cst_66 = arith.constant dense<0xFF800000> : vector<4x16x128xf32>
    %70 = vector.multi_reduction <maximumf>, %69, %cst_66 [1] : vector<4x2x16x128xf32> to vector<4x16x128xf32>
    %c0_67 = arith.constant 0 : index
    %c0_68 = arith.constant 0 : index
    %c0_69 = arith.constant 0 : index
    %c0_70 = arith.constant 0 : index
    %71 = vector.load %arg13[%c0_67, %c0_68, %c0_69, %c0_70] : memref<2x8x16x128xf32, #tpu.memory_space<vmem>>, vector<1x4x16x128xf32>
    %72 = vector.shape_cast %71 : vector<1x4x16x128xf32> to vector<4x16x128xf32>
    %73 = vector.shape_cast %70 : vector<4x16x128xf32> to vector<1x4x16x128xf32>
    tpu.vector_store %arg13[%c0_67, %c0_68, %c0_69, %c0_70], %73 {strides = array<i32>} : memref<2x8x16x128xf32, #tpu.memory_space<vmem>>, vector<1x4x16x128xf32>,
    %cst_71 = arith.constant 0.000000e+00 : f32
    %74 = vector.broadcast %cst_71 : f32 to vector<128x128xf32>
    %c0_72 = arith.constant 0 : index
    %c8_73 = arith.constant 8 : index
    %c0_74 = arith.constant 0 : index
    %c0_75 = arith.constant 0 : index
    %75 = vector.load %arg1[%c0_72, %c8_73, %c0_74, %c0_75] : memref<2x18x18x128xf32, #tpu.memory_space<vmem>>, vector<1x8x16x8xf32>
    %76 = vector.shape_cast %75 : vector<1x8x16x8xf32> to vector<8x16x8xf32>
    %77 = vector.shape_cast %76 : vector<8x16x8xf32> to vector<128x8xf32>
    %c0_76 = arith.constant 0 : index
    %c0_77 = arith.constant 0 : index
    %c0_78 = arith.constant 0 : index
    %78 = vector.load %arg2[%c0_76, %c0_77, %c0_78] : memref<9x8x128xf32, #tpu.memory_space<vmem>>, vector<1x8x128xf32>
    %79 = vector.shape_cast %78 : vector<1x8x128xf32> to vector<8x128xf32>
    %cst_79 = arith.constant dense<0.000000e+00> : vector<128x128xf32>
    %80 = tpu.matmul %77, %79, %cst_79 {dimension_numbers = #tpu.dot_dimension_numbers<[1], [0], [0], [1], [0, 0, 1, 1], [], []>} : vector<128x8xf32>, vector<8x128xf32>, vector<128x128xf32> -> vector<128x128xf32>
    %81 = arith.addf %74, %80 : vector<128x128xf32>
    %c0_80 = arith.constant 0 : index
    %c8_81 = arith.constant 8 : index
    %c1_82 = arith.constant 1 : index
    %c0_83 = arith.constant 0 : index
    %82 = vector.load %arg1[%c0_80, %c8_81, %c1_82, %c0_83] : memref<2x18x18x128xf32, #tpu.memory_space<vmem>>, vector<1x8x16x8xf32>
    %83 = vector.shape_cast %82 : vector<1x8x16x8xf32> to vector<8x16x8xf32>
    %84 = vector.shape_cast %83 : vector<8x16x8xf32> to vector<128x8xf32>
    %c1_84 = arith.constant 1 : index
    %c0_85 = arith.constant 0 : index
    %c0_86 = arith.constant 0 : index
    %85 = vector.load %arg2[%c1_84, %c0_85, %c0_86] : memref<9x8x128xf32, #tpu.memory_space<vmem>>, vector<1x8x128xf32>
    %86 = vector.shape_cast %85 : vector<1x8x128xf32> to vector<8x128xf32>
    %cst_87 = arith.constant dense<0.000000e+00> : vector<128x128xf32>
    %87 = tpu.matmul %84, %86, %cst_87 {dimension_numbers = #tpu.dot_dimension_numbers<[1], [0], [0], [1], [0, 0, 1, 1], [], []>} : vector<128x8xf32>, vector<8x128xf32>, vector<128x128xf32> -> vector<128x128xf32>
    %88 = arith.addf %81, %87 : vector<128x128xf32>
    %c0_88 = arith.constant 0 : index
    %c8_89 = arith.constant 8 : index
    %c2_90 = arith.constant 2 : index
    %c0_91 = arith.constant 0 : index
    %89 = vector.load %arg1[%c0_88, %c8_89, %c2_90, %c0_91] : memref<2x18x18x128xf32, #tpu.memory_space<vmem>>, vector<1x8x16x8xf32>
    %90 = vector.shape_cast %89 : vector<1x8x16x8xf32> to vector<8x16x8xf32>
    %91 = vector.shape_cast %90 : vector<8x16x8xf32> to vector<128x8xf32>
    %c2_92 = arith.constant 2 : index
    %c0_93 = arith.constant 0 : index
    %c0_94 = arith.constant 0 : index
    %92 = vector.load %arg2[%c2_92, %c0_93, %c0_94] : memref<9x8x128xf32, #tpu.memory_space<vmem>>, vector<1x8x128xf32>
    %93 = vector.shape_cast %92 : vector<1x8x128xf32> to vector<8x128xf32>
    %cst_95 = arith.constant dense<0.000000e+00> : vector<128x128xf32>
    %94 = tpu.matmul %91, %93, %cst_95 {dimension_numbers = #tpu.dot_dimension_numbers<[1], [0], [0], [1], [0, 0, 1, 1], [], []>} : vector<128x8xf32>, vector<8x128xf32>, vector<128x128xf32> -> vector<128x128xf32>
    %95 = arith.addf %88, %94 : vector<128x128xf32>
    %c0_96 = arith.constant 0 : index
    %c9 = arith.constant 9 : index
    %c0_97 = arith.constant 0 : index
    %c0_98 = arith.constant 0 : index
    %96 = vector.load %arg1[%c0_96, %c9, %c0_97, %c0_98] : memref<2x18x18x128xf32, #tpu.memory_space<vmem>>, vector<1x8x16x8xf32>
    %97 = vector.shape_cast %96 : vector<1x8x16x8xf32> to vector<8x16x8xf32>
    %98 = vector.shape_cast %97 : vector<8x16x8xf32> to vector<128x8xf32>
    %c3_99 = arith.constant 3 : index
    %c0_100 = arith.constant 0 : index
    %c0_101 = arith.constant 0 : index
    %99 = vector.load %arg2[%c3_99, %c0_100, %c0_101] : memref<9x8x128xf32, #tpu.memory_space<vmem>>, vector<1x8x128xf32>
    %100 = vector.shape_cast %99 : vector<1x8x128xf32> to vector<8x128xf32>
    %cst_102 = arith.constant dense<0.000000e+00> : vector<128x128xf32>
    %101 = tpu.matmul %98, %100, %cst_102 {dimension_numbers = #tpu.dot_dimension_numbers<[1], [0], [0], [1], [0, 0, 1, 1], [], []>} : vector<128x8xf32>, vector<8x128xf32>, vector<128x128xf32> -> vector<128x128xf32>
    %102 = arith.addf %95, %101 : vector<128x128xf32>
    %c0_103 = arith.constant 0 : index
    %c9_104 = arith.constant 9 : index
    %c1_105 = arith.constant 1 : index
    %c0_106 = arith.constant 0 : index
    %103 = vector.load %arg1[%c0_103, %c9_104, %c1_105, %c0_106] : memref<2x18x18x128xf32, #tpu.memory_space<vmem>>, vector<1x8x16x8xf32>
    %104 = vector.shape_cast %103 : vector<1x8x16x8xf32> to vector<8x16x8xf32>
    %105 = vector.shape_cast %104 : vector<8x16x8xf32> to vector<128x8xf32>
    %c4_107 = arith.constant 4 : index
    %c0_108 = arith.constant 0 : index
    %c0_109 = arith.constant 0 : index
    %106 = vector.load %arg2[%c4_107, %c0_108, %c0_109] : memref<9x8x128xf32, #tpu.memory_space<vmem>>, vector<1x8x128xf32>
    %107 = vector.shape_cast %106 : vector<1x8x128xf32> to vector<8x128xf32>
    %cst_110 = arith.constant dense<0.000000e+00> : vector<128x128xf32>
    %108 = tpu.matmul %105, %107, %cst_110 {dimension_numbers = #tpu.dot_dimension_numbers<[1], [0], [0], [1], [0, 0, 1, 1], [], []>} : vector<128x8xf32>, vector<8x128xf32>, vector<128x128xf32> -> vector<128x128xf32>
    %109 = arith.addf %102, %108 : vector<128x128xf32>
    %c0_111 = arith.constant 0 : index
    %c9_112 = arith.constant 9 : index
    %c2_113 = arith.constant 2 : index
    %c0_114 = arith.constant 0 : index
    %110 = vector.load %arg1[%c0_111, %c9_112, %c2_113, %c0_114] : memref<2x18x18x128xf32, #tpu.memory_space<vmem>>, vector<1x8x16x8xf32>
    %111 = vector.shape_cast %110 : vector<1x8x16x8xf32> to vector<8x16x8xf32>
    %112 = vector.shape_cast %111 : vector<8x16x8xf32> to vector<128x8xf32>
    %c5_115 = arith.constant 5 : index
    %c0_116 = arith.constant 0 : index
    %c0_117 = arith.constant 0 : index
    %113 = vector.load %arg2[%c5_115, %c0_116, %c0_117] : memref<9x8x128xf32, #tpu.memory_space<vmem>>, vector<1x8x128xf32>
    %114 = vector.shape_cast %113 : vector<1x8x128xf32> to vector<8x128xf32>
    %cst_118 = arith.constant dense<0.000000e+00> : vector<128x128xf32>
    %115 = tpu.matmul %112, %114, %cst_118 {dimension_numbers = #tpu.dot_dimension_numbers<[1], [0], [0], [1], [0, 0, 1, 1], [], []>} : vector<128x8xf32>, vector<8x128xf32>, vector<128x128xf32> -> vector<128x128xf32>
    %116 = arith.addf %109, %115 : vector<128x128xf32>
    %c0_119 = arith.constant 0 : index
    %c10 = arith.constant 10 : index
    %c0_120 = arith.constant 0 : index
    %c0_121 = arith.constant 0 : index
    %117 = vector.load %arg1[%c0_119, %c10, %c0_120, %c0_121] : memref<2x18x18x128xf32, #tpu.memory_space<vmem>>, vector<1x8x16x8xf32>
    %118 = vector.shape_cast %117 : vector<1x8x16x8xf32> to vector<8x16x8xf32>
    %119 = vector.shape_cast %118 : vector<8x16x8xf32> to vector<128x8xf32>
    %c6_122 = arith.constant 6 : index
    %c0_123 = arith.constant 0 : index
    %c0_124 = arith.constant 0 : index
    %120 = vector.load %arg2[%c6_122, %c0_123, %c0_124] : memref<9x8x128xf32, #tpu.memory_space<vmem>>, vector<1x8x128xf32>
    %121 = vector.shape_cast %120 : vector<1x8x128xf32> to vector<8x128xf32>
    %cst_125 = arith.constant dense<0.000000e+00> : vector<128x128xf32>
    %122 = tpu.matmul %119, %121, %cst_125 {dimension_numbers = #tpu.dot_dimension_numbers<[1], [0], [0], [1], [0, 0, 1, 1], [], []>} : vector<128x8xf32>, vector<8x128xf32>, vector<128x128xf32> -> vector<128x128xf32>
    %123 = arith.addf %116, %122 : vector<128x128xf32>
    %c0_126 = arith.constant 0 : index
    %c10_127 = arith.constant 10 : index
    %c1_128 = arith.constant 1 : index
    %c0_129 = arith.constant 0 : index
    %124 = vector.load %arg1[%c0_126, %c10_127, %c1_128, %c0_129] : memref<2x18x18x128xf32, #tpu.memory_space<vmem>>, vector<1x8x16x8xf32>
    %125 = vector.shape_cast %124 : vector<1x8x16x8xf32> to vector<8x16x8xf32>
    %126 = vector.shape_cast %125 : vector<8x16x8xf32> to vector<128x8xf32>
    %c7_130 = arith.constant 7 : index
    %c0_131 = arith.constant 0 : index
    %c0_132 = arith.constant 0 : index
    %127 = vector.load %arg2[%c7_130, %c0_131, %c0_132] : memref<9x8x128xf32, #tpu.memory_space<vmem>>, vector<1x8x128xf32>
    %128 = vector.shape_cast %127 : vector<1x8x128xf32> to vector<8x128xf32>
    %cst_133 = arith.constant dense<0.000000e+00> : vector<128x128xf32>
    %129 = tpu.matmul %126, %128, %cst_133 {dimension_numbers = #tpu.dot_dimension_numbers<[1], [0], [0], [1], [0, 0, 1, 1], [], []>} : vector<128x8xf32>, vector<8x128xf32>, vector<128x128xf32> -> vector<128x128xf32>
    %130 = arith.addf %123, %129 : vector<128x128xf32>
    %c0_134 = arith.constant 0 : index
    %c10_135 = arith.constant 10 : index
    %c2_136 = arith.constant 2 : index
    %c0_137 = arith.constant 0 : index
    %131 = vector.load %arg1[%c0_134, %c10_135, %c2_136, %c0_137] : memref<2x18x18x128xf32, #tpu.memory_space<vmem>>, vector<1x8x16x8xf32>
    %132 = vector.shape_cast %131 : vector<1x8x16x8xf32> to vector<8x16x8xf32>
    %133 = vector.shape_cast %132 : vector<8x16x8xf32> to vector<128x8xf32>
    %c8_138 = arith.constant 8 : index
    %c0_139 = arith.constant 0 : index
    %c0_140 = arith.constant 0 : index
    %134 = vector.load %arg2[%c8_138, %c0_139, %c0_140] : memref<9x8x128xf32, #tpu.memory_space<vmem>>, vector<1x8x128xf32>
    %135 = vector.shape_cast %134 : vector<1x8x128xf32> to vector<8x128xf32>
    %cst_141 = arith.constant dense<0.000000e+00> : vector<128x128xf32>
    %136 = tpu.matmul %133, %135, %cst_141 {dimension_numbers = #tpu.dot_dimension_numbers<[1], [0], [0], [1], [0, 0, 1, 1], [], []>} : vector<128x8xf32>, vector<8x128xf32>, vector<128x128xf32> -> vector<128x128xf32>
    %137 = arith.addf %130, %136 : vector<128x128xf32>
    %138 = vector.broadcast %0 : vector<1x128xf32> to vector<128x128xf32>
    %139 = arith.addf %137, %138 : vector<128x128xf32>
    %cst_142 = arith.constant 0.000000e+00 : f32
    %140 = vector.broadcast %cst_142 : f32 to vector<128x128xf32>
    %141 = arith.maximumf %139, %140 : vector<128x128xf32>
    %142 = vector.shape_cast %141 : vector<128x128xf32> to vector<4x2x16x128xf32>
    %cst_143 = arith.constant dense<0xFF800000> : vector<4x16x128xf32>
    %143 = vector.multi_reduction <maximumf>, %142, %cst_143 [1] : vector<4x2x16x128xf32> to vector<4x16x128xf32>
    %c0_144 = arith.constant 0 : index
    %c4_145 = arith.constant 4 : index
    %c0_146 = arith.constant 0 : index
    %c0_147 = arith.constant 0 : index
    %144 = vector.load %arg13[%c0_144, %c4_145, %c0_146, %c0_147] : memref<2x8x16x128xf32, #tpu.memory_space<vmem>>, vector<1x4x16x128xf32>
    %145 = vector.shape_cast %144 : vector<1x4x16x128xf32> to vector<4x16x128xf32>
    %146 = vector.shape_cast %143 : vector<4x16x128xf32> to vector<1x4x16x128xf32>
    tpu.vector_store %arg13[%c0_144, %c4_145, %c0_146, %c0_147], %146 {strides = array<i32>} : memref<2x8x16x128xf32, #tpu.memory_space<vmem>>, vector<1x4x16x128xf32>,
    %cst_148 = arith.constant 0.000000e+00 : f32
    %147 = vector.broadcast %cst_148 : f32 to vector<128x128xf32>
    %c1_149 = arith.constant 1 : index
    %c0_150 = arith.constant 0 : index
    %c0_151 = arith.constant 0 : index
    %c0_152 = arith.constant 0 : index
    %148 = vector.load %arg1[%c1_149, %c0_150, %c0_151, %c0_152] : memref<2x18x18x128xf32, #tpu.memory_space<vmem>>, vector<1x8x16x8xf32>
    %149 = vector.shape_cast %148 : vector<1x8x16x8xf32> to vector<8x16x8xf32>
    %150 = vector.shape_cast %149 : vector<8x16x8xf32> to vector<128x8xf32>
    %c0_153 = arith.constant 0 : index
    %c0_154 = arith.constant 0 : index
    %c0_155 = arith.constant 0 : index
    %151 = vector.load %arg2[%c0_153, %c0_154, %c0_155] : memref<9x8x128xf32, #tpu.memory_space<vmem>>, vector<1x8x128xf32>
    %152 = vector.shape_cast %151 : vector<1x8x128xf32> to vector<8x128xf32>
    %cst_156 = arith.constant dense<0.000000e+00> : vector<128x128xf32>
    %153 = tpu.matmul %150, %152, %cst_156 {dimension_numbers = #tpu.dot_dimension_numbers<[1], [0], [0], [1], [0, 0, 1, 1], [], []>} : vector<128x8xf32>, vector<8x128xf32>, vector<128x128xf32> -> vector<128x128xf32>
    %154 = arith.addf %147, %153 : vector<128x128xf32>
    %c1_157 = arith.constant 1 : index
    %c0_158 = arith.constant 0 : index
    %c1_159 = arith.constant 1 : index
    %c0_160 = arith.constant 0 : index
    %155 = vector.load %arg1[%c1_157, %c0_158, %c1_159, %c0_160] : memref<2x18x18x128xf32, #tpu.memory_space<vmem>>, vector<1x8x16x8xf32>
    %156 = vector.shape_cast %155 : vector<1x8x16x8xf32> to vector<8x16x8xf32>
    %157 = vector.shape_cast %156 : vector<8x16x8xf32> to vector<128x8xf32>
    %c1_161 = arith.constant 1 : index
    %c0_162 = arith.constant 0 : index
    %c0_163 = arith.constant 0 : index
    %158 = vector.load %arg2[%c1_161, %c0_162, %c0_163] : memref<9x8x128xf32, #tpu.memory_space<vmem>>, vector<1x8x128xf32>
    %159 = vector.shape_cast %158 : vector<1x8x128xf32> to vector<8x128xf32>
    %cst_164 = arith.constant dense<0.000000e+00> : vector<128x128xf32>
    %160 = tpu.matmul %157, %159, %cst_164 {dimension_numbers = #tpu.dot_dimension_numbers<[1], [0], [0], [1], [0, 0, 1, 1], [], []>} : vector<128x8xf32>, vector<8x128xf32>, vector<128x128xf32> -> vector<128x128xf32>
    %161 = arith.addf %154, %160 : vector<128x128xf32>
    %c1_165 = arith.constant 1 : index
    %c0_166 = arith.constant 0 : index
    %c2_167 = arith.constant 2 : index
    %c0_168 = arith.constant 0 : index
    %162 = vector.load %arg1[%c1_165, %c0_166, %c2_167, %c0_168] : memref<2x18x18x128xf32, #tpu.memory_space<vmem>>, vector<1x8x16x8xf32>
    %163 = vector.shape_cast %162 : vector<1x8x16x8xf32> to vector<8x16x8xf32>
    %164 = vector.shape_cast %163 : vector<8x16x8xf32> to vector<128x8xf32>
    %c2_169 = arith.constant 2 : index
    %c0_170 = arith.constant 0 : index
    %c0_171 = arith.constant 0 : index
    %165 = vector.load %arg2[%c2_169, %c0_170, %c0_171] : memref<9x8x128xf32, #tpu.memory_space<vmem>>, vector<1x8x128xf32>
    %166 = vector.shape_cast %165 : vector<1x8x128xf32> to vector<8x128xf32>
    %cst_172 = arith.constant dense<0.000000e+00> : vector<128x128xf32>
    %167 = tpu.matmul %164, %166, %cst_172 {dimension_numbers = #tpu.dot_dimension_numbers<[1], [0], [0], [1], [0, 0, 1, 1], [], []>} : vector<128x8xf32>, vector<8x128xf32>, vector<128x128xf32> -> vector<128x128xf32>
    %168 = arith.addf %161, %167 : vector<128x128xf32>
    %c1_173 = arith.constant 1 : index
    %c1_174 = arith.constant 1 : index
    %c0_175 = arith.constant 0 : index
    %c0_176 = arith.constant 0 : index
    %169 = vector.load %arg1[%c1_173, %c1_174, %c0_175, %c0_176] : memref<2x18x18x128xf32, #tpu.memory_space<vmem>>, vector<1x8x16x8xf32>
    %170 = vector.shape_cast %169 : vector<1x8x16x8xf32> to vector<8x16x8xf32>
    %171 = vector.shape_cast %170 : vector<8x16x8xf32> to vector<128x8xf32>
    %c3_177 = arith.constant 3 : index
    %c0_178 = arith.constant 0 : index
    %c0_179 = arith.constant 0 : index
    %172 = vector.load %arg2[%c3_177, %c0_178, %c0_179] : memref<9x8x128xf32, #tpu.memory_space<vmem>>, vector<1x8x128xf32>
    %173 = vector.shape_cast %172 : vector<1x8x128xf32> to vector<8x128xf32>
    %cst_180 = arith.constant dense<0.000000e+00> : vector<128x128xf32>
    %174 = tpu.matmul %171, %173, %cst_180 {dimension_numbers = #tpu.dot_dimension_numbers<[1], [0], [0], [1], [0, 0, 1, 1], [], []>} : vector<128x8xf32>, vector<8x128xf32>, vector<128x128xf32> -> vector<128x128xf32>
    %175 = arith.addf %168, %174 : vector<128x128xf32>
    %c1_181 = arith.constant 1 : index
    %c1_182 = arith.constant 1 : index
    %c1_183 = arith.constant 1 : index
    %c0_184 = arith.constant 0 : index
    %176 = vector.load %arg1[%c1_181, %c1_182, %c1_183, %c0_184] : memref<2x18x18x128xf32, #tpu.memory_space<vmem>>, vector<1x8x16x8xf32>
    %177 = vector.shape_cast %176 : vector<1x8x16x8xf32> to vector<8x16x8xf32>
    %178 = vector.shape_cast %177 : vector<8x16x8xf32> to vector<128x8xf32>
    %c4_185 = arith.constant 4 : index
    %c0_186 = arith.constant 0 : index
    %c0_187 = arith.constant 0 : index
    %179 = vector.load %arg2[%c4_185, %c0_186, %c0_187] : memref<9x8x128xf32, #tpu.memory_space<vmem>>, vector<1x8x128xf32>
    %180 = vector.shape_cast %179 : vector<1x8x128xf32> to vector<8x128xf32>
    %cst_188 = arith.constant dense<0.000000e+00> : vector<128x128xf32>
    %181 = tpu.matmul %178, %180, %cst_188 {dimension_numbers = #tpu.dot_dimension_numbers<[1], [0], [0], [1], [0, 0, 1, 1], [], []>} : vector<128x8xf32>, vector<8x128xf32>, vector<128x128xf32> -> vector<128x128xf32>
    %182 = arith.addf %175, %181 : vector<128x128xf32>
    %c1_189 = arith.constant 1 : index
    %c1_190 = arith.constant 1 : index
    %c2_191 = arith.constant 2 : index
    %c0_192 = arith.constant 0 : index
    %183 = vector.load %arg1[%c1_189, %c1_190, %c2_191, %c0_192] : memref<2x18x18x128xf32, #tpu.memory_space<vmem>>, vector<1x8x16x8xf32>
    %184 = vector.shape_cast %183 : vector<1x8x16x8xf32> to vector<8x16x8xf32>
    %185 = vector.shape_cast %184 : vector<8x16x8xf32> to vector<128x8xf32>
    %c5_193 = arith.constant 5 : index
    %c0_194 = arith.constant 0 : index
    %c0_195 = arith.constant 0 : index
    %186 = vector.load %arg2[%c5_193, %c0_194, %c0_195] : memref<9x8x128xf32, #tpu.memory_space<vmem>>, vector<1x8x128xf32>
    %187 = vector.shape_cast %186 : vector<1x8x128xf32> to vector<8x128xf32>
    %cst_196 = arith.constant dense<0.000000e+00> : vector<128x128xf32>
    %188 = tpu.matmul %185, %187, %cst_196 {dimension_numbers = #tpu.dot_dimension_numbers<[1], [0], [0], [1], [0, 0, 1, 1], [], []>} : vector<128x8xf32>, vector<8x128xf32>, vector<128x128xf32> -> vector<128x128xf32>
    %189 = arith.addf %182, %188 : vector<128x128xf32>
    %c1_197 = arith.constant 1 : index
    %c2_198 = arith.constant 2 : index
    %c0_199 = arith.constant 0 : index
    %c0_200 = arith.constant 0 : index
    %190 = vector.load %arg1[%c1_197, %c2_198, %c0_199, %c0_200] : memref<2x18x18x128xf32, #tpu.memory_space<vmem>>, vector<1x8x16x8xf32>
    %191 = vector.shape_cast %190 : vector<1x8x16x8xf32> to vector<8x16x8xf32>
    %192 = vector.shape_cast %191 : vector<8x16x8xf32> to vector<128x8xf32>
    %c6_201 = arith.constant 6 : index
    %c0_202 = arith.constant 0 : index
    %c0_203 = arith.constant 0 : index
    %193 = vector.load %arg2[%c6_201, %c0_202, %c0_203] : memref<9x8x128xf32, #tpu.memory_space<vmem>>, vector<1x8x128xf32>
    %194 = vector.shape_cast %193 : vector<1x8x128xf32> to vector<8x128xf32>
    %cst_204 = arith.constant dense<0.000000e+00> : vector<128x128xf32>
    %195 = tpu.matmul %192, %194, %cst_204 {dimension_numbers = #tpu.dot_dimension_numbers<[1], [0], [0], [1], [0, 0, 1, 1], [], []>} : vector<128x8xf32>, vector<8x128xf32>, vector<128x128xf32> -> vector<128x128xf32>
    %196 = arith.addf %189, %195 : vector<128x128xf32>
    %c1_205 = arith.constant 1 : index
    %c2_206 = arith.constant 2 : index
    %c1_207 = arith.constant 1 : index
    %c0_208 = arith.constant 0 : index
    %197 = vector.load %arg1[%c1_205, %c2_206, %c1_207, %c0_208] : memref<2x18x18x128xf32, #tpu.memory_space<vmem>>, vector<1x8x16x8xf32>
    %198 = vector.shape_cast %197 : vector<1x8x16x8xf32> to vector<8x16x8xf32>
    %199 = vector.shape_cast %198 : vector<8x16x8xf32> to vector<128x8xf32>
    %c7_209 = arith.constant 7 : index
    %c0_210 = arith.constant 0 : index
    %c0_211 = arith.constant 0 : index
    %200 = vector.load %arg2[%c7_209, %c0_210, %c0_211] : memref<9x8x128xf32, #tpu.memory_space<vmem>>, vector<1x8x128xf32>
    %201 = vector.shape_cast %200 : vector<1x8x128xf32> to vector<8x128xf32>
    %cst_212 = arith.constant dense<0.000000e+00> : vector<128x128xf32>
    %202 = tpu.matmul %199, %201, %cst_212 {dimension_numbers = #tpu.dot_dimension_numbers<[1], [0], [0], [1], [0, 0, 1, 1], [], []>} : vector<128x8xf32>, vector<8x128xf32>, vector<128x128xf32> -> vector<128x128xf32>
    %203 = arith.addf %196, %202 : vector<128x128xf32>
    %c1_213 = arith.constant 1 : index
    %c2_214 = arith.constant 2 : index
    %c2_215 = arith.constant 2 : index
    %c0_216 = arith.constant 0 : index
    %204 = vector.load %arg1[%c1_213, %c2_214, %c2_215, %c0_216] : memref<2x18x18x128xf32, #tpu.memory_space<vmem>>, vector<1x8x16x8xf32>
    %205 = vector.shape_cast %204 : vector<1x8x16x8xf32> to vector<8x16x8xf32>
    %206 = vector.shape_cast %205 : vector<8x16x8xf32> to vector<128x8xf32>
    %c8_217 = arith.constant 8 : index
    %c0_218 = arith.constant 0 : index
    %c0_219 = arith.constant 0 : index
    %207 = vector.load %arg2[%c8_217, %c0_218, %c0_219] : memref<9x8x128xf32, #tpu.memory_space<vmem>>, vector<1x8x128xf32>
    %208 = vector.shape_cast %207 : vector<1x8x128xf32> to vector<8x128xf32>
    %cst_220 = arith.constant dense<0.000000e+00> : vector<128x128xf32>
    %209 = tpu.matmul %206, %208, %cst_220 {dimension_numbers = #tpu.dot_dimension_numbers<[1], [0], [0], [1], [0, 0, 1, 1], [], []>} : vector<128x8xf32>, vector<8x128xf32>, vector<128x128xf32> -> vector<128x128xf32>
    %210 = arith.addf %203, %209 : vector<128x128xf32>
    %211 = vector.broadcast %0 : vector<1x128xf32> to vector<128x128xf32>
    %212 = arith.addf %210, %211 : vector<128x128xf32>
    %cst_221 = arith.constant 0.000000e+00 : f32
    %213 = vector.broadcast %cst_221 : f32 to vector<128x128xf32>
    %214 = arith.maximumf %212, %213 : vector<128x128xf32>
    %215 = vector.shape_cast %214 : vector<128x128xf32> to vector<4x2x16x128xf32>
    %cst_222 = arith.constant dense<0xFF800000> : vector<4x16x128xf32>
    %216 = vector.multi_reduction <maximumf>, %215, %cst_222 [1] : vector<4x2x16x128xf32> to vector<4x16x128xf32>
    %c1_223 = arith.constant 1 : index
    %c0_224 = arith.constant 0 : index
    %c0_225 = arith.constant 0 : index
    %c0_226 = arith.constant 0 : index
    %217 = vector.load %arg13[%c1_223, %c0_224, %c0_225, %c0_226] : memref<2x8x16x128xf32, #tpu.memory_space<vmem>>, vector<1x4x16x128xf32>
    %218 = vector.shape_cast %217 : vector<1x4x16x128xf32> to vector<4x16x128xf32>
    %219 = vector.shape_cast %216 : vector<4x16x128xf32> to vector<1x4x16x128xf32>
    tpu.vector_store %arg13[%c1_223, %c0_224, %c0_225, %c0_226], %219 {strides = array<i32>} : memref<2x8x16x128xf32, #tpu.memory_space<vmem>>, vector<1x4x16x128xf32>,
    %cst_227 = arith.constant 0.000000e+00 : f32
    %220 = vector.broadcast %cst_227 : f32 to vector<128x128xf32>
    %c1_228 = arith.constant 1 : index
    %c8_229 = arith.constant 8 : index
    %c0_230 = arith.constant 0 : index
    %c0_231 = arith.constant 0 : index
    %221 = vector.load %arg1[%c1_228, %c8_229, %c0_230, %c0_231] : memref<2x18x18x128xf32, #tpu.memory_space<vmem>>, vector<1x8x16x8xf32>
    %222 = vector.shape_cast %221 : vector<1x8x16x8xf32> to vector<8x16x8xf32>
    %223 = vector.shape_cast %222 : vector<8x16x8xf32> to vector<128x8xf32>
    %c0_232 = arith.constant 0 : index
    %c0_233 = arith.constant 0 : index
    %c0_234 = arith.constant 0 : index
    %224 = vector.load %arg2[%c0_232, %c0_233, %c0_234] : memref<9x8x128xf32, #tpu.memory_space<vmem>>, vector<1x8x128xf32>
    %225 = vector.shape_cast %224 : vector<1x8x128xf32> to vector<8x128xf32>
    %cst_235 = arith.constant dense<0.000000e+00> : vector<128x128xf32>
    %226 = tpu.matmul %223, %225, %cst_235 {dimension_numbers = #tpu.dot_dimension_numbers<[1], [0], [0], [1], [0, 0, 1, 1], [], []>} : vector<128x8xf32>, vector<8x128xf32>, vector<128x128xf32> -> vector<128x128xf32>
    %227 = arith.addf %220, %226 : vector<128x128xf32>
    %c1_236 = arith.constant 1 : index
    %c8_237 = arith.constant 8 : index
    %c1_238 = arith.constant 1 : index
    %c0_239 = arith.constant 0 : index
    %228 = vector.load %arg1[%c1_236, %c8_237, %c1_238, %c0_239] : memref<2x18x18x128xf32, #tpu.memory_space<vmem>>, vector<1x8x16x8xf32>
    %229 = vector.shape_cast %228 : vector<1x8x16x8xf32> to vector<8x16x8xf32>
    %230 = vector.shape_cast %229 : vector<8x16x8xf32> to vector<128x8xf32>
    %c1_240 = arith.constant 1 : index
    %c0_241 = arith.constant 0 : index
    %c0_242 = arith.constant 0 : index
    %231 = vector.load %arg2[%c1_240, %c0_241, %c0_242] : memref<9x8x128xf32, #tpu.memory_space<vmem>>, vector<1x8x128xf32>
    %232 = vector.shape_cast %231 : vector<1x8x128xf32> to vector<8x128xf32>
    %cst_243 = arith.constant dense<0.000000e+00> : vector<128x128xf32>
    %233 = tpu.matmul %230, %232, %cst_243 {dimension_numbers = #tpu.dot_dimension_numbers<[1], [0], [0], [1], [0, 0, 1, 1], [], []>} : vector<128x8xf32>, vector<8x128xf32>, vector<128x128xf32> -> vector<128x128xf32>
    %234 = arith.addf %227, %233 : vector<128x128xf32>
    %c1_244 = arith.constant 1 : index
    %c8_245 = arith.constant 8 : index
    %c2_246 = arith.constant 2 : index
    %c0_247 = arith.constant 0 : index
    %235 = vector.load %arg1[%c1_244, %c8_245, %c2_246, %c0_247] : memref<2x18x18x128xf32, #tpu.memory_space<vmem>>, vector<1x8x16x8xf32>
    %236 = vector.shape_cast %235 : vector<1x8x16x8xf32> to vector<8x16x8xf32>
    %237 = vector.shape_cast %236 : vector<8x16x8xf32> to vector<128x8xf32>
    %c2_248 = arith.constant 2 : index
    %c0_249 = arith.constant 0 : index
    %c0_250 = arith.constant 0 : index
    %238 = vector.load %arg2[%c2_248, %c0_249, %c0_250] : memref<9x8x128xf32, #tpu.memory_space<vmem>>, vector<1x8x128xf32>
    %239 = vector.shape_cast %238 : vector<1x8x128xf32> to vector<8x128xf32>
    %cst_251 = arith.constant dense<0.000000e+00> : vector<128x128xf32>
    %240 = tpu.matmul %237, %239, %cst_251 {dimension_numbers = #tpu.dot_dimension_numbers<[1], [0], [0], [1], [0, 0, 1, 1], [], []>} : vector<128x8xf32>, vector<8x128xf32>, vector<128x128xf32> -> vector<128x128xf32>
    %241 = arith.addf %234, %240 : vector<128x128xf32>
    %c1_252 = arith.constant 1 : index
    %c9_253 = arith.constant 9 : index
    %c0_254 = arith.constant 0 : index
    %c0_255 = arith.constant 0 : index
    %242 = vector.load %arg1[%c1_252, %c9_253, %c0_254, %c0_255] : memref<2x18x18x128xf32, #tpu.memory_space<vmem>>, vector<1x8x16x8xf32>
    %243 = vector.shape_cast %242 : vector<1x8x16x8xf32> to vector<8x16x8xf32>
    %244 = vector.shape_cast %243 : vector<8x16x8xf32> to vector<128x8xf32>
    %c3_256 = arith.constant 3 : index
    %c0_257 = arith.constant 0 : index
    %c0_258 = arith.constant 0 : index
    %245 = vector.load %arg2[%c3_256, %c0_257, %c0_258] : memref<9x8x128xf32, #tpu.memory_space<vmem>>, vector<1x8x128xf32>
    %246 = vector.shape_cast %245 : vector<1x8x128xf32> to vector<8x128xf32>
    %cst_259 = arith.constant dense<0.000000e+00> : vector<128x128xf32>
    %247 = tpu.matmul %244, %246, %cst_259 {dimension_numbers = #tpu.dot_dimension_numbers<[1], [0], [0], [1], [0, 0, 1, 1], [], []>} : vector<128x8xf32>, vector<8x128xf32>, vector<128x128xf32> -> vector<128x128xf32>
    %248 = arith.addf %241, %247 : vector<128x128xf32>
    %c1_260 = arith.constant 1 : index
    %c9_261 = arith.constant 9 : index
    %c1_262 = arith.constant 1 : index
    %c0_263 = arith.constant 0 : index
    %249 = vector.load %arg1[%c1_260, %c9_261, %c1_262, %c0_263] : memref<2x18x18x128xf32, #tpu.memory_space<vmem>>, vector<1x8x16x8xf32>
    %250 = vector.shape_cast %249 : vector<1x8x16x8xf32> to vector<8x16x8xf32>
    %251 = vector.shape_cast %250 : vector<8x16x8xf32> to vector<128x8xf32>
    %c4_264 = arith.constant 4 : index
    %c0_265 = arith.constant 0 : index
    %c0_266 = arith.constant 0 : index
    %252 = vector.load %arg2[%c4_264, %c0_265, %c0_266] : memref<9x8x128xf32, #tpu.memory_space<vmem>>, vector<1x8x128xf32>
    %253 = vector.shape_cast %252 : vector<1x8x128xf32> to vector<8x128xf32>
    %cst_267 = arith.constant dense<0.000000e+00> : vector<128x128xf32>
    %254 = tpu.matmul %251, %253, %cst_267 {dimension_numbers = #tpu.dot_dimension_numbers<[1], [0], [0], [1], [0, 0, 1, 1], [], []>} : vector<128x8xf32>, vector<8x128xf32>, vector<128x128xf32> -> vector<128x128xf32>
    %255 = arith.addf %248, %254 : vector<128x128xf32>
    %c1_268 = arith.constant 1 : index
    %c9_269 = arith.constant 9 : index
    %c2_270 = arith.constant 2 : index
    %c0_271 = arith.constant 0 : index
    %256 = vector.load %arg1[%c1_268, %c9_269, %c2_270, %c0_271] : memref<2x18x18x128xf32, #tpu.memory_space<vmem>>, vector<1x8x16x8xf32>
    %257 = vector.shape_cast %256 : vector<1x8x16x8xf32> to vector<8x16x8xf32>
    %258 = vector.shape_cast %257 : vector<8x16x8xf32> to vector<128x8xf32>
    %c5_272 = arith.constant 5 : index
    %c0_273 = arith.constant 0 : index
    %c0_274 = arith.constant 0 : index
    %259 = vector.load %arg2[%c5_272, %c0_273, %c0_274] : memref<9x8x128xf32, #tpu.memory_space<vmem>>, vector<1x8x128xf32>
    %260 = vector.shape_cast %259 : vector<1x8x128xf32> to vector<8x128xf32>
    %cst_275 = arith.constant dense<0.000000e+00> : vector<128x128xf32>
    %261 = tpu.matmul %258, %260, %cst_275 {dimension_numbers = #tpu.dot_dimension_numbers<[1], [0], [0], [1], [0, 0, 1, 1], [], []>} : vector<128x8xf32>, vector<8x128xf32>, vector<128x128xf32> -> vector<128x128xf32>
    %262 = arith.addf %255, %261 : vector<128x128xf32>
    %c1_276 = arith.constant 1 : index
    %c10_277 = arith.constant 10 : index
    %c0_278 = arith.constant 0 : index
    %c0_279 = arith.constant 0 : index
    %263 = vector.load %arg1[%c1_276, %c10_277, %c0_278, %c0_279] : memref<2x18x18x128xf32, #tpu.memory_space<vmem>>, vector<1x8x16x8xf32>
    %264 = vector.shape_cast %263 : vector<1x8x16x8xf32> to vector<8x16x8xf32>
    %265 = vector.shape_cast %264 : vector<8x16x8xf32> to vector<128x8xf32>
    %c6_280 = arith.constant 6 : index
    %c0_281 = arith.constant 0 : index
    %c0_282 = arith.constant 0 : index
    %266 = vector.load %arg2[%c6_280, %c0_281, %c0_282] : memref<9x8x128xf32, #tpu.memory_space<vmem>>, vector<1x8x128xf32>
    %267 = vector.shape_cast %266 : vector<1x8x128xf32> to vector<8x128xf32>
    %cst_283 = arith.constant dense<0.000000e+00> : vector<128x128xf32>
    %268 = tpu.matmul %265, %267, %cst_283 {dimension_numbers = #tpu.dot_dimension_numbers<[1], [0], [0], [1], [0, 0, 1, 1], [], []>} : vector<128x8xf32>, vector<8x128xf32>, vector<128x128xf32> -> vector<128x128xf32>
    %269 = arith.addf %262, %268 : vector<128x128xf32>
    %c1_284 = arith.constant 1 : index
    %c10_285 = arith.constant 10 : index
    %c1_286 = arith.constant 1 : index
    %c0_287 = arith.constant 0 : index
    %270 = vector.load %arg1[%c1_284, %c10_285, %c1_286, %c0_287] : memref<2x18x18x128xf32, #tpu.memory_space<vmem>>, vector<1x8x16x8xf32>
    %271 = vector.shape_cast %270 : vector<1x8x16x8xf32> to vector<8x16x8xf32>
    %272 = vector.shape_cast %271 : vector<8x16x8xf32> to vector<128x8xf32>
    %c7_288 = arith.constant 7 : index
    %c0_289 = arith.constant 0 : index
    %c0_290 = arith.constant 0 : index
    %273 = vector.load %arg2[%c7_288, %c0_289, %c0_290] : memref<9x8x128xf32, #tpu.memory_space<vmem>>, vector<1x8x128xf32>
    %274 = vector.shape_cast %273 : vector<1x8x128xf32> to vector<8x128xf32>
    %cst_291 = arith.constant dense<0.000000e+00> : vector<128x128xf32>
    %275 = tpu.matmul %272, %274, %cst_291 {dimension_numbers = #tpu.dot_dimension_numbers<[1], [0], [0], [1], [0, 0, 1, 1], [], []>} : vector<128x8xf32>, vector<8x128xf32>, vector<128x128xf32> -> vector<128x128xf32>
    %276 = arith.addf %269, %275 : vector<128x128xf32>
    %c1_292 = arith.constant 1 : index
    %c10_293 = arith.constant 10 : index
    %c2_294 = arith.constant 2 : index
    %c0_295 = arith.constant 0 : index
    %277 = vector.load %arg1[%c1_292, %c10_293, %c2_294, %c0_295] : memref<2x18x18x128xf32, #tpu.memory_space<vmem>>, vector<1x8x16x8xf32>
    %278 = vector.shape_cast %277 : vector<1x8x16x8xf32> to vector<8x16x8xf32>
    %279 = vector.shape_cast %278 : vector<8x16x8xf32> to vector<128x8xf32>
    %c8_296 = arith.constant 8 : index
    %c0_297 = arith.constant 0 : index
    %c0_298 = arith.constant 0 : index
    %280 = vector.load %arg2[%c8_296, %c0_297, %c0_298] : memref<9x8x128xf32, #tpu.memory_space<vmem>>, vector<1x8x128xf32>
    %281 = vector.shape_cast %280 : vector<1x8x128xf32> to vector<8x128xf32>
    %cst_299 = arith.constant dense<0.000000e+00> : vector<128x128xf32>
    %282 = tpu.matmul %279, %281, %cst_299 {dimension_numbers = #tpu.dot_dimension_numbers<[1], [0], [0], [1], [0, 0, 1, 1], [], []>} : vector<128x8xf32>, vector<8x128xf32>, vector<128x128xf32> -> vector<128x128xf32>
    %283 = arith.addf %276, %282 : vector<128x128xf32>
    %284 = vector.broadcast %0 : vector<1x128xf32> to vector<128x128xf32>
    %285 = arith.addf %283, %284 : vector<128x128xf32>
    %cst_300 = arith.constant 0.000000e+00 : f32
    %286 = vector.broadcast %cst_300 : f32 to vector<128x128xf32>
    %287 = arith.maximumf %285, %286 : vector<128x128xf32>
    %288 = vector.shape_cast %287 : vector<128x128xf32> to vector<4x2x16x128xf32>
    %cst_301 = arith.constant dense<0xFF800000> : vector<4x16x128xf32>
    %289 = vector.multi_reduction <maximumf>, %288, %cst_301 [1] : vector<4x2x16x128xf32> to vector<4x16x128xf32>
    %c1_302 = arith.constant 1 : index
    %c4_303 = arith.constant 4 : index
    %c0_304 = arith.constant 0 : index
    %c0_305 = arith.constant 0 : index
    %290 = vector.load %arg13[%c1_302, %c4_303, %c0_304, %c0_305] : memref<2x8x16x128xf32, #tpu.memory_space<vmem>>, vector<1x4x16x128xf32>
    %291 = vector.shape_cast %290 : vector<1x4x16x128xf32> to vector<4x16x128xf32>
    %292 = vector.shape_cast %289 : vector<4x16x128xf32> to vector<1x4x16x128xf32>
    tpu.vector_store %arg13[%c1_302, %c4_303, %c0_304, %c0_305], %292 {strides = array<i32>} : memref<2x8x16x128xf32, #tpu.memory_space<vmem>>, vector<1x4x16x128xf32>,
    %cst_306 = arith.constant 0.000000e+00 : f32
    %293 = vector.broadcast %cst_306 : f32 to vector<2x10x10x128xf32>
    %c0_307 = arith.constant 0 : index
    %c0_308 = arith.constant 0 : index
    %c0_309 = arith.constant 0 : index
    %c0_310 = arith.constant 0 : index
    %294 = vector.load %arg14[%c0_307, %c0_308, %c0_309, %c0_310] : memref<2x10x10x128xf32, #tpu.memory_space<vmem>>, vector<2x10x10x128xf32>
    tpu.vector_store %arg14[%c0_307, %c0_308, %c0_309, %c0_310], %293 {strides = array<i32>} : memref<2x10x10x128xf32, #tpu.memory_space<vmem>>, vector<2x10x10x128xf32>,
    %c0_311 = arith.constant 0 : index
    %c0_312 = arith.constant 0 : index
    %c0_313 = arith.constant 0 : index
    %c0_314 = arith.constant 0 : index
    %295 = vector.load %arg13[%c0_311, %c0_312, %c0_313, %c0_314] : memref<2x8x16x128xf32, #tpu.memory_space<vmem>>, vector<2x8x2x128xf32>
    %cst_315 = arith.constant dense<0xFF800000> : vector<2x8x128xf32>
    %296 = vector.multi_reduction <maximumf>, %295, %cst_315 [2] : vector<2x8x2x128xf32> to vector<2x8x128xf32>
    %c0_316 = arith.constant 0 : index
    %c1_317 = arith.constant 1 : index
    %c1_318 = arith.constant 1 : index
    %c0_319 = arith.constant 0 : index
    %297 = vector.load %arg14[%c0_316, %c1_317, %c1_318, %c0_319] : memref<2x10x10x128xf32, #tpu.memory_space<vmem>>, vector<2x1x8x128xf32>
    %298 = vector.shape_cast %297 : vector<2x1x8x128xf32> to vector<2x8x128xf32>
    %299 = vector.shape_cast %296 : vector<2x8x128xf32> to vector<2x1x8x128xf32>
    tpu.vector_store %arg14[%c0_316, %c1_317, %c1_318, %c0_319], %299 {strides = array<i32>} : memref<2x10x10x128xf32, #tpu.memory_space<vmem>>, vector<2x1x8x128xf32>,
    %c0_320 = arith.constant 0 : index
    %c0_321 = arith.constant 0 : index
    %c2_322 = arith.constant 2 : index
    %c0_323 = arith.constant 0 : index
    %300 = vector.load %arg13[%c0_320, %c0_321, %c2_322, %c0_323] : memref<2x8x16x128xf32, #tpu.memory_space<vmem>>, vector<2x8x2x128xf32>
    %cst_324 = arith.constant dense<0xFF800000> : vector<2x8x128xf32>
    %301 = vector.multi_reduction <maximumf>, %300, %cst_324 [2] : vector<2x8x2x128xf32> to vector<2x8x128xf32>
    %c0_325 = arith.constant 0 : index
    %c2_326 = arith.constant 2 : index
    %c1_327 = arith.constant 1 : index
    %c0_328 = arith.constant 0 : index
    %302 = vector.load %arg14[%c0_325, %c2_326, %c1_327, %c0_328] : memref<2x10x10x128xf32, #tpu.memory_space<vmem>>, vector<2x1x8x128xf32>
    %303 = vector.shape_cast %302 : vector<2x1x8x128xf32> to vector<2x8x128xf32>
    %304 = vector.shape_cast %301 : vector<2x8x128xf32> to vector<2x1x8x128xf32>
    tpu.vector_store %arg14[%c0_325, %c2_326, %c1_327, %c0_328], %304 {strides = array<i32>} : memref<2x10x10x128xf32, #tpu.memory_space<vmem>>, vector<2x1x8x128xf32>,
    %c0_329 = arith.constant 0 : index
    %c0_330 = arith.constant 0 : index
    %c4_331 = arith.constant 4 : index
    %c0_332 = arith.constant 0 : index
    %305 = vector.load %arg13[%c0_329, %c0_330, %c4_331, %c0_332] : memref<2x8x16x128xf32, #tpu.memory_space<vmem>>, vector<2x8x2x128xf32>
    %cst_333 = arith.constant dense<0xFF800000> : vector<2x8x128xf32>
    %306 = vector.multi_reduction <maximumf>, %305, %cst_333 [2] : vector<2x8x2x128xf32> to vector<2x8x128xf32>
    %c0_334 = arith.constant 0 : index
    %c3_335 = arith.constant 3 : index
    %c1_336 = arith.constant 1 : index
    %c0_337 = arith.constant 0 : index
    %307 = vector.load %arg14[%c0_334, %c3_335, %c1_336, %c0_337] : memref<2x10x10x128xf32, #tpu.memory_space<vmem>>, vector<2x1x8x128xf32>
    %308 = vector.shape_cast %307 : vector<2x1x8x128xf32> to vector<2x8x128xf32>
    %309 = vector.shape_cast %306 : vector<2x8x128xf32> to vector<2x1x8x128xf32>
    tpu.vector_store %arg14[%c0_334, %c3_335, %c1_336, %c0_337], %309 {strides = array<i32>} : memref<2x10x10x128xf32, #tpu.memory_space<vmem>>, vector<2x1x8x128xf32>,
    %c0_338 = arith.constant 0 : index
    %c0_339 = arith.constant 0 : index
    %c6_340 = arith.constant 6 : index
    %c0_341 = arith.constant 0 : index
    %310 = vector.load %arg13[%c0_338, %c0_339, %c6_340, %c0_341] : memref<2x8x16x128xf32, #tpu.memory_space<vmem>>, vector<2x8x2x128xf32>
    %cst_342 = arith.constant dense<0xFF800000> : vector<2x8x128xf32>
    %311 = vector.multi_reduction <maximumf>, %310, %cst_342 [2] : vector<2x8x2x128xf32> to vector<2x8x128xf32>
    %c0_343 = arith.constant 0 : index
    %c4_344 = arith.constant 4 : index
    %c1_345 = arith.constant 1 : index
    %c0_346 = arith.constant 0 : index
    %312 = vector.load %arg14[%c0_343, %c4_344, %c1_345, %c0_346] : memref<2x10x10x128xf32, #tpu.memory_space<vmem>>, vector<2x1x8x128xf32>
    %313 = vector.shape_cast %312 : vector<2x1x8x128xf32> to vector<2x8x128xf32>
    %314 = vector.shape_cast %311 : vector<2x8x128xf32> to vector<2x1x8x128xf32>
    tpu.vector_store %arg14[%c0_343, %c4_344, %c1_345, %c0_346], %314 {strides = array<i32>} : memref<2x10x10x128xf32, #tpu.memory_space<vmem>>, vector<2x1x8x128xf32>,
    %c0_347 = arith.constant 0 : index
    %c0_348 = arith.constant 0 : index
    %c8_349 = arith.constant 8 : index
    %c0_350 = arith.constant 0 : index
    %315 = vector.load %arg13[%c0_347, %c0_348, %c8_349, %c0_350] : memref<2x8x16x128xf32, #tpu.memory_space<vmem>>, vector<2x8x2x128xf32>
    %cst_351 = arith.constant dense<0xFF800000> : vector<2x8x128xf32>
    %316 = vector.multi_reduction <maximumf>, %315, %cst_351 [2] : vector<2x8x2x128xf32> to vector<2x8x128xf32>
    %c0_352 = arith.constant 0 : index
    %c5_353 = arith.constant 5 : index
    %c1_354 = arith.constant 1 : index
    %c0_355 = arith.constant 0 : index
    %317 = vector.load %arg14[%c0_352, %c5_353, %c1_354, %c0_355] : memref<2x10x10x128xf32, #tpu.memory_space<vmem>>, vector<2x1x8x128xf32>
    %318 = vector.shape_cast %317 : vector<2x1x8x128xf32> to vector<2x8x128xf32>
    %319 = vector.shape_cast %316 : vector<2x8x128xf32> to vector<2x1x8x128xf32>
    tpu.vector_store %arg14[%c0_352, %c5_353, %c1_354, %c0_355], %319 {strides = array<i32>} : memref<2x10x10x128xf32, #tpu.memory_space<vmem>>, vector<2x1x8x128xf32>,
    %c0_356 = arith.constant 0 : index
    %c0_357 = arith.constant 0 : index
    %c10_358 = arith.constant 10 : index
    %c0_359 = arith.constant 0 : index
    %320 = vector.load %arg13[%c0_356, %c0_357, %c10_358, %c0_359] : memref<2x8x16x128xf32, #tpu.memory_space<vmem>>, vector<2x8x2x128xf32>
    %cst_360 = arith.constant dense<0xFF800000> : vector<2x8x128xf32>
    %321 = vector.multi_reduction <maximumf>, %320, %cst_360 [2] : vector<2x8x2x128xf32> to vector<2x8x128xf32>
    %c0_361 = arith.constant 0 : index
    %c6_362 = arith.constant 6 : index
    %c1_363 = arith.constant 1 : index
    %c0_364 = arith.constant 0 : index
    %322 = vector.load %arg14[%c0_361, %c6_362, %c1_363, %c0_364] : memref<2x10x10x128xf32, #tpu.memory_space<vmem>>, vector<2x1x8x128xf32>
    %323 = vector.shape_cast %322 : vector<2x1x8x128xf32> to vector<2x8x128xf32>
    %324 = vector.shape_cast %321 : vector<2x8x128xf32> to vector<2x1x8x128xf32>
    tpu.vector_store %arg14[%c0_361, %c6_362, %c1_363, %c0_364], %324 {strides = array<i32>} : memref<2x10x10x128xf32, #tpu.memory_space<vmem>>, vector<2x1x8x128xf32>,
    %c0_365 = arith.constant 0 : index
    %c0_366 = arith.constant 0 : index
    %c12 = arith.constant 12 : index
    %c0_367 = arith.constant 0 : index
    %325 = vector.load %arg13[%c0_365, %c0_366, %c12, %c0_367] : memref<2x8x16x128xf32, #tpu.memory_space<vmem>>, vector<2x8x2x128xf32>
    %cst_368 = arith.constant dense<0xFF800000> : vector<2x8x128xf32>
    %326 = vector.multi_reduction <maximumf>, %325, %cst_368 [2] : vector<2x8x2x128xf32> to vector<2x8x128xf32>
    %c0_369 = arith.constant 0 : index
    %c7_370 = arith.constant 7 : index
    %c1_371 = arith.constant 1 : index
    %c0_372 = arith.constant 0 : index
    %327 = vector.load %arg14[%c0_369, %c7_370, %c1_371, %c0_372] : memref<2x10x10x128xf32, #tpu.memory_space<vmem>>, vector<2x1x8x128xf32>
    %328 = vector.shape_cast %327 : vector<2x1x8x128xf32> to vector<2x8x128xf32>
    %329 = vector.shape_cast %326 : vector<2x8x128xf32> to vector<2x1x8x128xf32>
    tpu.vector_store %arg14[%c0_369, %c7_370, %c1_371, %c0_372], %329 {strides = array<i32>} : memref<2x10x10x128xf32, #tpu.memory_space<vmem>>, vector<2x1x8x128xf32>,
    %c0_373 = arith.constant 0 : index
    %c0_374 = arith.constant 0 : index
    %c14 = arith.constant 14 : index
    %c0_375 = arith.constant 0 : index
    %330 = vector.load %arg13[%c0_373, %c0_374, %c14, %c0_375] : memref<2x8x16x128xf32, #tpu.memory_space<vmem>>, vector<2x8x2x128xf32>
    %cst_376 = arith.constant dense<0xFF800000> : vector<2x8x128xf32>
    %331 = vector.multi_reduction <maximumf>, %330, %cst_376 [2] : vector<2x8x2x128xf32> to vector<2x8x128xf32>
    %c0_377 = arith.constant 0 : index
    %c8_378 = arith.constant 8 : index
    %c1_379 = arith.constant 1 : index
    %c0_380 = arith.constant 0 : index
    %332 = vector.load %arg14[%c0_377, %c8_378, %c1_379, %c0_380] : memref<2x10x10x128xf32, #tpu.memory_space<vmem>>, vector<2x1x8x128xf32>
    %333 = vector.shape_cast %332 : vector<2x1x8x128xf32> to vector<2x8x128xf32>
    %334 = vector.shape_cast %331 : vector<2x8x128xf32> to vector<2x1x8x128xf32>
    tpu.vector_store %arg14[%c0_377, %c8_378, %c1_379, %c0_380], %334 {strides = array<i32>} : memref<2x10x10x128xf32, #tpu.memory_space<vmem>>, vector<2x1x8x128xf32>,
    %cst_381 = arith.constant 0.000000e+00 : f32
    %335 = vector.broadcast %cst_381 : f32 to vector<128x128xf32>
    %c0_382 = arith.constant 0 : index
    %c0_383 = arith.constant 0 : index
    %c0_384 = arith.constant 0 : index
    %c0_385 = arith.constant 0 : index
    %336 = vector.load %arg14[%c0_382, %c0_383, %c0_384, %c0_385] : memref<2x10x10x128xf32, #tpu.memory_space<vmem>>, vector<2x8x8x8xf32>
    %337 = vector.shape_cast %336 : vector<2x8x8x8xf32> to vector<128x8xf32>
    %c0_386 = arith.constant 0 : index
    %c0_387 = arith.constant 0 : index
    %c0_388 = arith.constant 0 : index
    %338 = vector.load %arg4[%c0_386, %c0_387, %c0_388] : memref<9x8x128xf32, #tpu.memory_space<vmem>>, vector<1x8x128xf32>
    %339 = vector.shape_cast %338 : vector<1x8x128xf32> to vector<8x128xf32>
    %cst_389 = arith.constant dense<0.000000e+00> : vector<128x128xf32>
    %340 = tpu.matmul %337, %339, %cst_389 {dimension_numbers = #tpu.dot_dimension_numbers<[1], [0], [0], [1], [0, 0, 1, 1], [], []>} : vector<128x8xf32>, vector<8x128xf32>, vector<128x128xf32> -> vector<128x128xf32>
    %341 = arith.addf %335, %340 : vector<128x128xf32>
    %c0_390 = arith.constant 0 : index
    %c1_391 = arith.constant 1 : index
    %c0_392 = arith.constant 0 : index
    %c0_393 = arith.constant 0 : index
    %342 = vector.load %arg14[%c0_390, %c1_391, %c0_392, %c0_393] : memref<2x10x10x128xf32, #tpu.memory_space<vmem>>, vector<2x8x8x8xf32>
    %343 = vector.shape_cast %342 : vector<2x8x8x8xf32> to vector<128x8xf32>
    %c1_394 = arith.constant 1 : index
    %c0_395 = arith.constant 0 : index
    %c0_396 = arith.constant 0 : index
    %344 = vector.load %arg4[%c1_394, %c0_395, %c0_396] : memref<9x8x128xf32, #tpu.memory_space<vmem>>, vector<1x8x128xf32>
    %345 = vector.shape_cast %344 : vector<1x8x128xf32> to vector<8x128xf32>
    %cst_397 = arith.constant dense<0.000000e+00> : vector<128x128xf32>
    %346 = tpu.matmul %343, %345, %cst_397 {dimension_numbers = #tpu.dot_dimension_numbers<[1], [0], [0], [1], [0, 0, 1, 1], [], []>} : vector<128x8xf32>, vector<8x128xf32>, vector<128x128xf32> -> vector<128x128xf32>
    %347 = arith.addf %341, %346 : vector<128x128xf32>
    %c0_398 = arith.constant 0 : index
    %c2_399 = arith.constant 2 : index
    %c0_400 = arith.constant 0 : index
    %c0_401 = arith.constant 0 : index
    %348 = vector.load %arg14[%c0_398, %c2_399, %c0_400, %c0_401] : memref<2x10x10x128xf32, #tpu.memory_space<vmem>>, vector<2x8x8x8xf32>
    %349 = vector.shape_cast %348 : vector<2x8x8x8xf32> to vector<128x8xf32>
    %c2_402 = arith.constant 2 : index
    %c0_403 = arith.constant 0 : index
    %c0_404 = arith.constant 0 : index
    %350 = vector.load %arg4[%c2_402, %c0_403, %c0_404] : memref<9x8x128xf32, #tpu.memory_space<vmem>>, vector<1x8x128xf32>
    %351 = vector.shape_cast %350 : vector<1x8x128xf32> to vector<8x128xf32>
    %cst_405 = arith.constant dense<0.000000e+00> : vector<128x128xf32>
    %352 = tpu.matmul %349, %351, %cst_405 {dimension_numbers = #tpu.dot_dimension_numbers<[1], [0], [0], [1], [0, 0, 1, 1], [], []>} : vector<128x8xf32>, vector<8x128xf32>, vector<128x128xf32> -> vector<128x128xf32>
    %353 = arith.addf %347, %352 : vector<128x128xf32>
    %c0_406 = arith.constant 0 : index
    %c0_407 = arith.constant 0 : index
    %c1_408 = arith.constant 1 : index
    %c0_409 = arith.constant 0 : index
    %354 = vector.load %arg14[%c0_406, %c0_407, %c1_408, %c0_409] : memref<2x10x10x128xf32, #tpu.memory_space<vmem>>, vector<2x8x8x8xf32>
    %355 = vector.shape_cast %354 : vector<2x8x8x8xf32> to vector<128x8xf32>
    %c3_410 = arith.constant 3 : index
    %c0_411 = arith.constant 0 : index
    %c0_412 = arith.constant 0 : index
    %356 = vector.load %arg4[%c3_410, %c0_411, %c0_412] : memref<9x8x128xf32, #tpu.memory_space<vmem>>, vector<1x8x128xf32>
    %357 = vector.shape_cast %356 : vector<1x8x128xf32> to vector<8x128xf32>
    %cst_413 = arith.constant dense<0.000000e+00> : vector<128x128xf32>
    %358 = tpu.matmul %355, %357, %cst_413 {dimension_numbers = #tpu.dot_dimension_numbers<[1], [0], [0], [1], [0, 0, 1, 1], [], []>} : vector<128x8xf32>, vector<8x128xf32>, vector<128x128xf32> -> vector<128x128xf32>
    %359 = arith.addf %353, %358 : vector<128x128xf32>
    %c0_414 = arith.constant 0 : index
    %c1_415 = arith.constant 1 : index
    %c1_416 = arith.constant 1 : index
    %c0_417 = arith.constant 0 : index
    %360 = vector.load %arg14[%c0_414, %c1_415, %c1_416, %c0_417] : memref<2x10x10x128xf32, #tpu.memory_space<vmem>>, vector<2x8x8x8xf32>
    %361 = vector.shape_cast %360 : vector<2x8x8x8xf32> to vector<128x8xf32>
    %c4_418 = arith.constant 4 : index
    %c0_419 = arith.constant 0 : index
    %c0_420 = arith.constant 0 : index
    %362 = vector.load %arg4[%c4_418, %c0_419, %c0_420] : memref<9x8x128xf32, #tpu.memory_space<vmem>>, vector<1x8x128xf32>
    %363 = vector.shape_cast %362 : vector<1x8x128xf32> to vector<8x128xf32>
    %cst_421 = arith.constant dense<0.000000e+00> : vector<128x128xf32>
    %364 = tpu.matmul %361, %363, %cst_421 {dimension_numbers = #tpu.dot_dimension_numbers<[1], [0], [0], [1], [0, 0, 1, 1], [], []>} : vector<128x8xf32>, vector<8x128xf32>, vector<128x128xf32> -> vector<128x128xf32>
    %365 = arith.addf %359, %364 : vector<128x128xf32>
    %c0_422 = arith.constant 0 : index
    %c2_423 = arith.constant 2 : index
    %c1_424 = arith.constant 1 : index
    %c0_425 = arith.constant 0 : index
    %366 = vector.load %arg14[%c0_422, %c2_423, %c1_424, %c0_425] : memref<2x10x10x128xf32, #tpu.memory_space<vmem>>, vector<2x8x8x8xf32>
    %367 = vector.shape_cast %366 : vector<2x8x8x8xf32> to vector<128x8xf32>
    %c5_426 = arith.constant 5 : index
    %c0_427 = arith.constant 0 : index
    %c0_428 = arith.constant 0 : index
    %368 = vector.load %arg4[%c5_426, %c0_427, %c0_428] : memref<9x8x128xf32, #tpu.memory_space<vmem>>, vector<1x8x128xf32>
    %369 = vector.shape_cast %368 : vector<1x8x128xf32> to vector<8x128xf32>
    %cst_429 = arith.constant dense<0.000000e+00> : vector<128x128xf32>
    %370 = tpu.matmul %367, %369, %cst_429 {dimension_numbers = #tpu.dot_dimension_numbers<[1], [0], [0], [1], [0, 0, 1, 1], [], []>} : vector<128x8xf32>, vector<8x128xf32>, vector<128x128xf32> -> vector<128x128xf32>
    %371 = arith.addf %365, %370 : vector<128x128xf32>
    %c0_430 = arith.constant 0 : index
    %c0_431 = arith.constant 0 : index
    %c2_432 = arith.constant 2 : index
    %c0_433 = arith.constant 0 : index
    %372 = vector.load %arg14[%c0_430, %c0_431, %c2_432, %c0_433] : memref<2x10x10x128xf32, #tpu.memory_space<vmem>>, vector<2x8x8x8xf32>
    %373 = vector.shape_cast %372 : vector<2x8x8x8xf32> to vector<128x8xf32>
    %c6_434 = arith.constant 6 : index
    %c0_435 = arith.constant 0 : index
    %c0_436 = arith.constant 0 : index
    %374 = vector.load %arg4[%c6_434, %c0_435, %c0_436] : memref<9x8x128xf32, #tpu.memory_space<vmem>>, vector<1x8x128xf32>
    %375 = vector.shape_cast %374 : vector<1x8x128xf32> to vector<8x128xf32>
    %cst_437 = arith.constant dense<0.000000e+00> : vector<128x128xf32>
    %376 = tpu.matmul %373, %375, %cst_437 {dimension_numbers = #tpu.dot_dimension_numbers<[1], [0], [0], [1], [0, 0, 1, 1], [], []>} : vector<128x8xf32>, vector<8x128xf32>, vector<128x128xf32> -> vector<128x128xf32>
    %377 = arith.addf %371, %376 : vector<128x128xf32>
    %c0_438 = arith.constant 0 : index
    %c1_439 = arith.constant 1 : index
    %c2_440 = arith.constant 2 : index
    %c0_441 = arith.constant 0 : index
    %378 = vector.load %arg14[%c0_438, %c1_439, %c2_440, %c0_441] : memref<2x10x10x128xf32, #tpu.memory_space<vmem>>, vector<2x8x8x8xf32>
    %379 = vector.shape_cast %378 : vector<2x8x8x8xf32> to vector<128x8xf32>
    %c7_442 = arith.constant 7 : index
    %c0_443 = arith.constant 0 : index
    %c0_444 = arith.constant 0 : index
    %380 = vector.load %arg4[%c7_442, %c0_443, %c0_444] : memref<9x8x128xf32, #tpu.memory_space<vmem>>, vector<1x8x128xf32>
    %381 = vector.shape_cast %380 : vector<1x8x128xf32> to vector<8x128xf32>
    %cst_445 = arith.constant dense<0.000000e+00> : vector<128x128xf32>
    %382 = tpu.matmul %379, %381, %cst_445 {dimension_numbers = #tpu.dot_dimension_numbers<[1], [0], [0], [1], [0, 0, 1, 1], [], []>} : vector<128x8xf32>, vector<8x128xf32>, vector<128x128xf32> -> vector<128x128xf32>
    %383 = arith.addf %377, %382 : vector<128x128xf32>
    %c0_446 = arith.constant 0 : index
    %c2_447 = arith.constant 2 : index
    %c2_448 = arith.constant 2 : index
    %c0_449 = arith.constant 0 : index
    %384 = vector.load %arg14[%c0_446, %c2_447, %c2_448, %c0_449] : memref<2x10x10x128xf32, #tpu.memory_space<vmem>>, vector<2x8x8x8xf32>
    %385 = vector.shape_cast %384 : vector<2x8x8x8xf32> to vector<128x8xf32>
    %c8_450 = arith.constant 8 : index
    %c0_451 = arith.constant 0 : index
    %c0_452 = arith.constant 0 : index
    %386 = vector.load %arg4[%c8_450, %c0_451, %c0_452] : memref<9x8x128xf32, #tpu.memory_space<vmem>>, vector<1x8x128xf32>
    %387 = vector.shape_cast %386 : vector<1x8x128xf32> to vector<8x128xf32>
    %cst_453 = arith.constant dense<0.000000e+00> : vector<128x128xf32>
    %388 = tpu.matmul %385, %387, %cst_453 {dimension_numbers = #tpu.dot_dimension_numbers<[1], [0], [0], [1], [0, 0, 1, 1], [], []>} : vector<128x8xf32>, vector<8x128xf32>, vector<128x128xf32> -> vector<128x128xf32>
    %389 = arith.addf %383, %388 : vector<128x128xf32>
    %c0_454 = arith.constant 0 : index
    %c0_455 = arith.constant 0 : index
    %390 = vector.load %arg5[%c0_454, %c0_455] : memref<1x128xf32, #tpu.memory_space<vmem>>, vector<1x128xf32>
    %391 = vector.broadcast %390 : vector<1x128xf32> to vector<128x128xf32>
    %392 = arith.addf %389, %391 : vector<128x128xf32>
    %cst_456 = arith.constant 0.000000e+00 : f32
    %393 = vector.broadcast %cst_456 : f32 to vector<128x128xf32>
    %394 = arith.maximumf %392, %393 : vector<128x128xf32>
    %cst_457 = arith.constant 0.000000e+00 : f32
    %395 = vector.broadcast %cst_457 : f32 to vector<8x4x8x128xf32>
    %c0_458 = arith.constant 0 : index
    %c0_459 = arith.constant 0 : index
    %c0_460 = arith.constant 0 : index
    %c0_461 = arith.constant 0 : index
    %396 = vector.load %arg15[%c0_458, %c0_459, %c0_460, %c0_461] : memref<8x4x8x128xf32, #tpu.memory_space<vmem>>, vector<8x4x8x128xf32>
    tpu.vector_store %arg15[%c0_458, %c0_459, %c0_460, %c0_461], %395 {strides = array<i32>} : memref<8x4x8x128xf32, #tpu.memory_space<vmem>>, vector<8x4x8x128xf32>,
    %397 = vector.shape_cast %394 : vector<128x128xf32> to vector<2x4x2x8x128xf32>
    %cst_462 = arith.constant dense<0xFF800000> : vector<2x4x8x128xf32>
    %398 = vector.multi_reduction <maximumf>, %397, %cst_462 [2] : vector<2x4x2x8x128xf32> to vector<2x4x8x128xf32>
    %c0_463 = arith.constant 0 : index
    %c0_464 = arith.constant 0 : index
    %c0_465 = arith.constant 0 : index
    %c0_466 = arith.constant 0 : index
    %399 = vector.load %arg15[%c0_463, %c0_464, %c0_465, %c0_466] : memref<8x4x8x128xf32, #tpu.memory_space<vmem>>, vector<2x4x8x128xf32>
    tpu.vector_store %arg15[%c0_463, %c0_464, %c0_465, %c0_466], %398 {strides = array<i32>} : memref<8x4x8x128xf32, #tpu.memory_space<vmem>>, vector<2x4x8x128xf32>,
    %cst_467 = arith.constant 0.000000e+00 : f32
    %400 = vector.broadcast %cst_467 : f32 to vector<8x128xf32>
    %c0_468 = arith.constant 0 : index
    %c0_469 = arith.constant 0 : index
    %c0_470 = arith.constant 0 : index
    %c0_471 = arith.constant 0 : index
    %401 = vector.load %arg15[%c0_468, %c0_469, %c0_470, %c0_471] : memref<8x4x8x128xf32, #tpu.memory_space<vmem>>, vector<8x1x2x16xf32>
    %402 = vector.shape_cast %401 : vector<8x1x2x16xf32> to vector<8x2x16xf32>
    %cst_472 = arith.constant dense<0xFF800000> : vector<8x16xf32>
    %403 = vector.multi_reduction <maximumf>, %402, %cst_472 [1] : vector<8x2x16xf32> to vector<8x16xf32>
    %c0_473 = arith.constant 0 : index
    %c0_474 = arith.constant 0 : index
    %c0_475 = arith.constant 0 : index
    %404 = vector.load %arg6[%c0_473, %c0_474, %c0_475] : memref<16x16x128xf32, #tpu.memory_space<vmem>>, vector<1x16x128xf32>
    %405 = vector.shape_cast %404 : vector<1x16x128xf32> to vector<16x128xf32>
    %cst_476 = arith.constant dense<0.000000e+00> : vector<8x128xf32>
    %406 = tpu.matmul %403, %405, %cst_476 {dimension_numbers = #tpu.dot_dimension_numbers<[1], [0], [0], [1], [0, 0, 1, 1], [], []>} : vector<8x16xf32>, vector<16x128xf32>, vector<8x128xf32> -> vector<8x128xf32>
    %407 = arith.addf %400, %406 : vector<8x128xf32>
    %c0_477 = arith.constant 0 : index
    %c1_478 = arith.constant 1 : index
    %c0_479 = arith.constant 0 : index
    %c0_480 = arith.constant 0 : index
    %408 = vector.load %arg15[%c0_477, %c1_478, %c0_479, %c0_480] : memref<8x4x8x128xf32, #tpu.memory_space<vmem>>, vector<8x1x2x16xf32>
    %409 = vector.shape_cast %408 : vector<8x1x2x16xf32> to vector<8x2x16xf32>
    %cst_481 = arith.constant dense<0xFF800000> : vector<8x16xf32>
    %410 = vector.multi_reduction <maximumf>, %409, %cst_481 [1] : vector<8x2x16xf32> to vector<8x16xf32>
    %c1_482 = arith.constant 1 : index
    %c0_483 = arith.constant 0 : index
    %c0_484 = arith.constant 0 : index
    %411 = vector.load %arg6[%c1_482, %c0_483, %c0_484] : memref<16x16x128xf32, #tpu.memory_space<vmem>>, vector<1x16x128xf32>
    %412 = vector.shape_cast %411 : vector<1x16x128xf32> to vector<16x128xf32>
    %cst_485 = arith.constant dense<0.000000e+00> : vector<8x128xf32>
    %413 = tpu.matmul %410, %412, %cst_485 {dimension_numbers = #tpu.dot_dimension_numbers<[1], [0], [0], [1], [0, 0, 1, 1], [], []>} : vector<8x16xf32>, vector<16x128xf32>, vector<8x128xf32> -> vector<8x128xf32>
    %414 = arith.addf %407, %413 : vector<8x128xf32>
    %c0_486 = arith.constant 0 : index
    %c2_487 = arith.constant 2 : index
    %c0_488 = arith.constant 0 : index
    %c0_489 = arith.constant 0 : index
    %415 = vector.load %arg15[%c0_486, %c2_487, %c0_488, %c0_489] : memref<8x4x8x128xf32, #tpu.memory_space<vmem>>, vector<8x1x2x16xf32>
    %416 = vector.shape_cast %415 : vector<8x1x2x16xf32> to vector<8x2x16xf32>
    %cst_490 = arith.constant dense<0xFF800000> : vector<8x16xf32>
    %417 = vector.multi_reduction <maximumf>, %416, %cst_490 [1] : vector<8x2x16xf32> to vector<8x16xf32>
    %c2_491 = arith.constant 2 : index
    %c0_492 = arith.constant 0 : index
    %c0_493 = arith.constant 0 : index
    %418 = vector.load %arg6[%c2_491, %c0_492, %c0_493] : memref<16x16x128xf32, #tpu.memory_space<vmem>>, vector<1x16x128xf32>
    %419 = vector.shape_cast %418 : vector<1x16x128xf32> to vector<16x128xf32>
    %cst_494 = arith.constant dense<0.000000e+00> : vector<8x128xf32>
    %420 = tpu.matmul %417, %419, %cst_494 {dimension_numbers = #tpu.dot_dimension_numbers<[1], [0], [0], [1], [0, 0, 1, 1], [], []>} : vector<8x16xf32>, vector<16x128xf32>, vector<8x128xf32> -> vector<8x128xf32>
    %421 = arith.addf %414, %420 : vector<8x128xf32>
    %c0_495 = arith.constant 0 : index
    %c3_496 = arith.constant 3 : index
    %c0_497 = arith.constant 0 : index
    %c0_498 = arith.constant 0 : index
    %422 = vector.load %arg15[%c0_495, %c3_496, %c0_497, %c0_498] : memref<8x4x8x128xf32, #tpu.memory_space<vmem>>, vector<8x1x2x16xf32>
    %423 = vector.shape_cast %422 : vector<8x1x2x16xf32> to vector<8x2x16xf32>
    %cst_499 = arith.constant dense<0xFF800000> : vector<8x16xf32>
    %424 = vector.multi_reduction <maximumf>, %423, %cst_499 [1] : vector<8x2x16xf32> to vector<8x16xf32>
    %c3_500 = arith.constant 3 : index
    %c0_501 = arith.constant 0 : index
    %c0_502 = arith.constant 0 : index
    %425 = vector.load %arg6[%c3_500, %c0_501, %c0_502] : memref<16x16x128xf32, #tpu.memory_space<vmem>>, vector<1x16x128xf32>
    %426 = vector.shape_cast %425 : vector<1x16x128xf32> to vector<16x128xf32>
    %cst_503 = arith.constant dense<0.000000e+00> : vector<8x128xf32>
    %427 = tpu.matmul %424, %426, %cst_503 {dimension_numbers = #tpu.dot_dimension_numbers<[1], [0], [0], [1], [0, 0, 1, 1], [], []>} : vector<8x16xf32>, vector<16x128xf32>, vector<8x128xf32> -> vector<8x128xf32>
    %428 = arith.addf %421, %427 : vector<8x128xf32>
    %c0_504 = arith.constant 0 : index
    %c0_505 = arith.constant 0 : index
    %c2_506 = arith.constant 2 : index
    %c0_507 = arith.constant 0 : index
    %429 = vector.load %arg15[%c0_504, %c0_505, %c2_506, %c0_507] : memref<8x4x8x128xf32, #tpu.memory_space<vmem>>, vector<8x1x2x16xf32>
    %430 = vector.shape_cast %429 : vector<8x1x2x16xf32> to vector<8x2x16xf32>
    %cst_508 = arith.constant dense<0xFF800000> : vector<8x16xf32>
    %431 = vector.multi_reduction <maximumf>, %430, %cst_508 [1] : vector<8x2x16xf32> to vector<8x16xf32>
    %c4_509 = arith.constant 4 : index
    %c0_510 = arith.constant 0 : index
    %c0_511 = arith.constant 0 : index
    %432 = vector.load %arg6[%c4_509, %c0_510, %c0_511] : memref<16x16x128xf32, #tpu.memory_space<vmem>>, vector<1x16x128xf32>
    %433 = vector.shape_cast %432 : vector<1x16x128xf32> to vector<16x128xf32>
    %cst_512 = arith.constant dense<0.000000e+00> : vector<8x128xf32>
    %434 = tpu.matmul %431, %433, %cst_512 {dimension_numbers = #tpu.dot_dimension_numbers<[1], [0], [0], [1], [0, 0, 1, 1], [], []>} : vector<8x16xf32>, vector<16x128xf32>, vector<8x128xf32> -> vector<8x128xf32>
    %435 = arith.addf %428, %434 : vector<8x128xf32>
    %c0_513 = arith.constant 0 : index
    %c1_514 = arith.constant 1 : index
    %c2_515 = arith.constant 2 : index
    %c0_516 = arith.constant 0 : index
    %436 = vector.load %arg15[%c0_513, %c1_514, %c2_515, %c0_516] : memref<8x4x8x128xf32, #tpu.memory_space<vmem>>, vector<8x1x2x16xf32>
    %437 = vector.shape_cast %436 : vector<8x1x2x16xf32> to vector<8x2x16xf32>
    %cst_517 = arith.constant dense<0xFF800000> : vector<8x16xf32>
    %438 = vector.multi_reduction <maximumf>, %437, %cst_517 [1] : vector<8x2x16xf32> to vector<8x16xf32>
    %c5_518 = arith.constant 5 : index
    %c0_519 = arith.constant 0 : index
    %c0_520 = arith.constant 0 : index
    %439 = vector.load %arg6[%c5_518, %c0_519, %c0_520] : memref<16x16x128xf32, #tpu.memory_space<vmem>>, vector<1x16x128xf32>
    %440 = vector.shape_cast %439 : vector<1x16x128xf32> to vector<16x128xf32>
    %cst_521 = arith.constant dense<0.000000e+00> : vector<8x128xf32>
    %441 = tpu.matmul %438, %440, %cst_521 {dimension_numbers = #tpu.dot_dimension_numbers<[1], [0], [0], [1], [0, 0, 1, 1], [], []>} : vector<8x16xf32>, vector<16x128xf32>, vector<8x128xf32> -> vector<8x128xf32>
    %442 = arith.addf %435, %441 : vector<8x128xf32>
    %c0_522 = arith.constant 0 : index
    %c2_523 = arith.constant 2 : index
    %c2_524 = arith.constant 2 : index
    %c0_525 = arith.constant 0 : index
    %443 = vector.load %arg15[%c0_522, %c2_523, %c2_524, %c0_525] : memref<8x4x8x128xf32, #tpu.memory_space<vmem>>, vector<8x1x2x16xf32>
    %444 = vector.shape_cast %443 : vector<8x1x2x16xf32> to vector<8x2x16xf32>
    %cst_526 = arith.constant dense<0xFF800000> : vector<8x16xf32>
    %445 = vector.multi_reduction <maximumf>, %444, %cst_526 [1] : vector<8x2x16xf32> to vector<8x16xf32>
    %c6_527 = arith.constant 6 : index
    %c0_528 = arith.constant 0 : index
    %c0_529 = arith.constant 0 : index
    %446 = vector.load %arg6[%c6_527, %c0_528, %c0_529] : memref<16x16x128xf32, #tpu.memory_space<vmem>>, vector<1x16x128xf32>
    %447 = vector.shape_cast %446 : vector<1x16x128xf32> to vector<16x128xf32>
    %cst_530 = arith.constant dense<0.000000e+00> : vector<8x128xf32>
    %448 = tpu.matmul %445, %447, %cst_530 {dimension_numbers = #tpu.dot_dimension_numbers<[1], [0], [0], [1], [0, 0, 1, 1], [], []>} : vector<8x16xf32>, vector<16x128xf32>, vector<8x128xf32> -> vector<8x128xf32>
    %449 = arith.addf %442, %448 : vector<8x128xf32>
    %c0_531 = arith.constant 0 : index
    %c3_532 = arith.constant 3 : index
    %c2_533 = arith.constant 2 : index
    %c0_534 = arith.constant 0 : index
    %450 = vector.load %arg15[%c0_531, %c3_532, %c2_533, %c0_534] : memref<8x4x8x128xf32, #tpu.memory_space<vmem>>, vector<8x1x2x16xf32>
    %451 = vector.shape_cast %450 : vector<8x1x2x16xf32> to vector<8x2x16xf32>
    %cst_535 = arith.constant dense<0xFF800000> : vector<8x16xf32>
    %452 = vector.multi_reduction <maximumf>, %451, %cst_535 [1] : vector<8x2x16xf32> to vector<8x16xf32>
    %c7_536 = arith.constant 7 : index
    %c0_537 = arith.constant 0 : index
    %c0_538 = arith.constant 0 : index
    %453 = vector.load %arg6[%c7_536, %c0_537, %c0_538] : memref<16x16x128xf32, #tpu.memory_space<vmem>>, vector<1x16x128xf32>
    %454 = vector.shape_cast %453 : vector<1x16x128xf32> to vector<16x128xf32>
    %cst_539 = arith.constant dense<0.000000e+00> : vector<8x128xf32>
    %455 = tpu.matmul %452, %454, %cst_539 {dimension_numbers = #tpu.dot_dimension_numbers<[1], [0], [0], [1], [0, 0, 1, 1], [], []>} : vector<8x16xf32>, vector<16x128xf32>, vector<8x128xf32> -> vector<8x128xf32>
    %456 = arith.addf %449, %455 : vector<8x128xf32>
    %c0_540 = arith.constant 0 : index
    %c0_541 = arith.constant 0 : index
    %c4_542 = arith.constant 4 : index
    %c0_543 = arith.constant 0 : index
    %457 = vector.load %arg15[%c0_540, %c0_541, %c4_542, %c0_543] : memref<8x4x8x128xf32, #tpu.memory_space<vmem>>, vector<8x1x2x16xf32>
    %458 = vector.shape_cast %457 : vector<8x1x2x16xf32> to vector<8x2x16xf32>
    %cst_544 = arith.constant dense<0xFF800000> : vector<8x16xf32>
    %459 = vector.multi_reduction <maximumf>, %458, %cst_544 [1] : vector<8x2x16xf32> to vector<8x16xf32>
    %c8_545 = arith.constant 8 : index
    %c0_546 = arith.constant 0 : index
    %c0_547 = arith.constant 0 : index
    %460 = vector.load %arg6[%c8_545, %c0_546, %c0_547] : memref<16x16x128xf32, #tpu.memory_space<vmem>>, vector<1x16x128xf32>
    %461 = vector.shape_cast %460 : vector<1x16x128xf32> to vector<16x128xf32>
    %cst_548 = arith.constant dense<0.000000e+00> : vector<8x128xf32>
    %462 = tpu.matmul %459, %461, %cst_548 {dimension_numbers = #tpu.dot_dimension_numbers<[1], [0], [0], [1], [0, 0, 1, 1], [], []>} : vector<8x16xf32>, vector<16x128xf32>, vector<8x128xf32> -> vector<8x128xf32>
    %463 = arith.addf %456, %462 : vector<8x128xf32>
    %c0_549 = arith.constant 0 : index
    %c1_550 = arith.constant 1 : index
    %c4_551 = arith.constant 4 : index
    %c0_552 = arith.constant 0 : index
    %464 = vector.load %arg15[%c0_549, %c1_550, %c4_551, %c0_552] : memref<8x4x8x128xf32, #tpu.memory_space<vmem>>, vector<8x1x2x16xf32>
    %465 = vector.shape_cast %464 : vector<8x1x2x16xf32> to vector<8x2x16xf32>
    %cst_553 = arith.constant dense<0xFF800000> : vector<8x16xf32>
    %466 = vector.multi_reduction <maximumf>, %465, %cst_553 [1] : vector<8x2x16xf32> to vector<8x16xf32>
    %c9_554 = arith.constant 9 : index
    %c0_555 = arith.constant 0 : index
    %c0_556 = arith.constant 0 : index
    %467 = vector.load %arg6[%c9_554, %c0_555, %c0_556] : memref<16x16x128xf32, #tpu.memory_space<vmem>>, vector<1x16x128xf32>
    %468 = vector.shape_cast %467 : vector<1x16x128xf32> to vector<16x128xf32>
    %cst_557 = arith.constant dense<0.000000e+00> : vector<8x128xf32>
    %469 = tpu.matmul %466, %468, %cst_557 {dimension_numbers = #tpu.dot_dimension_numbers<[1], [0], [0], [1], [0, 0, 1, 1], [], []>} : vector<8x16xf32>, vector<16x128xf32>, vector<8x128xf32> -> vector<8x128xf32>
    %470 = arith.addf %463, %469 : vector<8x128xf32>
    %c0_558 = arith.constant 0 : index
    %c2_559 = arith.constant 2 : index
    %c4_560 = arith.constant 4 : index
    %c0_561 = arith.constant 0 : index
    %471 = vector.load %arg15[%c0_558, %c2_559, %c4_560, %c0_561] : memref<8x4x8x128xf32, #tpu.memory_space<vmem>>, vector<8x1x2x16xf32>
    %472 = vector.shape_cast %471 : vector<8x1x2x16xf32> to vector<8x2x16xf32>
    %cst_562 = arith.constant dense<0xFF800000> : vector<8x16xf32>
    %473 = vector.multi_reduction <maximumf>, %472, %cst_562 [1] : vector<8x2x16xf32> to vector<8x16xf32>
    %c10_563 = arith.constant 10 : index
    %c0_564 = arith.constant 0 : index
    %c0_565 = arith.constant 0 : index
    %474 = vector.load %arg6[%c10_563, %c0_564, %c0_565] : memref<16x16x128xf32, #tpu.memory_space<vmem>>, vector<1x16x128xf32>
    %475 = vector.shape_cast %474 : vector<1x16x128xf32> to vector<16x128xf32>
    %cst_566 = arith.constant dense<0.000000e+00> : vector<8x128xf32>
    %476 = tpu.matmul %473, %475, %cst_566 {dimension_numbers = #tpu.dot_dimension_numbers<[1], [0], [0], [1], [0, 0, 1, 1], [], []>} : vector<8x16xf32>, vector<16x128xf32>, vector<8x128xf32> -> vector<8x128xf32>
    %477 = arith.addf %470, %476 : vector<8x128xf32>
    %c0_567 = arith.constant 0 : index
    %c3_568 = arith.constant 3 : index
    %c4_569 = arith.constant 4 : index
    %c0_570 = arith.constant 0 : index
    %478 = vector.load %arg15[%c0_567, %c3_568, %c4_569, %c0_570] : memref<8x4x8x128xf32, #tpu.memory_space<vmem>>, vector<8x1x2x16xf32>
    %479 = vector.shape_cast %478 : vector<8x1x2x16xf32> to vector<8x2x16xf32>
    %cst_571 = arith.constant dense<0xFF800000> : vector<8x16xf32>
    %480 = vector.multi_reduction <maximumf>, %479, %cst_571 [1] : vector<8x2x16xf32> to vector<8x16xf32>
    %c11 = arith.constant 11 : index
    %c0_572 = arith.constant 0 : index
    %c0_573 = arith.constant 0 : index
    %481 = vector.load %arg6[%c11, %c0_572, %c0_573] : memref<16x16x128xf32, #tpu.memory_space<vmem>>, vector<1x16x128xf32>
    %482 = vector.shape_cast %481 : vector<1x16x128xf32> to vector<16x128xf32>
    %cst_574 = arith.constant dense<0.000000e+00> : vector<8x128xf32>
    %483 = tpu.matmul %480, %482, %cst_574 {dimension_numbers = #tpu.dot_dimension_numbers<[1], [0], [0], [1], [0, 0, 1, 1], [], []>} : vector<8x16xf32>, vector<16x128xf32>, vector<8x128xf32> -> vector<8x128xf32>
    %484 = arith.addf %477, %483 : vector<8x128xf32>
    %c0_575 = arith.constant 0 : index
    %c0_576 = arith.constant 0 : index
    %c6_577 = arith.constant 6 : index
    %c0_578 = arith.constant 0 : index
    %485 = vector.load %arg15[%c0_575, %c0_576, %c6_577, %c0_578] : memref<8x4x8x128xf32, #tpu.memory_space<vmem>>, vector<8x1x2x16xf32>
    %486 = vector.shape_cast %485 : vector<8x1x2x16xf32> to vector<8x2x16xf32>
    %cst_579 = arith.constant dense<0xFF800000> : vector<8x16xf32>
    %487 = vector.multi_reduction <maximumf>, %486, %cst_579 [1] : vector<8x2x16xf32> to vector<8x16xf32>
    %c12_580 = arith.constant 12 : index
    %c0_581 = arith.constant 0 : index
    %c0_582 = arith.constant 0 : index
    %488 = vector.load %arg6[%c12_580, %c0_581, %c0_582] : memref<16x16x128xf32, #tpu.memory_space<vmem>>, vector<1x16x128xf32>
    %489 = vector.shape_cast %488 : vector<1x16x128xf32> to vector<16x128xf32>
    %cst_583 = arith.constant dense<0.000000e+00> : vector<8x128xf32>
    %490 = tpu.matmul %487, %489, %cst_583 {dimension_numbers = #tpu.dot_dimension_numbers<[1], [0], [0], [1], [0, 0, 1, 1], [], []>} : vector<8x16xf32>, vector<16x128xf32>, vector<8x128xf32> -> vector<8x128xf32>
    %491 = arith.addf %484, %490 : vector<8x128xf32>
    %c0_584 = arith.constant 0 : index
    %c1_585 = arith.constant 1 : index
    %c6_586 = arith.constant 6 : index
    %c0_587 = arith.constant 0 : index
    %492 = vector.load %arg15[%c0_584, %c1_585, %c6_586, %c0_587] : memref<8x4x8x128xf32, #tpu.memory_space<vmem>>, vector<8x1x2x16xf32>
    %493 = vector.shape_cast %492 : vector<8x1x2x16xf32> to vector<8x2x16xf32>
    %cst_588 = arith.constant dense<0xFF800000> : vector<8x16xf32>
    %494 = vector.multi_reduction <maximumf>, %493, %cst_588 [1] : vector<8x2x16xf32> to vector<8x16xf32>
    %c13 = arith.constant 13 : index
    %c0_589 = arith.constant 0 : index
    %c0_590 = arith.constant 0 : index
    %495 = vector.load %arg6[%c13, %c0_589, %c0_590] : memref<16x16x128xf32, #tpu.memory_space<vmem>>, vector<1x16x128xf32>
    %496 = vector.shape_cast %495 : vector<1x16x128xf32> to vector<16x128xf32>
    %cst_591 = arith.constant dense<0.000000e+00> : vector<8x128xf32>
    %497 = tpu.matmul %494, %496, %cst_591 {dimension_numbers = #tpu.dot_dimension_numbers<[1], [0], [0], [1], [0, 0, 1, 1], [], []>} : vector<8x16xf32>, vector<16x128xf32>, vector<8x128xf32> -> vector<8x128xf32>
    %498 = arith.addf %491, %497 : vector<8x128xf32>
    %c0_592 = arith.constant 0 : index
    %c2_593 = arith.constant 2 : index
    %c6_594 = arith.constant 6 : index
    %c0_595 = arith.constant 0 : index
    %499 = vector.load %arg15[%c0_592, %c2_593, %c6_594, %c0_595] : memref<8x4x8x128xf32, #tpu.memory_space<vmem>>, vector<8x1x2x16xf32>
    %500 = vector.shape_cast %499 : vector<8x1x2x16xf32> to vector<8x2x16xf32>
    %cst_596 = arith.constant dense<0xFF800000> : vector<8x16xf32>
    %501 = vector.multi_reduction <maximumf>, %500, %cst_596 [1] : vector<8x2x16xf32> to vector<8x16xf32>
    %c14_597 = arith.constant 14 : index
    %c0_598 = arith.constant 0 : index
    %c0_599 = arith.constant 0 : index
    %502 = vector.load %arg6[%c14_597, %c0_598, %c0_599] : memref<16x16x128xf32, #tpu.memory_space<vmem>>, vector<1x16x128xf32>
    %503 = vector.shape_cast %502 : vector<1x16x128xf32> to vector<16x128xf32>
    %cst_600 = arith.constant dense<0.000000e+00> : vector<8x128xf32>
    %504 = tpu.matmul %501, %503, %cst_600 {dimension_numbers = #tpu.dot_dimension_numbers<[1], [0], [0], [1], [0, 0, 1, 1], [], []>} : vector<8x16xf32>, vector<16x128xf32>, vector<8x128xf32> -> vector<8x128xf32>
    %505 = arith.addf %498, %504 : vector<8x128xf32>
    %c0_601 = arith.constant 0 : index
    %c3_602 = arith.constant 3 : index
    %c6_603 = arith.constant 6 : index
    %c0_604 = arith.constant 0 : index
    %506 = vector.load %arg15[%c0_601, %c3_602, %c6_603, %c0_604] : memref<8x4x8x128xf32, #tpu.memory_space<vmem>>, vector<8x1x2x16xf32>
    %507 = vector.shape_cast %506 : vector<8x1x2x16xf32> to vector<8x2x16xf32>
    %cst_605 = arith.constant dense<0xFF800000> : vector<8x16xf32>
    %508 = vector.multi_reduction <maximumf>, %507, %cst_605 [1] : vector<8x2x16xf32> to vector<8x16xf32>
    %c15 = arith.constant 15 : index
    %c0_606 = arith.constant 0 : index
    %c0_607 = arith.constant 0 : index
    %509 = vector.load %arg6[%c15, %c0_606, %c0_607] : memref<16x16x128xf32, #tpu.memory_space<vmem>>, vector<1x16x128xf32>
    %510 = vector.shape_cast %509 : vector<1x16x128xf32> to vector<16x128xf32>
    %cst_608 = arith.constant dense<0.000000e+00> : vector<8x128xf32>
    %511 = tpu.matmul %508, %510, %cst_608 {dimension_numbers = #tpu.dot_dimension_numbers<[1], [0], [0], [1], [0, 0, 1, 1], [], []>} : vector<8x16xf32>, vector<16x128xf32>, vector<8x128xf32> -> vector<8x128xf32>
    %512 = arith.addf %505, %511 : vector<8x128xf32>
    %c0_609 = arith.constant 0 : index
    %c0_610 = arith.constant 0 : index
    %513 = vector.load %arg7[%c0_609, %c0_610] : memref<1x128xf32, #tpu.memory_space<vmem>>, vector<1x128xf32>
    %514 = vector.broadcast %513 : vector<1x128xf32> to vector<8x128xf32>
    %515 = arith.addf %512, %514 : vector<8x128xf32>
    %cst_611 = arith.constant 0.000000e+00 : f32
    %516 = vector.broadcast %cst_611 : f32 to vector<8x128xf32>
    %517 = arith.maximumf %515, %516 : vector<8x128xf32>
    %518 = vector.extract_strided_slice %517 {offsets = [0, 0], sizes = [8, 64], strides = [1, 1]} : vector<8x128xf32> to vector<8x64xf32>
    %c0_612 = arith.constant 0 : index
    %c0_613 = arith.constant 0 : index
    %519 = vector.load %arg8[%c0_612, %c0_613] : memref<64x128xf32, #tpu.memory_space<vmem>>, vector<64x128xf32>
    %cst_614 = arith.constant dense<0.000000e+00> : vector<8x128xf32>
    %520 = tpu.matmul %518, %519, %cst_614 {dimension_numbers = #tpu.dot_dimension_numbers<[1], [0], [0], [1], [0, 0, 1, 1], [], []>} : vector<8x64xf32>, vector<64x128xf32>, vector<8x128xf32> -> vector<8x128xf32>
    %c0_615 = arith.constant 0 : index
    %c0_616 = arith.constant 0 : index
    %521 = vector.load %arg9[%c0_615, %c0_616] : memref<1x128xf32, #tpu.memory_space<vmem>>, vector<1x128xf32>
    %522 = vector.broadcast %521 : vector<1x128xf32> to vector<8x128xf32>
    %523 = arith.addf %520, %522 : vector<8x128xf32>
    %cst_617 = arith.constant 0.000000e+00 : f32
    %524 = vector.broadcast %cst_617 : f32 to vector<8x128xf32>
    %525 = arith.maximumf %523, %524 : vector<8x128xf32>
    %526 = vector.extract_strided_slice %525 {offsets = [0, 0], sizes = [8, 64], strides = [1, 1]} : vector<8x128xf32> to vector<8x64xf32>
    %c0_618 = arith.constant 0 : index
    %c0_619 = arith.constant 0 : index
    %527 = vector.load %arg10[%c0_618, %c0_619] : memref<64x128xf32, #tpu.memory_space<vmem>>, vector<64x128xf32>
    %cst_620 = arith.constant dense<0.000000e+00> : vector<8x128xf32>
    %528 = tpu.matmul %526, %527, %cst_620 {dimension_numbers = #tpu.dot_dimension_numbers<[1], [0], [0], [1], [0, 0, 1, 1], [], []>} : vector<8x64xf32>, vector<64x128xf32>, vector<8x128xf32> -> vector<8x128xf32>
    %c0_621 = arith.constant 0 : index
    %c0_622 = arith.constant 0 : index
    %529 = vector.load %arg11[%c0_621, %c0_622] : memref<1x128xf32, #tpu.memory_space<vmem>>, vector<1x128xf32>
    %530 = vector.broadcast %529 : vector<1x128xf32> to vector<8x128xf32>
    %531 = arith.addf %528, %530 : vector<8x128xf32>
    %532 = vector.extract_strided_slice %531 {offsets = [0, 0], sizes = [2, 128], strides = [1, 1]} : vector<8x128xf32> to vector<2x128xf32>
    %c0_623 = arith.constant 0 : index
    %c0_624 = arith.constant 0 : index
    %533 = vector.load %arg12[%c0_623, %c0_624] : memref<2x128xf32, #tpu.memory_space<vmem>>, vector<2x128xf32>
    tpu.vector_store %arg12[%c0_623, %c0_624], %532 {strides = array<i32>} : memref<2x128xf32, #tpu.memory_space<vmem>>, vector<2x128xf32>,
    return
  }
  func.func @transform_0(%arg0: i32) -> (i32, i32, i32, i32) {
    %c0_i32 = arith.constant 0 : i32
    %c0_i32_0 = arith.constant 0 : i32
    %c0_i32_1 = arith.constant 0 : i32
    %c0_i32_2 = arith.constant 0 : i32
    %c0_i32_3 = arith.constant 0 : i32
    return %c0_i32, %c0_i32_0, %c0_i32_1, %c0_i32_2 : i32, i32, i32, i32
  }
  func.func @transform_1(%arg0: i32) -> (i32, i32, i32) {
    %c0_i32 = arith.constant 0 : i32
    %c0_i32_0 = arith.constant 0 : i32
    %c0_i32_1 = arith.constant 0 : i32
    %c0_i32_2 = arith.constant 0 : i32
    return %c0_i32, %c0_i32_0, %c0_i32_1 : i32, i32, i32
  }
  func.func @transform_2(%arg0: i32) -> (i32, i32) {
    %c0_i32 = arith.constant 0 : i32
    %c0_i32_0 = arith.constant 0 : i32
    %c0_i32_1 = arith.constant 0 : i32
    return %c0_i32, %c0_i32_0 : i32, i32
  }
  func.func @transform_3(%arg0: i32) -> (i32, i32, i32) {
    %c0_i32 = arith.constant 0 : i32
    %c0_i32_0 = arith.constant 0 : i32
    %c0_i32_1 = arith.constant 0 : i32
    %c0_i32_2 = arith.constant 0 : i32
    return %c0_i32, %c0_i32_0, %c0_i32_1 : i32, i32, i32
  }
  func.func @transform_4(%arg0: i32) -> (i32, i32) {
    %c0_i32 = arith.constant 0 : i32
    %c0_i32_0 = arith.constant 0 : i32
    %c0_i32_1 = arith.constant 0 : i32
    return %c0_i32, %c0_i32_0 : i32, i32
  }
  func.func @transform_5(%arg0: i32) -> (i32, i32, i32) {
    %c0_i32 = arith.constant 0 : i32
    %c0_i32_0 = arith.constant 0 : i32
    %c0_i32_1 = arith.constant 0 : i32
    %c0_i32_2 = arith.constant 0 : i32
    return %c0_i32, %c0_i32_0, %c0_i32_1 : i32, i32, i32
  }
  func.func @transform_6(%arg0: i32) -> (i32, i32) {
    %c0_i32 = arith.constant 0 : i32
    %c0_i32_0 = arith.constant 0 : i32
    %c0_i32_1 = arith.constant 0 : i32
    return %c0_i32, %c0_i32_0 : i32, i32
  }
  func.func @transform_7(%arg0: i32) -> (i32, i32) {
    %c0_i32 = arith.constant 0 : i32
    %c0_i32_0 = arith.constant 0 : i32
    %c0_i32_1 = arith.constant 0 : i32
    return %c0_i32, %c0_i32_0 : i32, i32
  }
  func.func @transform_8(%arg0: i32) -> (i32, i32) {
    %c0_i32 = arith.constant 0 : i32
    %c0_i32_0 = arith.constant 0 : i32
    %c0_i32_1 = arith.constant 0 : i32
    return %c0_i32, %c0_i32_0 : i32, i32
  }
  func.func @transform_9(%arg0: i32) -> (i32, i32) {
    %c0_i32 = arith.constant 0 : i32
    %c0_i32_0 = arith.constant 0 : i32
    %c0_i32_1 = arith.constant 0 : i32
    return %c0_i32, %c0_i32_0 : i32, i32
  }
  func.func @transform_10(%arg0: i32) -> (i32, i32) {
    %c0_i32 = arith.constant 0 : i32
    %c0_i32_0 = arith.constant 0 : i32
    %c0_i32_1 = arith.constant 0 : i32
    return %c0_i32, %c0_i32_0 : i32, i32
  }
  func.func @transform_11(%arg0: i32) -> (i32, i32) {
    %c0_i32 = arith.constant 0 : i32
    %c0_i32_0 = arith.constant 0 : i32
    %c0_i32_1 = arith.constant 0 : i32
    return %c0_i32, %c0_i32_0 : i32, i32
  }
}

</mosaic_0001>

<bundles_post_ra>
// kernel: image_model_forward.1
= control target key start
LH: loop header
LB: loop body
LE: loop exit
PB: predicated region body
PF: predicated region fallthrough
CT: control target
= control target key end

     0   :  { %vm75_vm0 = vcmask 64512   ;;  %s23168_s0 = inlined_call_operand.vmem [shape: f32[2,18,18,128], index: 0, kind: input, shape index: {}]   ;;  %s23169_s1 = inlined_call_operand.vmem [shape: f32[9,8,128], index: 1, kind: input, shape index: {}]   ;;  %s23170_s2 = inlined_call_operand.vmem [shape: f32[1,128], index: 2, kind: input, shape index: {}]   ;;  %s23171_s3 = inlined_call_operand.vmem [shape: f32[9,8,128], index: 3, kind: input, shape index: {}]   ;;  %s23172_s4 = inlined_call_operand.vmem [shape: f32[1,128], index: 4, kind: input, shape index: {}]   ;;  %s23173_s5 = inlined_call_operand.vmem [shape: f32[16,16,128], index: 5, kind: input, shape index: {}]   ;;  %s23174_s6 = inlined_call_operand.vmem [shape: f32[1,128], index: 6, kind: input, shape index: {}]   ;;  %s23175_s7 = inlined_call_operand.vmem [shape: f32[64,128], index: 7, kind: input, shape index: {}]   ;;  %s23176_s8 = inlined_call_operand.vmem [shape: f32[1,128], index: 8, kind: input, shape index: {}]   ;;  %s23177_s9 = inlined_call_operand.vmem [shape: f32[64,128], index: 9, kind: input, shape index: {}]   ;;  %s23178_s10 = inlined_call_operand.vmem [shape: f32[1,128], index: 10, kind: input, shape index: {}]   ;;  %s23179_s11 = inlined_call_operand.hbm [shape: f32[2,128], index: 11, kind: output, shape index: {}]  }
   0x1   :  { %v18719_v0 = vld [vmem:[%s23169_s1 + $0x8] sm:$0xff]  ;;  %v18724_v1 = vld [vmem:[%s23169_s1 + $0x18] sm:$0xff]  ;;  %v18742_v5 = vld [vmem:[%s23169_s1] sm:$0xff] }
   0x2   :  { %v57_v2 = vld [vmem:[%s23168_s0 + $0x1] sm:$0xff]  ;;  %16574 = vmatprep.subr.mxu1 %v18719_v0  ;;  %16652 = vmatprep.subr.mxu0 %v18724_v1  ;;  %v18734_v3 = vld [vmem:[%s23168_s0 + $0x18] sm:$0xff]  ;;  %v58_v4 = vld [vmem:[%s23168_s0 + $0x9] sm:$0xff] }
   0x3   :  { %16575 = vmatpush3.msra.mxu1 %v18719_v0  ;;  %16576 = vmatprep.mubr.msk.f32.mxu1 %vm75_vm0, %v57_v2  ;;  %v18749_v6 = vld [vmem:[%s23168_s0 + $0x20] sm:$0xff]  ;;  %v18762_v8 = vld [vmem:[%s23168_s0 + $0x30] sm:$0xff]  ;;  %v18781_v10 = vld [vmem:[%s23168_s0 + $0x38] sm:$0xff] }
   0x4   :  { %16653 = vmatpush3.msra.mxu0 %v18724_v1  ;;  %16654 = vmatprep.mubr.msk.f32.mxu0 %vm75_vm0, %v18734_v3  ;;  %v18757_v7 = vld [vmem:[%s23168_s0 + $0x19] sm:$0xff]  ;;  %v18772_v9 = vld [vmem:[%s23168_s0 + $0x21] sm:$0xff]  ;;  %v18786_v11 = vld [vmem:[%s23168_s0 + $0x31] sm:$0xff] }
   0x5   :  { %16577 = vmatmul.mubr.msk.f32.vlgmr.msra.gmra.mrb[0].mxu1 %vm75_vm0, %v58_v4  ;;  %16600 = vmatprep.subr.mxu1 %v18742_v5  ;;  %v18791_v12 = vld [vmem:[%s23168_s0 + $0x48] sm:$0xff]  ;;  %v18802_v13 = vld [vmem:[%s23168_s0 + $0x39] sm:$0xff]  ;;  %v18809_v14 = vld [vmem:[%s23168_s0 + $0x50] sm:$0xff] }
   0x6   :  { %16655 = vmatmul.mubr.msk.f32.vlgmr.msra.gmra.mrb[0].mxu0 %vm75_vm0, %v18749_v6  ;;  %16601 = vmatpush3.msra.mxu1 %v18742_v5  ;;  %v18814_v15 = vld [vmem:[%s23168_s0 + $0x49] sm:$0xff]  ;;  %v18819_v16 = vld [vmem:[%s23168_s0 + $0x60] sm:$0xff]  ;;  %v18841_v19 = vld [vmem:[%s23168_s0 + $0x51] sm:$0xff] }
   0x7   :  { %16579 = vmatprep.mubr.msk.f32.mxu1 %vm75_vm0, %v18757_v7  ;;  %16657 = vmatprep.mubr.msk.f32.mxu0 %vm75_vm0, %v18762_v8  ;;  %v18824_v17 = vld [vmem:[%s23169_s1 + $0x20] sm:$0xff]  ;;  %v18832_v18 = vld [vmem:[%s23169_s1 + $0x10] sm:$0xff]  ;;  %v18846_v20 = vld [vmem:[%s23169_s1 + $0x28] sm:$0xff] }
   0x8   :  { %16678 = vmatprep.subr.mxu0 %v18824_v17  ;;  %v18853_v21 = vld [vmem:[%s23168_s0 + $0x68] sm:$0xff]  ;;  %v18864_v23 = vld [vmem:[%s23168_s0 + $0x78] sm:$0xff]  ;;  %16626 = vmatprep.subr.mxu1 %v18832_v18  ;;  %v18884_v25 = vld [vmem:[%s23168_s0 + $0x80] sm:$0xff] }
   0x9   :  { %16580 = vmatmul.mubr.msk.f32.gmra.mrb[2].mxu1 %vm75_vm0, %v18772_v9  ;;  %v18858_v22 = vld [vmem:[%s23168_s0 + $0x61] sm:$0xff]  ;;  %16679 = vmatpush3.msra.mxu0 %v18824_v17  ;;  %v18877_v24 = vld [vmem:[%s23168_s0 + $0x69] sm:$0xff]  ;;  %v18889_v26 = vld [vmem:[%s23168_s0 + $0x79] sm:$0xff] }
   0xa   :  { %16658 = vmatmul.mubr.msk.f32.gmra.mrb[2].mxu0 %vm75_vm0, %v18781_v10  ;;  %16582 = vmatprep.mubr.msk.f32.mxu1 %vm75_vm0, %v18786_v11  ;;  %v18894_v27 = vld [vmem:[%s23168_s0 + $0x90] sm:$0xff]  ;;  %v18905_v28 = vld [vmem:[%s23168_s0 + $0x81] sm:$0xff]  ;;  %v18912_v29 = vld [vmem:[%s23168_s0 + $0x98] sm:$0xff] }
   0xb   :  { %16660 = vmatprep.mubr.msk.f32.mxu0 %vm75_vm0, %v18791_v12  ;;  %16704 = vmatprep.subr.mxu0 %v18846_v20  ;;  %v18917_v30 = vld [vmem:[%s23168_s0 + $0x91] sm:$0xff]  ;;  %v18922_v31 = vld [vmem:[%s23168_s0 + $0xa8] sm:$0xff]  ;;  %v18933_v32 = vld [vmem:[%s23168_s0 + $0x99] sm:$0xff] }
   0xc   :  { %v18940_v33 = vld [vmem:[%s23168_s0 + $0xb0] sm:$0xff]  ;;  %v18950_v35 = vld [vmem:[%s23168_s0 + $0xc0] sm:$0xff] }
   0xd   :  { %16583 = vmatmul.mubr.msk.f32.gmra.mrb[4].mxu1 %vm75_vm0, %v18802_v13  ;;  %v18945_v34 = vld [vmem:[%s23168_s0 + $0xa9] sm:$0xff]  ;;  %v18961_v36 = vld [vmem:[%s23168_s0 + $0xb1] sm:$0xff] }
   0xe   :  { %16661 = vmatmul.mubr.msk.f32.gmra.mrb[4].mxu0 %vm75_vm0, %v18809_v14  ;;  %16585 = vmatprep.mubr.msk.f32.mxu1 %vm75_vm0, %v18814_v15 }
   0xf   :  { %16663 = vmatprep.mubr.msk.f32.mxu0 %vm75_vm0, %v18819_v16 }
  0x11   :  { %16586 = vmatmul.mubr.msk.f32.gmra.mrb[6].mxu1 %vm75_vm0, %v18841_v19 }
  0x12   :  { %16664 = vmatmul.mubr.msk.f32.gmra.mrb[6].mxu0 %vm75_vm0, %v18853_v21  ;;  %16588 = vmatprep.mubr.msk.f32.mxu1 %vm75_vm0, %v18858_v22 }
  0x13   :  { %16666 = vmatprep.mubr.msk.f32.mxu0 %vm75_vm0, %v18864_v23 }
  0x15   :  { %16589 = vmatmul.mubr.msk.f32.gmra.mrb[8].mxu1 %vm75_vm0, %v18877_v24 }
  0x16   :  { %16667 = vmatmul.mubr.msk.f32.gmra.mrb[8].mxu0 %vm75_vm0, %v18884_v25  ;;  %16591 = vmatprep.mubr.msk.f32.mxu1 %vm75_vm0, %v18889_v26 }
  0x17   :  { %16669 = vmatprep.mubr.msk.f32.mxu0 %vm75_vm0, %v18894_v27 }
  0x19   :  { %16592 = vmatmul.mubr.msk.f32.gmra.mrb[10].mxu1 %vm75_vm0, %v18905_v28 }
  0x1a   :  { %16670 = vmatmul.mubr.msk.f32.gmra.mrb[10].mxu0 %vm75_vm0, %v18912_v29  ;;  %16594 = vmatprep.mubr.msk.f32.mxu1 %vm75_vm0, %v18917_v30 }
  0x1b   :  { %16672 = vmatprep.mubr.msk.f32.mxu0 %vm75_vm0, %v18922_v31 }
  0x1d   :  { %16595 = vmatmul.mubr.msk.f32.gmra.mrb[12].mxu1 %vm75_vm0, %v18933_v32 }
  0x1e   :  { %16673 = vmatmul.mubr.msk.f32.gmra.mrb[12].mxu0 %vm75_vm0, %v18940_v33  ;;  %16597 = vmatprep.mubr.msk.f32.mxu1 %vm75_vm0, %v18945_v34 }
  0x1f   :  { %16 = vsyncpa [#allocation6], 0  ;;  %16675 = vmatprep.mubr.msk.f32.mxu0 %vm75_vm0, %v18950_v35  ;;  %v18968_v37 = vld [vmem:[%s23168_s0 + $0xc8] sm:$0xff]  ;;  %v40_v38 = vld [vmem:[%s23168_s0] sm:$0xff]  ;;  %vm8325_vm1 = vcmask 1041408   ;;  %vm8454_vm2 = vcmask 1041409  }
  0x20   :  { %v41_v39 = vld [vmem:[%s23168_s0 + $0x8] sm:$0xff]  ;;  %v18990_v40 = vld [vmem:[%s23169_s1 + $0x30] sm:$0xff]  ;;  %v14518_v44 = vld [vmem:[%s23168_s0 + $0x1a] sm:$0xff]  ;;  %vm8456_vm3 = vcmask 1042434   ;;  %vm8458_vm4 = vcmask 1043459   ;;  %vm8460_vm5 = vcmask 1044484  }
  0x21   :  { %16598 = vmatmul.mubr.msk.f32.gmra.mrb[14].mxu1 %vm75_vm0, %v18961_v36  ;;  %v19042_v41 = vld [vmem:[%s23168_s0 + $0xc1] sm:$0xff]  ;;  %v19055_v42 = vld [vmem:[%s23168_s0 + $0xc9] sm:$0xff]  ;;  %v19078_v47 = vld [vmem:[%s23168_s0 + $0x32] sm:$0xff]  ;;  %vm8462_vm6 = vcmask 1045509   ;;  %vm8464_vm7 = vcmask 1046534   ;;  %vm8466_vm8 = vcmask 1047559  }
  0x22   :  { %16676 = vmatmul.mubr.msk.f32.gmra.mrb[14].mxu0 %vm75_vm0, %v18968_v37  ;;  %16602 = vmatprep.mubr.msk.f32.mxu1 %vm75_vm0, %v40_v38  ;;  %v462_v43 = vld [vmem:[%s23168_s0 + $0x2] sm:$0xff]  ;;  %v463_v45 = vld [vmem:[%s23168_s0 + $0xa] sm:$0xff]  ;;  %v19086_v48 = vld [vmem:[%s23169_s1 + $0x38] sm:$0xff]  ;;  %vm18654_vm9 = vmmov 0   ;;  %vm11726_vm10 = vcmask 123904   ;;  %vm11868_vm11 = vcmask 130048  }
  0x23   :  { %16680 = vmatprep.mubr.msk.f32.mxu0 %vm75_vm0, %v18757_v7  ;;  %v14519_v46 = vld [vmem:[%s23168_s0 + $0x22] sm:$0xff]  ;;  %v19094_v49 = vld [vmem:[%s23168_s0 + $0x3a] sm:$0xff]  ;;  %v19099_v50 = vld [vmem:[%s23168_s0 + $0x4a] sm:$0xff]  ;;  %vm14224_vm12 = vcmask 523264  }
  0x24   :  { %v19114_v51 = vld [vmem:[%s23168_s0 + $0x52] sm:$0xff]  ;;  %v19119_v52 = vld [vmem:[%s23168_s0 + $0x62] sm:$0xff]  ;;  %v19132_v53 = vld [vmem:[%s23168_s0 + $0x6a] sm:$0xff] }
  0x25   :  { %16603 = vmatmul.mubr.msk.f32.vlgmr.msra.gmra.mrb[0].mxu1 %vm75_vm0, %v41_v39  ;;  %v19137_v54 = vld [vmem:[%s23168_s0 + $0x7a] sm:$0xff]  ;;  %v19150_v55 = vld [vmem:[%s23168_s0 + $0x82] sm:$0xff]  ;;  %v19155_v56 = vld [vmem:[%s23168_s0 + $0x92] sm:$0xff] }
  0x26   :  { %16681 = vmatmul.mubr.msk.f32.vlgmr.msra.gmra.mrb[0].mxu0 %vm75_vm0, %v18772_v9  ;;  %16627 = vmatpush3.msra.mxu1 %v18832_v18  ;;  %v19168_v57 = vld [vmem:[%s23168_s0 + $0x9a] sm:$0xff]  ;;  %v19173_v58 = vld [vmem:[%s23168_s0 + $0xaa] sm:$0xff]  ;;  %v19186_v59 = vld [vmem:[%s23168_s0 + $0xb2] sm:$0xff] }
  0x27   :  { %16605 = vmatprep.mubr.msk.f32.mxu1 %vm75_vm0, %v18734_v3  ;;  %16683 = vmatprep.mubr.msk.f32.mxu0 %vm75_vm0, %v18786_v11  ;;  %v19191_v60 = vld [vmem:[%s23168_s0 + $0xc2] sm:$0xff]  ;;  %v19204_v61 = vld [vmem:[%s23168_s0 + $0xca] sm:$0xff]  ;;  %v19217_v62 = vld [vmem:[%s23168_s0 + $0xd9] sm:$0xff] }
  0x28   :  { %16705 = vmatpush3.msra.mxu0 %v18846_v20  ;;  %16808 = vmatprep.subr.mxu1 %v18719_v0  ;;  %v19227_v63 = vld [vmem:[%s23168_s0 + $0xe1] sm:$0xff]  ;;  %v19241_v3 = vld [vmem:[%s23168_s0 + $0xf1] sm:$0xff]  ;;  %v19255_v4 = vld [vmem:[%s23168_s0 + $0xf9] sm:$0xff] }
  0x29   :  { %16606 = vmatmul.mubr.msk.f32.gmra.mrb[2].mxu1 %vm75_vm0, %v18749_v6  ;;  %16730 = vmatprep.subr.mxu0 %v18990_v40  ;;  %v19232_v2 = vld [vmem:[%s23169_s1 + $0x40] sm:$0xff]  ;;  %v19262_v6 = vld [vmem:[%s23168_s0 + $0x109] sm:$0xff]  ;;  %v19273_v7 = vld [vmem:[%s23168_s0 + $0x111] sm:$0xff] }
  0x2a   :  { %16684 = vmatmul.mubr.msk.f32.gmra.mrb[2].mxu0 %vm75_vm0, %v18802_v13  ;;  %16608 = vmatprep.mubr.msk.f32.mxu1 %vm75_vm0, %v18762_v8  ;;  %v19291_v9 = vld [vmem:[%s23168_s0 + $0x129] sm:$0xff]  ;;  %v19574_v39 = vld [vmem:[%s23168_s0 + $0x13a] sm:$0xff] }
  0x2b   :  { %16686 = vmatprep.mubr.msk.f32.mxu0 %vm75_vm0, %v18814_v15  ;;  %v19567_v38 = vld [vmem:[%s23168_s0 + $0x12a] sm:$0xff]  ;;  %23239 = vst [vmem:[#allocation14_spill] sm:$0xff] %v19574_v39 }
  0x2d   :  { %16609 = vmatmul.mubr.msk.f32.gmra.mrb[4].mxu1 %vm75_vm0, %v18781_v10 }
  0x2e   :  { %16687 = vmatmul.mubr.msk.f32.gmra.mrb[4].mxu0 %vm75_vm0, %v18841_v19  ;;  %16611 = vmatprep.mubr.msk.f32.mxu1 %vm75_vm0, %v18791_v12 }
  0x2f   :  { %16689 = vmatprep.mubr.msk.f32.mxu0 %vm75_vm0, %v18858_v22 }
  0x31   :  { %16612 = vmatmul.mubr.msk.f32.gmra.mrb[6].mxu1 %vm75_vm0, %v18809_v14 }
  0x32   :  { %16690 = vmatmul.mubr.msk.f32.gmra.mrb[6].mxu0 %vm75_vm0, %v18877_v24  ;;  %16614 = vmatprep.mubr.msk.f32.mxu1 %vm75_vm0, %v18819_v16 }
  0x33   :  { %16692 = vmatprep.mubr.msk.f32.mxu0 %vm75_vm0, %v18889_v26 }
  0x35   :  { %16615 = vmatmul.mubr.msk.f32.gmra.mrb[8].mxu1 %vm75_vm0, %v18853_v21 }
  0x36   :  { %16693 = vmatmul.mubr.msk.f32.gmra.mrb[8].mxu0 %vm75_vm0, %v18905_v28  ;;  %16617 = vmatprep.mubr.msk.f32.mxu1 %vm75_vm0, %v18864_v23 }
  0x37   :  { %16695 = vmatprep.mubr.msk.f32.mxu0 %vm75_vm0, %v18917_v30 }
  0x39   :  { %16618 = vmatmul.mubr.msk.f32.gmra.mrb[10].mxu1 %vm75_vm0, %v18884_v25 }
  0x3a   :  { %16696 = vmatmul.mubr.msk.f32.gmra.mrb[10].mxu0 %vm75_vm0, %v18933_v32  ;;  %16620 = vmatprep.mubr.msk.f32.mxu1 %vm75_vm0, %v18894_v27 }
  0x3b   :  { %16698 = vmatprep.mubr.msk.f32.mxu0 %vm75_vm0, %v18945_v34 }
  0x3d   :  { %16621 = vmatmul.mubr.msk.f32.gmra.mrb[12].mxu1 %vm75_vm0, %v18912_v29 }
  0x3e   :  { %16699 = vmatmul.mubr.msk.f32.gmra.mrb[12].mxu0 %vm75_vm0, %v18961_v36  ;;  %16623 = vmatprep.mubr.msk.f32.mxu1 %vm75_vm0, %v18922_v31 }
  0x3f   :  { %16701 = vmatprep.mubr.msk.f32.mxu0 %vm75_vm0, %v19042_v41 }
  0x41   :  { %16624 = vmatmul.mubr.msk.f32.gmra.mrb[14].mxu1 %vm75_vm0, %v18940_v33 }
  0x42   :  { %16702 = vmatmul.mubr.msk.f32.gmra.mrb[14].mxu0 %vm75_vm0, %v19055_v42  ;;  %16628 = vmatprep.mubr.msk.f32.mxu1 %vm75_vm0, %v462_v43  ;;  %v19603_v43 = vld [vmem:[%s23168_s0 + $0x15a] sm:$0xff] }
  0x43   :  { %16706 = vmatprep.mubr.msk.f32.mxu0 %vm75_vm0, %v14518_v44  ;;  %23241 = vst [vmem:[#allocation16_spill] sm:$0xff] %v19603_v43 }
  0x45   :  { %16629 = vmatmul.mubr.msk.f32.vlgmr.msra.gmra.mrb[0].mxu1 %vm75_vm0, %v463_v45  ;;  %v19621_v45 = vld [vmem:[%s23168_s0 + $0x172] sm:$0xff] }
  0x46   :  { %16707 = vmatmul.mubr.msk.f32.vlgmr.msra.gmra.mrb[0].mxu0 %vm75_vm0, %v14519_v46  ;;  %16809 = vmatpush3.msra.mxu1 %v18719_v0  ;;  %23243 = vst [vmem:[#allocation18_spill] sm:$0xff] %v19621_v45 }
  0x47   :  { %16631 = vmatprep.mubr.msk.f32.mxu1 %vm75_vm0, %v14518_v44  ;;  %16709 = vmatprep.mubr.msk.f32.mxu0 %vm75_vm0, %v19078_v47  ;;  %v19610_v44 = vld [vmem:[%s23168_s0 + $0x16a] sm:$0xff] }
  0x48   :  { %16731 = vmatpush3.msra.mxu0 %v18990_v40  ;;  %16834 = vmatprep.subr.mxu1 %v18742_v5  ;;  %23242 = vst [vmem:[#allocation17_spill] sm:$0xff] %v19610_v44 }
  0x49   :  { %16632 = vmatmul.mubr.msk.f32.gmra.mrb[2].mxu1 %vm75_vm0, %v14519_v46  ;;  %16756 = vmatprep.subr.mxu0 %v19086_v48  ;;  %v14963_v46 = vld [vmem:[%s23168_s0 + $0x1b1] sm:$0xff] }
  0x4a   :  { %16710 = vmatmul.mubr.msk.f32.gmra.mrb[2].mxu0 %vm75_vm0, %v19094_v49  ;;  %16634 = vmatprep.mubr.msk.f32.mxu1 %vm75_vm0, %v19078_v47 }
  0x4b   :  { %16712 = vmatprep.mubr.msk.f32.mxu0 %vm75_vm0, %v19099_v50 }
  0x4d   :  { %16635 = vmatmul.mubr.msk.f32.gmra.mrb[4].mxu1 %vm75_vm0, %v19094_v49 }
  0x4e   :  { %16713 = vmatmul.mubr.msk.f32.gmra.mrb[4].mxu0 %vm75_vm0, %v19114_v51  ;;  %16637 = vmatprep.mubr.msk.f32.mxu1 %vm75_vm0, %v19099_v50 }
  0x4f   :  { %16715 = vmatprep.mubr.msk.f32.mxu0 %vm75_vm0, %v19119_v52 }
  0x51   :  { %16638 = vmatmul.mubr.msk.f32.gmra.mrb[6].mxu1 %vm75_vm0, %v19114_v51 }
  0x52   :  { %16716 = vmatmul.mubr.msk.f32.gmra.mrb[6].mxu0 %vm75_vm0, %v19132_v53  ;;  %16640 = vmatprep.mubr.msk.f32.mxu1 %vm75_vm0, %v19119_v52 }
  0x53   :  { %16718 = vmatprep.mubr.msk.f32.mxu0 %vm75_vm0, %v19137_v54 }
  0x55   :  { %16641 = vmatmul.mubr.msk.f32.gmra.mrb[8].mxu1 %vm75_vm0, %v19132_v53 }
  0x56   :  { %16719 = vmatmul.mubr.msk.f32.gmra.mrb[8].mxu0 %vm75_vm0, %v19150_v55  ;;  %16643 = vmatprep.mubr.msk.f32.mxu1 %vm75_vm0, %v19137_v54 }
  0x57   :  { %16721 = vmatprep.mubr.msk.f32.mxu0 %vm75_vm0, %v19155_v56 }
  0x59   :  { %16644 = vmatmul.mubr.msk.f32.gmra.mrb[10].mxu1 %vm75_vm0, %v19150_v55 }
  0x5a   :  { %16722 = vmatmul.mubr.msk.f32.gmra.mrb[10].mxu0 %vm75_vm0, %v19168_v57  ;;  %16646 = vmatprep.mubr.msk.f32.mxu1 %vm75_vm0, %v19155_v56 }
  0x5b   :  { %16724 = vmatprep.mubr.msk.f32.mxu0 %vm75_vm0, %v19173_v58 }
  0x5d   :  { %16647 = vmatmul.mubr.msk.f32.gmra.mrb[12].mxu1 %vm75_vm0, %v19168_v57 }
  0x5e   :  { %16725 = vmatmul.mubr.msk.f32.gmra.mrb[12].mxu0 %vm75_vm0, %v19186_v59  ;;  %16649 = vmatprep.mubr.msk.f32.mxu1 %vm75_vm0, %v19173_v58 }
  0x5f   :  { %16727 = vmatprep.mubr.msk.f32.mxu0 %vm75_vm0, %v19191_v60 }
  0x61   :  { %16650 = vmatmul.mubr.msk.f32.gmra.mrb[14].mxu1 %vm75_vm0, %v19186_v59 }
  0x62   :  { %16728 = vmatmul.mubr.msk.f32.gmra.mrb[14].mxu0 %vm75_vm0, %v19204_v61  ;;  %16810 = vmatprep.mubr.msk.f32.mxu1 %vm75_vm0, %v19042_v41 }
  0x63   :  { %16732 = vmatprep.mubr.msk.f32.mxu0 %vm75_vm0, %v18762_v8  ;;  %v19280_v8 = vld [vmem:[%s23168_s0 + $0x121] sm:$0xff] }
  0x65   :  { %16811 = vmatmul.mubr.msk.f32.vlgmr.msra.gmra.mrb[16].mxu1 %vm75_vm0, %v19055_v42 }
  0x66   :  { %16733 = vmatmul.mubr.msk.f32.vlgmr.msra.gmra.mrb[0].mxu0 %vm75_vm0, %v18781_v10  ;;  %16835 = vmatpush3.msra.mxu1 %v18742_v5  ;;  %v19298_v10 = vld [vmem:[%s23168_s0 + $0x139] sm:$0xff] }
  0x67   :  { %16735 = vmatprep.mubr.msk.f32.mxu0 %vm75_vm0, %v18791_v12  ;;  %16813 = vmatprep.mubr.msk.f32.mxu1 %vm75_vm0, %v19217_v62  ;;  %v19309_v12 = vld [vmem:[%s23168_s0 + $0x141] sm:$0xff] }
  0x68   :  { %16757 = vmatpush3.msra.mxu0 %v19086_v48  ;;  %16860 = vmatprep.subr.mxu1 %v18832_v18  ;;  %23233 = vst [vmem:[#allocation8_spill] sm:$0xff] %v19309_v12 }
  0x69   :  { %16814 = vmatmul.mubr.msk.f32.gmra.mrb[18].mxu1 %vm75_vm0, %v19227_v63  ;;  %16782 = vmatprep.subr.mxu0 %v19232_v2 }
  0x6a   :  { %16736 = vmatmul.mubr.msk.f32.gmra.mrb[2].mxu0 %vm75_vm0, %v18809_v14  ;;  %16816 = vmatprep.mubr.msk.f32.mxu1 %vm75_vm0, %v19241_v3  ;;  %v19316_v14 = vld [vmem:[%s23168_s0 + $0x151] sm:$0xff] }
  0x6b   :  { %16738 = vmatprep.mubr.msk.f32.mxu0 %vm75_vm0, %v18819_v16  ;;  %23234 = vst [vmem:[#allocation9_spill] sm:$0xff] %v19316_v14  ;;  %v19327_v16 = vld [vmem:[%s23168_s0 + $0x159] sm:$0xff] }
  0x6c   :  { %23235 = vst [vmem:[#allocation10_spill] sm:$0xff] %v19327_v16 }
  0x6d   :  { %16817 = vmatmul.mubr.msk.f32.gmra.mrb[20].mxu1 %vm75_vm0, %v19255_v4 }
  0x6e   :  { %16739 = vmatmul.mubr.msk.f32.gmra.mrb[4].mxu0 %vm75_vm0, %v18853_v21  ;;  %16819 = vmatprep.mubr.msk.f32.mxu1 %vm75_vm0, %v19262_v6  ;;  %v19334_v21 = vld [vmem:[%s23168_s0 + $0x169] sm:$0xff] }
  0x6f   :  { %16741 = vmatprep.mubr.msk.f32.mxu0 %vm75_vm0, %v18864_v23  ;;  %23236 = vst [vmem:[#allocation11_spill] sm:$0xff] %v19334_v21  ;;  %v19339_v23 = vld [vmem:[%s23168_s0 + $0xd8] sm:$0xff] }
  0x71   :  { %16820 = vmatmul.mubr.msk.f32.gmra.mrb[22].mxu1 %vm75_vm0, %v19273_v7 }
  0x72   :  { %16742 = vmatmul.mubr.msk.f32.gmra.mrb[6].mxu0 %vm75_vm0, %v18884_v25  ;;  %16822 = vmatprep.mubr.msk.f32.mxu1 %vm75_vm0, %v19280_v8  ;;  %v19350_v25 = vld [vmem:[%s23168_s0 + $0x171] sm:$0xff] }
  0x73   :  { %16744 = vmatprep.mubr.msk.f32.mxu0 %vm75_vm0, %v18894_v27  ;;  %23237 = vst [vmem:[#allocation12_spill] sm:$0xff] %v19350_v25  ;;  %v19357_v27 = vld [vmem:[%s23168_s0 + $0xe0] sm:$0xff] }
  0x75   :  { %16823 = vmatmul.mubr.msk.f32.gmra.mrb[24].mxu1 %vm75_vm0, %v19291_v9 }
  0x76   :  { %16745 = vmatmul.mubr.msk.f32.gmra.mrb[8].mxu0 %vm75_vm0, %v18912_v29  ;;  %16825 = vmatprep.mubr.msk.f32.mxu1 %vm75_vm0, %v19298_v10  ;;  %v19379_v29 = vld [vmem:[%s23168_s0 + $0xf0] sm:$0xff] }
  0x77   :  { %16747 = vmatprep.mubr.msk.f32.mxu0 %vm75_vm0, %v18922_v31  ;;  %v19472_v31 = vld [vmem:[%s23168_s0 + $0x168] sm:$0xff] }
  0x79   :  { %16826 = vmatmul.mubr.msk.f32.gmra.mrb[26].mxu1 %vm75_vm0, %v19309_v12 }
  0x7a   :  { %16748 = vmatmul.mubr.msk.f32.gmra.mrb[10].mxu0 %vm75_vm0, %v18940_v33  ;;  %16828 = vmatprep.mubr.msk.f32.mxu1 %vm75_vm0, %v19316_v14  ;;  %v19498_v33 = vld [vmem:[%s23168_s0 + $0xda] sm:$0xff] }
  0x7b   :  { %16750 = vmatprep.mubr.msk.f32.mxu0 %vm75_vm0, %v18950_v35 }
  0x7d   :  { %16829 = vmatmul.mubr.msk.f32.gmra.mrb[28].mxu1 %vm75_vm0, %v19327_v16 }
  0x7e   :  { %16751 = vmatmul.mubr.msk.f32.gmra.mrb[12].mxu0 %vm75_vm0, %v18968_v37  ;;  %16831 = vmatprep.mubr.msk.f32.mxu1 %vm75_vm0, %v19334_v21 }
  0x7f   :  { %16753 = vmatprep.mubr.msk.f32.mxu0 %vm75_vm0, %v19339_v23 }
  0x81   :  { %16832 = vmatmul.mubr.msk.f32.gmra.mrb[30].mxu1 %vm75_vm0, %v19350_v25 }
  0x82   :  { %16754 = vmatmul.mubr.msk.f32.gmra.mrb[14].mxu0 %vm75_vm0, %v19357_v27  ;;  %16836 = vmatprep.mubr.msk.f32.mxu1 %vm75_vm0, %v18950_v35  ;;  %v19517_v35 = vld [vmem:[%s23168_s0 + $0xf2] sm:$0xff] }
  0x83   :  { %16758 = vmatprep.mubr.msk.f32.mxu0 %vm75_vm0, %v18786_v11  ;;  %v19393_v11 = vld [vmem:[%s23168_s0 + $0xf8] sm:$0xff] }
  0x85   :  { %16837 = vmatmul.mubr.msk.f32.vlgmr.msra.gmra.mrb[16].mxu1 %vm75_vm0, %v18968_v37  ;;  %v19556_v37 = vld [vmem:[%s23168_s0 + $0x122] sm:$0xff] }
  0x86   :  { %16759 = vmatmul.mubr.msk.f32.vlgmr.msra.gmra.mrb[0].mxu0 %vm75_vm0, %v18802_v13  ;;  %16861 = vmatpush3.msra.mxu1 %v18832_v18  ;;  %v19400_v13 = vld [vmem:[%s23168_s0 + $0x108] sm:$0xff]  ;;  %23238 = vst [vmem:[#allocation13_spill] sm:$0xff] %v19556_v37 }
  0x87   :  { %16761 = vmatprep.mubr.msk.f32.mxu0 %vm75_vm0, %v18814_v15  ;;  %16839 = vmatprep.mubr.msk.f32.mxu1 %vm75_vm0, %v19339_v23  ;;  %v19411_v15 = vld [vmem:[%s23168_s0 + $0x110] sm:$0xff] }
  0x88   :  { %16783 = vmatpush3.msra.mxu0 %v19232_v2  ;;  %16886 = vmatprep.subr.mxu1 %v18724_v1 }
  0x89   :  { %16840 = vmatmul.mubr.msk.f32.gmra.mrb[18].mxu1 %vm75_vm0, %v19357_v27  ;;  %17042 = vmatprep.subr.mxu0 %v18719_v0 }
  0x8a   :  { %16762 = vmatmul.mubr.msk.f32.gmra.mrb[2].mxu0 %vm75_vm0, %v18841_v19  ;;  %16842 = vmatprep.mubr.msk.f32.mxu1 %vm75_vm0, %v19379_v29  ;;  %v19418_v19 = vld [vmem:[%s23168_s0 + $0x120] sm:$0xff] }
  0x8b   :  { %16764 = vmatprep.mubr.msk.f32.mxu0 %vm75_vm0, %v18858_v22  ;;  %v19429_v22 = vld [vmem:[%s23168_s0 + $0x128] sm:$0xff] }
  0x8d   :  { %16843 = vmatmul.mubr.msk.f32.gmra.mrb[20].mxu1 %vm75_vm0, %v19393_v11 }
  0x8e   :  { %16765 = vmatmul.mubr.msk.f32.gmra.mrb[4].mxu0 %vm75_vm0, %v18877_v24  ;;  %16845 = vmatprep.mubr.msk.f32.mxu1 %vm75_vm0, %v19400_v13  ;;  %v19436_v24 = vld [vmem:[%s23168_s0 + $0x138] sm:$0xff] }
  0x8f   :  { %16767 = vmatprep.mubr.msk.f32.mxu0 %vm75_vm0, %v18889_v26  ;;  %v19447_v26 = vld [vmem:[%s23168_s0 + $0x140] sm:$0xff] }
  0x91   :  { %16846 = vmatmul.mubr.msk.f32.gmra.mrb[22].mxu1 %vm75_vm0, %v19411_v15 }
  0x92   :  { %16768 = vmatmul.mubr.msk.f32.gmra.mrb[6].mxu0 %vm75_vm0, %v18905_v28  ;;  %16848 = vmatprep.mubr.msk.f32.mxu1 %vm75_vm0, %v19418_v19  ;;  %v19454_v28 = vld [vmem:[%s23168_s0 + $0x150] sm:$0xff] }
  0x93   :  { %16770 = vmatprep.mubr.msk.f32.mxu0 %vm75_vm0, %v18917_v30  ;;  %v19465_v30 = vld [vmem:[%s23168_s0 + $0x158] sm:$0xff] }
  0x95   :  { %16849 = vmatmul.mubr.msk.f32.gmra.mrb[24].mxu1 %vm75_vm0, %v19429_v22 }
  0x96   :  { %16771 = vmatmul.mubr.msk.f32.gmra.mrb[8].mxu0 %vm75_vm0, %v18933_v32  ;;  %16851 = vmatprep.mubr.msk.f32.mxu1 %vm75_vm0, %v19436_v24  ;;  %v19483_v32 = vld [vmem:[%s23168_s0 + $0x170] sm:$0xff] }
  0x97   :  { %16773 = vmatprep.mubr.msk.f32.mxu0 %vm75_vm0, %v18945_v34  ;;  %v19508_v34 = vld [vmem:[%s23168_s0 + $0xe2] sm:$0xff] }
  0x99   :  { %16852 = vmatmul.mubr.msk.f32.gmra.mrb[26].mxu1 %vm75_vm0, %v19447_v26 }
  0x9a   :  { %16774 = vmatmul.mubr.msk.f32.gmra.mrb[10].mxu0 %vm75_vm0, %v18961_v36  ;;  %16854 = vmatprep.mubr.msk.f32.mxu1 %vm75_vm0, %v19454_v28  ;;  %v19549_v36 = vld [vmem:[%s23168_s0 + $0x112] sm:$0xff] }
  0x9b   :  { %16776 = vmatprep.mubr.msk.f32.mxu0 %vm75_vm0, %v19042_v41  ;;  %v19585_v41 = vld [vmem:[%s23168_s0 + $0x142] sm:$0xff] }
  0x9c   :  { %23240 = vst [vmem:[#allocation15_spill] sm:$0xff] %v19585_v41 }
  0x9d   :  { %16855 = vmatmul.mubr.msk.f32.gmra.mrb[28].mxu1 %vm75_vm0, %v19465_v30 }
  0x9e   :  { %16777 = vmatmul.mubr.msk.f32.gmra.mrb[12].mxu0 %vm75_vm0, %v19055_v42  ;;  %16857 = vmatprep.mubr.msk.f32.mxu1 %vm75_vm0, %v19472_v31  ;;  %v19592_v42 = vld [vmem:[%s23168_s0 + $0x152] sm:$0xff] }
  0x9f   :  { %16779 = vmatprep.mubr.msk.f32.mxu0 %vm75_vm0, %v19217_v62 }
  0xa1   :  { %16858 = vmatmul.mubr.msk.f32.gmra.mrb[30].mxu1 %vm75_vm0, %v19483_v32 }
  0xa2   :  { %16780 = vmatmul.mubr.msk.f32.gmra.mrb[14].mxu0 %vm75_vm0, %v19227_v63  ;;  %16862 = vmatprep.mubr.msk.f32.mxu1 %vm75_vm0, %v19191_v60 }
  0xa3   :  { %16784 = vmatprep.mubr.msk.f32.mxu0 %vm75_vm0, %v19078_v47  ;;  %v14964_v47 = vld [vmem:[%s23168_s0 + $0x1b9] sm:$0xff] }
  0xa5   :  { %16863 = vmatmul.mubr.msk.f32.vlgmr.msra.gmra.mrb[16].mxu1 %vm75_vm0, %v19204_v61 }
  0xa6   :  { %16785 = vmatmul.mubr.msk.f32.vlgmr.msra.gmra.mrb[0].mxu0 %vm75_vm0, %v19094_v49  ;;  %16887 = vmatpush3.msra.mxu1 %v18724_v1  ;;  %v19531_v1 = vld [vmem:[%s23168_s0 + $0xfa] sm:$0xff]  ;;  %v19641_v49 = vld [vmem:[%s23168_s0 + $0x1c9] sm:$0xff] }
  0xa7   :  { %16787 = vmatprep.mubr.msk.f32.mxu0 %vm75_vm0, %v19099_v50  ;;  %16865 = vmatprep.mubr.msk.f32.mxu1 %vm75_vm0, %v19498_v33  ;;  %v19654_v50 = vld [vmem:[%s23168_s0 + $0x1d1] sm:$0xff] }
  0xa8   :  { %17043 = vmatpush3.msra.mxu0 %v18719_v0  ;;  %16912 = vmatprep.subr.mxu1 %v18824_v17  ;;  %v19538_v0 = vld [vmem:[%s23168_s0 + $0x10a] sm:$0xff] }
  0xa9   :  { %16866 = vmatmul.mubr.msk.f32.gmra.mrb[18].mxu1 %vm75_vm0, %v19508_v34  ;;  %17068 = vmatprep.subr.mxu0 %v18742_v5 }
  0xaa   :  { %16788 = vmatmul.mubr.msk.f32.gmra.mrb[2].mxu0 %vm75_vm0, %v19114_v51  ;;  %16868 = vmatprep.mubr.msk.f32.mxu1 %vm75_vm0, %v19517_v35  ;;  %v19659_v51 = vld [vmem:[%s23168_s0 + $0x1e1] sm:$0xff] }
  0xab   :  { %16790 = vmatprep.mubr.msk.f32.mxu0 %vm75_vm0, %v19119_v52  ;;  %v19693_v52 = vld [vmem:[%s23168_s0 + $0x201] sm:$0xff] }
  0xad   :  { %16869 = vmatmul.mubr.msk.f32.gmra.mrb[20].mxu1 %vm75_vm0, %v19531_v1 }
  0xae   :  { %16791 = vmatmul.mubr.msk.f32.gmra.mrb[4].mxu0 %vm75_vm0, %v19132_v53  ;;  %16871 = vmatprep.mubr.msk.f32.mxu1 %vm75_vm0, %v19538_v0  ;;  %v19698_v53 = vld [vmem:[%s23168_s0 + $0x211] sm:$0xff] }
  0xaf   :  { %16793 = vmatprep.mubr.msk.f32.mxu0 %vm75_vm0, %v19137_v54  ;;  %v19711_v54 = vld [vmem:[%s23168_s0 + $0x219] sm:$0xff] }
  0xb0   :  { %23244 = vst [vmem:[#allocation19_spill] sm:$0xff] %v19711_v54 }
  0xb1   :  { %16872 = vmatmul.mubr.msk.f32.gmra.mrb[22].mxu1 %vm75_vm0, %v19549_v36 }
  0xb2   :  { %16794 = vmatmul.mubr.msk.f32.gmra.mrb[6].mxu0 %vm75_vm0, %v19150_v55  ;;  %16874 = vmatprep.mubr.msk.f32.mxu1 %vm75_vm0, %v19556_v37  ;;  %v19716_v55 = vld [vmem:[%s23168_s0 + $0x229] sm:$0xff] }
  0xb3   :  { %16796 = vmatprep.mubr.msk.f32.mxu0 %vm75_vm0, %v19155_v56  ;;  %23245 = vst [vmem:[#allocation20_spill] sm:$0xff] %v19716_v55  ;;  %v19729_v56 = vld [vmem:[%s23168_s0 + $0x231] sm:$0xff] }
  0xb4   :  { %23246 = vst [vmem:[#allocation21_spill] sm:$0xff] %v19729_v56 }
  0xb5   :  { %16875 = vmatmul.mubr.msk.f32.gmra.mrb[24].mxu1 %vm75_vm0, %v19567_v38 }
  0xb6   :  { %16797 = vmatmul.mubr.msk.f32.gmra.mrb[8].mxu0 %vm75_vm0, %v19168_v57  ;;  %16877 = vmatprep.mubr.msk.f32.mxu1 %vm75_vm0, %v19574_v39  ;;  %v19734_v57 = vld [vmem:[%s23168_s0 + $0x241] sm:$0xff] }
  0xb7   :  { %16799 = vmatprep.mubr.msk.f32.mxu0 %vm75_vm0, %v19173_v58  ;;  %23247 = vst [vmem:[#allocation22_spill] sm:$0xff] %v19734_v57  ;;  %v19747_v58 = vld [vmem:[%s23168_s0 + $0x249] sm:$0xff] }
  0xb8   :  { %23248 = vst [vmem:[#allocation23_spill] sm:$0xff] %v19747_v58 }
  0xb9   :  { %16878 = vmatmul.mubr.msk.f32.gmra.mrb[26].mxu1 %vm75_vm0, %v19585_v41 }
  0xba   :  { %16800 = vmatmul.mubr.msk.f32.gmra.mrb[10].mxu0 %vm75_vm0, %v19186_v59  ;;  %16880 = vmatprep.mubr.msk.f32.mxu1 %vm75_vm0, %v19592_v42  ;;  %v19752_v59 = vld [vmem:[%s23168_s0 + $0x180] sm:$0xff] }
  0xbb   :  { %16802 = vmatprep.mubr.msk.f32.mxu0 %vm75_vm0, %v19191_v60  ;;  %v19757_v60 = vld [vmem:[%s23168_s0 + $0x259] sm:$0xff] }
  0xbc   :  { %23249 = vst [vmem:[#allocation24_spill] sm:$0xff] %v19757_v60 }
  0xbd   :  { %16881 = vmatmul.mubr.msk.f32.gmra.mrb[28].mxu1 %vm75_vm0, %v19603_v43 }
  0xbe   :  { %16803 = vmatmul.mubr.msk.f32.gmra.mrb[12].mxu0 %vm75_vm0, %v19204_v61  ;;  %16883 = vmatprep.mubr.msk.f32.mxu1 %vm75_vm0, %v19610_v44  ;;  %v19768_v61 = vld [vmem:[%s23168_s0 + $0x188] sm:$0xff] }
  0xbf   :  { %16805 = vmatprep.mubr.msk.f32.mxu0 %vm75_vm0, %v19498_v33 }
  0xc1   :  { %16884 = vmatmul.mubr.msk.f32.gmra.mrb[30].mxu1 %vm75_vm0, %v19621_v45 }
  0xc2   :  { %16806 = vmatmul.mubr.msk.f32.gmra.mrb[14].mxu0 %vm75_vm0, %v19508_v34  ;;  %16888 = vmatprep.mubr.msk.f32.mxu1 %vm75_vm0, %v19339_v23  ;;  %v19775_v23 = vld [vmem:[%s23168_s0 + $0x261] sm:$0xff] }
  0xc3   :  { %17044 = vmatprep.mubr.msk.f32.mxu0 %vm75_vm0, %v14963_v46  ;;  %23250 = vst [vmem:[#allocation25_spill] sm:$0xff] %v19775_v23  ;;  %v14948_v46 = vld [vmem:[%s23168_s0 + $0x1b8] sm:$0xff] }
  0xc5   :  { %16889 = vmatmul.mubr.msk.f32.vlgmr.msra.gmra.mrb[16].mxu1 %vm75_vm0, %v19357_v27  ;;  %v14947_v27 = vld [vmem:[%s23168_s0 + $0x1b0] sm:$0xff] }
  0xc6   :  { %17045 = vmatmul.mubr.msk.f32.vlgmr.msra.gmra.mrb[16].mxu0 %vm75_vm0, %v14964_v47  ;;  %16913 = vmatpush3.msra.mxu1 %v18824_v17  ;;  %v19680_v17 = vld [vmem:[%s23168_s0 + $0x1f9] sm:$0xff]  ;;  %v19793_v47 = vld [vmem:[%s23168_s0 + $0x1c8] sm:$0xff] }
  0xc7   :  { %16891 = vmatprep.mubr.msk.f32.mxu1 %vm75_vm0, %v19379_v29  ;;  %17047 = vmatprep.mubr.msk.f32.mxu0 %vm75_vm0, %v19641_v49 }
  0xc8   :  { %17069 = vmatpush3.msra.mxu0 %v18742_v5  ;;  %16938 = vmatprep.subr.mxu1 %v18846_v20  ;;  %v19675_v5 = vld [vmem:[%s23168_s0 + $0x1e9] sm:$0xff] }
  0xc9   :  { %16892 = vmatmul.mubr.msk.f32.gmra.mrb[18].mxu1 %vm75_vm0, %v19393_v11  ;;  %17094 = vmatprep.subr.mxu0 %v18832_v18 }
  0xca   :  { %17048 = vmatmul.mubr.msk.f32.gmra.mrb[18].mxu0 %vm75_vm0, %v19654_v50  ;;  %16894 = vmatprep.mubr.msk.f32.mxu1 %vm75_vm0, %v19400_v13 }
  0xcb   :  { %17050 = vmatprep.mubr.msk.f32.mxu0 %vm75_vm0, %v19659_v51 }
  0xcd   :  { %16895 = vmatmul.mubr.msk.f32.gmra.mrb[20].mxu1 %vm75_vm0, %v19411_v15 }
  0xce   :  { %17051 = vmatmul.mubr.msk.f32.gmra.mrb[20].mxu0 %vm75_vm0, %v19675_v5  ;;  %16897 = vmatprep.mubr.msk.f32.mxu1 %vm75_vm0, %v19418_v19 }
  0xcf   :  { %17053 = vmatprep.mubr.msk.f32.mxu0 %vm75_vm0, %v19680_v17 }
  0xd1   :  { %16898 = vmatmul.mubr.msk.f32.gmra.mrb[22].mxu1 %vm75_vm0, %v19429_v22 }
  0xd2   :  { %17054 = vmatmul.mubr.msk.f32.gmra.mrb[22].mxu0 %vm75_vm0, %v19693_v52  ;;  %16900 = vmatprep.mubr.msk.f32.mxu1 %vm75_vm0, %v19436_v24 }
  0xd3   :  { %17056 = vmatprep.mubr.msk.f32.mxu0 %vm75_vm0, %v19698_v53 }
  0xd5   :  { %16901 = vmatmul.mubr.msk.f32.gmra.mrb[24].mxu1 %vm75_vm0, %v19447_v26 }
  0xd6   :  { %17057 = vmatmul.mubr.msk.f32.gmra.mrb[24].mxu0 %vm75_vm0, %v19711_v54  ;;  %16903 = vmatprep.mubr.msk.f32.mxu1 %vm75_vm0, %v19454_v28  ;;  %v19929_v54 = vld [vmem:[%s23168_s0 + $0x260] sm:$0xff] }
  0xd7   :  { %17059 = vmatprep.mubr.msk.f32.mxu0 %vm75_vm0, %v19716_v55  ;;  %v19901_v55 = vld [vmem:[%s23168_s0 + $0x248] sm:$0xff] }
  0xd9   :  { %16904 = vmatmul.mubr.msk.f32.gmra.mrb[26].mxu1 %vm75_vm0, %v19465_v30 }
  0xda   :  { %17060 = vmatmul.mubr.msk.f32.gmra.mrb[26].mxu0 %vm75_vm0, %v19729_v56  ;;  %16906 = vmatprep.mubr.msk.f32.mxu1 %vm75_vm0, %v19472_v31  ;;  %v19888_v56 = vld [vmem:[%s23168_s0 + $0x240] sm:$0xff] }
  0xdb   :  { %17062 = vmatprep.mubr.msk.f32.mxu0 %vm75_vm0, %v19734_v57  ;;  %v19883_v57 = vld [vmem:[%s23168_s0 + $0x230] sm:$0xff] }
  0xdd   :  { %16907 = vmatmul.mubr.msk.f32.gmra.mrb[28].mxu1 %vm75_vm0, %v19483_v32 }
  0xde   :  { %17063 = vmatmul.mubr.msk.f32.gmra.mrb[28].mxu0 %vm75_vm0, %v19747_v58  ;;  %16909 = vmatprep.mubr.msk.f32.mxu1 %vm75_vm0, %v19752_v59  ;;  %v19870_v58 = vld [vmem:[%s23168_s0 + $0x228] sm:$0xff] }
  0xdf   :  { %17065 = vmatprep.mubr.msk.f32.mxu0 %vm75_vm0, %v19757_v60  ;;  %v19865_v60 = vld [vmem:[%s23168_s0 + $0x218] sm:$0xff] }
  0xe1   :  { %16910 = vmatmul.mubr.msk.f32.gmra.mrb[30].mxu1 %vm75_vm0, %v19768_v61 }
  0xe2   :  { %17066 = vmatmul.mubr.msk.f32.gmra.mrb[30].mxu0 %vm75_vm0, %v19775_v23  ;;  %16914 = vmatprep.mubr.msk.f32.mxu1 %vm75_vm0, %v19217_v62  ;;  %v15061_v62 = vld [vmem:[%s23169_s1 + $0x18] sm:$0xff]  ;;  %v19852_v23 = vld [vmem:[%s23168_s0 + $0x210] sm:$0xff] }
  0xe3   :  { %17070 = vmatprep.mubr.msk.f32.mxu0 %vm75_vm0, %v14947_v27  ;;  %v19809_v27 = vld [vmem:[%s23168_s0 + $0x1d0] sm:$0xff] }
  0xe5   :  { %16915 = vmatmul.mubr.msk.f32.vlgmr.msra.gmra.mrb[16].mxu1 %vm75_vm0, %v19227_v63  ;;  %v19814_v63 = vld [vmem:[%s23168_s0 + $0x1e0] sm:$0xff] }
  0xe6   :  { %17071 = vmatmul.mubr.msk.f32.vlgmr.msra.gmra.mrb[16].mxu0 %vm75_vm0, %v14948_v46  ;;  %16939 = vmatpush3.msra.mxu1 %v18846_v20  ;;  %v19829_v20 = vld [vmem:[%s23168_s0 + $0x1e8] sm:$0xff]  ;;  %v19847_v46 = vld [vmem:[%s23168_s0 + $0x200] sm:$0xff] }
  0xe7   :  { %16917 = vmatprep.mubr.msk.f32.mxu1 %vm75_vm0, %v19241_v3  ;;  %17073 = vmatprep.mubr.msk.f32.mxu0 %vm75_vm0, %v19793_v47 }
  0xe8   :  { %17095 = vmatpush3.msra.mxu0 %v18832_v18  ;;  %16964 = vmatprep.subr.mxu1 %v18990_v40  ;;  %v19834_v18 = vld [vmem:[%s23168_s0 + $0x1f8] sm:$0xff] }
  0xe9   :  { %16918 = vmatmul.mubr.msk.f32.gmra.mrb[18].mxu1 %vm75_vm0, %v19255_v4  ;;  %17120 = vmatprep.subr.mxu0 %v15061_v62 }
  0xea   :  { %17074 = vmatmul.mubr.msk.f32.gmra.mrb[18].mxu0 %vm75_vm0, %v19809_v27  ;;  %16920 = vmatprep.mubr.msk.f32.mxu1 %vm75_vm0, %v19262_v6 }
  0xeb   :  { %17076 = vmatprep.mubr.msk.f32.mxu0 %vm75_vm0, %v19814_v63 }
  0xed   :  { %16921 = vmatmul.mubr.msk.f32.gmra.mrb[20].mxu1 %vm75_vm0, %v19273_v7 }
  0xee   :  { %17077 = vmatmul.mubr.msk.f32.gmra.mrb[20].mxu0 %vm75_vm0, %v19829_v20  ;;  %16923 = vmatprep.mubr.msk.f32.mxu1 %vm75_vm0, %v19280_v8 }
  0xef   :  { %17079 = vmatprep.mubr.msk.f32.mxu0 %vm75_vm0, %v19834_v18 }
  0xf1   :  { %16924 = vmatmul.mubr.msk.f32.gmra.mrb[22].mxu1 %vm75_vm0, %v19291_v9 }
  0xf2   :  { %17080 = vmatmul.mubr.msk.f32.gmra.mrb[22].mxu0 %vm75_vm0, %v19847_v46  ;;  %16926 = vmatprep.mubr.msk.f32.mxu1 %vm75_vm0, %v19298_v10 }
  0xf3   :  { %17082 = vmatprep.mubr.msk.f32.mxu0 %vm75_vm0, %v19852_v23 }
  0xf5   :  { %16927 = vmatmul.mubr.msk.f32.gmra.mrb[24].mxu1 %vm75_vm0, %v19309_v12  ;;  %v19947_v12 = vld [vmem:[%s23168_s0 + $0x1ca] sm:$0xff] }
  0xf6   :  { %17083 = vmatmul.mubr.msk.f32.gmra.mrb[24].mxu0 %vm75_vm0, %v19865_v60  ;;  %16929 = vmatprep.mubr.msk.f32.mxu1 %vm75_vm0, %v19316_v14  ;;  %v19906_v14 = vld [vmem:[%s23168_s0 + $0x181] sm:$0xff] }
  0xf7   :  { %17085 = vmatprep.mubr.msk.f32.mxu0 %vm75_vm0, %v19870_v58  ;;  %23251 = vst [vmem:[#allocation26_spill] sm:$0xff] %v19906_v14 }
  0xf9   :  { %16930 = vmatmul.mubr.msk.f32.gmra.mrb[26].mxu1 %vm75_vm0, %v19327_v16  ;;  %v19911_v16 = vld [vmem:[%s23168_s0 + $0x258] sm:$0xff] }
  0xfa   :  { %17086 = vmatmul.mubr.msk.f32.gmra.mrb[26].mxu0 %vm75_vm0, %v19883_v57  ;;  %16932 = vmatprep.mubr.msk.f32.mxu1 %vm75_vm0, %v19334_v21  ;;  %v19922_v21 = vld [vmem:[%s23168_s0 + $0x189] sm:$0xff] }
  0xfb   :  { %17088 = vmatprep.mubr.msk.f32.mxu0 %vm75_vm0, %v19888_v56 }
  0xfd   :  { %16933 = vmatmul.mubr.msk.f32.gmra.mrb[28].mxu1 %vm75_vm0, %v19350_v25  ;;  %v15012_v25 = vld [vmem:[%s23168_s0 + $0x1b2] sm:$0xff] }
  0xfe   :  { %17089 = vmatmul.mubr.msk.f32.gmra.mrb[28].mxu0 %vm75_vm0, %v19901_v55  ;;  %16935 = vmatprep.mubr.msk.f32.mxu1 %vm75_vm0, %v19906_v14  ;;  %v15013_v14 = vld [vmem:[%s23168_s0 + $0x1ba] sm:$0xff] }
  0xff   :  { %17091 = vmatprep.mubr.msk.f32.mxu0 %vm75_vm0, %v19911_v16 }
 0x101   :  { %16936 = vmatmul.mubr.msk.f32.gmra.mrb[30].mxu1 %vm75_vm0, %v19922_v21 }
 0x102   :  { %17092 = vmatmul.mubr.msk.f32.gmra.mrb[30].mxu0 %vm75_vm0, %v19929_v54  ;;  %16940 = vmatprep.mubr.msk.f32.mxu1 %vm75_vm0, %v19498_v33  ;;  %v19965_v33 = vld [vmem:[%s23168_s0 + $0x1d2] sm:$0xff] }
 0x103   :  { %17096 = vmatprep.mubr.msk.f32.mxu0 %vm75_vm0, %v15012_v25  ;;  %v19956_v25 = vld [vmem:[%s23169_s1 + $0x20] sm:$0xff] }
 0x105   :  { %16941 = vmatmul.mubr.msk.f32.vlgmr.msra.gmra.mrb[16].mxu1 %vm75_vm0, %v19508_v34  ;;  %v19990_v34 = vld [vmem:[%s23168_s0 + $0x1fa] sm:$0xff] }
 0x106   :  { %17097 = vmatmul.mubr.msk.f32.vlgmr.msra.gmra.mrb[16].mxu0 %vm75_vm0, %v15013_v14  ;;  %16965 = vmatpush3.msra.mxu1 %v18990_v40  ;;  %v19970_v40 = vld [vmem:[%s23168_s0 + $0x1e2] sm:$0xff]  ;;  %v19985_v14 = vld [vmem:[%s23168_s0 + $0x1ea] sm:$0xff]  ;;  %23253 = vst [vmem:[#allocation28_spill] sm:$0xff] %v19990_v34 }
 0x107   :  { %16943 = vmatprep.mubr.msk.f32.mxu1 %vm75_vm0, %v19517_v35  ;;  %17099 = vmatprep.mubr.msk.f32.mxu0 %vm75_vm0, %v19947_v12  ;;  %23252 = vst [vmem:[#allocation27_spill] sm:$0xff] %v19970_v40 }
 0x108   :  { %17121 = vmatpush3.msra.mxu0 %v15061_v62  ;;  %16990 = vmatprep.subr.mxu1 %v19086_v48  ;;  %v20003_v62 = vld [vmem:[%s23168_s0 + $0x202] sm:$0xff] }
 0x109   :  { %16944 = vmatmul.mubr.msk.f32.gmra.mrb[18].mxu1 %vm75_vm0, %v19531_v1  ;;  %17146 = vmatprep.subr.mxu0 %v19956_v25  ;;  %23254 = vst [vmem:[#allocation29_spill] sm:$0xff] %v20003_v62 }
 0x10a   :  { %17100 = vmatmul.mubr.msk.f32.gmra.mrb[18].mxu0 %vm75_vm0, %v19965_v33  ;;  %16946 = vmatprep.mubr.msk.f32.mxu1 %vm75_vm0, %v19538_v0 }
 0x10b   :  { %17102 = vmatprep.mubr.msk.f32.mxu0 %vm75_vm0, %v19970_v40  ;;  %v20008_v40 = vld [vmem:[%s23168_s0 + $0x212] sm:$0xff] }
 0x10c   :  { %23255 = vst [vmem:[#allocation30_spill] sm:$0xff] %v20008_v40 }
 0x10d   :  { %16947 = vmatmul.mubr.msk.f32.gmra.mrb[20].mxu1 %vm75_vm0, %v19549_v36 }
 0x10e   :  { %17103 = vmatmul.mubr.msk.f32.gmra.mrb[20].mxu0 %vm75_vm0, %v19985_v14  ;;  %16949 = vmatprep.mubr.msk.f32.mxu1 %vm75_vm0, %v19556_v37  ;;  %v20026_v37 = vld [vmem:[%s23168_s0 + $0x22a] sm:$0xff] }
 0x10f   :  { %17105 = vmatprep.mubr.msk.f32.mxu0 %vm75_vm0, %v19990_v34  ;;  %v20021_v34 = vld [vmem:[%s23168_s0 + $0x21a] sm:$0xff] }
 0x111   :  { %16950 = vmatmul.mubr.msk.f32.gmra.mrb[22].mxu1 %vm75_vm0, %v19567_v38 }
 0x112   :  { %17106 = vmatmul.mubr.msk.f32.gmra.mrb[22].mxu0 %vm75_vm0, %v20003_v62  ;;  %16952 = vmatprep.mubr.msk.f32.mxu1 %vm75_vm0, %v19574_v39 }
 0x113   :  { %17108 = vmatprep.mubr.msk.f32.mxu0 %vm75_vm0, %v20008_v40  ;;  %v20039_v40 = vld [vmem:[%s23168_s0 + $0x232] sm:$0xff] }
 0x114   :  { %23256 = vst [vmem:[#allocation31_spill] sm:$0xff] %v20039_v40 }
 0x115   :  { %16953 = vmatmul.mubr.msk.f32.gmra.mrb[24].mxu1 %vm75_vm0, %v19585_v41  ;;  %v20046_v41 = vld [vmem:[%s23168_s0 + $0x242] sm:$0xff] }
 0x116   :  { %17109 = vmatmul.mubr.msk.f32.gmra.mrb[24].mxu0 %vm75_vm0, %v20021_v34  ;;  %16955 = vmatprep.mubr.msk.f32.mxu1 %vm75_vm0, %v19592_v42  ;;  %23258 = vst [vmem:[#allocation33_spill] sm:$0xff] %v20046_v41 }
 0x117   :  { %17111 = vmatprep.mubr.msk.f32.mxu0 %vm75_vm0, %v20026_v37 }
 0x118   :  { %v20041_v39 = vpop.f32.mrb[0].mxu1 }
 0x119   :  { %23257 = vst [vmem:[#allocation32_spill] sm:$0xff] %v20041_v39  ;;  %v20048_v62 = vpop.f32.mrb[1].mxu1  ;;  %16956 = vmatmul.mubr.msk.f32.gmra.mrb[26].mxu1 %vm75_vm0, %v19603_v43  ;;  %v20061_v39 = vld [vmem:[%s23168_s0 + $0x24a] sm:$0xff] }
 0x11a   :  { %23259 = vst [vmem:[#allocation34_spill] sm:$0xff] %v20048_v62  ;;  %17112 = vmatmul.mubr.msk.f32.gmra.mrb[26].mxu0 %vm75_vm0, %v20039_v40  ;;  %16958 = vmatprep.mubr.msk.f32.mxu1 %vm75_vm0, %v19610_v44  ;;  %v20066_v62 = vld [vmem:[%s23168_s0 + $0x182] sm:$0xff]  ;;  %v20073_v40 = vld [vmem:[%s23168_s0 + $0x25a] sm:$0xff] }
 0x11b   :  { %17114 = vmatprep.mubr.msk.f32.mxu0 %vm75_vm0, %v20046_v41  ;;  %23260 = vst [vmem:[#allocation35_spill] sm:$0xff] %v20066_v62  ;;  %23262 = vst [vmem:[#allocation37_spill] sm:$0xff] %v20073_v40 }
 0x11c   :  { %v20068_v43 = vpop.f32.mrb[2].mxu1 }
 0x11d   :  { %23261 = vst [vmem:[#allocation36_spill] sm:$0xff] %v20068_v43  ;;  %v20075_v44 = vpop.f32.mrb[3].mxu1  ;;  %16959 = vmatmul.mubr.msk.f32.gmra.mrb[28].mxu1 %vm75_vm0, %v19621_v45  ;;  %v20086_v43 = vld [vmem:[%s23168_s0 + $0x18a] sm:$0xff] }
 0x11e   :  { %23263 = vst [vmem:[#allocation38_spill] sm:$0xff] %v20075_v44  ;;  %17115 = vmatmul.mubr.msk.f32.gmra.mrb[28].mxu0 %vm75_vm0, %v20061_v39  ;;  %16961 = vmatprep.mubr.msk.f32.mxu1 %vm75_vm0, %v20066_v62  ;;  %v20093_v44 = vld [vmem:[%s23168_s0 + $0x262] sm:$0xff] }
 0x11f   :  { %17117 = vmatprep.mubr.msk.f32.mxu0 %vm75_vm0, %v20073_v40 }
 0x120   :  { %v20095_v45 = vpop.f32.mrb[4].mxu1 }
 0x121   :  { %v20097_v41 = vpop.f32.mrb[5].mxu1  ;;  %16962 = vmatmul.mubr.msk.f32.gmra.mrb[30].mxu1 %vm75_vm0, %v20086_v43 }
 0x122   :  { %23264 = vst [vmem:[#allocation39_spill] sm:$0xff] %v20097_v41  ;;  %17118 = vmatmul.mubr.msk.f32.gmra.mrb[30].mxu0 %vm75_vm0, %v20093_v44  ;;  %16966 = vmatprep.mubr.msk.f32.mxu1 %vm75_vm0, %v19379_v29  ;;  %v15127_v41 = vld [vmem:[%s23169_s1 + $0x28] sm:$0xff] }
 0x123   :  { %17122 = vmatprep.mubr.msk.f32.mxu0 %vm75_vm0, %v19793_v47 }
 0x124   :  { %v20107_v40 = vpop.f32.mrb[6].mxu1 }
 0x125   :  { %v20109_v62 = vpop.f32.mrb[7].mxu1  ;;  %16967 = vmatmul.mubr.msk.f32.vlgmr.msra.gmra.mrb[16].mxu1 %vm75_vm0, %v19393_v11 }
 0x126   :  { %17123 = vmatmul.mubr.msk.f32.vlgmr.msra.gmra.mrb[16].mxu0 %vm75_vm0, %v19809_v27  ;;  %16991 = vmatpush3.msra.mxu1 %v19086_v48 }
 0x127   :  { %16969 = vmatprep.mubr.msk.f32.mxu1 %vm75_vm0, %v19400_v13  ;;  %17125 = vmatprep.mubr.msk.f32.mxu0 %vm75_vm0, %v19814_v63 }
 0x128   :  { %v20123_v29 = vpop.f32.mrb[8].mxu1  ;;  %17147 = vmatpush3.msra.mxu0 %v19956_v25  ;;  %17016 = vmatprep.subr.mxu1 %v19232_v2  ;;  %v23293_v25 = vld [vmem:[#allocation37_spill] sm:$0xff] }
 0x129   :  { %v20127_v11 = vpop.f32.mrb[9].mxu1  ;;  %16970 = vmatmul.mubr.msk.f32.gmra.mrb[18].mxu1 %vm75_vm0, %v19411_v15  ;;  %17172 = vmatprep.subr.mxu0 %v15127_v41 }
 0x12a   :  { %17126 = vmatmul.mubr.msk.f32.gmra.mrb[18].mxu0 %vm75_vm0, %v19829_v20  ;;  %16972 = vmatprep.mubr.msk.f32.mxu1 %vm75_vm0, %v19418_v19  ;;  %v20352_v20 = vld [vmem:[%s23170_s2] ss:$0 sm:$0xff] }
 0x12b   :  { %17128 = vmatprep.mubr.msk.f32.mxu0 %vm75_vm0, %v19834_v18  ;;  %v23292_v18 = vld [vmem:[#allocation34_spill] sm:$0xff] }
 0x12c   :  { %v20137_v48 = vpop.f32.mrb[10].mxu1 }
 0x12d   :  { %v20139_v13 = vpop.f32.mrb[11].mxu1  ;;  %16973 = vmatmul.mubr.msk.f32.gmra.mrb[20].mxu1 %vm75_vm0, %v19429_v22 }
 0x12e   :  { %17129 = vmatmul.mubr.msk.f32.gmra.mrb[20].mxu0 %vm75_vm0, %v19847_v46  ;;  %16975 = vmatprep.mubr.msk.f32.mxu1 %vm75_vm0, %v19436_v24 }
 0x12f   :  { %17131 = vmatprep.mubr.msk.f32.mxu0 %vm75_vm0, %v19852_v23  ;;  %v23289_v23 = vld [vmem:[#allocation18_spill] sm:$0xff] }
 0x130   :  { %v20149_v15 = vpop.f32.mrb[12].mxu1 }
 0x131   :  { %v20151_v19 = vpop.f32.mrb[13].mxu1  ;;  %16976 = vmatmul.mubr.msk.f32.gmra.mrb[22].mxu1 %vm75_vm0, %v19447_v26  ;;  %v14862_v26 = vld [vmem:[%s23168_s0 + $0x198] sm:$0xff] }
 0x132   :  { %17132 = vmatmul.mubr.msk.f32.gmra.mrb[22].mxu0 %vm75_vm0, %v19865_v60  ;;  %16978 = vmatprep.mubr.msk.f32.mxu1 %vm75_vm0, %v19454_v28  ;;  %v15059_v28 = vld [vmem:[%s23168_s0 + $0x270] sm:$0xff] }
 0x133   :  { %17134 = vmatprep.mubr.msk.f32.mxu0 %vm75_vm0, %v19870_v58  ;;  %v23286_v58 = vld [vmem:[#allocation31_spill] sm:$0xff]  ;;  %v23288_v60 = vld [vmem:[#allocation33_spill] sm:$0xff] }
 0x134   :  { %v20161_v22 = vpop.f32.mrb[14].mxu1 }
 0x135   :  { %v20163_v24 = vpop.f32.mrb[15].mxu1  ;;  %16979 = vmatmul.mubr.msk.f32.gmra.mrb[24].mxu1 %vm75_vm0, %v19465_v30  ;;  %v15060_v30 = vld [vmem:[%s23168_s0 + $0x278] sm:$0xff] }
 0x136   :  { %17135 = vmatmul.mubr.msk.f32.gmra.mrb[24].mxu0 %vm75_vm0, %v19883_v57  ;;  %16981 = vmatprep.mubr.msk.f32.mxu1 %vm75_vm0, %v19472_v31  ;;  %v15275_v31 = vld [vmem:[%s23169_s1 + $0x8] sm:$0xff]  ;;  %v23284_v57 = vld [vmem:[#allocation15_spill] sm:$0xff] }
 0x137   :  { %17137 = vmatprep.mubr.msk.f32.mxu0 %vm75_vm0, %v19888_v56  ;;  %v23282_v56 = vld [vmem:[#allocation14_spill] sm:$0xff] }
 0x139   :  { %16982 = vmatmul.mubr.msk.f32.gmra.mrb[26].mxu1 %vm75_vm0, %v19483_v32  ;;  %v15160_v32 = vld [vmem:[%s23169_s1 + $0x30] sm:$0xff] }
 0x13a   :  { %17138 = vmatmul.mubr.msk.f32.gmra.mrb[26].mxu0 %vm75_vm0, %v19901_v55  ;;  %16984 = vmatprep.mubr.msk.f32.mxu1 %vm75_vm0, %v19752_v59  ;;  %v20302_v55 = vld [vmem:[%s23169_s1 + $0x38] sm:$0xff]  ;;  %v23287_v59 = vld [vmem:[#allocation17_spill] sm:$0xff] }
 0x13b   :  { %17140 = vmatprep.mubr.msk.f32.mxu0 %vm75_vm0, %v19911_v16  ;;  %v14863_v16 = vld [vmem:[%s23168_s0 + $0x1a0] sm:$0xff] }
 0x13d   :  { %16985 = vmatmul.mubr.msk.f32.gmra.mrb[28].mxu1 %vm75_vm0, %v19768_v61 }
 0x13e   :  { %17141 = vmatmul.mubr.msk.f32.gmra.mrb[28].mxu0 %vm75_vm0, %v19929_v54  ;;  %16987 = vmatprep.mubr.msk.f32.mxu1 %vm75_vm0, %v14862_v26  ;;  %v20281_v54 = vld [vmem:[%s23168_s0 + $0x279] sm:$0xff]  ;;  %v23294_v26 = vld [vmem:[#allocation36_spill] sm:$0xff] }
 0x13f   :  { %17143 = vmatprep.mubr.msk.f32.mxu0 %vm75_vm0, %v15059_v28 }
 0x141   :  { %16988 = vmatmul.mubr.msk.f32.gmra.mrb[30].mxu1 %vm75_vm0, %v14863_v16 }
 0x142   :  { %17144 = vmatmul.mubr.msk.f32.gmra.mrb[30].mxu0 %vm75_vm0, %v15060_v30  ;;  %16992 = vmatprep.mubr.msk.f32.mxu1 %vm75_vm0, %v19241_v3  ;;  %v23266_v3 = vld [vmem:[#allocation19_spill] sm:$0xff]  ;;  %v14929_v30 = vld [vmem:[%s23168_s0 + $0x1a2] sm:$0xff] }
 0x143   :  { %17148 = vmatprep.mubr.msk.f32.mxu0 %vm75_vm0, %v19641_v49  ;;  %v23274_v49 = vld [vmem:[#allocation23_spill] sm:$0xff] }
 0x145   :  { %16993 = vmatmul.mubr.msk.f32.vlgmr.msra.gmra.mrb[16].mxu1 %vm75_vm0, %v19255_v4  ;;  %v23267_v4 = vld [vmem:[#allocation9_spill] sm:$0xff] }
 0x146   :  { %17149 = vmatmul.mubr.msk.f32.vlgmr.msra.gmra.mrb[16].mxu0 %vm75_vm0, %v19654_v50  ;;  %17017 = vmatpush3.msra.mxu1 %v19232_v2  ;;  %v23265_v2 = vld [vmem:[#allocation8_spill] sm:$0xff]  ;;  %v23275_v50 = vld [vmem:[#allocation26_spill] sm:$0xff] }
 0x147   :  { %16995 = vmatprep.mubr.msk.f32.mxu1 %vm75_vm0, %v19262_v6  ;;  %17151 = vmatprep.mubr.msk.f32.mxu0 %vm75_vm0, %v19659_v51  ;;  %v23268_v6 = vld [vmem:[#allocation20_spill] sm:$0xff] }
 0x148   :  { %17173 = vmatpush3.msra.mxu0 %v15127_v41  ;;  %17276 = vmatprep.subr.mxu1 %v15275_v31  ;;  %v23273_v41 = vld [vmem:[#allocation12_spill] sm:$0xff] }
 0x149   :  { %16996 = vmatmul.mubr.msk.f32.gmra.mrb[18].mxu1 %vm75_vm0, %v19273_v7  ;;  %17198 = vmatprep.subr.mxu0 %v15160_v32  ;;  %v23269_v7 = vld [vmem:[#allocation10_spill] sm:$0xff]  ;;  %v23276_v51 = vld [vmem:[#allocation24_spill] sm:$0xff] }
 0x14a   :  { %17152 = vmatmul.mubr.msk.f32.gmra.mrb[18].mxu0 %vm75_vm0, %v19675_v5  ;;  %16998 = vmatprep.mubr.msk.f32.mxu1 %vm75_vm0, %v19280_v8  ;;  %v23270_v8 = vld [vmem:[#allocation21_spill] sm:$0xff]  ;;  %v14895_v5 = vld [vmem:[%s23168_s0 + $0x199] sm:$0xff] }
 0x14b   :  { %17154 = vmatprep.mubr.msk.f32.mxu0 %vm75_vm0, %v19680_v17  ;;  %v20266_v17 = vld [vmem:[%s23168_s0 + $0x271] sm:$0xff] }
 0x14d   :  { %16999 = vmatmul.mubr.msk.f32.gmra.mrb[20].mxu1 %vm75_vm0, %v19291_v9  ;;  %v23271_v9 = vld [vmem:[#allocation11_spill] sm:$0xff] }
 0x14e   :  { %17155 = vmatmul.mubr.msk.f32.gmra.mrb[20].mxu0 %vm75_vm0, %v19693_v52  ;;  %17001 = vmatprep.mubr.msk.f32.mxu1 %vm75_vm0, %v19298_v10  ;;  %v23272_v10 = vld [vmem:[#allocation22_spill] sm:$0xff]  ;;  %v23277_v52 = vld [vmem:[#allocation25_spill] sm:$0xff] }
 0x14f   :  { %17157 = vmatprep.mubr.msk.f32.mxu0 %vm75_vm0, %v19698_v53  ;;  %v14896_v53 = vld [vmem:[%s23168_s0 + $0x1a1] sm:$0xff] }
 0x151   :  { %17002 = vmatmul.mubr.msk.f32.gmra.mrb[22].mxu1 %vm75_vm0, %v23265_v2 }
 0x152   :  { %17158 = vmatmul.mubr.msk.f32.gmra.mrb[22].mxu0 %vm75_vm0, %v23266_v3  ;;  %17004 = vmatprep.mubr.msk.f32.mxu1 %vm75_vm0, %v23267_v4 }
 0x153   :  { %17160 = vmatprep.mubr.msk.f32.mxu0 %vm75_vm0, %v23268_v6 }
 0x155   :  { %17005 = vmatmul.mubr.msk.f32.gmra.mrb[24].mxu1 %vm75_vm0, %v23269_v7 }
 0x156   :  { %17161 = vmatmul.mubr.msk.f32.gmra.mrb[24].mxu0 %vm75_vm0, %v23270_v8  ;;  %17007 = vmatprep.mubr.msk.f32.mxu1 %vm75_vm0, %v23271_v9 }
 0x157   :  { %17163 = vmatprep.mubr.msk.f32.mxu0 %vm75_vm0, %v23272_v10 }
 0x159   :  { %17008 = vmatmul.mubr.msk.f32.gmra.mrb[26].mxu1 %vm75_vm0, %v23273_v41 }
 0x15a   :  { %17164 = vmatmul.mubr.msk.f32.gmra.mrb[26].mxu0 %vm75_vm0, %v23274_v49  ;;  %17010 = vmatprep.mubr.msk.f32.mxu1 %vm75_vm0, %v23275_v50  ;;  %v23296_v49 = vld [vmem:[#allocation39_spill] sm:$0xff] }
 0x15b   :  { %17166 = vmatprep.mubr.msk.f32.mxu0 %vm75_vm0, %v23276_v51  ;;  %v15145_v51 = vld [vmem:[%s23168_s0 + $0x1e8] sm:$0xff] }
 0x15d   :  { %17011 = vmatmul.mubr.msk.f32.gmra.mrb[28].mxu1 %vm75_vm0, %v19922_v21  ;;  %v20295_v21 = vld [vmem:[%s23169_s1] sm:$0xff] }
 0x15e   :  { %17167 = vmatmul.mubr.msk.f32.gmra.mrb[28].mxu0 %vm75_vm0, %v23277_v52  ;;  %17013 = vmatprep.mubr.msk.f32.mxu1 %vm75_vm0, %v14895_v5 }
 0x15f   :  { %17169 = vmatprep.mubr.msk.f32.mxu0 %vm75_vm0, %v20266_v17 }
 0x161   :  { %17014 = vmatmul.mubr.msk.f32.gmra.mrb[30].mxu1 %vm75_vm0, %v14896_v53 }
 0x162   :  { %17170 = vmatmul.mubr.msk.f32.gmra.mrb[30].mxu0 %vm75_vm0, %v20281_v54  ;;  %17018 = vmatprep.mubr.msk.f32.mxu1 %vm75_vm0, %v19517_v35  ;;  %v23279_v35 = vld [vmem:[#allocation13_spill] sm:$0xff] }
 0x163   :  { %17174 = vmatprep.mubr.msk.f32.mxu0 %vm75_vm0, %v19947_v12  ;;  %v23278_v12 = vld [vmem:[#allocation27_spill] sm:$0xff] }
 0x165   :  { %17019 = vmatmul.mubr.msk.f32.vlgmr.msra.gmra.mrb[16].mxu1 %vm75_vm0, %v19531_v1  ;;  %v23280_v1 = vld [vmem:[#allocation28_spill] sm:$0xff] }
 0x166   :  { %17175 = vmatmul.mubr.msk.f32.vlgmr.msra.gmra.mrb[16].mxu0 %vm75_vm0, %v19965_v33  ;;  %17277 = vmatpush3.msra.mxu1 %v15275_v31  ;;  %v14928_v33 = vld [vmem:[%s23168_s0 + $0x19a] sm:$0xff] }
 0x167   :  { %17021 = vmatprep.mubr.msk.f32.mxu1 %vm75_vm0, %v19538_v0  ;;  %17177 = vmatprep.mubr.msk.f32.mxu0 %vm75_vm0, %v23278_v12  ;;  %v23281_v0 = vld [vmem:[#allocation29_spill] sm:$0xff] }
 0x168   :  { %17199 = vmatpush3.msra.mxu0 %v15160_v32  ;;  %17302 = vmatprep.subr.mxu1 %v20295_v21  ;;  %v23295_v32 = vld [vmem:[#allocation38_spill] sm:$0xff] }
 0x169   :  { %17022 = vmatmul.mubr.msk.f32.gmra.mrb[18].mxu1 %vm75_vm0, %v19549_v36  ;;  %17224 = vmatprep.subr.mxu0 %v20302_v55  ;;  %v23283_v36 = vld [vmem:[#allocation30_spill] sm:$0xff] }
 0x16a   :  { %17178 = vmatmul.mubr.msk.f32.gmra.mrb[18].mxu0 %vm75_vm0, %v19985_v14  ;;  %17024 = vmatprep.mubr.msk.f32.mxu1 %vm75_vm0, %v23279_v35 }
 0x16b   :  { %17180 = vmatprep.mubr.msk.f32.mxu0 %vm75_vm0, %v23280_v1 }
 0x16d   :  { %17025 = vmatmul.mubr.msk.f32.gmra.mrb[20].mxu1 %vm75_vm0, %v19567_v38  ;;  %v23285_v38 = vld [vmem:[#allocation16_spill] sm:$0xff] }
 0x16e   :  { %17181 = vmatmul.mubr.msk.f32.gmra.mrb[20].mxu0 %vm75_vm0, %v23281_v0  ;;  %17027 = vmatprep.mubr.msk.f32.mxu1 %vm75_vm0, %v23282_v56  ;;  %v20420_v0 = vld [vmem:[%s23168_s0 + $0x291] sm:$0xff] }
 0x16f   :  { %17183 = vmatprep.mubr.msk.f32.mxu0 %vm75_vm0, %v23283_v36  ;;  %v20438_v36 = vld [vmem:[%s23168_s0 + $0x2a1] sm:$0xff] }
 0x171   :  { %17028 = vmatmul.mubr.msk.f32.gmra.mrb[22].mxu1 %vm75_vm0, %v23284_v57 }
 0x172   :  { %17184 = vmatmul.mubr.msk.f32.gmra.mrb[22].mxu0 %vm75_vm0, %v20021_v34  ;;  %17030 = vmatprep.mubr.msk.f32.mxu1 %vm75_vm0, %v19592_v42  ;;  %v23290_v42 = vld [vmem:[#allocation32_spill] sm:$0xff] }
 0x173   :  { %17186 = vmatprep.mubr.msk.f32.mxu0 %vm75_vm0, %v20026_v37  ;;  %v23291_v37 = vld [vmem:[#allocation35_spill] sm:$0xff] }
 0x175   :  { %17031 = vmatmul.mubr.msk.f32.gmra.mrb[24].mxu1 %vm75_vm0, %v23285_v38 }
 0x176   :  { %17187 = vmatmul.mubr.msk.f32.gmra.mrb[24].mxu0 %vm75_vm0, %v23286_v58  ;;  %17033 = vmatprep.mubr.msk.f32.mxu1 %vm75_vm0, %v23287_v59 }
 0x177   :  { %17189 = vmatprep.mubr.msk.f32.mxu0 %vm75_vm0, %v23288_v60 }
 0x179   :  { %v16786_v61 = vpop.f32.mrb[0].mxu0  ;;  %17034 = vmatmul.mubr.msk.f32.gmra.mrb[26].mxu1 %vm75_vm0, %v23289_v23 }
 0x17a   :  { %v17966_v47 = vadd.f32 %v16786_v61, %v23290_v42  ;;  %v1958_v27 = vpop.f32.mrb[1].mxu0  ;;  %17190 = vmatmul.mubr.msk.f32.gmra.mrb[26].mxu0 %vm75_vm0, %v20061_v39  ;;  %17036 = vmatprep.mubr.msk.f32.mxu1 %vm75_vm0, %v23291_v37  ;;  %v20363_v39 = vld [vmem:[%s23168_s0 + $0x272] sm:$0xff] }
 0x17b   :  { %v17967_v46 = vadd.f32 %v1958_v27, %v23292_v18  ;;  %17192 = vmatprep.mubr.msk.f32.mxu0 %vm75_vm0, %v23293_v25  ;;  %v20471_v37 = vld [vmem:[%s23168_s0 + $0x2b9] sm:$0xff] }
 0x17c   :  { %v2060_v34 = vadd.f32 %v17966_v47, %v20352_v20 }
 0x17d   :  { %v16789_v14 = vpop.f32.mrb[2].mxu0  ;;  %17037 = vmatmul.mubr.msk.f32.gmra.mrb[28].mxu1 %vm75_vm0, %v20086_v43  ;;  %v2059_v31 = vadd.f32 %v17967_v46, %v20352_v20  ;;  %v20382_v43 = vld [vmem:[%s23168_s0 + $0x27a] sm:$0xff]  ;;  %v15150_v46 = vld [vmem:[%s23168_s0 + $0x228] sm:$0xff] }
 0x17e   :  { %v17968_v28 = vadd.f32 %v16789_v14, %v23294_v26  ;;  %v1968_v16 = vpop.f32.mrb[3].mxu0  ;;  %17193 = vmatmul.mubr.msk.f32.gmra.mrb[28].mxu0 %vm75_vm0, %v20093_v44  ;;  %17039 = vmatprep.mubr.msk.f32.mxu1 %vm75_vm0, %v14928_v33  ;;  %v2076_v6 = vmax.f32 %v2060_v34, 0.0  ;;  %v15151_v33 = vld [vmem:[%s23168_s0 + $0x230] sm:$0xff]  ;;  %v15152_v34 = vld [vmem:[%s23168_s0 + $0x240] sm:$0xff] }
 0x17f   :  { %v17969_v2 = vadd.f32 %v1968_v16, %v23295_v32  ;;  %17195 = vmatprep.mubr.msk.f32.mxu0 %vm75_vm0, %v20363_v39  ;;  %v2075_v10 = vmax.f32 %v2059_v31, 0.0  ;;  %v20493_v14 = vld [vmem:[%s23168_s0 + $0x2d1] sm:$0xff]  ;;  %v20506_v16 = vld [vmem:[%s23168_s0 + $0x2d9] sm:$0xff]  ;;  %v15153_v31 = vld [vmem:[%s23168_s0 + $0x248] sm:$0xff] }
 0x180   :  { %v2062_v44 = vadd.f32 %v17968_v28, %v20352_v20 }
 0x181   :  { %v2061_v3 = vadd.f32 %v17969_v2, %v20352_v20  ;;  %v16792_v4 = vpop.f32.mrb[4].mxu0  ;;  %17040 = vmatmul.mubr.msk.f32.gmra.mrb[30].mxu1 %vm75_vm0, %v14929_v30  ;;  %v15154_v2 = vld [vmem:[%s23168_s0 + $0x258] sm:$0xff] }
 0x182   :  { %v2078_v7 = vmax.f32 %v2062_v44, 0.0  ;;  %v17970_v8 = vadd.f32 %v16792_v4, %v20095_v45  ;;  %v1978_v9 = vpop.f32.mrb[5].mxu0  ;;  %17196 = vmatmul.mubr.msk.f32.gmra.mrb[30].mxu0 %vm75_vm0, %v20382_v43  ;;  %17278 = vmatprep.mubr.msk.f32.mxu1 %vm75_vm0, %v20266_v17  ;;  %v15146_v45 = vld [vmem:[%s23168_s0 + $0x1f8] sm:$0xff]  ;;  %v20404_v17 = vld [vmem:[%s23168_s0 + $0x289] sm:$0xff] }
 0x183   :  { %v2077_v41 = vmax.f32 %v2061_v3, 0.0  ;;  %v17971_v50 = vadd.f32 %v1978_v9, %v23296_v49  ;;  %17200 = vmatprep.mubr.msk.f32.mxu0 %vm75_vm0, %v19814_v63  ;;  %v20411_v63 = vld [vmem:[%s23169_s1 + $0x10] sm:$0xff]  ;;  %v20542_v9 = vld [vmem:[%s23168_s0 + $0x301] sm:$0xff] }
 0x184   :  { %v2092_v5 = vmax.f32 %v2076_v6, %v2078_v7  ;;  %v2064_v12 = vadd.f32 %v17970_v8, %v20352_v20  ;;  %v20518_v44 = vld [vmem:[%s23168_s0 + $0x2e9] sm:$0xff]  ;;  %v20526_v4 = vld [vmem:[%s23168_s0 + $0x2f1] sm:$0xff]  ;;  %v15155_v7 = vld [vmem:[%s23168_s0 + $0x260] sm:$0xff] }
 0x185   :  { %v2091_v52 = vmax.f32 %v2075_v10, %v2077_v41  ;;  %v16795_v53 = vpop.f32.mrb[6].mxu0  ;;  %17279 = vmatmul.mubr.msk.f32.vlgmr.msra.gmra.mrb[32].mxu1 %vm75_vm0, %v20281_v54  ;;  %v20425_v54 = vld [vmem:[%s23169_s1 + $0x40] sm:$0xff]  ;;  %v2063_v56 = vadd.f32 %v17971_v50, %v20352_v20  ;;  %v15156_v8 = vld [vmem:[%s23168_s0 + $0x270] sm:$0xff]  ;;  %v15157_v41 = vld [vmem:[%s23168_s0 + $0x278] sm:$0xff] }
 0x186   :  { %2100 = vst [vmem:[#allocation2 + $0x8] sm:$0xff] %v2092_v5  ;;  %v17972_v35 = vadd.f32 %v16795_v53, %v20107_v40  ;;  %v1988_v1 = vpop.f32.mrb[7].mxu0  ;;  %17201 = vmatmul.mubr.msk.f32.vlgmr.msra.gmra.mrb[16].mxu0 %vm75_vm0, %v15145_v51  ;;  %17303 = vmatpush3.msra.mxu1 %v20295_v21  ;;  %v15147_v21 = vld [vmem:[%s23168_s0 + $0x200] sm:$0xff]  ;;  %v2080_v59 = vmax.f32 %v2064_v12, 0.0  ;;  %v20550_v10 = vld [vmem:[%s23168_s0 + $0x309] sm:$0xff] }
 0x187   :  { %2099 = vst [vmem:[#allocation2] sm:$0xff] %v2091_v52  ;;  %v17973_v40 = vadd.f32 %v1988_v1, %v20109_v62  ;;  %17203 = vmatprep.mubr.msk.f32.mxu0 %vm75_vm0, %v15146_v45  ;;  %17281 = vmatprep.mubr.msk.f32.mxu1 %vm75_vm0, %v20404_v17  ;;  %v15148_v62 = vld [vmem:[%s23168_s0 + $0x210] sm:$0xff]  ;;  %v2079_v42 = vmax.f32 %v2063_v56, 0.0  ;;  %v20561_v49 = vld [vmem:[%s23168_s0 + $0x288] sm:$0xff]  ;;  %v20566_v50 = vld [vmem:[%s23168_s0 + $0x319] sm:$0xff] }
 0x188   :  { %v2066_v57 = vadd.f32 %v17972_v35, %v20352_v20  ;;  %17225 = vmatpush3.msra.mxu0 %v20302_v55  ;;  %17328 = vmatprep.subr.mxu1 %v20411_v63  ;;  %v20459_v55 = vld [vmem:[%s23168_s0 + $0x2a9] sm:$0xff]  ;;  %v20574_v51 = vld [vmem:[%s23168_s0 + $0x321] sm:$0xff]  ;;  %v15179_v53 = vld [vmem:[%s23168_s0 + $0x1f9] sm:$0xff] }
 0x189   :  { %v2065_v38 = vadd.f32 %v17973_v40, %v20352_v20  ;;  %v16798_v58 = vpop.f32.mrb[8].mxu0  ;;  %17282 = vmatmul.mubr.msk.f32.gmra.mrb[34].mxu1 %vm75_vm0, %v20420_v0  ;;  %17250 = vmatprep.subr.mxu0 %v20425_v54  ;;  %v20583_v5 = vld [vmem:[%s23168_s0 + $0x290] sm:$0xff]  ;;  %v15177_v45 = vld [vmem:[%s23168_s0 + $0x1e1] sm:$0xff] }
 0x18a   :  { %v2082_v60 = vmax.f32 %v2066_v57, 0.0  ;;  %v20451_v61 = vadd.f32 %v16798_v58, %v20123_v29  ;;  %v1998_v23 = vpop.f32.mrb[9].mxu0  ;;  %17204 = vmatmul.mubr.msk.f32.gmra.mrb[18].mxu0 %vm75_vm0, %v15147_v21  ;;  %17284 = vmatprep.mubr.msk.f32.mxu1 %vm75_vm0, %v20438_v36  ;;  %v15149_v29 = vld [vmem:[%s23168_s0 + $0x218] sm:$0xff]  ;;  %v15178_v52 = vld [vmem:[%s23168_s0 + $0x1e9] sm:$0xff]  ;;  %v15180_v12 = vld [vmem:[%s23168_s0 + $0x201] sm:$0xff] }
 0x18b   :  { %v2081_v47 = vmax.f32 %v2065_v38, 0.0  ;;  %v20462_v27 = vadd.f32 %v1998_v23, %v20127_v11  ;;  %17206 = vmatprep.mubr.msk.f32.mxu0 %vm75_vm0, %v15148_v62  ;;  %v20484_v11 = vld [vmem:[%s23168_s0 + $0x2c1] sm:$0xff]  ;;  %v15181_v1 = vld [vmem:[%s23168_s0 + $0x211] sm:$0xff]  ;;  %v15182_v62 = vld [vmem:[%s23168_s0 + $0x219] sm:$0xff] }
 0x18c   :  { %v2094_v18 = vmax.f32 %v2080_v59, %v2082_v60  ;;  %v20612_v35 = vld [vmem:[%s23168_s0 + $0x2a0] sm:$0xff]  ;;  %v2068_v56 = vadd.f32 %v20451_v61, %v20352_v20  ;;  %v15183_v58 = vld [vmem:[%s23168_s0 + $0x229] sm:$0xff]  ;;  %v20650_v59 = vld [vmem:[%s23168_s0 + $0x2b8] sm:$0xff] }
 0x18d   :  { %v2093_v25 = vmax.f32 %v2079_v42, %v2081_v47  ;;  %17285 = vmatmul.mubr.msk.f32.gmra.mrb[36].mxu1 %vm75_vm0, %v20459_v55  ;;  %v16801_v26 = vpop.f32.mrb[10].mxu0  ;;  %v2067_v40 = vadd.f32 %v20462_v27, %v20352_v20  ;;  %v20664_v42 = vld [vmem:[%s23168_s0 + $0x2c0] sm:$0xff] }
 0x18e   :  { %2102 = vst [vmem:[#allocation2 + $0x18] sm:$0xff] %v2094_v18  ;;  %17207 = vmatmul.mubr.msk.f32.gmra.mrb[20].mxu0 %vm75_vm0, %v15149_v29  ;;  %17287 = vmatprep.mubr.msk.f32.mxu1 %vm75_vm0, %v20471_v37  ;;  %v2008_v28 = vpop.f32.mrb[11].mxu0  ;;  %v17976_v21 = vadd.f32 %v16801_v26, %v20137_v48  ;;  %v20676_v18 = vld [vmem:[%s23168_s0 + $0x2d0] sm:$0xff] }
 0x18f   :  { %2101 = vst [vmem:[#allocation2 + $0x10] sm:$0xff] %v2093_v25  ;;  %17209 = vmatprep.mubr.msk.f32.mxu0 %vm75_vm0, %v15150_v46  ;;  %v17977_v57 = vadd.f32 %v2008_v28, %v20139_v13  ;;  %v2083_v47 = vmax.f32 %v2067_v40, 0.0  ;;  %v20756_v40 = vld [vmem:[%s23168_s0 + $0x320] sm:$0xff] }
 0x190   :  { %v2070_v48 = vadd.f32 %v17976_v21, %v20352_v20  ;;  %v15210_v21 = vld [vmem:[%s23168_s0 + $0x1e2] sm:$0xff] }
 0x191   :  { %17288 = vmatmul.mubr.msk.f32.gmra.mrb[38].mxu1 %vm75_vm0, %v20484_v11  ;;  %v16804_v30 = vpop.f32.mrb[12].mxu0  ;;  %v2069_v13 = vadd.f32 %v17977_v57, %v20352_v20  ;;  %v15211_v57 = vld [vmem:[%s23168_s0 + $0x1ea] sm:$0xff] }
 0x192   :  { %17210 = vmatmul.mubr.msk.f32.gmra.mrb[22].mxu0 %vm75_vm0, %v15151_v33  ;;  %17290 = vmatprep.mubr.msk.f32.mxu1 %vm75_vm0, %v20493_v14  ;;  %v2018_v32 = vpop.f32.mrb[13].mxu0  ;;  %v17978_v38 = vadd.f32 %v16804_v30, %v20149_v15  ;;  %v2084_v15 = vmax.f32 %v2068_v56, 0.0  ;;  %v2086_v27 = vmax.f32 %v2070_v48, 0.0  ;;  %v15185_v33 = vld [vmem:[%s23168_s0 + $0x241] sm:$0xff]  ;;  %v20746_v56 = vld [vmem:[%s23168_s0 + $0x318] sm:$0xff] }
 0x193   :  { %17212 = vmatprep.mubr.msk.f32.mxu0 %vm75_vm0, %v15152_v34  ;;  %v17979_v60 = vadd.f32 %v2018_v32, %v20151_v19  ;;  %v2085_v29 = vmax.f32 %v2069_v13, 0.0  ;;  %v15390_v48 = vld [vmem:[%s23169_s1 + $0x20] sm:$0xff] }
 0x194   :  { %v2072_v23 = vadd.f32 %v17978_v38, %v20352_v20  ;;  %v2096_v34 = vmax.f32 %v2084_v15, %v2086_v27  ;;  %v20781_v38 = vld [vmem:[%s23168_s0 + $0x28a] sm:$0xff]  ;;  %v15213_v13 = vld [vmem:[%s23168_s0 + $0x202] sm:$0xff]  ;;  %v15215_v15 = vld [vmem:[%s23168_s0 + $0x21a] sm:$0xff] }
 0x195   :  { %v16807_v3 = vpop.f32.mrb[14].mxu0  ;;  %17291 = vmatmul.mubr.msk.f32.gmra.mrb[40].mxu1 %vm75_vm0, %v20506_v16  ;;  %v2071_v46 = vadd.f32 %v17979_v60, %v20352_v20  ;;  %v2095_v26 = vmax.f32 %v2083_v47, %v2085_v29  ;;  %v20800_v60 = vld [vmem:[%s23168_s0 + $0x2a2] sm:$0xff]  ;;  %v15216_v47 = vld [vmem:[%s23168_s0 + $0x22a] sm:$0xff]  ;;  %v15217_v29 = vld [vmem:[%s23168_s0 + $0x232] sm:$0xff] }
 0x196   :  { %17213 = vmatmul.mubr.msk.f32.gmra.mrb[24].mxu0 %vm75_vm0, %v15153_v31  ;;  %v20528_v6 = vpop.f32.mrb[15].mxu0  ;;  %17293 = vmatprep.mubr.msk.f32.mxu1 %vm75_vm0, %v20518_v44  ;;  %v17980_v61 = vadd.f32 %v16807_v3, %v20161_v22  ;;  %v15184_v22 = vld [vmem:[%s23168_s0 + $0x231] sm:$0xff]  ;;  %v2088_v28 = vmax.f32 %v2072_v23, 0.0  ;;  %2104 = vst [vmem:[#allocation2 + $0x28] sm:$0xff] %v2096_v34  ;;  %v20824_v23 = vld [vmem:[%s23168_s0 + $0x2ba] sm:$0xff]  ;;  %v20837_v27 = vld [vmem:[%s23168_s0 + $0x2c2] sm:$0xff] }
 0x197   :  { %17215 = vmatprep.mubr.msk.f32.mxu0 %vm75_vm0, %v15154_v2  ;;  %v17981_v25 = vadd.f32 %v20528_v6, %v20163_v24  ;;  %v20693_v24 = vld [vmem:[%s23168_s0 + $0x2d8] sm:$0xff]  ;;  %2103 = vst [vmem:[#allocation2 + $0x20] sm:$0xff] %v2095_v26  ;;  %v15186_v2 = vld [vmem:[%s23168_s0 + $0x249] sm:$0xff]  ;;  %v2087_v3 = vmax.f32 %v2071_v46, 0.0 }
 0x198   :  { %v2074_v19 = vadd.f32 %v17980_v61, %v20352_v20  ;;  %v20815_v61 = vld [vmem:[%s23168_s0 + $0x2aa] sm:$0xff]  ;;  %v20859_v46 = vld [vmem:[%s23168_s0 + $0x2da] sm:$0xff]  ;;  %v20881_v26 = vld [vmem:[%s23168_s0 + $0x2f2] sm:$0xff] }
 0x199   :  { %17294 = vmatmul.mubr.msk.f32.gmra.mrb[42].mxu1 %vm75_vm0, %v20526_v4  ;;  %v2073_v31 = vadd.f32 %v17981_v25, %v20352_v20  ;;  %v20702_v20 = vld [vmem:[%s23168_s0 + $0x2e8] sm:$0xff]  ;;  %v15220_v34 = vld [vmem:[%s23168_s0 + $0x25a] sm:$0xff] }
 0x19a   :  { %17216 = vmatmul.mubr.msk.f32.gmra.mrb[26].mxu0 %vm75_vm0, %v15155_v7  ;;  %17296 = vmatprep.mubr.msk.f32.mxu1 %vm75_vm0, %v20542_v9  ;;  %v2090_v30 = vmax.f32 %v2074_v19, 0.0  ;;  %v15187_v7 = vld [vmem:[%s23168_s0 + $0x259] sm:$0xff]  ;;  %v15219_v25 = vld [vmem:[%s23168_s0 + $0x24a] sm:$0xff] }
 0x19b   :  { %17218 = vmatprep.mubr.msk.f32.mxu0 %vm75_vm0, %v15156_v8  ;;  %v2089_v6 = vmax.f32 %v2073_v31, 0.0  ;;  %v20846_v19 = vld [vmem:[%s23168_s0 + $0x2d2] sm:$0xff]  ;;  %v20900_v31 = vld [vmem:[%s23168_s0 + $0x30a] sm:$0xff] }
 0x19c   :  { %v2098_v32 = vmax.f32 %v2088_v28, %v2090_v30  ;;  %v15221_v28 = vld [vmem:[%s23168_s0 + $0x262] sm:$0xff] }
 0x19d   :  { %17297 = vmatmul.mubr.msk.f32.gmra.mrb[44].mxu1 %vm75_vm0, %v20550_v10  ;;  %v20890_v30 = vld [vmem:[%s23168_s0 + $0x302] sm:$0xff] }
 0x19e   :  { %17219 = vmatmul.mubr.msk.f32.gmra.mrb[28].mxu0 %vm75_vm0, %v15157_v41  ;;  %17299 = vmatprep.mubr.msk.f32.mxu1 %vm75_vm0, %v20566_v50  ;;  %2106 = vst [vmem:[#allocation2 + $0x38] sm:$0xff] %v2098_v32  ;;  %v20907_v32 = vld [vmem:[%s23168_s0 + $0x31a] sm:$0xff] }
 0x19f   :  { %17221 = vmatprep.mubr.msk.f32.mxu0 %vm75_vm0, %v20561_v49 }
 0x1a1   :  { %17300 = vmatmul.mubr.msk.f32.gmra.mrb[46].mxu1 %vm75_vm0, %v20574_v51 }
 0x1a2   :  { %17222 = vmatmul.mubr.msk.f32.gmra.mrb[30].mxu0 %vm75_vm0, %v20583_v5  ;;  %17304 = vmatprep.mubr.msk.f32.mxu1 %vm75_vm0, %v15156_v8  ;;  %v2097_v8 = vmax.f32 %v2087_v3, %v2089_v6  ;;  %v8309_v3 = vld [vmem:[#allocation2] sm:$0x3]  ;;  %v20974_v6 = vld [vmem:[%s23169_s1 + $0x30] sm:$0xff] }
 0x1a3   :  { %17226 = vmatprep.mubr.msk.f32.mxu0 %vm75_vm0, %v15177_v45  ;;  %v15188_v45 = vld [vmem:[%s23168_s0 + $0x261] sm:$0xff] }
 0x1a4   :  { %2105 = vst [vmem:[#allocation2 + $0x30] sm:$0xff] %v2097_v8 }
 0x1a5   :  { %17305 = vmatmul.mubr.msk.f32.vlgmr.msra.gmra.mrb[32].mxu1 %vm75_vm0, %v15157_v41  ;;  %v20715_v41 = vld [vmem:[%s23168_s0 + $0x2f0] sm:$0xff] }
 0x1a6   :  { %17227 = vmatmul.mubr.msk.f32.vlgmr.msra.gmra.mrb[16].mxu0 %vm75_vm0, %v15178_v52  ;;  %17329 = vmatpush3.msra.mxu1 %v20411_v63  ;;  %v20623_v63 = vld [vmem:[%s23169_s1 + $0x18] sm:$0xff]  ;;  %v20724_v52 = vld [vmem:[%s23168_s0 + $0x300] sm:$0xff] }
 0x1a7   :  { %17229 = vmatprep.mubr.msk.f32.mxu0 %vm75_vm0, %v15179_v53  ;;  %17307 = vmatprep.mubr.msk.f32.mxu1 %vm75_vm0, %v20561_v49  ;;  %v15189_v53 = vld [vmem:[%s23168_s0 + $0x271] sm:$0xff] }
 0x1a8   :  { %17251 = vmatpush3.msra.mxu0 %v20425_v54  ;;  %v20633_v54 = vld [vmem:[%s23168_s0 + $0x2a8] sm:$0xff]  ;;  %17354 = vmatprep.subr.mxu1 %v20623_v63 }
 0x1a9   :  { %17308 = vmatmul.mubr.msk.f32.gmra.mrb[34].mxu1 %vm75_vm0, %v20583_v5 }
 0x1aa   :  { %17230 = vmatmul.mubr.msk.f32.gmra.mrb[18].mxu0 %vm75_vm0, %v15180_v12  ;;  %17310 = vmatprep.mubr.msk.f32.mxu1 %vm75_vm0, %v20612_v35  ;;  %v20737_v12 = vld [vmem:[%s23168_s0 + $0x308] sm:$0xff] }
 0x1ab   :  { %17232 = vmatprep.mubr.msk.f32.mxu0 %vm75_vm0, %v15181_v1  ;;  %v15190_v1 = vld [vmem:[%s23168_s0 + $0x279] sm:$0xff] }
 0x1ad   :  { %17311 = vmatmul.mubr.msk.f32.gmra.mrb[36].mxu1 %vm75_vm0, %v20633_v54 }
 0x1ae   :  { %17233 = vmatmul.mubr.msk.f32.gmra.mrb[20].mxu0 %vm75_vm0, %v15182_v62  ;;  %17313 = vmatprep.mubr.msk.f32.mxu1 %vm75_vm0, %v20650_v59  ;;  %v15212_v62 = vld [vmem:[%s23168_s0 + $0x1fa] sm:$0xff] }
 0x1af   :  { %17235 = vmatprep.mubr.msk.f32.mxu0 %vm75_vm0, %v15183_v58  ;;  %v20788_v58 = vld [vmem:[%s23168_s0 + $0x292] sm:$0xff] }
 0x1b1   :  { %17314 = vmatmul.mubr.msk.f32.gmra.mrb[38].mxu1 %vm75_vm0, %v20664_v42 }
 0x1b2   :  { %17236 = vmatmul.mubr.msk.f32.gmra.mrb[22].mxu0 %vm75_vm0, %v15184_v22  ;;  %17316 = vmatprep.mubr.msk.f32.mxu1 %vm75_vm0, %v20676_v18  ;;  %v15218_v22 = vld [vmem:[%s23168_s0 + $0x242] sm:$0xff] }
 0x1b3   :  { %17238 = vmatprep.mubr.msk.f32.mxu0 %vm75_vm0, %v15185_v33  ;;  %v20868_v33 = vld [vmem:[%s23168_s0 + $0x2ea] sm:$0xff] }
 0x1b5   :  { %17317 = vmatmul.mubr.msk.f32.gmra.mrb[40].mxu1 %vm75_vm0, %v20693_v24 }
 0x1b6   :  { %17239 = vmatmul.mubr.msk.f32.gmra.mrb[24].mxu0 %vm75_vm0, %v15186_v2  ;;  %17319 = vmatprep.mubr.msk.f32.mxu1 %vm75_vm0, %v20702_v20  ;;  %v20918_v2 = vld [vmem:[%s23168_s0 + $0x322] sm:$0xff] }
 0x1b7   :  { %17241 = vmatprep.mubr.msk.f32.mxu0 %vm75_vm0, %v15187_v7 }
 0x1b9   :  { %17320 = vmatmul.mubr.msk.f32.gmra.mrb[42].mxu1 %vm75_vm0, %v20715_v41 }
 0x1ba   :  { %17242 = vmatmul.mubr.msk.f32.gmra.mrb[26].mxu0 %vm75_vm0, %v15188_v45  ;;  %17322 = vmatprep.mubr.msk.f32.mxu1 %vm75_vm0, %v20724_v52  ;;  %v8326_v45 = vsel %vm8325_vm1, %v8309_v3, -inf }
 0x1bb   :  { %17244 = vmatprep.mubr.msk.f32.mxu0 %vm75_vm0, %v15189_v53 }
 0x1bd   :  { %17323 = vmatmul.mubr.msk.f32.gmra.mrb[44].mxu1 %vm75_vm0, %v20737_v12 }
 0x1be   :  { %17245 = vmatmul.mubr.msk.f32.gmra.mrb[28].mxu0 %vm75_vm0, %v15190_v1  ;;  %17325 = vmatprep.mubr.msk.f32.mxu1 %vm75_vm0, %v20746_v56  ;;  %v8327_v1 = vrot.slane %v8326_v45, 4 }
 0x1bf   :  { %17247 = vmatprep.mubr.msk.f32.mxu0 %vm75_vm0, %v20404_v17 }
 0x1c1   :  { %17326 = vmatmul.mubr.msk.f32.gmra.mrb[46].mxu1 %vm75_vm0, %v20756_v40 }
 0x1c2   :  { %17248 = vmatmul.mubr.msk.f32.gmra.mrb[30].mxu0 %vm75_vm0, %v20420_v0  ;;  %17330 = vmatprep.mubr.msk.f32.mxu1 %vm75_vm0, %v20363_v39 }
 0x1c3   :  { %17252 = vmatprep.mubr.msk.f32.mxu0 %vm75_vm0, %v15210_v21 }
 0x1c5   :  { %17331 = vmatmul.mubr.msk.f32.vlgmr.msra.gmra.mrb[32].mxu1 %vm75_vm0, %v20382_v43 }
 0x1c6   :  { %17253 = vmatmul.mubr.msk.f32.vlgmr.msra.gmra.mrb[16].mxu0 %vm75_vm0, %v15211_v57  ;;  %17355 = vmatpush3.msra.mxu1 %v20623_v63  ;;  %v15214_v63 = vld [vmem:[%s23168_s0 + $0x212] sm:$0xff] }
 0x1c7   :  { %17255 = vmatprep.mubr.msk.f32.mxu0 %vm75_vm0, %v15212_v62  ;;  %17333 = vmatprep.mubr.msk.f32.mxu1 %vm75_vm0, %v20781_v38 }
 0x1c8   :  { %17380 = vmatprep.subr.mxu1 %v15390_v48 }
 0x1c9   :  { %17334 = vmatmul.mubr.msk.f32.gmra.mrb[34].mxu1 %vm75_vm0, %v20788_v58 }
 0x1ca   :  { %17256 = vmatmul.mubr.msk.f32.gmra.mrb[18].mxu0 %vm75_vm0, %v15213_v13  ;;  %17336 = vmatprep.mubr.msk.f32.mxu1 %vm75_vm0, %v20800_v60 }
 0x1cb   :  { %17258 = vmatprep.mubr.msk.f32.mxu0 %vm75_vm0, %v15214_v63 }
 0x1cd   :  { %17337 = vmatmul.mubr.msk.f32.gmra.mrb[36].mxu1 %vm75_vm0, %v20815_v61 }
 0x1ce   :  { %17259 = vmatmul.mubr.msk.f32.gmra.mrb[20].mxu0 %vm75_vm0, %v15215_v15  ;;  %17339 = vmatprep.mubr.msk.f32.mxu1 %vm75_vm0, %v20824_v23 }
 0x1cf   :  { %17261 = vmatprep.mubr.msk.f32.mxu0 %vm75_vm0, %v15216_v47 }
 0x1d1   :  { %17340 = vmatmul.mubr.msk.f32.gmra.mrb[38].mxu1 %vm75_vm0, %v20837_v27 }
 0x1d2   :  { %17262 = vmatmul.mubr.msk.f32.gmra.mrb[22].mxu0 %vm75_vm0, %v15217_v29  ;;  %17342 = vmatprep.mubr.msk.f32.mxu1 %vm75_vm0, %v20846_v19 }
 0x1d3   :  { %17264 = vmatprep.mubr.msk.f32.mxu0 %vm75_vm0, %v15218_v22 }
 0x1d5   :  { %17343 = vmatmul.mubr.msk.f32.gmra.mrb[40].mxu1 %vm75_vm0, %v20859_v46 }
 0x1d6   :  { %17265 = vmatmul.mubr.msk.f32.gmra.mrb[24].mxu0 %vm75_vm0, %v15219_v25  ;;  %17345 = vmatprep.mubr.msk.f32.mxu1 %vm75_vm0, %v20868_v33 }
 0x1d7   :  { %17267 = vmatprep.mubr.msk.f32.mxu0 %vm75_vm0, %v15220_v34  ;;  %v21005_v34 = vld [vmem:[#allocation2 + $0x18] sm:$0x3] }
 0x1d9   :  { %17346 = vmatmul.mubr.msk.f32.gmra.mrb[42].mxu1 %vm75_vm0, %v20881_v26 }
 0x1da   :  { %17268 = vmatmul.mubr.msk.f32.gmra.mrb[26].mxu0 %vm75_vm0, %v15221_v28  ;;  %17348 = vmatprep.mubr.msk.f32.mxu1 %vm75_vm0, %v20890_v30  ;;  %v21010_v28 = vld [vmem:[#allocation2 + $0x1a] sm:$0x3] }
 0x1db   :  { %17270 = vmatprep.mubr.msk.f32.mxu0 %vm75_vm0, %v20363_v39  ;;  %v15423_v39 = vld [vmem:[%s23169_s1 + $0x28] sm:$0xff] }
 0x1dd   :  { %17349 = vmatmul.mubr.msk.f32.gmra.mrb[44].mxu1 %vm75_vm0, %v20900_v31 }
 0x1de   :  { %17271 = vmatmul.mubr.msk.f32.gmra.mrb[28].mxu0 %vm75_vm0, %v20382_v43  ;;  %17351 = vmatprep.mubr.msk.f32.mxu1 %vm75_vm0, %v20907_v32  ;;  %v15355_v43 = vld [vmem:[%s23168_s0 + $0x330] sm:$0xff] }
 0x1df   :  { %17273 = vmatprep.mubr.msk.f32.mxu0 %vm75_vm0, %v20781_v38 }
 0x1e1   :  { %17352 = vmatmul.mubr.msk.f32.gmra.mrb[46].mxu1 %vm75_vm0, %v20918_v2 }
 0x1e2   :  { %17274 = vmatmul.mubr.msk.f32.gmra.mrb[30].mxu0 %vm75_vm0, %v20788_v58  ;;  %17356 = vmatprep.mubr.msk.f32.mxu1 %vm75_vm0, %v20561_v49  ;;  %v15356_v49 = vld [vmem:[%s23168_s0 + $0x338] sm:$0xff] }
 0x1e5   :  { %17357 = vmatmul.mubr.msk.f32.vlgmr.msra.gmra.mrb[32].mxu1 %vm75_vm0, %v20583_v5  ;;  %v8969_v5 = vld [vmem:[#allocation2 + $0x8] sm:$0x3] }
 0x1e6   :  { %17381 = vmatpush3.msra.mxu1 %v15390_v48  ;;  %17359 = vmatprep.mubr.msk.f32.mxu1 %vm75_vm0, %v20612_v35  ;;  %v9132_v35 = vld [vmem:[#allocation2 + $0xa] sm:$0x3] }
 0x1e7   :  { %17406 = vmatprep.subr.mxu1 %v15423_v39 }
 0x1e9   :  { %17360 = vmatmul.mubr.msk.f32.gmra.mrb[34].mxu1 %vm75_vm0, %v20633_v54  ;;  %v9295_v54 = vld [vmem:[#allocation2 + $0xc] sm:$0x3] }
 0x1ea   :  { %17362 = vmatprep.mubr.msk.f32.mxu1 %vm75_vm0, %v20650_v59  ;;  %v9458_v59 = vld [vmem:[#allocation2 + $0xe] sm:$0x3] }
 0x1ed   :  { %17363 = vmatmul.mubr.msk.f32.gmra.mrb[36].mxu1 %vm75_vm0, %v20664_v42  ;;  %v8985_v42 = vsel %vm8325_vm1, %v8969_v5, -inf  ;;  %v21022_v5 = vld [vmem:[#allocation2 + $0x1e] sm:$0x3] }
 0x1ee   :  { %17365 = vmatprep.mubr.msk.f32.mxu1 %vm75_vm0, %v20676_v18  ;;  %v9148_v18 = vsel %vm8325_vm1, %v9132_v35, -inf  ;;  %v8986_v7 = vrot.slane %v8985_v42, 4  ;;  %v21024_v35 = vld [vmem:[#allocation2 + $0x10] sm:$0x3] }
 0x1ef   :  { %v9149_v8 = vrot.slane %v9148_v18, 4 }
 0x1f1   :  { %17366 = vmatmul.mubr.msk.f32.gmra.mrb[38].mxu1 %vm75_vm0, %v20693_v24  ;;  %v9311_v24 = vsel %vm8325_vm1, %v9295_v54, -inf  ;;  %v9150_v53 = vmax.f32 %v9148_v18, %v9149_v8  ;;  %v9481_v8 = vsel %vm8325_vm1, %v21022_v5, -inf }
 0x1f2   :  { %17368 = vmatprep.mubr.msk.f32.mxu1 %vm75_vm0, %v20702_v20  ;;  %v9474_v20 = vsel %vm8325_vm1, %v9458_v59, -inf  ;;  %v8992_v59 = vsel %vm8325_vm1, %v21005_v34, -inf }
 0x1f3   :  { %v9151_v62 = vrot.slane %v9150_v53, 2 }
 0x1f5   :  { %17369 = vmatmul.mubr.msk.f32.gmra.mrb[40].mxu1 %vm75_vm0, %v20715_v41  ;;  %v9475_v41 = vrot.slane %v9474_v20, 4  ;;  %v21003_v25 = vmax.f32 %v9150_v53, %v9151_v62  ;;  %v8993_v53 = vrot.slane %v8992_v59, 4  ;;  %v8807_v62 = vld [vmem:[#allocation2 + $0x16] sm:$0x3] }
 0x1f6   :  { %17371 = vmatprep.mubr.msk.f32.mxu1 %vm75_vm0, %v20724_v52  ;;  %v8987_v52 = vmax.f32 %v8985_v42, %v8986_v7 }
 0x1f7   :  { %v9153_v18 = vrot.slane %v21003_v25, 1 }
 0x1f8   :  { %v8988_v57 = vrot.slane %v8987_v52, 2 }
 0x1f9   :  { %17372 = vmatmul.mubr.msk.f32.gmra.mrb[42].mxu1 %vm75_vm0, %v20737_v12  ;;  %v8480_v12 = vld [vmem:[#allocation2 + $0x2] sm:$0x3] }
 0x1fa   :  { %17374 = vmatprep.mubr.msk.f32.mxu1 %vm75_vm0, %v20746_v56  ;;  %v8643_v56 = vld [vmem:[#allocation2 + $0x4] sm:$0x3]  ;;  %v8496_v21 = vsel %vm8325_vm1, %v8480_v12, -inf  ;;  %v21001_v22 = vmax.f32 %v8987_v52, %v8988_v57  ;;  %v8644_v12 = vld [vmem:[#allocation2 + $0x14] sm:$0x3] }
 0x1fb   :  { %v20988_v48 = vsel %vm8325_vm1, %v8643_v56, -inf  ;;  %v8497_v15 = vrot.slane %v8496_v21, 4 }
 0x1fc   :  { %v8660_v47 = vrot.slane %v20988_v48, 4  ;;  %v8990_v42 = vrot.slane %v21001_v22, 1 }
 0x1fd   :  { %17375 = vmatmul.mubr.msk.f32.gmra.mrb[44].mxu1 %vm75_vm0, %v20756_v40  ;;  %v8806_v40 = vld [vmem:[#allocation2 + $0x6] sm:$0x3] }
 0x1fe   :  { %17377 = vmatprep.mubr.msk.f32.mxu1 %vm75_vm0, %v15355_v43  ;;  %v20991_v13 = vsel %vm8325_vm1, %v8806_v40, -inf  ;;  %v21018_v43 = vmax.f32 %v8496_v21, %v8497_v15 }
 0x1ff   :  { %v8823_v29 = vrot.slane %v20991_v13, 4 }
 0x200   :  { %v8499_v52 = vrot.slane %v21018_v43, 2 }
 0x201   :  { %17378 = vmatmul.mubr.msk.f32.gmra.mrb[46].mxu1 %vm75_vm0, %v15356_v49  ;;  %v21020_v49 = vld [vmem:[#allocation2 + $0x1c] sm:$0x3]  ;;  %v8824_v54 = vmax.f32 %v20991_v13, %v8823_v29  ;;  %v8971_v29 = vld [vmem:[#allocation2 + $0x28] sm:$0x3] }
 0x202   :  { %17382 = vmatprep.mubr.msk.f32.mxu1 %vm75_vm0, %v20404_v17  ;;  %v9312_v17 = vrot.slane %v9311_v24, 4  ;;  %v9318_v7 = vsel %vm8325_vm1, %v21020_v49, -inf  ;;  %v8500_v15 = vmax.f32 %v21018_v43, %v8499_v52  ;;  %v8999_v43 = vsel %vm8325_vm1, %v8971_v29, -inf }
 0x203   :  { %v8825_v56 = vrot.slane %v8824_v54, 2 }
 0x205   :  { %17383 = vmatmul.mubr.msk.f32.vlgmr.msra.gmra.mrb[32].mxu1 %vm75_vm0, %v20420_v0  ;;  %v9313_v0 = vmax.f32 %v9311_v24, %v9312_v17  ;;  %v9155_v24 = vsel %vm8325_vm1, %v21010_v28, -inf  ;;  %v8333_v17 = vsel %vm8325_vm1, %v21024_v35, -inf  ;;  %v8826_v49 = vmax.f32 %v8824_v54, %v8825_v56 }
 0x206   :  { %17407 = vmatpush3.msra.mxu1 %v15423_v39  ;;  %17385 = vmatprep.mubr.msk.f32.mxu1 %vm75_vm0, %v20438_v36  ;;  %v9476_v36 = vmax.f32 %v9474_v20, %v9475_v41  ;;  %v15539_v20 = vld [vmem:[%s23171_s3 + $0x8] sm:$0xff]  ;;  %v8481_v41 = vld [vmem:[#allocation2 + $0x12] sm:$0x3]  ;;  %v9156_v40 = vrot.slane %v9155_v24, 4  ;;  %v8334_v21 = vrot.slane %v8333_v17, 4 }
 0x207   :  { %17432 = vmatprep.subr.mxu1 %v20974_v6  ;;  %17510 = vmatprep.subr.mxu0 %v15539_v20  ;;  %v8503_v57 = vsel %vm8325_vm1, %v8481_v41, -inf  ;;  %v8827_v41 = vrot.slane %v8826_v49, 1 }
 0x208   :  { %v9477_v63 = vrot.slane %v9476_v36, 2  ;;  %17511 = vmatpush3.msra.mxu0 %v15539_v20  ;;  %v8504_v28 = vrot.slane %v8503_v57, 4 }
 0x209   :  { %17386 = vmatmul.mubr.msk.f32.gmra.mrb[34].mxu1 %vm75_vm0, %v20459_v55  ;;  %v20995_v55 = vmax.f32 %v8326_v45, %v8327_v1  ;;  %v21164_v29 = vmax.f32 %v8826_v49, %v8827_v41 }
 0x20a   :  { %17388 = vmatprep.mubr.msk.f32.mxu1 %vm75_vm0, %v20471_v37  ;;  %v9314_v37 = vrot.slane %v9313_v0, 2  ;;  %v21016_v39 = vmax.f32 %v9476_v36, %v9477_v63  ;;  %v9482_v36 = vrot.slane %v9481_v8, 4 }
 0x20c   :  { %v9479_v45 = vrot.slane %v21016_v39, 1  ;;  %v9483_v35 = vmax.f32 %v9481_v8, %v9482_v36  ;;  %v8505_v8 = vmax.f32 %v8503_v57, %v8504_v28  ;;  %v8482_v28 = vld [vmem:[#allocation2 + $0x22] sm:$0x3] }
 0x20d   :  { %17389 = vmatmul.mubr.msk.f32.gmra.mrb[36].mxu1 %vm75_vm0, %v20484_v11  ;;  %v8329_v11 = vrot.slane %v20995_v55, 2 }
 0x20e   :  { %17391 = vmatprep.mubr.msk.f32.mxu1 %vm75_vm0, %v20493_v14  ;;  %v21014_v14 = vmax.f32 %v9313_v0, %v9314_v37  ;;  %v9319_v0 = vrot.slane %v9318_v7, 4  ;;  %v15388_v37 = vld [vmem:[%s23168_s0 + $0x331] sm:$0xff] }
 0x20f   :  { %v8330_v3 = vmax.f32 %v20995_v55, %v8329_v11  ;;  %v8666_v55 = vsel %vm8325_vm1, %v8644_v12, -inf  ;;  %v9157_v11 = vmax.f32 %v9155_v24, %v9156_v40 }
 0x210   :  { %v9320_v5 = vmax.f32 %v9318_v7, %v9319_v0 }
 0x211   :  { %17392 = vmatmul.mubr.msk.f32.gmra.mrb[38].mxu1 %vm75_vm0, %v20506_v16  ;;  %v18652_v16 = vmov 0.0   ;;  %v8331_v13 = vrot.slane %v8330_v3, 1 }
 0x212   :  { %17394 = vmatprep.mubr.msk.f32.mxu1 %vm75_vm0, %v20518_v44  ;;  %8271 = vst [vmem:[#allocation3 + $0x10] sm:$0xff] %v18652_v16  ;;  %8272 = vst [vmem:[#allocation3 + $0x18] sm:$0x3] %v18652_v16  ;;  %v8661_v44 = vmax.f32 %v20988_v48, %v8660_v47  ;;  %v21128_v48 = vmax.f32 %v21003_v25, %v9153_v18  ;;  %v8994_v47 = vmax.f32 %v8992_v59, %v8993_v53  ;;  %v9297_v25 = vld [vmem:[#allocation2 + $0x2c] sm:$0x3] }
 0x213   :  { %8269 = vst [vmem:[#allocation3] sm:$0xff] %v18652_v16  ;;  %8270 = vst [vmem:[#allocation3 + $0x8] sm:$0x3] %v18652_v16  ;;  %v21153_v54 = vmax.f32 %v8330_v3, %v8331_v13  ;;  %v8501_v18 = vrot.slane %v8500_v15, 1  ;;  %v8311_v53 = vld [vmem:[#allocation2 + $0x20] sm:$0x3] }
 0x214   :  { %8273 = vst [vmem:[#allocation3 + $0x20] sm:$0xff] %v18652_v16  ;;  %8274 = vst [vmem:[#allocation3 + $0x28] sm:$0x3] %v18652_v16  ;;  %v8662_v1 = vrot.slane %v8661_v44, 2  ;;  %v8995_v24 = vrot.slane %v8994_v47, 2  ;;  %v9321_v12 = vrot.slane %v9320_v5, 2 }
 0x215   :  { %8275 = vst [vmem:[#allocation3 + $0x30] sm:$0xff] %v18652_v16  ;;  %8276 = vst [vmem:[#allocation3 + $0x38] sm:$0x3] %v18652_v16  ;;  %17395 = vmatmul.mubr.msk.f32.gmra.mrb[40].mxu1 %vm75_vm0, %v20526_v4  ;;  %v9316_v4 = vrot.slane %v21014_v14, 1  ;;  %v21159_v40 = vmax.f32 %v8500_v15, %v8501_v18  ;;  %v8506_v13 = vrot.slane %v8505_v8, 2 }
 0x216   :  { %8277 = vst [vmem:[#allocation3 + $0x40] sm:$0xff] %v18652_v16  ;;  %8278 = vst [vmem:[#allocation3 + $0x48] sm:$0x3] %v18652_v16  ;;  %17397 = vmatprep.mubr.msk.f32.mxu1 %vm75_vm0, %v20542_v9  ;;  %v21125_v9 = vmax.f32 %v21001_v22, %v8990_v42  ;;  %v9134_v22 = vld [vmem:[#allocation2 + $0x2a] sm:$0x3]  ;;  %v8663_v34 = vmax.f32 %v8661_v44, %v8662_v1  ;;  %v9325_v42 = vsel %vm8325_vm1, %v9297_v25, -inf }
 0x217   :  { %8279 = vst [vmem:[#allocation3 + $0x50] sm:$0xff] %v18652_v16  ;;  %8280 = vst [vmem:[#allocation3 + $0x58] sm:$0x3] %v18652_v16  ;;  %v21137_v63 = vmax.f32 %v21014_v14, %v9316_v4  ;;  %v9460_v14 = vld [vmem:[#allocation2 + $0x2e] sm:$0x3]  ;;  %v9162_v59 = vsel %vm8325_vm1, %v9134_v22, -inf  ;;  %v8996_v0 = vmax.f32 %v8994_v47, %v8995_v24 }
 0x218   :  { %8281 = vst [vmem:[#allocation3 + $0x60] sm:$0xff] %v18652_v16  ;;  %8282 = vst [vmem:[#allocation3 + $0x68] sm:$0x3] %v18652_v16  ;;  %v15389_v44 = vld [vmem:[%s23168_s0 + $0x339] sm:$0xff]  ;;  %v8664_v7 = vrot.slane %v8663_v34, 1  ;;  %v9000_v4 = vrot.slane %v8999_v43, 4 }
 0x219   :  { %8283 = vst [vmem:[#allocation3 + $0x70] sm:$0xff] %v18652_v16  ;;  %8284 = vst [vmem:[#allocation3 + $0x78] sm:$0x3] %v18652_v16  ;;  %17398 = vmatmul.mubr.msk.f32.gmra.mrb[42].mxu1 %vm75_vm0, %v20550_v10  ;;  %v21140_v10 = vmax.f32 %v21016_v39, %v9479_v45  ;;  %v8667_v39 = vrot.slane %v8666_v55, 4  ;;  %v9163_v45 = vrot.slane %v9162_v59, 4  ;;  %v9326_v52 = vrot.slane %v9325_v42, 4 }
 0x21a   :  { %8285 = vst [vmem:[#allocation3 + $0x80] sm:$0xff] %v18652_v16  ;;  %8286 = vst [vmem:[#allocation3 + $0x88] sm:$0x3] %v18652_v16  ;;  %17400 = vmatprep.mubr.msk.f32.mxu1 %vm75_vm0, %v20566_v50  ;;  %v8829_v50 = vsel %vm8325_vm1, %v8807_v62, -inf  ;;  %v9484_v1 = vrot.slane %v9483_v35, 2  ;;  %v21161_v57 = vmax.f32 %v8663_v34, %v8664_v7  ;;  %v9001_v22 = vmax.f32 %v8999_v43, %v9000_v4 }
 0x21b   :  { %8287 = vst [vmem:[#allocation3 + $0x90] sm:$0xff] %v18652_v16  ;;  %8288 = vst [vmem:[#allocation3 + $0x98] sm:$0x3] %v18652_v16  ;;  %v8830_v20 = vrot.slane %v8829_v50, 4  ;;  %v8668_v3 = vmax.f32 %v8666_v55, %v8667_v39  ;;  %v9164_v25 = vmax.f32 %v9162_v59, %v9163_v45  ;;  %v9327_v55 = vmax.f32 %v9325_v42, %v9326_v52  ;;  %v21174_v59 = vld [vmem:[%s23169_s1 + $0x38] sm:$0xff] }
 0x21c   :  { %8289 = vst [vmem:[#allocation3 + $0xa0] sm:$0xff] %v18652_v16  ;;  %8290 = vst [vmem:[#allocation3 + $0xa8] sm:$0x3] %v18652_v16  ;;  %v9485_v15 = vmax.f32 %v9483_v35, %v9484_v1  ;;  %v8510_v35 = vsel %vm8325_vm1, %v8482_v28, -inf }
 0x21d   :  { %8291 = vst [vmem:[#allocation3 + $0xb0] sm:$0xff] %v18652_v16  ;;  %8292 = vst [vmem:[#allocation3 + $0xb8] sm:$0x3] %v18652_v16  ;;  %17401 = vmatmul.mubr.msk.f32.gmra.mrb[44].mxu1 %vm75_vm0, %v20574_v51  ;;  %v9158_v51 = vrot.slane %v9157_v11, 2  ;;  %v8831_v36 = vmax.f32 %v8829_v50, %v8830_v20  ;;  %v8669_v34 = vrot.slane %v8668_v3, 2  ;;  %v9165_v42 = vrot.slane %v9164_v25, 2 }
 0x21e   :  { %8293 = vst [vmem:[#allocation3 + $0xc0] sm:$0xff] %v18652_v16  ;;  %8294 = vst [vmem:[#allocation3 + $0xc8] sm:$0x3] %v18652_v16  ;;  %17403 = vmatprep.mubr.msk.f32.mxu1 %vm75_vm0, %v15388_v37  ;;  %v8340_v37 = vsel %vm8325_vm1, %v8311_v53, -inf  ;;  %v8808_v50 = vld [vmem:[#allocation2 + $0x26] sm:$0x3] }
 0x21f   :  { %8295 = vst [vmem:[#allocation3 + $0xd0] sm:$0xff] %v18652_v16  ;;  %8296 = vst [vmem:[#allocation3 + $0xd8] sm:$0x3] %v18652_v16  ;;  %v9159_v62 = vmax.f32 %v9157_v11, %v9158_v51  ;;  %v8997_v11 = vrot.slane %v8996_v0, 1  ;;  %v8832_v49 = vrot.slane %v8831_v36, 2  ;;  %v8341_v43 = vrot.slane %v8340_v37, 4 }
 0x220   :  { %8297 = vst [vmem:[#allocation3 + $0xe0] sm:$0xff] %v18652_v16  ;;  %8298 = vst [vmem:[#allocation3 + $0xe8] sm:$0x3] %v18652_v16  ;;  %v9486_v24 = vrot.slane %v9485_v15, 1  ;;  %v8670_v7 = vmax.f32 %v8668_v3, %v8669_v34  ;;  %v8511_v45 = vrot.slane %v8510_v35, 4 }
 0x221   :  { %8299 = vst [vmem:[#allocation3 + $0xf0] sm:$0xff] %v18652_v16  ;;  %8300 = vst [vmem:[#allocation3 + $0xf8] sm:$0x3] %v18652_v16  ;;  %17404 = vmatmul.mubr.msk.f32.gmra.mrb[46].mxu1 %vm75_vm0, %v15389_v44  ;;  %v8836_v44 = vsel %vm8325_vm1, %v8808_v50, -inf  ;;  %v8998_v51 = vmax.f32 %v8996_v0, %v8997_v11  ;;  %v8342_v41 = vmax.f32 %v8340_v37, %v8341_v43  ;;  %v9135_v11 = vld [vmem:[#allocation2 + $0x3a] sm:$0x3] }
 0x222   :  { %8301 = vst [vmem:[#allocation3 + $0x100] sm:$0xff] %v18652_v16  ;;  %8302 = vst [vmem:[#allocation3 + $0x108] sm:$0x3] %v18652_v16  ;;  %17408 = vmatprep.mubr.msk.f32.mxu1 %vm75_vm0, %v20781_v38  ;;  %v9322_v38 = vmax.f32 %v9320_v5, %v9321_v12  ;;  %v8507_v5 = vmax.f32 %v8505_v8, %v8506_v13  ;;  %v8833_v8 = vmax.f32 %v8831_v36, %v8832_v49  ;;  %v9298_v49 = vld [vmem:[#allocation2 + $0x3c] sm:$0x3] }
 0x223   :  { %8303 = vst [vmem:[#allocation3 + $0x110] sm:$0xff] %v18652_v16  ;;  %8304 = vst [vmem:[#allocation3 + $0x118] sm:$0x3] %v18652_v16  ;;  %v8837_v53 = vrot.slane %v8836_v44, 4  ;;  %v9487_v3 = vmax.f32 %v9485_v15, %v9486_v24  ;;  %v8671_v28 = vrot.slane %v8670_v7, 1 }
 0x224   :  { %8305 = vst [vmem:[#allocation3 + $0x120] sm:$0xff] %v18652_v16  ;;  %8306 = vst [vmem:[#allocation3 + $0x128] sm:$0x3] %v18652_v16  ;;  %v9323_v18 = vrot.slane %v9322_v38, 1  ;;  %v8508_v4 = vrot.slane %v8507_v5, 1  ;;  %v8834_v0 = vrot.slane %v8833_v8, 1 }
 0x225   :  { %8307 = vst [vmem:[#allocation3 + $0x130] sm:$0xff] %v18652_v16  ;;  %8308 = vst [vmem:[#allocation3 + $0x138] sm:$0x3] %v18652_v16  ;;  %17409 = vmatmul.mubr.msk.f32.vlgmr.msra.gmra.mrb[32].mxu1 %vm75_vm0, %v20788_v58  ;;  %v9160_v58 = vrot.slane %v9159_v62, 1  ;;  %v8672_v50 = vmax.f32 %v8670_v7, %v8671_v28 }
 0x226   :  { %11678 = vst [vmem:[#allocation4 + $0x40] sm:$0xff] %v18652_v16  ;;  %11679 = vst [vmem:[#allocation4 + $0x48] sm:$0xff] %v18652_v16  ;;  %17433 = vmatpush3.msra.mxu1 %v20974_v6  ;;  %17411 = vmatprep.mubr.msk.f32.mxu1 %vm75_vm0, %v20800_v60  ;;  %v9328_v60 = vrot.slane %v9327_v55, 2  ;;  %v8509_v37 = vmax.f32 %v8507_v5, %v8508_v4 }
 0x227   :  { %11680 = vst [vmem:[#allocation4 + $0x50] sm:$0xff] %v18652_v16  ;;  %11681 = vst [vmem:[#allocation4 + $0x58] sm:$0xff] %v18652_v16  ;;  %17458 = vmatprep.subr.mxu1 %v21174_v59  ;;  %v9161_v12 = vmax.f32 %v9159_v62, %v9160_v58  ;;  %v8343_v62 = vrot.slane %v8342_v41, 2  ;;  %v9461_v58 = vld [vmem:[#allocation2 + $0x3e] sm:$0x3] }
 0x228   :  { %11682 = vst [vmem:[#allocation4 + $0x60] sm:$0xff] %v18652_v16  ;;  %11683 = vst [vmem:[#allocation4 + $0x68] sm:$0xff] %v18652_v16  ;;  %v9495_v24 = vsel %vm8325_vm1, %v9461_v58, -inf }
 0x229   :  { %11684 = vst [vmem:[#allocation4 + $0x70] sm:$0xff] %v18652_v16  ;;  %11685 = vst [vmem:[#allocation4 + $0x78] sm:$0xff] %v18652_v16  ;;  %17412 = vmatmul.mubr.msk.f32.gmra.mrb[34].mxu1 %vm75_vm0, %v20815_v61  ;;  %v9324_v61 = vmax.f32 %v9322_v38, %v9323_v18  ;;  %v8344_v43 = vmax.f32 %v8342_v41, %v8343_v62  ;;  %v9332_v18 = vsel %vm8325_vm1, %v9298_v49, -inf }
 0x22a   :  { %11686 = vst [vmem:[#allocation4 + $0x80] sm:$0xff] %v18652_v16  ;;  %11687 = vst [vmem:[#allocation4 + $0x88] sm:$0xff] %v18652_v16  ;;  %17414 = vmatprep.mubr.msk.f32.mxu1 %vm75_vm0, %v20824_v23  ;;  %v9113_v23 = vsel %vm8454_vm2, %v8998_v51, %v21125_v9  ;;  %v9602_v9 = vsel %vm8454_vm2, %v9487_v3, %v21140_v10  ;;  %v21207_v10 = vsel %vm8454_vm2, %v8509_v37, %v21159_v40 }
 0x22b   :  { %11688 = vst [vmem:[#allocation4 + $0x90] sm:$0xff] %v18652_v16  ;;  %11689 = vst [vmem:[#allocation4 + $0x98] sm:$0xff] %v18652_v16 }
 0x22c   :  { %11690 = vst [vmem:[#allocation4 + $0xa0] sm:$0xff] %v18652_v16  ;;  %11691 = vst [vmem:[#allocation4 + $0xa8] sm:$0xff] %v18652_v16 }
 0x22d   :  { %11692 = vst [vmem:[#allocation4 + $0xb0] sm:$0xff] %v18652_v16  ;;  %11693 = vst [vmem:[#allocation4 + $0xb8] sm:$0xff] %v18652_v16  ;;  %17415 = vmatmul.mubr.msk.f32.gmra.mrb[36].mxu1 %vm75_vm0, %v20837_v27  ;;  %v9276_v27 = vsel %vm8454_vm2, %v9161_v12, %v21128_v48  ;;  %v8835_v48 = vmax.f32 %v8833_v8, %v8834_v0  ;;  %v8646_v8 = vld [vmem:[#allocation2 + $0x34] sm:$0x3]  ;;  %v9496_v12 = vrot.slane %v9495_v24, 4 }
 0x22e   :  { %11694 = vst [vmem:[#allocation4 + $0xc0] sm:$0xff] %v18652_v16  ;;  %11695 = vst [vmem:[#allocation4 + $0xc8] sm:$0xff] %v18652_v16  ;;  %17417 = vmatprep.mubr.msk.f32.mxu1 %vm75_vm0, %v20846_v19  ;;  %v9439_v19 = vsel %vm8454_vm2, %v9324_v61, %v21137_v63  ;;  %v8312_v63 = vld [vmem:[#allocation2 + $0x30] sm:$0x3]  ;;  %v8680_v28 = vsel %vm8325_vm1, %v8646_v8, -inf }
 0x22f   :  { %11696 = vst [vmem:[#allocation4 + $0xd0] sm:$0xff] %v18652_v16  ;;  %11697 = vst [vmem:[#allocation4 + $0xd8] sm:$0xff] %v18652_v16  ;;  %v8347_v40 = vsel %vm8325_vm1, %v8312_v63, -inf  ;;  %v21223_v7 = vsel %vm8454_vm2, %v8835_v48, %v21164_v29 }
 0x230   :  { %11698 = vst [vmem:[#allocation4 + $0xe0] sm:$0xff] %v18652_v16  ;;  %11699 = vst [vmem:[#allocation4 + $0xe8] sm:$0xff] %v18652_v16 }
 0x231   :  { %11700 = vst [vmem:[#allocation4 + $0xf0] sm:$0xff] %v18652_v16  ;;  %11701 = vst [vmem:[#allocation4 + $0xf8] sm:$0xff] %v18652_v16  ;;  %v8335_v16 = vmax.f32 %v8333_v17, %v8334_v21  ;;  %v9488_v17 = vsel %vm8325_vm1, %v9460_v14, -inf  ;;  %v8645_v14 = vld [vmem:[#allocation2 + $0x24] sm:$0x3]  ;;  %17418 = vmatmul.mubr.msk.f32.gmra.mrb[38].mxu1 %vm75_vm0, %v20859_v46 }
 0x232   :  { %v9489_v21 = vrot.slane %v9488_v17, 4  ;;  %v8673_v6 = vsel %vm8325_vm1, %v8645_v14, -inf  ;;  %v8972_v14 = vld [vmem:[#allocation2 + $0x38] sm:$0x3]  ;;  %17420 = vmatprep.mubr.msk.f32.mxu1 %vm75_vm0, %v20868_v33  ;;  %v8483_v33 = vld [vmem:[#allocation2 + $0x32] sm:$0x3] }
 0x233   :  { %v8336_v56 = vrot.slane %v8335_v16, 2  ;;  %v8674_v52 = vrot.slane %v8673_v6, 4  ;;  %v9006_v46 = vsel %vm8325_vm1, %v8972_v14, -inf  ;;  %v9497_v14 = vmax.f32 %v9495_v24, %v9496_v12  ;;  %v18612_v24 = vld [vmem:[%s23168_s0 + $0x2a0] sm:$0xff] }
 0x234   :  { %v9490_v39 = vmax.f32 %v9488_v17, %v9489_v21  ;;  %v9329_v21 = vmax.f32 %v9327_v55, %v9328_v60  ;;  %v8838_v55 = vmax.f32 %v8836_v44, %v8837_v53  ;;  %v9169_v60 = vsel %vm8325_vm1, %v9135_v11, -inf  ;;  %v15422_v11 = vld [vmem:[%s23168_s0 + $0x33a] sm:$0xff] }
 0x235   :  { %v8337_v47 = vmax.f32 %v8335_v16, %v8336_v56  ;;  %v9002_v16 = vrot.slane %v9001_v22, 2  ;;  %v9166_v56 = vmax.f32 %v9164_v25, %v9165_v42  ;;  %v8675_v25 = vmax.f32 %v8673_v6, %v8674_v52  ;;  %17421 = vmatmul.mubr.msk.f32.gmra.mrb[40].mxu1 %vm75_vm0, %v20881_v26  ;;  %v8809_v52 = vld [vmem:[#allocation2 + $0x36] sm:$0x3] }
 0x236   :  { %v9491_v17 = vrot.slane %v9490_v39, 2  ;;  %v9007_v44 = vrot.slane %v9006_v46, 4  ;;  %17423 = vmatprep.mubr.msk.f32.mxu1 %vm75_vm0, %v20890_v30  ;;  %v8345_v26 = vrot.slane %v8344_v43, 1  ;;  %v9170_v4 = vrot.slane %v9169_v60, 4 }
 0x237   :  { %v8338_v20 = vrot.slane %v8337_v47, 1  ;;  %v9003_v1 = vmax.f32 %v9001_v22, %v9002_v16  ;;  %v8512_v22 = vmax.f32 %v8510_v35, %v8511_v45  ;;  %v9167_v15 = vrot.slane %v9166_v56, 1 }
 0x238   :  { %v9492_v36 = vmax.f32 %v9490_v39, %v9491_v17  ;;  %v8839_v35 = vrot.slane %v8838_v55, 2  ;;  %v8517_v45 = vsel %vm8325_vm1, %v8483_v33, -inf  ;;  %v17020_v30 = vpop.f32.mrb[16].mxu1  ;;  %v9008_v3 = vmax.f32 %v9006_v46, %v9007_v44 }
 0x239   :  { %v8339_v13 = vmax.f32 %v8337_v47, %v8338_v20  ;;  %v9004_v38 = vrot.slane %v9003_v1, 1  ;;  %v9330_v47 = vrot.slane %v9329_v21, 1  ;;  %v8513_v5 = vrot.slane %v8512_v22, 2  ;;  %17424 = vmatmul.mubr.msk.f32.gmra.mrb[42].mxu1 %vm75_vm0, %v20900_v31  ;;  %v21250_v31 = vld [vmem:[%s23170_s2] ss:$0 sm:$0xff] }
 0x23a   :  { %v9493_v39 = vrot.slane %v9492_v36, 1  ;;  %v9168_v16 = vmax.f32 %v9166_v56, %v9167_v15  ;;  %v21219_v20 = vsel %vm8454_vm2, %v8672_v50, %v21161_v57  ;;  %v21230_v53 = vmax.f32 %v8838_v55, %v8839_v35  ;;  %v4017_v56 = vpop.f32.mrb[17].mxu1  ;;  %17426 = vmatprep.mubr.msk.f32.mxu1 %vm75_vm0, %v20907_v32 }
 0x23b   :  { %v21200_v34 = vsel %vm8454_vm2, %v8339_v13, %v21153_v54  ;;  %v8676_v54 = vrot.slane %v8675_v25, 2  ;;  %v9005_v6 = vmax.f32 %v9003_v1, %v9004_v38  ;;  %v9331_v42 = vmax.f32 %v9329_v21, %v9330_v47 }
 0x23c   :  { %v9494_v51 = vmax.f32 %v9492_v36, %v9493_v39  ;;  %v21225_v17 = vmax.f32 %v8512_v22, %v8513_v5  ;;  %v9333_v57 = vrot.slane %v9332_v18, 4  ;;  %v8348_v1 = vrot.slane %v8347_v40, 4  ;;  %v15421_v36 = vld [vmem:[%s23168_s0 + $0x332] sm:$0xff] }
 0x23d   :  { %v21227_v41 = vmax.f32 %v8675_v25, %v8676_v54  ;;  %v21235_v29 = vsel %vm8456_vm3, %v9005_v6, %v9113_v23  ;;  %v21238_v21 = vsel %vm8456_vm3, %v9168_v16, %v9276_v27  ;;  %v21241_v61 = vsel %vm8456_vm3, %v9331_v42, %v9439_v19  ;;  %v17023_v25 = vpop.f32.mrb[18].mxu1  ;;  %17427 = vmatmul.mubr.msk.f32.gmra.mrb[44].mxu1 %vm75_vm0, %v20918_v2 }
 0x23e   :  { %v8518_v13 = vrot.slane %v8517_v45, 4  ;;  %v8843_v0 = vsel %vm8325_vm1, %v8809_v52, -inf  ;;  %v4113_v23 = vadd.f32 %v21250_v31, %v17020_v30  ;;  %v21257_v62 = vsel %vm8456_vm3, %v9494_v51, %v9602_v9  ;;  %v4027_v15 = vpop.f32.mrb[19].mxu1  ;;  %17429 = vmatprep.mubr.msk.f32.mxu1 %vm75_vm0, %v15421_v36  ;;  %v18614_v36 = vld [vmem:[%s23168_s0 + $0x2b8] sm:$0xff] }
 0x23f   :  { %v8346_v32 = vmax.f32 %v8344_v43, %v8345_v26  ;;  %v9171_v37 = vmax.f32 %v9169_v60, %v9170_v4  ;;  %v4112_v22 = vadd.f32 %v21250_v31, %v4017_v56  ;;  %v9334_v55 = vmax.f32 %v9332_v18, %v9333_v57 }
 0x240   :  { %v8349_v27 = vmax.f32 %v8347_v40, %v8348_v1  ;;  %v4115_v38 = vadd.f32 %v21250_v31, %v17023_v25  ;;  %v9009_v47 = vrot.slane %v9008_v3, 2  ;;  %v8681_v19 = vrot.slane %v8680_v28, 4  ;;  %v17026_v5 = vpop.f32.mrb[20].mxu1 }
 0x241   :  { %v8844_v50 = vrot.slane %v8843_v0, 4  ;;  %v4114_v9 = vadd.f32 %v21250_v31, %v4027_v15  ;;  %v8515_v49 = vrot.slane %v21225_v17, 1  ;;  %v8519_v48 = vmax.f32 %v8517_v45, %v8518_v13  ;;  %v4037_v42 = vpop.f32.mrb[21].mxu1  ;;  %17430 = vmatmul.mubr.msk.f32.gmra.mrb[46].mxu1 %vm75_vm0, %v15422_v11 }
 0x242   :  { %v4129_v39 = vmax.f32 %v4113_v23, 0.0  ;;  %v4131_v43 = vmax.f32 %v4115_v38, 0.0  ;;  %v8678_v46 = vrot.slane %v21227_v41, 1  ;;  %v9172_v58 = vrot.slane %v9171_v37, 2  ;;  %17434 = vmatprep.mubr.msk.f32.mxu1 %vm75_vm0, %v18612_v24 }
 0x243   :  { %v4128_v2 = vmax.f32 %v4112_v22, 0.0  ;;  %v4130_v63 = vmax.f32 %v4114_v9, 0.0  ;;  %v9335_v54 = vrot.slane %v9334_v55, 2  ;;  %v9498_v35 = vrot.slane %v9497_v14, 2 }
 0x244   :  { %v8350_v6 = vrot.slane %v8349_v27, 2  ;;  %v4145_v16 = vmax.f32 %v4129_v39, %v4131_v43  ;;  %v9010_v60 = vmax.f32 %v9008_v3, %v9009_v47  ;;  %v8682_v33 = vmax.f32 %v8680_v28, %v8681_v19  ;;  %v17029_v57 = vpop.f32.mrb[22].mxu1  ;;  %v18613_v3 = vld [vmem:[%s23168_s0 + $0x2a8] sm:$0xff] }
 0x245   :  { %v8845_v44 = vmax.f32 %v8843_v0, %v8844_v50  ;;  %v4144_v18 = vmax.f32 %v4128_v2, %v4130_v63  ;;  %v21277_v40 = vsel %vm8456_vm3, %v8346_v32, %v21200_v34  ;;  %v8841_v51 = vrot.slane %v21230_v53, 1  ;;  %v21289_v34 = vld [vmem:[%s23169_s1 + $0x40] sm:$0xff]  ;;  %17435 = vmatmul.mubr.msk.f32.vlgmr.msra.gmra.mrb[32].mxu1 %vm75_vm0, %v18613_v3 }
 0x246   :  { %v8520_v26 = vrot.slane %v8519_v48, 2  ;;  %4154 = vst [vmem:[#allocation2 + $0x48] sm:$0xff] %v4145_v16  ;;  %v4117_v8 = vadd.f32 %v21250_v31, %v17026_v5  ;;  %v8516_v4 = vmax.f32 %v21225_v17, %v8515_v49  ;;  %v8679_v45 = vmax.f32 %v21227_v41, %v8678_v46  ;;  %v4047_v41 = vpop.f32.mrb[23].mxu1  ;;  %17459 = vmatpush3.msra.mxu1 %v21174_v59 }
 0x247   :  { %v21283_v52 = vmax.f32 %v9171_v37, %v9172_v58  ;;  %4153 = vst [vmem:[#allocation2 + $0x40] sm:$0xff] %v4144_v18  ;;  %v4116_v30 = vadd.f32 %v21250_v31, %v4037_v42  ;;  %v21291_v12 = vmax.f32 %v9334_v55, %v9335_v54  ;;  %v21293_v1 = vmax.f32 %v9497_v14, %v9498_v35  ;;  %v18616_v58 = vld [vmem:[%s23168_s0 + $0x2d0] sm:$0xff] }
 0x248   :  { %v21295_v56 = vmax.f32 %v8349_v27, %v8350_v6  ;;  %v4119_v17 = vadd.f32 %v21250_v31, %v17029_v57  ;;  %v9011_v13 = vrot.slane %v9010_v60, 1  ;;  %v8683_v28 = vrot.slane %v8682_v33, 2  ;;  %17437 = vmatprep.mubr.msk.f32.mxu1 %vm75_vm0, %v18614_v36  ;;  %17484 = vmatprep.subr.mxu1 %v21289_v34  ;;  %v21317_v38 = vpop.f32.mrb[24].mxu1 }
 0x249   :  { %v8846_v0 = vrot.slane %v8845_v44, 2  ;;  %v4118_v23 = vadd.f32 %v21250_v31, %v4047_v41  ;;  %v8842_v32 = vmax.f32 %v21230_v53, %v8841_v51  ;;  %v21309_v37 = vmax.f32 %v8519_v48, %v8520_v26  ;;  %v21322_v50 = vpop.f32.mrb[25].mxu1 }
 0x24a   :  { %v4133_v22 = vmax.f32 %v4117_v8, 0.0  ;;  %v4135_v25 = vmax.f32 %v4119_v17, 0.0  ;;  %v21314_v55 = vsel %vm8456_vm3, %v8516_v4, %v21207_v10  ;;  %v9174_v59 = vrot.slane %v21283_v52, 1  ;;  %v18615_v10 = vld [vmem:[%s23168_s0 + $0x2c0] sm:$0xff]  ;;  %v18617_v4 = vld [vmem:[%s23168_s0 + $0x2d8] sm:$0xff] }
 0x24b   :  { %v4132_v14 = vmax.f32 %v4116_v30, 0.0  ;;  %v4134_v27 = vmax.f32 %v4118_v23, 0.0  ;;  %v9337_v15 = vrot.slane %v21291_v12, 1  ;;  %v9500_v53 = vrot.slane %v21293_v1, 1  ;;  %17438 = vmatmul.mubr.msk.f32.gmra.mrb[34].mxu1 %vm75_vm0, %v18615_v10 }
 0x24c   :  { %v8352_v47 = vrot.slane %v21295_v56, 1  ;;  %v4147_v19 = vmax.f32 %v4133_v22, %v4135_v25  ;;  %v9012_v9 = vmax.f32 %v9010_v60, %v9011_v13  ;;  %v8684_v11 = vmax.f32 %v8682_v33, %v8683_v28  ;;  %17440 = vmatprep.mubr.msk.f32.mxu1 %vm75_vm0, %v18616_v58  ;;  %v21351_v41 = vpop.f32.mrb[26].mxu1 }
 0x24d   :  { %v8847_v49 = vmax.f32 %v8845_v44, %v8846_v0  ;;  %v8973_v48 = vld [vmem:[#allocation2 + $0x48] sm:$0x3]  ;;  %v9136_v39 = vld [vmem:[#allocation2 + $0x4a] sm:$0x3]  ;;  %v9299_v43 = vld [vmem:[#allocation2 + $0x4c] sm:$0x3]  ;;  %v4146_v46 = vmax.f32 %v4132_v14, %v4134_v27  ;;  %v21339_v44 = vsel %vm8456_vm3, %v8679_v45, %v21219_v20  ;;  %v21343_v18 = vsel %vm8456_vm3, %v8842_v32, %v21223_v7 }
 0x24e   :  { %v8522_v2 = vrot.slane %v21309_v37, 1  ;;  %v9013_v63 = vsel %vm8325_vm1, %v8973_v48, -inf  ;;  %v9176_v5 = vsel %vm8325_vm1, %v9136_v39, -inf  ;;  %v9339_v54 = vsel %vm8325_vm1, %v9299_v43, -inf  ;;  %v9462_v35 = vld [vmem:[#allocation2 + $0x4e] sm:$0x3] }
 0x24f   :  { %4156 = vst [vmem:[#allocation2 + $0x58] sm:$0xff] %v4147_v19  ;;  %v9014_v6 = vrot.slane %v9013_v63, 4  ;;  %v9177_v16 = vrot.slane %v9176_v5, 4  ;;  %v9340_v42 = vrot.slane %v9339_v54, 4  ;;  %v9502_v60 = vsel %vm8325_vm1, %v9462_v35, -inf  ;;  %4155 = vst [vmem:[#allocation2 + $0x50] sm:$0xff] %v4146_v46  ;;  %17441 = vmatmul.mubr.msk.f32.gmra.mrb[36].mxu1 %vm75_vm0, %v18617_v4 }
 0x250   :  { %v8313_v33 = vld [vmem:[#allocation2 + $0x40] sm:$0x3]  ;;  %v9503_v24 = vrot.slane %v9502_v60, 4  ;;  %v8484_v26 = vld [vmem:[#allocation2 + $0x42] sm:$0x3]  ;;  %v9175_v30 = vmax.f32 %v21283_v52, %v9174_v59  ;;  %v8685_v57 = vrot.slane %v8684_v11, 1  ;;  %v9338_v3 = vmax.f32 %v21291_v12, %v9337_v15 }
 0x251   :  { %v8354_v51 = vsel %vm8325_vm1, %v8313_v33, -inf  ;;  %v8647_v8 = vld [vmem:[#allocation2 + $0x44] sm:$0x3]  ;;  %v8848_v20 = vrot.slane %v8847_v49, 1  ;;  %v9015_v45 = vmax.f32 %v9013_v63, %v9014_v6  ;;  %v8810_v17 = vld [vmem:[#allocation2 + $0x46] sm:$0x3]  ;;  %v9178_v13 = vmax.f32 %v9176_v5, %v9177_v16 }
 0x252   :  { %v18618_v7 = vld [vmem:[%s23168_s0 + $0x2e8] sm:$0xff]  ;;  %v8355_v28 = vrot.slane %v8354_v51, 4  ;;  %v21358_v0 = vpop.f32.mrb[27].mxu1  ;;  %v21362_v52 = vsel %vm8458_vm4, %v9012_v9, %v21235_v29  ;;  %v9341_v23 = vmax.f32 %v9339_v54, %v9340_v42  ;;  %v9504_v36 = vmax.f32 %v9502_v60, %v9503_v24  ;;  %v18619_v29 = vld [vmem:[%s23168_s0 + $0x2f0] sm:$0xff] }
 0x253   :  { %17443 = vmatprep.mubr.msk.f32.mxu1 %vm75_vm0, %v18618_v7  ;;  %v8524_v32 = vsel %vm8325_vm1, %v8484_v26, -inf  ;;  %v8687_v22 = vsel %vm8325_vm1, %v8647_v8, -inf  ;;  %v21366_v25 = vpop.f32.mrb[28].mxu1  ;;  %v9501_v59 = vmax.f32 %v21293_v1, %v9500_v53  ;;  %v8353_v12 = vmax.f32 %v21295_v56, %v8352_v47  ;;  %v18620_v1 = vld [vmem:[%s23168_s0 + $0x300] sm:$0xff]  ;;  %v15449_v56 = vld [vmem:[%s23168_s0 + $0x308] sm:$0xff] }
 0x254   :  { %v8523_v14 = vmax.f32 %v21309_v37, %v8522_v2  ;;  %v8850_v27 = vsel %vm8325_vm1, %v8810_v17, -inf  ;;  %v21372_v15 = vpop.f32.mrb[29].mxu1  ;;  %17444 = vmatmul.mubr.msk.f32.gmra.mrb[38].mxu1 %vm75_vm0, %v18619_v29  ;;  %v8686_v19 = vmax.f32 %v8684_v11, %v8685_v57  ;;  %v8849_v10 = vmax.f32 %v8847_v49, %v8848_v20  ;;  %v15450_v49 = vld [vmem:[%s23168_s0 + $0x318] sm:$0xff] }
 0x255   :  { %v9016_v9 = vrot.slane %v9015_v45, 2  ;;  %17446 = vmatprep.mubr.msk.f32.mxu1 %vm75_vm0, %v18620_v1  ;;  %v21387_v37 = vsel %vm8458_vm4, %v9175_v30, %v21238_v21  ;;  %v9179_v53 = vrot.slane %v9178_v13, 2  ;;  %v8356_v47 = vmax.f32 %v8354_v51, %v8355_v28  ;;  %v21392_v58 = vpop.f32.mrb[30].mxu1 }
 0x256   :  { %v8525_v48 = vrot.slane %v8524_v32, 4  ;;  %v8688_v11 = vrot.slane %v8687_v22, 4  ;;  %v9342_v39 = vrot.slane %v9341_v23, 2  ;;  %v9505_v43 = vrot.slane %v9504_v36, 2  ;;  %v8974_v63 = vld [vmem:[#allocation2 + $0x58] sm:$0x3] }
 0x257   :  { %v8851_v46 = vrot.slane %v8850_v27, 4  ;;  %v21396_v2 = vsel %vm8458_vm4, %v9338_v3, %v21241_v61  ;;  %v21400_v21 = vsel %vm8458_vm4, %v8523_v14, %v21314_v55  ;;  %v9137_v5 = vld [vmem:[#allocation2 + $0x5a] sm:$0x3]  ;;  %v9300_v54 = vld [vmem:[#allocation2 + $0x5c] sm:$0x3]  ;;  %v21404_v35 = vadd.f32 %v21250_v31, %v21317_v38  ;;  %v21421_v42 = vpop.f32.mrb[31].mxu1 }
 0x258   :  { %17447 = vmatmul.mubr.msk.f32.gmra.mrb[40].mxu1 %vm75_vm0, %v15449_v56  ;;  %v21409_v6 = vsel %vm8458_vm4, %v8353_v12, %v21277_v40  ;;  %v21413_v61 = vsel %vm8458_vm4, %v9501_v59, %v21257_v62  ;;  %v21415_v16 = vmax.f32 %v9015_v45, %v9016_v9  ;;  %v21419_v55 = vadd.f32 %v21250_v31, %v21322_v50  ;;  %v15451_v38 = vld [vmem:[%s23168_s0 + $0x320] sm:$0xff]  ;;  %v9463_v51 = vld [vmem:[#allocation2 + $0x5e] sm:$0x3]  ;;  %v8314_v26 = vld [vmem:[#allocation2 + $0x50] sm:$0x3] }
 0x259   :  { %17449 = vmatprep.mubr.msk.f32.mxu1 %vm75_vm0, %v15450_v49  ;;  %v21429_v40 = vsel %vm8458_vm4, %v8686_v19, %v21339_v44  ;;  %v21433_v62 = vsel %vm8458_vm4, %v8849_v10, %v21343_v18  ;;  %v21435_v60 = vmax.f32 %v9178_v13, %v9179_v53  ;;  %v8357_v50 = vrot.slane %v8356_v47, 2  ;;  %v8485_v45 = vld [vmem:[#allocation2 + $0x52] sm:$0x3]  ;;  %v15454_v14 = vld [vmem:[%s23168_s0 + $0x348] sm:$0xff]  ;;  %v8811_v9 = vld [vmem:[#allocation2 + $0x56] sm:$0x3] }
 0x25a   :  { %v8526_v33 = vmax.f32 %v8524_v32, %v8525_v48  ;;  %v8689_v24 = vmax.f32 %v8687_v22, %v8688_v11  ;;  %v8852_v8 = vmax.f32 %v8850_v27, %v8851_v46  ;;  %v9020_v4 = vsel %vm8325_vm1, %v8974_v63, -inf  ;;  %v8648_v32 = vld [vmem:[#allocation2 + $0x54] sm:$0x3] }
 0x25b   :  { %v9183_v30 = vsel %vm8325_vm1, %v9137_v5, -inf  ;;  %v9346_v57 = vsel %vm8325_vm1, %v9300_v54, -inf  ;;  %v21440_v44 = vmax.f32 %v9341_v23, %v9342_v39  ;;  %v21442_v20 = vmax.f32 %v9504_v36, %v9505_v43  ;;  %v18621_v23 = vld [vmem:[%s23168_s0 + $0x330] sm:$0xff] }
 0x25c   :  { %v9021_v18 = vrot.slane %v9020_v4, 4  ;;  %v4137_v17 = vmax.f32 %v21404_v35, 0.0  ;;  %17450 = vmatmul.mubr.msk.f32.gmra.mrb[42].mxu1 %vm75_vm0, %v15451_v38  ;;  %v9184_v7 = vrot.slane %v9183_v30, 4  ;;  %v9347_v3 = vrot.slane %v9346_v57, 4  ;;  %v15455_v46 = vld [vmem:[%s23168_s0 + $0x350] sm:$0xff] }
 0x25d   :  { %v9509_v13 = vsel %vm8325_vm1, %v9463_v51, -inf  ;;  %v8361_v28 = vsel %vm8325_vm1, %v8314_v26, -inf  ;;  %17452 = vmatprep.mubr.msk.f32.mxu1 %vm75_vm0, %v18621_v23  ;;  %v9018_v36 = vrot.slane %v21415_v16, 1  ;;  %v9181_v22 = vrot.slane %v21435_v60, 1  ;;  %v15479_v35 = vld [vmem:[%s23168_s0 + $0x2e9] sm:$0xff] }
 0x25e   :  { %v8358_v59 = vmax.f32 %v8356_v47, %v8357_v50  ;;  %v8527_v12 = vrot.slane %v8526_v33, 2  ;;  %v8690_v27 = vrot.slane %v8689_v24, 2  ;;  %v8853_v29 = vrot.slane %v8852_v8, 2  ;;  %v18622_v47 = vld [vmem:[%s23168_s0 + $0x338] sm:$0xff]  ;;  %v15473_v50 = vld [vmem:[%s23168_s0 + $0x2a1] sm:$0xff] }
 0x25f   :  { %v9510_v19 = vrot.slane %v9509_v13, 4  ;;  %v8362_v10 = vrot.slane %v8361_v28, 4  ;;  %v9344_v1 = vrot.slane %v21440_v44, 1  ;;  %v9507_v56 = vrot.slane %v21442_v20, 1 }
 0x260   :  { %v8531_v53 = vsel %vm8325_vm1, %v8485_v45, -inf  ;;  %v8694_v48 = vsel %vm8325_vm1, %v8648_v32, -inf  ;;  %17453 = vmatmul.mubr.msk.f32.gmra.mrb[44].mxu1 %vm75_vm0, %v18622_v47  ;;  %v9022_v11 = vmax.f32 %v9020_v4, %v9021_v18  ;;  %v9185_v49 = vmax.f32 %v9183_v30, %v9184_v7 }
 0x261   :  { %v9348_v39 = vmax.f32 %v9346_v57, %v9347_v3  ;;  %v8363_v43 = vmax.f32 %v8361_v28, %v8362_v10  ;;  %17455 = vmatprep.mubr.msk.f32.mxu1 %vm75_vm0, %v15454_v14  ;;  %v9511_v63 = vmax.f32 %v9509_v13, %v9510_v19  ;;  %v8532_v5 = vrot.slane %v8531_v53, 4 }
 0x262   :  { %v8695_v54 = vrot.slane %v8694_v48, 4  ;;  %v8857_v38 = vsel %vm8325_vm1, %v8811_v9, -inf  ;;  %v8359_v51 = vrot.slane %v8358_v59, 1  ;;  %v8528_v26 = vmax.f32 %v8526_v33, %v8527_v12  ;;  %v15474_v33 = vld [vmem:[%s23168_s0 + $0x2a9] sm:$0xff] }
 0x263   :  { %v8691_v4 = vmax.f32 %v8689_v24, %v8690_v27  ;;  %v21473_v30 = vmax.f32 %v8852_v8, %v8853_v29  ;;  %v8364_v57 = vrot.slane %v8363_v43, 2  ;;  %v8533_v18 = vmax.f32 %v8531_v53, %v8532_v5 }
 0x264   :  { %v8696_v45 = vmax.f32 %v8694_v48, %v8695_v54  ;;  %v8858_v7 = vrot.slane %v8857_v38, 4  ;;  %17456 = vmatmul.mubr.msk.f32.gmra.mrb[46].mxu1 %vm75_vm0, %v15455_v46  ;;  %v21477_v3 = vmax.f32 %v21415_v16, %v9018_v36  ;;  %v9023_v13 = vrot.slane %v9022_v11, 2  ;;  %v15475_v36 = vld [vmem:[%s23168_s0 + $0x2b9] sm:$0xff] }
 0x265   :  { %v9186_v28 = vrot.slane %v9185_v49, 2  ;;  %v9349_v32 = vrot.slane %v9348_v39, 2  ;;  %17460 = vmatprep.mubr.msk.f32.mxu1 %vm75_vm0, %v15473_v50  ;;  %v9512_v24 = vrot.slane %v9511_v63, 2  ;;  %v8534_v8 = vrot.slane %v8533_v18, 2 }
 0x266   :  { %v8697_v23 = vrot.slane %v8696_v45, 2  ;;  %v8859_v12 = vmax.f32 %v8857_v38, %v8858_v7  ;;  %v21483_v14 = vmax.f32 %v8358_v59, %v8359_v51  ;;  %v8529_v27 = vrot.slane %v8528_v26, 1 }
 0x267   :  { %v8692_v29 = vrot.slane %v8691_v4, 1  ;;  %v8855_v16 = vrot.slane %v21473_v30, 1  ;;  %v8365_v19 = vmax.f32 %v8363_v43, %v8364_v57  ;;  %v8535_v10 = vmax.f32 %v8533_v18, %v8534_v8  ;;  %v15476_v43 = vld [vmem:[%s23168_s0 + $0x2c1] sm:$0xff] }
 0x268   :  { %v8698_v9 = vmax.f32 %v8696_v45, %v8697_v23  ;;  %v8860_v53 = vrot.slane %v8859_v12, 2  ;;  %17461 = vmatmul.mubr.msk.f32.vlgmr.msra.gmra.mrb[32].mxu1 %vm75_vm0, %v15474_v33  ;;  %v9024_v48 = vmax.f32 %v9022_v11, %v9023_v13  ;;  %v9187_v47 = vmax.f32 %v9185_v49, %v9186_v28 }
 0x269   :  { %v4123_v59 = vadd.f32 %v21250_v31, %v21351_v41  ;;  %v4122_v46 = vadd.f32 %v21250_v31, %v21358_v0  ;;  %17485 = vmatpush3.msra.mxu1 %v21289_v34  ;;  %v9350_v5 = vmax.f32 %v9348_v39, %v9349_v32  ;;  %v9513_v54 = vmax.f32 %v9511_v63, %v9512_v24  ;;  %v15477_v41 = vld [vmem:[%s23168_s0 + $0x2d1] sm:$0xff] }
 0x26a   :  { %v8861_v38 = vmax.f32 %v8859_v12, %v8860_v53  ;;  %v4125_v11 = vadd.f32 %v21250_v31, %v21366_v25  ;;  %17463 = vmatprep.mubr.msk.f32.mxu1 %vm75_vm0, %v15475_v36  ;;  %v4136_v0 = vmax.f32 %v21419_v55, 0.0  ;;  %v4127_v50 = vadd.f32 %v21250_v31, %v21392_v58  ;;  %v15478_v58 = vld [vmem:[%s23168_s0 + $0x2d9] sm:$0xff] }
 0x26b   :  { %v4139_v49 = vmax.f32 %v4123_v59, 0.0  ;;  %v4138_v34 = vmax.f32 %v4122_v46, 0.0  ;;  %v8366_v51 = vrot.slane %v8365_v19, 1  ;;  %v8536_v39 = vrot.slane %v8535_v10, 1 }
 0x26c   :  { %v8699_v63 = vrot.slane %v8698_v9, 1  ;;  %v4124_v57 = vadd.f32 %v21250_v31, %v21372_v15  ;;  %17464 = vmatmul.mubr.msk.f32.gmra.mrb[34].mxu1 %vm75_vm0, %v15476_v43  ;;  %v4141_v45 = vmax.f32 %v4125_v11, 0.0  ;;  %v4143_v7 = vmax.f32 %v4127_v50, 0.0 }
 0x26d   :  { %v4149_v25 = vmax.f32 %v4137_v17, %v4139_v49  ;;  %v4148_v18 = vmax.f32 %v4136_v0, %v4138_v34  ;;  %17466 = vmatprep.mubr.msk.f32.mxu1 %vm75_vm0, %v15477_v41  ;;  %v8530_v55 = vmax.f32 %v8528_v26, %v8529_v27  ;;  %v9025_v13 = vrot.slane %v9024_v48, 1  ;;  %v15484_v0 = vld [vmem:[%s23168_s0 + $0x321] sm:$0xff] }
 0x26e   :  { %v8862_v28 = vrot.slane %v8861_v38, 1  ;;  %v4126_v15 = vadd.f32 %v21250_v31, %v21421_v42  ;;  %v8693_v17 = vmax.f32 %v8691_v4, %v8692_v29  ;;  %v9188_v32 = vrot.slane %v9187_v47, 1  ;;  %v15480_v4 = vld [vmem:[%s23168_s0 + $0x2f1] sm:$0xff] }
 0x26f   :  { %v9351_v33 = vrot.slane %v9350_v5, 1  ;;  %4158 = vst [vmem:[#allocation2 + $0x68] sm:$0xff] %v4149_v25  ;;  %4157 = vst [vmem:[#allocation2 + $0x60] sm:$0xff] %v4148_v18  ;;  %v4151_v24 = vmax.f32 %v4141_v45, %v4143_v7  ;;  %v9514_v8 = vrot.slane %v9513_v54, 1  ;;  %v8537_v23 = vmax.f32 %v8535_v10, %v8536_v39 }
 0x270   :  { %v4140_v12 = vmax.f32 %v4124_v57, 0.0  ;;  %v4142_v36 = vmax.f32 %v4126_v15, 0.0  ;;  %17467 = vmatmul.mubr.msk.f32.gmra.mrb[36].mxu1 %vm75_vm0, %v15478_v58  ;;  %v9182_v31 = vmax.f32 %v21435_v60, %v9181_v22  ;;  %v8856_v42 = vmax.f32 %v21473_v30, %v8855_v16  ;;  %v15481_v60 = vld [vmem:[%s23168_s0 + $0x301] sm:$0xff] }
 0x271   :  { %v8367_v26 = vmax.f32 %v8365_v19, %v8366_v51  ;;  %v8700_v27 = vmax.f32 %v8698_v9, %v8699_v63  ;;  %4160 = vst [vmem:[#allocation2 + $0x78] sm:$0xff] %v4151_v24  ;;  %17469 = vmatprep.mubr.msk.f32.mxu1 %vm75_vm0, %v15479_v35  ;;  %v9345_v29 = vmax.f32 %v21440_v44, %v9344_v1 }
 0x272   :  { %v9026_v10 = vmax.f32 %v9024_v48, %v9025_v13  ;;  %v8863_v53 = vmax.f32 %v8861_v38, %v8862_v28  ;;  %v4150_v59 = vmax.f32 %v4140_v12, %v4142_v36  ;;  %v9508_v22 = vmax.f32 %v21442_v20, %v9507_v56  ;;  %v15483_v56 = vld [vmem:[%s23168_s0 + $0x319] sm:$0xff]  ;;  %v15485_v28 = vld [vmem:[%s23168_s0 + $0x331] sm:$0xff] }
 0x273   :  { %v8627_v30 = vsel %vm8460_vm5, %v8530_v55, %v21400_v21  ;;  %v9189_v16 = vmax.f32 %v9187_v47, %v9188_v32  ;;  %v9352_v19 = vmax.f32 %v9350_v5, %v9351_v33  ;;  %v21541_v9 = vmax.f32 %v9513_v54, %v9514_v8  ;;  %v15482_v21 = vld [vmem:[%s23168_s0 + $0x309] sm:$0xff] }
 0x274   :  { %v21544_v44 = vsel %vm8462_vm6, %v8537_v23, %v8627_v30  ;;  %4159 = vst [vmem:[#allocation2 + $0x70] sm:$0xff] %v4150_v59  ;;  %17470 = vmatmul.mubr.msk.f32.gmra.mrb[38].mxu1 %vm75_vm0, %v15480_v4  ;;  %v8461_v1 = vsel %vm8460_vm5, %v21483_v14, %v21409_v6  ;;  %v8790_v20 = vsel %vm8460_vm5, %v8693_v17, %v21429_v40 }
 0x275   :  { %17472 = vmatprep.mubr.msk.f32.mxu1 %vm75_vm0, %v15481_v60  ;;  %v21560_v48 = vsel %vm8462_vm6, %v8367_v26, %v8461_v1  ;;  %v21563_v47 = vsel %vm8462_vm6, %v8700_v27, %v8790_v20  ;;  %v8953_v6 = vsel %vm8460_vm5, %v8856_v42, %v21433_v62  ;;  %v9116_v40 = vsel %vm8460_vm5, %v21477_v3, %v21362_v52  ;;  %v15486_v26 = vld [vmem:[%s23168_s0 + $0x339] sm:$0xff] }
 0x276   :  { %v8975_v14 = vld [vmem:[#allocation2 + $0x68] sm:$0x3]  ;;  %v9138_v46 = vld [vmem:[#allocation2 + $0x6a] sm:$0x3]  ;;  %v9301_v43 = vld [vmem:[#allocation2 + $0x6c] sm:$0x3]  ;;  %v21571_v5 = vsel %vm8462_vm6, %v8863_v53, %v8953_v6  ;;  %v21574_v54 = vsel %vm8462_vm6, %v9026_v10, %v9116_v40  ;;  %v9279_v38 = vsel %vm8460_vm5, %v9182_v31, %v21387_v37  ;;  %v9442_v11 = vsel %vm8460_vm5, %v9345_v29, %v21396_v2 }
 0x277   :  { %v9027_v62 = vsel %vm8325_vm1, %v8975_v14, -inf  ;;  %v9190_v41 = vsel %vm8325_vm1, %v9138_v46, -inf  ;;  %v9353_v52 = vsel %vm8325_vm1, %v9301_v43, -inf  ;;  %v9464_v3 = vld [vmem:[#allocation2 + $0x6e] sm:$0x3]  ;;  %v21588_v49 = vsel %vm8460_vm5, %v9508_v22, %v21413_v61  ;;  %v15488_v6 = vld [vmem:[%s23168_s0 + $0x351] sm:$0xff] }
 0x278   :  { %v9028_v34 = vrot.slane %v9027_v62, 4  ;;  %v9191_v37 = vrot.slane %v9190_v41, 4  ;;  %v9354_v50 = vrot.slane %v9353_v52, 4  ;;  %v9516_v2 = vsel %vm8325_vm1, %v9464_v3, -inf  ;;  %v8315_v51 = vld [vmem:[#allocation2 + $0x60] sm:$0x3]  ;;  %17473 = vmatmul.mubr.msk.f32.gmra.mrb[40].mxu1 %vm75_vm0, %v15482_v21 }
 0x279   :  { %v9517_v39 = vrot.slane %v9516_v2, 4  ;;  %v8368_v63 = vsel %vm8325_vm1, %v8315_v51, -inf  ;;  %v8486_v57 = vld [vmem:[#allocation2 + $0x62] sm:$0x3]  ;;  %v8649_v25 = vld [vmem:[#allocation2 + $0x64] sm:$0x3]  ;;  %17475 = vmatprep.mubr.msk.f32.mxu1 %vm75_vm0, %v15483_v56  ;;  %v21595_v18 = vsel %vm8462_vm6, %v9189_v16, %v9279_v38  ;;  %v21598_v61 = vsel %vm8462_vm6, %v9352_v19, %v9442_v11 }
 0x27a   :  { %v9029_v45 = vmax.f32 %v9027_v62, %v9028_v34  ;;  %v9192_v7 = vmax.f32 %v9190_v41, %v9191_v37  ;;  %v9355_v58 = vmax.f32 %v9353_v52, %v9354_v50  ;;  %v8369_v55 = vrot.slane %v8368_v63, 4  ;;  %v8812_v13 = vld [vmem:[#allocation2 + $0x66] sm:$0x3]  ;;  %v15487_v53 = vld [vmem:[%s23168_s0 + $0x349] sm:$0xff]  ;;  %v8976_v16 = vld [vmem:[#allocation2 + $0x78] sm:$0x3] }
 0x27b   :  { %v9518_v15 = vmax.f32 %v9516_v2, %v9517_v39  ;;  %v8538_v35 = vsel %vm8325_vm1, %v8486_v57, -inf  ;;  %v8701_v17 = vsel %vm8325_vm1, %v8649_v25, -inf  ;;  %v8864_v32 = vsel %vm8325_vm1, %v8812_v13, -inf  ;;  %v9139_v56 = vld [vmem:[#allocation2 + $0x7a] sm:$0x3]  ;;  %v15506_v52 = vld [vmem:[%s23168_s0 + $0x2a2] sm:$0xff] }
 0x27c   :  { %v9030_v33 = vrot.slane %v9029_v45, 2  ;;  %v9193_v24 = vrot.slane %v9192_v7, 2  ;;  %v9356_v8 = vrot.slane %v9355_v58, 2  ;;  %v8370_v23 = vmax.f32 %v8368_v63, %v8369_v55  ;;  %17476 = vmatmul.mubr.msk.f32.gmra.mrb[42].mxu1 %vm75_vm0, %v15484_v0  ;;  %v9302_v38 = vld [vmem:[#allocation2 + $0x7c] sm:$0x3] }
 0x27d   :  { %v9519_v12 = vrot.slane %v9518_v15, 2  ;;  %v8539_v36 = vrot.slane %v8538_v35, 4  ;;  %v8702_v31 = vrot.slane %v8701_v17, 4  ;;  %v8865_v42 = vrot.slane %v8864_v32, 4  ;;  %17478 = vmatprep.mubr.msk.f32.mxu1 %vm75_vm0, %v15485_v28  ;;  %v9465_v2 = vld [vmem:[#allocation2 + $0x7e] sm:$0x3] }
 0x27e   :  { %v9031_v27 = vmax.f32 %v9029_v45, %v9030_v33  ;;  %v9194_v4 = vmax.f32 %v9192_v7, %v9193_v24  ;;  %v9357_v29 = vmax.f32 %v9355_v58, %v9356_v8  ;;  %v8371_v10 = vrot.slane %v8370_v23, 2  ;;  %v8316_v51 = vld [vmem:[#allocation2 + $0x70] sm:$0x3]  ;;  %v8487_v45 = vld [vmem:[#allocation2 + $0x72] sm:$0x3]  ;;  %v15508_v28 = vld [vmem:[%s23168_s0 + $0x2ba] sm:$0xff] }
 0x27f   :  { %v9520_v59 = vmax.f32 %v9518_v15, %v9519_v12  ;;  %v8540_v60 = vmax.f32 %v8538_v35, %v8539_v36  ;;  %v8703_v22 = vmax.f32 %v8701_v17, %v8702_v31  ;;  %v8866_v30 = vmax.f32 %v8864_v32, %v8865_v42  ;;  %v8650_v13 = vld [vmem:[#allocation2 + $0x74] sm:$0x3]  ;;  %v8813_v33 = vld [vmem:[#allocation2 + $0x76] sm:$0x3] }
 0x280   :  { %v9032_v19 = vrot.slane %v9031_v27, 1  ;;  %v9195_v1 = vrot.slane %v9194_v4, 1  ;;  %v9358_v20 = vrot.slane %v9357_v29, 1  ;;  %v8372_v21 = vmax.f32 %v8370_v23, %v8371_v10  ;;  %17479 = vmatmul.mubr.msk.f32.gmra.mrb[44].mxu1 %vm75_vm0, %v15486_v26 }
 0x281   :  { %v9521_v40 = vrot.slane %v9520_v59, 1  ;;  %v8541_v14 = vrot.slane %v8540_v60, 2  ;;  %v8704_v46 = vrot.slane %v8703_v22, 2  ;;  %v8867_v43 = vrot.slane %v8866_v30, 2  ;;  %17481 = vmatprep.mubr.msk.f32.mxu1 %vm75_vm0, %v15487_v53  ;;  %v15509_v53 = vld [vmem:[%s23168_s0 + $0x2c2] sm:$0xff] }
 0x282   :  { %v21619_v11 = vmax.f32 %v9031_v27, %v9032_v19  ;;  %v21621_v62 = vmax.f32 %v9194_v4, %v9195_v1  ;;  %v8373_v41 = vrot.slane %v8372_v21, 1  ;;  %v21629_v3 = vsel %vm8462_vm6, %v21541_v9, %v21588_v49  ;;  %v15507_v9 = vld [vmem:[%s23168_s0 + $0x2aa] sm:$0xff] }
 0x283   :  { %v21631_v0 = vmax.f32 %v9357_v29, %v9358_v20  ;;  %v8542_v34 = vmax.f32 %v8540_v60, %v8541_v14  ;;  %v8705_v37 = vmax.f32 %v8703_v22, %v8704_v46  ;;  %v21633_v50 = vmax.f32 %v8866_v30, %v8867_v43 }
 0x284   :  { %v21635_v39 = vmax.f32 %v9520_v59, %v9521_v40  ;;  %v9034_v63 = vsel %vm8325_vm1, %v8976_v16, -inf  ;;  %v9197_v57 = vsel %vm8325_vm1, %v9139_v56, -inf  ;;  %v9360_v25 = vsel %vm8325_vm1, %v9302_v38, -inf  ;;  %17482 = vmatmul.mubr.msk.f32.gmra.mrb[46].mxu1 %vm75_vm0, %v15488_v6  ;;  %v15510_v16 = vld [vmem:[%s23168_s0 + $0x2d2] sm:$0xff] }
 0x285   :  { %v21644_v49 = vmax.f32 %v8372_v21, %v8373_v41  ;;  %v8543_v7 = vrot.slane %v8542_v34, 1  ;;  %v8706_v58 = vrot.slane %v8705_v37, 1  ;;  %v9035_v55 = vrot.slane %v9034_v63, 4  ;;  %17486 = vmatprep.mubr.msk.f32.mxu1 %vm75_vm0, %v15506_v52  ;;  %v15511_v52 = vld [vmem:[%s23168_s0 + $0x2da] sm:$0xff] }
 0x286   :  { %v9198_v15 = vrot.slane %v9197_v57, 4  ;;  %v9361_v35 = vrot.slane %v9360_v25, 4  ;;  %v9523_v17 = vsel %vm8325_vm1, %v9465_v2, -inf  ;;  %v8375_v32 = vsel %vm8325_vm1, %v8316_v51, -inf }
 0x287   :  { %v8544_v24 = vmax.f32 %v8542_v34, %v8543_v7  ;;  %v21652_v8 = vmax.f32 %v8705_v37, %v8706_v58  ;;  %v8869_v23 = vrot.slane %v21633_v50, 1  ;;  %v9036_v12 = vmax.f32 %v9034_v63, %v9035_v55  ;;  %v15512_v63 = vld [vmem:[%s23168_s0 + $0x2ea] sm:$0xff] }
 0x288   :  { %v9199_v36 = vmax.f32 %v9197_v57, %v9198_v15  ;;  %v9362_v31 = vmax.f32 %v9360_v25, %v9361_v35  ;;  %v9524_v42 = vrot.slane %v9523_v17, 4  ;;  %v8376_v26 = vrot.slane %v8375_v32, 4  ;;  %17487 = vmatmul.mubr.msk.f32.vlgmr.msra.gmra.mrb[32].mxu1 %vm75_vm0, %v15507_v9 }
 0x289   :  { %v9037_v27 = vrot.slane %v9036_v12, 2  ;;  %v8545_v4 = vsel %vm8325_vm1, %v8487_v45, -inf  ;;  %v8708_v29 = vsel %vm8325_vm1, %v8650_v13, -inf  ;;  %v8871_v10 = vsel %vm8325_vm1, %v8813_v33, -inf  ;;  %17489 = vmatprep.mubr.msk.f32.mxu1 %vm75_vm0, %v15508_v28 }
 0x28a   :  { %v9200_v59 = vrot.slane %v9199_v36, 2  ;;  %v9363_v60 = vrot.slane %v9362_v31, 2  ;;  %v9525_v22 = vmax.f32 %v9523_v17, %v9524_v42  ;;  %v8377_v30 = vmax.f32 %v8375_v32, %v8376_v26  ;;  %v15513_v32 = vld [vmem:[%s23168_s0 + $0x2f2] sm:$0xff] }
 0x28b   :  { %v9038_v19 = vmax.f32 %v9036_v12, %v9037_v27  ;;  %v8546_v1 = vrot.slane %v8545_v4, 4  ;;  %v8709_v20 = vrot.slane %v8708_v29, 4  ;;  %v8872_v21 = vrot.slane %v8871_v10, 4 }
 0x28c   :  { %v9201_v56 = vmax.f32 %v9199_v36, %v9200_v59  ;;  %v9364_v6 = vmax.f32 %v9362_v31, %v9363_v60  ;;  %v9526_v40 = vrot.slane %v9525_v22, 2  ;;  %v8378_v14 = vrot.slane %v8377_v30, 2  ;;  %17490 = vmatmul.mubr.msk.f32.gmra.mrb[34].mxu1 %vm75_vm0, %v15509_v53  ;;  %v15514_v36 = vld [vmem:[%s23168_s0 + $0x302] sm:$0xff] }
 0x28d   :  { %v9039_v46 = vrot.slane %v9038_v19, 1  ;;  %v8547_v43 = vmax.f32 %v8545_v4, %v8546_v1  ;;  %v8710_v38 = vmax.f32 %v8708_v29, %v8709_v20  ;;  %v8873_v41 = vmax.f32 %v8871_v10, %v8872_v21  ;;  %17492 = vmatprep.mubr.msk.f32.mxu1 %vm75_vm0, %v15510_v16  ;;  %v15519_v16 = vld [vmem:[%s23168_s0 + $0x33a] sm:$0xff] }
 0x28e   :  { %v9202_v34 = vrot.slane %v9201_v56, 1  ;;  %v9365_v37 = vrot.slane %v9364_v6, 1  ;;  %v9527_v2 = vmax.f32 %v9525_v22, %v9526_v40  ;;  %v8379_v51 = vmax.f32 %v8377_v30, %v8378_v14  ;;  %v21741_v20 = vld [vmem:[%s23170_s2] ss:$0 sm:$0xff] }
 0x28f   :  { %v8870_v57 = vmax.f32 %v21633_v50, %v8869_v23  ;;  %v8548_v25 = vrot.slane %v8547_v43, 2  ;;  %v8711_v45 = vrot.slane %v8710_v38, 2  ;;  %v8874_v9 = vrot.slane %v8873_v41, 2 }
 0x290   :  { %v9040_v7 = vmax.f32 %v9038_v19, %v9039_v46  ;;  %v9203_v58 = vmax.f32 %v9201_v56, %v9202_v34  ;;  %v9528_v55 = vrot.slane %v9527_v2, 1  ;;  %v8380_v13 = vrot.slane %v8379_v51, 1  ;;  %17493 = vmatmul.mubr.msk.f32.gmra.mrb[36].mxu1 %vm75_vm0, %v15511_v52  ;;  %v15520_v19 = vld [vmem:[%s23168_s0 + $0x34a] sm:$0xff] }
 0x291   :  { %v9366_v28 = vmax.f32 %v9364_v6, %v9365_v37  ;;  %v8549_v15 = vmax.f32 %v8547_v43, %v8548_v25  ;;  %v8712_v35 = vmax.f32 %v8710_v38, %v8711_v45  ;;  %v8875_v17 = vmax.f32 %v8873_v41, %v8874_v9  ;;  %17495 = vmatprep.mubr.msk.f32.mxu1 %vm75_vm0, %v15512_v63  ;;  %v15521_v43 = vld [vmem:[%s23168_s0 + $0x352] sm:$0xff] }
 0x292   :  { %v9529_v50 = vmax.f32 %v9527_v2, %v9528_v55  ;;  %v8381_v33 = vmax.f32 %v8379_v51, %v8380_v13  ;;  %v8465_v23 = vsel %vm8464_vm7, %v21644_v49, %v21560_v48  ;;  %v8629_v12 = vsel %vm8464_vm7, %v8544_v24, %v21544_v44 }
 0x293   :  { %v8550_v31 = vrot.slane %v8549_v15, 1  ;;  %v8713_v42 = vrot.slane %v8712_v35, 1  ;;  %v8876_v26 = vrot.slane %v8875_v17, 1  ;;  %v8792_v27 = vsel %vm8464_vm7, %v21652_v8, %v21563_v47 }
 0x294   :  { %v8467_v4 = vsel %vm8466_vm8, %v8381_v33, %v8465_v23  ;;  %v9118_v48 = vsel %vm8464_vm7, %v21619_v11, %v21574_v54  ;;  %v9281_v44 = vsel %vm8464_vm7, %v21621_v62, %v21595_v18  ;;  %v9444_v49 = vsel %vm8464_vm7, %v21631_v0, %v21598_v61  ;;  %17496 = vmatmul.mubr.msk.f32.gmra.mrb[38].mxu1 %vm75_vm0, %v15513_v32  ;;  %v15515_v54 = vld [vmem:[%s23168_s0 + $0x30a] sm:$0xff]  ;;  %v15516_v0 = vld [vmem:[%s23168_s0 + $0x31a] sm:$0xff] }
 0x295   :  { %v8551_v24 = vmax.f32 %v8549_v15, %v8550_v31  ;;  %v8714_v29 = vmax.f32 %v8712_v35, %v8713_v42  ;;  %v8877_v10 = vmax.f32 %v8875_v17, %v8876_v26  ;;  %8478 = vst [vmem:[#allocation3 + $0x11] sm:$0xff] %v8467_v4  ;;  %v9119_v47 = vsel %vm8466_vm8, %v9040_v7, %v9118_v48 }
 0x296   :  { %17498 = vmatprep.mubr.msk.f32.mxu1 %vm75_vm0, %v15514_v36  ;;  %v8955_v18 = vsel %vm8464_vm7, %v8870_v57, %v21571_v5  ;;  %9130 = vst [vmem:[#allocation3 + $0x51] sm:$0xff] %v9119_v47  ;;  %v9282_v61 = vsel %vm8466_vm8, %v9203_v58, %v9281_v44  ;;  %v9445_v11 = vsel %vm8466_vm8, %v9366_v28, %v9444_v49 }
 0x297   :  { %v9607_v62 = vsel %vm8464_vm7, %v21635_v39, %v21629_v3  ;;  %v8630_v8 = vsel %vm8466_vm8, %v8551_v24, %v8629_v12  ;;  %v8793_v53 = vsel %vm8466_vm8, %v8714_v29, %v8792_v27  ;;  %v8956_v59 = vsel %vm8466_vm8, %v8877_v10, %v8955_v18  ;;  %9293 = vst [vmem:[#allocation3 + $0x61] sm:$0xff] %v9282_v61  ;;  %v15517_v3 = vld [vmem:[%s23168_s0 + $0x322] sm:$0xff]  ;;  %v15518_v39 = vld [vmem:[%s23168_s0 + $0x332] sm:$0xff]  ;;  %s18655_s0 = smov [#allocation5]  }
 0x298   :  { %9456 = vst [vmem:[#allocation3 + $0x71] sm:$0xff] %v9445_v11  ;;  %v9608_v5 = vsel %vm8466_vm8, %v9529_v50, %v9607_v62  ;;  %8641 = vst [vmem:[#allocation3 + $0x21] sm:$0xff] %v8630_v8  ;;  %17499 = vmatmul.mubr.msk.f32.gmra.mrb[40].mxu1 %vm75_vm0, %v15515_v54  ;;  %s14394_s16 = sshll.u32 %s18655_s0, 4  ;;  %s14395_s16 = int_to_ptr.vmem [resolvable:$true] %s14394_s16 }
 0x299   :  { %8804 = vst [vmem:[#allocation3 + $0x31] sm:$0xff] %v8793_v53  ;;  %8967 = vst [vmem:[#allocation3 + $0x41] sm:$0xff] %v8956_v59  ;;  %17501 = vmatprep.mubr.msk.f32.mxu1 %vm75_vm0, %v15516_v0  ;;  %v17254_v22 = vpop.f32.mrb[16].mxu0  ;;  %p18633_p1 = scmp.lt.s32.totalorder %s14395_s16, %s14395_s16 }
 0x29a   :  { %9619 = vst [vmem:[#allocation3 + $0x81] sm:$0xff] %v9608_v5  ;;  %v6071_v30 = vpop.f32.mrb[17].mxu0  ;;  %v6167_v21 = vadd.f32 %v21741_v20, %v17254_v22 }
 0x29b   :  { %v6166_v6 = vadd.f32 %v21741_v20, %v6071_v30 }
 0x29c   :  { %v9638_v60 = vld [vmem:[#allocation3 + $0x10] sm:$0xff]  ;;  %17502 = vmatmul.mubr.msk.f32.gmra.mrb[42].mxu1 %vm75_vm0, %v15517_v3  ;;  %v6183_v52 = vmax.f32 %v6167_v21, 0.0 }
 0x29d   :  { %17512 = vmatprep.mubr.msk.f32.mxu0 %vm75_vm0, %v9638_v60  ;;  %17504 = vmatprep.mubr.msk.f32.mxu1 %vm75_vm0, %v15518_v39  ;;  %v17257_v40 = vpop.f32.mrb[18].mxu0  ;;  %v9642_v37 = vld [vmem:[#allocation3 + $0x50] sm:$0xff]  ;;  %v6182_v2 = vmax.f32 %v6166_v6, 0.0 }
 0x29e   :  { %v6169_v14 = vadd.f32 %v21741_v20, %v17257_v40  ;;  %v6081_v46 = vpop.f32.mrb[19].mxu0  ;;  %v9643_v9 = vld [vmem:[#allocation3 + $0x60] sm:$0xff] }
 0x29f   :  { %v9639_v1 = vld [vmem:[#allocation3 + $0x20] sm:$0xff]  ;;  %v6168_v38 = vadd.f32 %v21741_v20, %v6081_v46  ;;  %v9644_v58 = vld [vmem:[#allocation3 + $0x70] sm:$0xff] }
 0x2a0   :  { %17513 = vmatmul.mubr.msk.f32.vlgmr.msra.gmra.mrb[32].mxu0 %vm75_vm0, %v9639_v1  ;;  %v9640_v56 = vld [vmem:[#allocation3 + $0x30] sm:$0xff]  ;;  %17505 = vmatmul.mubr.msk.f32.gmra.mrb[44].mxu1 %vm75_vm0, %v15519_v16  ;;  %v9641_v41 = vld [vmem:[#allocation3 + $0x40] sm:$0xff]  ;;  %v6185_v34 = vmax.f32 %v6169_v14, 0.0 }
 0x2a1   :  { %17515 = vmatprep.mubr.msk.f32.mxu0 %vm75_vm0, %v9640_v56  ;;  %17507 = vmatprep.mubr.msk.f32.mxu1 %vm75_vm0, %v15520_v19  ;;  %v6184_v51 = vmax.f32 %v6168_v38, 0.0  ;;  %v17260_v63 = vpop.f32.mrb[20].mxu0  ;;  %v9645_v17 = vld [vmem:[#allocation3 + $0x80] sm:$0xff] }
 0x2a2   :  { %v6199_v57 = vmax.f32 %v6183_v52, %v6185_v34  ;;  %v6091_v25 = vpop.f32.mrb[21].mxu0  ;;  %v6171_v7 = vadd.f32 %v21741_v20, %v17260_v63 }
 0x2a3   :  { %v6198_v45 = vmax.f32 %v6182_v2, %v6184_v51  ;;  %v6170_v55 = vadd.f32 %v21741_v20, %v6091_v25 }
 0x2a4   :  { %17516 = vmatmul.mubr.msk.f32.gmra.mrb[34].mxu0 %vm75_vm0, %v9641_v41  ;;  %17508 = vmatmul.mubr.msk.f32.gmra.mrb[46].mxu1 %vm75_vm0, %v15521_v43  ;;  %6208 = vst [vmem:[#allocation2 + $0x88] sm:$0xff] %v6199_v57  ;;  %v6187_v32 = vmax.f32 %v6171_v7, 0.0 }
 0x2a5   :  { %17518 = vmatprep.mubr.msk.f32.mxu0 %vm75_vm0, %v9642_v37  ;;  %6207 = vst [vmem:[#allocation2 + $0x80] sm:$0xff] %v6198_v45  ;;  %v17263_v13 = vpop.f32.mrb[22].mxu0  ;;  %v6186_v33 = vmax.f32 %v6170_v55, 0.0 }
 0x2a6   :  { %v6173_v28 = vadd.f32 %v21741_v20, %v17263_v13  ;;  %v6101_v15 = vpop.f32.mrb[23].mxu0 }
 0x2a7   :  { %v6172_v35 = vadd.f32 %v21741_v20, %v6101_v15 }
 0x2a8   :  { %17519 = vmatmul.mubr.msk.f32.gmra.mrb[36].mxu0 %vm75_vm0, %v9643_v9  ;;  %v6189_v50 = vmax.f32 %v6173_v28, 0.0 }
 0x2a9   :  { %17521 = vmatprep.mubr.msk.f32.mxu0 %vm75_vm0, %v9644_v58  ;;  %v6188_v23 = vmax.f32 %v6172_v35, 0.0  ;;  %v17266_v12 = vpop.f32.mrb[24].mxu0 }
 0x2aa   :  { %v6201_v36 = vmax.f32 %v6187_v32, %v6189_v50  ;;  %v6111_v31 = vpop.f32.mrb[25].mxu0  ;;  %v6175_v24 = vadd.f32 %v21741_v20, %v17266_v12 }
 0x2ab   :  { %v6200_v42 = vmax.f32 %v6186_v33, %v6188_v23  ;;  %v6174_v29 = vadd.f32 %v21741_v20, %v6111_v31  ;;  %v8977_v19 = vld [vmem:[#allocation2 + $0x88] sm:$0x3]  ;;  %v9140_v1 = vld [vmem:[#allocation2 + $0x8a] sm:$0x3]  ;;  %v9303_v21 = vld [vmem:[#allocation2 + $0x8c] sm:$0x3] }
 0x2ac   :  { %17522 = vmatmul.mubr.msk.f32.gmra.mrb[38].mxu0 %vm75_vm0, %v9645_v17  ;;  %6210 = vst [vmem:[#allocation2 + $0x98] sm:$0xff] %v6201_v36  ;;  %v6191_v54 = vmax.f32 %v6175_v24, 0.0  ;;  %v9466_v56 = vld [vmem:[#allocation2 + $0x8e] sm:$0x3]  ;;  %v9041_v6 = vsel %vm8325_vm1, %v8977_v19, -inf  ;;  %v9204_v40 = vsel %vm8325_vm1, %v9140_v1, -inf }
 0x2ad   :  { %6209 = vst [vmem:[#allocation2 + $0x90] sm:$0xff] %v6200_v42  ;;  %v17269_v26 = vpop.f32.mrb[26].mxu0  ;;  %v6190_v61 = vmax.f32 %v6174_v29, 0.0  ;;  %v9367_v14 = vsel %vm8325_vm1, %v9303_v21, -inf  ;;  %v9530_v46 = vsel %vm8325_vm1, %v9466_v56, -inf  ;;  %v9042_v38 = vrot.slane %v9041_v6, 4 }
 0x2ae   :  { %v6121_v27 = vpop.f32.mrb[27].mxu0  ;;  %v6177_v10 = vadd.f32 %v21741_v20, %v17269_v26  ;;  %v8317_v43 = vld [vmem:[#allocation2 + $0x80] sm:$0x3]  ;;  %v9205_v41 = vrot.slane %v9204_v40, 4  ;;  %v9368_v52 = vrot.slane %v9367_v14, 4  ;;  %v9531_v34 = vrot.slane %v9530_v46, 4 }
 0x2af   :  { %v6176_v47 = vadd.f32 %v21741_v20, %v6121_v27  ;;  %v8382_v37 = vsel %vm8325_vm1, %v8317_v43, -inf  ;;  %v8488_v2 = vld [vmem:[#allocation2 + $0x82] sm:$0x3]  ;;  %v9043_v51 = vmax.f32 %v9041_v6, %v9042_v38  ;;  %v8651_v25 = vld [vmem:[#allocation2 + $0x84] sm:$0x3] }
 0x2b0   :  { %v6193_v11 = vmax.f32 %v6177_v10, 0.0  ;;  %v9206_v63 = vmax.f32 %v9204_v40, %v9205_v41  ;;  %v8383_v57 = vrot.slane %v8382_v37, 4  ;;  %v8814_v45 = vld [vmem:[#allocation2 + $0x86] sm:$0x3]  ;;  %v9369_v9 = vmax.f32 %v9367_v14, %v9368_v52 }
 0x2b1   :  { %v17272_v4 = vpop.f32.mrb[28].mxu0  ;;  %v6192_v62 = vmax.f32 %v6176_v47, 0.0  ;;  %v9532_v7 = vmax.f32 %v9530_v46, %v9531_v34  ;;  %v8552_v58 = vsel %vm8325_vm1, %v8488_v2, -inf  ;;  %v8715_v55 = vsel %vm8325_vm1, %v8651_v25, -inf }
 0x2b2   :  { %v6131_v48 = vpop.f32.mrb[29].mxu0  ;;  %v6179_v18 = vadd.f32 %v21741_v20, %v17272_v4  ;;  %v6203_v53 = vmax.f32 %v6191_v54, %v6193_v11  ;;  %v8878_v13 = vsel %vm8325_vm1, %v8814_v45, -inf  ;;  %v9044_v28 = vrot.slane %v9043_v51, 2 }
 0x2b3   :  { %v6178_v8 = vadd.f32 %v21741_v20, %v6131_v48  ;;  %v6202_v59 = vmax.f32 %v6190_v61, %v6192_v62  ;;  %v9207_v15 = vrot.slane %v9206_v63, 2  ;;  %v8384_v35 = vmax.f32 %v8382_v37, %v8383_v57  ;;  %v8978_v33 = vld [vmem:[#allocation2 + $0x98] sm:$0x3]  ;;  %v9141_v36 = vld [vmem:[#allocation2 + $0x9a] sm:$0x3]  ;;  %v9637_v48 = vld [vmem:[%s23171_s3] sm:$0xff] }
 0x2b4   :  { %v6195_v5 = vmax.f32 %v6179_v18, 0.0  ;;  %6212 = vst [vmem:[#allocation2 + $0xa8] sm:$0xff] %v6203_v53  ;;  %v9370_v17 = vrot.slane %v9369_v9, 2  ;;  %v9533_v32 = vrot.slane %v9532_v7, 2  ;;  %v8553_v50 = vrot.slane %v8552_v58, 4  ;;  %17536 = vmatprep.subr.mxu0 %v9637_v48 }
 0x2b5   :  { %v17275_v44 = vpop.f32.mrb[30].mxu0  ;;  %6211 = vst [vmem:[#allocation2 + $0xa0] sm:$0xff] %v6202_v59  ;;  %v6194_v22 = vmax.f32 %v6178_v8, 0.0  ;;  %v8716_v23 = vrot.slane %v8715_v55, 4  ;;  %v8879_v12 = vrot.slane %v8878_v13, 4  ;;  %v9045_v31 = vmax.f32 %v9043_v51, %v9044_v28  ;;  %17537 = vmatpush3.msra.mxu0 %v9637_v48 }
 0x2b6   :  { %v6141_v49 = vpop.f32.mrb[31].mxu0  ;;  %v6181_v0 = vadd.f32 %v21741_v20, %v17275_v44  ;;  %v9208_v42 = vmax.f32 %v9206_v63, %v9207_v15  ;;  %v8385_v26 = vrot.slane %v8384_v35, 2  ;;  %v9048_v27 = vsel %vm8325_vm1, %v8978_v33, -inf  ;;  %v9304_v4 = vld [vmem:[#allocation2 + $0x9c] sm:$0x3] }
 0x2b7   :  { %v6180_v39 = vadd.f32 %v21741_v20, %v6141_v49  ;;  %v9371_v44 = vmax.f32 %v9369_v9, %v9370_v17  ;;  %v9534_v49 = vmax.f32 %v9532_v7, %v9533_v32  ;;  %v8554_v24 = vmax.f32 %v8552_v58, %v8553_v50  ;;  %v9467_v29 = vld [vmem:[#allocation2 + $0x9e] sm:$0x3]  ;;  %v8318_v11 = vld [vmem:[#allocation2 + $0x90] sm:$0x3]  ;;  %v8489_v59 = vld [vmem:[#allocation2 + $0x92] sm:$0x3] }
 0x2b8   :  { %v6197_v3 = vmax.f32 %v6181_v0, 0.0  ;;  %v8717_v10 = vmax.f32 %v8715_v55, %v8716_v23  ;;  %v8880_v47 = vmax.f32 %v8878_v13, %v8879_v12  ;;  %v9211_v54 = vsel %vm8325_vm1, %v9141_v36, -inf  ;;  %v8815_v40 = vld [vmem:[#allocation2 + $0x96] sm:$0x3] }
 0x2b9   :  { %v6196_v30 = vmax.f32 %v6180_v39, 0.0  ;;  %v9049_v18 = vrot.slane %v9048_v27, 4  ;;  %v9374_v61 = vsel %vm8325_vm1, %v9304_v4, -inf  ;;  %v9046_v62 = vrot.slane %v9045_v31, 1 }
 0x2ba   :  { %v6205_v60 = vmax.f32 %v6195_v5, %v6197_v3  ;;  %v9209_v0 = vrot.slane %v9208_v42, 1  ;;  %v8386_v8 = vmax.f32 %v8384_v35, %v8385_v26  ;;  %v9537_v53 = vsel %vm8325_vm1, %v9467_v29, -inf }
 0x2bb   :  { %v6204_v16 = vmax.f32 %v6194_v22, %v6196_v30  ;;  %v9372_v5 = vrot.slane %v9371_v44, 1  ;;  %v9535_v3 = vrot.slane %v9534_v49, 1  ;;  %v8555_v39 = vrot.slane %v8554_v24, 2  ;;  %v8652_v22 = vld [vmem:[#allocation2 + $0x94] sm:$0x3] }
 0x2bc   :  { %6214 = vst [vmem:[#allocation2 + $0xb8] sm:$0xff] %v6205_v60  ;;  %v9212_v60 = vrot.slane %v9211_v54, 4  ;;  %v8718_v30 = vrot.slane %v8717_v10, 2  ;;  %v9375_v19 = vrot.slane %v9374_v61, 4  ;;  %v9050_v1 = vmax.f32 %v9048_v27, %v9049_v18  ;;  %v8979_v2 = vld [vmem:[#allocation2 + $0xa8] sm:$0x3] }
 0x2bd   :  { %6213 = vst [vmem:[#allocation2 + $0xb0] sm:$0xff] %v6204_v16  ;;  %v8881_v16 = vrot.slane %v8880_v47, 2  ;;  %v9538_v21 = vrot.slane %v9537_v53, 4  ;;  %v8389_v56 = vsel %vm8325_vm1, %v8318_v11, -inf  ;;  %v8559_v6 = vsel %vm8325_vm1, %v8489_v59, -inf }
 0x2be   :  { %v21789_v14 = vmax.f32 %v9045_v31, %v9046_v62  ;;  %v21791_v46 = vmax.f32 %v9208_v42, %v9209_v0  ;;  %v8387_v43 = vrot.slane %v8386_v8, 1  ;;  %v8722_v38 = vsel %vm8325_vm1, %v8652_v22, -inf  ;;  %v9142_v51 = vld [vmem:[#allocation2 + $0xaa] sm:$0x3]  ;;  %v9305_v63 = vld [vmem:[#allocation2 + $0xac] sm:$0x3] }
 0x2bf   :  { %v21794_v41 = vmax.f32 %v9371_v44, %v9372_v5  ;;  %v21796_v52 = vmax.f32 %v9534_v49, %v9535_v3  ;;  %v8556_v34 = vmax.f32 %v8554_v24, %v8555_v39  ;;  %v9213_v37 = vmax.f32 %v9211_v54, %v9212_v60  ;;  %v9468_v28 = vld [vmem:[#allocation2 + $0xae] sm:$0x3]  ;;  %v8319_v27 = vld [vmem:[#allocation2 + $0xa0] sm:$0x3]  ;;  %v8490_v60 = vld [vmem:[#allocation2 + $0xa2] sm:$0x3] }
 0x2c0   :  { %v8719_v57 = vmax.f32 %v8717_v10, %v8718_v30  ;;  %v8390_v25 = vrot.slane %v8389_v56, 4  ;;  %v8560_v45 = vrot.slane %v8559_v6, 4  ;;  %v8885_v9 = vsel %vm8325_vm1, %v8815_v40, -inf  ;;  %v8653_v22 = vld [vmem:[#allocation2 + $0xa4] sm:$0x3] }
 0x2c1   :  { %v8882_v7 = vmax.f32 %v8880_v47, %v8881_v16  ;;  %v9051_v58 = vrot.slane %v9050_v1, 2  ;;  %v9376_v55 = vmax.f32 %v9374_v61, %v9375_v19  ;;  %v9539_v13 = vmax.f32 %v9537_v53, %v9538_v21  ;;  %v8816_v21 = vld [vmem:[#allocation2 + $0xa6] sm:$0x3] }
 0x2c2   :  { %v8723_v15 = vrot.slane %v8722_v38, 4  ;;  %v9055_v35 = vsel %vm8325_vm1, %v8979_v2, -inf  ;;  %v9218_v17 = vsel %vm8325_vm1, %v9142_v51, -inf  ;;  %v9381_v32 = vsel %vm8325_vm1, %v9305_v63, -inf }
 0x2c3   :  { %v21802_v50 = vmax.f32 %v8386_v8, %v8387_v43  ;;  %v8557_v33 = vrot.slane %v8556_v34, 1  ;;  %v9214_v23 = vrot.slane %v9213_v37, 2  ;;  %v8886_v12 = vrot.slane %v8885_v9, 4 }
 0x2c4   :  { %v8720_v36 = vrot.slane %v8719_v57, 1  ;;  %v8391_v31 = vmax.f32 %v8389_v56, %v8390_v25  ;;  %v8561_v42 = vmax.f32 %v8559_v6, %v8560_v45  ;;  %v9544_v26 = vsel %vm8325_vm1, %v9468_v28, -inf }
 0x2c5   :  { %v8883_v4 = vrot.slane %v8882_v7, 1  ;;  %v9056_v48 = vrot.slane %v9055_v35, 4  ;;  %v9219_v44 = vrot.slane %v9218_v17, 4  ;;  %v9382_v49 = vrot.slane %v9381_v32, 4 }
 0x2c6   :  { %v9052_v24 = vmax.f32 %v9050_v1, %v9051_v58  ;;  %v9377_v29 = vrot.slane %v9376_v55, 2  ;;  %v9540_v10 = vrot.slane %v9539_v13, 2  ;;  %v8724_v47 = vmax.f32 %v8722_v38, %v8723_v15 }
 0x2c7   :  { %v9215_v54 = vmax.f32 %v9213_v37, %v9214_v23  ;;  %v8887_v18 = vmax.f32 %v8885_v9, %v8886_v12  ;;  %v9545_v61 = vrot.slane %v9544_v26, 4  ;;  %v8396_v11 = vsel %vm8325_vm1, %v8319_v27, -inf }
 0x2c8   :  { %v21806_v62 = vmax.f32 %v8556_v34, %v8557_v33  ;;  %v21808_v0 = vmax.f32 %v8719_v57, %v8720_v36  ;;  %v8392_v8 = vrot.slane %v8391_v31, 2  ;;  %v8562_v53 = vrot.slane %v8561_v42, 2 }
 0x2c9   :  { %v21810_v59 = vmax.f32 %v8882_v7, %v8883_v4  ;;  %v9057_v5 = vmax.f32 %v9055_v35, %v9056_v48  ;;  %v9220_v3 = vmax.f32 %v9218_v17, %v9219_v44  ;;  %v9383_v39 = vmax.f32 %v9381_v32, %v9382_v49 }
 0x2ca   :  { %v9378_v30 = vmax.f32 %v9376_v55, %v9377_v29  ;;  %v9541_v16 = vmax.f32 %v9539_v13, %v9540_v10  ;;  %v8725_v19 = vrot.slane %v8724_v47, 2  ;;  %v8397_v1 = vrot.slane %v8396_v11, 4 }
 0x2cb   :  { %v9053_v56 = vrot.slane %v9052_v24, 1  ;;  %v9216_v6 = vrot.slane %v9215_v54, 1  ;;  %v8888_v40 = vrot.slane %v8887_v18, 2  ;;  %v9546_v43 = vmax.f32 %v9544_v26, %v9545_v61  ;;  %v8980_v61 = vld [vmem:[#allocation2 + $0xb8] sm:$0x3] }
 0x2cc   :  { %v8393_v38 = vmax.f32 %v8391_v31, %v8392_v8  ;;  %v8563_v34 = vmax.f32 %v8561_v42, %v8562_v53  ;;  %v8566_v37 = vsel %vm8325_vm1, %v8490_v60, -inf  ;;  %v8729_v2 = vsel %vm8325_vm1, %v8653_v22, -inf  ;;  %v21818_v42 = vld [vmem:[%s23171_s3 + $0x10] sm:$0xff]  ;;  %v9143_v22 = vld [vmem:[#allocation2 + $0xba] sm:$0x3] }
 0x2cd   :  { %v9058_v51 = vrot.slane %v9057_v5, 2  ;;  %v9221_v63 = vrot.slane %v9220_v3, 2  ;;  %v9384_v57 = vrot.slane %v9383_v39, 2  ;;  %v8892_v25 = vsel %vm8325_vm1, %v8816_v21, -inf  ;;  %17562 = vmatprep.subr.mxu0 %v21818_v42 }
 0x2ce   :  { %v9379_v45 = vrot.slane %v9378_v30, 1  ;;  %v9542_v9 = vrot.slane %v9541_v16, 1  ;;  %v8726_v7 = vmax.f32 %v8724_v47, %v8725_v19  ;;  %v8398_v58 = vmax.f32 %v8396_v11, %v8397_v1 }
 0x2cf   :  { %v9054_v55 = vmax.f32 %v9052_v24, %v9053_v56  ;;  %v8889_v13 = vmax.f32 %v8887_v18, %v8888_v40  ;;  %v9547_v28 = vrot.slane %v9546_v43, 2  ;;  %v8567_v15 = vrot.slane %v8566_v37, 4  ;;  %v9469_v56 = vld [vmem:[#allocation2 + $0xbe] sm:$0x3] }
 0x2d0   :  { %v8394_v35 = vrot.slane %v8393_v38, 1  ;;  %v8564_v17 = vrot.slane %v8563_v34, 1  ;;  %v8730_v32 = vrot.slane %v8729_v2, 4  ;;  %v8893_v33 = vrot.slane %v8892_v25, 4 }
 0x2d1   :  { %v9217_v23 = vmax.f32 %v9215_v54, %v9216_v6  ;;  %v9059_v12 = vmax.f32 %v9057_v5, %v9058_v51  ;;  %v9222_v36 = vmax.f32 %v9220_v3, %v9221_v63  ;;  %v9385_v31 = vmax.f32 %v9383_v39, %v9384_v57 }
 0x2d2   :  { %v9380_v26 = vmax.f32 %v9378_v30, %v9379_v45  ;;  %v9543_v27 = vmax.f32 %v9541_v16, %v9542_v9  ;;  %v8727_v4 = vrot.slane %v8726_v7, 1  ;;  %v8399_v48 = vrot.slane %v8398_v58, 2  ;;  %v9306_v30 = vld [vmem:[#allocation2 + $0xbc] sm:$0x3]  ;;  %v8491_v9 = vld [vmem:[#allocation2 + $0xb2] sm:$0x3] }
 0x2d3   :  { %v9120_v44 = vsel %vm8454_vm2, %v9054_v55, %v21789_v14  ;;  %v8890_v49 = vrot.slane %v8889_v13, 1  ;;  %v9548_v24 = vmax.f32 %v9546_v43, %v9547_v28  ;;  %v8568_v29 = vmax.f32 %v8566_v37, %v8567_v15  ;;  %v8320_v37 = vld [vmem:[#allocation2 + $0xb0] sm:$0x3]  ;;  %v8817_v15 = vld [vmem:[#allocation2 + $0xb6] sm:$0x3] }
 0x2d4   :  { %v8395_v10 = vmax.f32 %v8393_v38, %v8394_v35  ;;  %v8565_v47 = vmax.f32 %v8563_v34, %v8564_v17  ;;  %v8731_v54 = vmax.f32 %v8729_v2, %v8730_v32  ;;  %v8894_v18 = vmax.f32 %v8892_v25, %v8893_v33 }
 0x2d5   :  { %v9283_v11 = vsel %vm8454_vm2, %v9217_v23, %v21791_v46  ;;  %v9060_v8 = vrot.slane %v9059_v12, 1  ;;  %v9223_v53 = vrot.slane %v9222_v36, 1  ;;  %v9386_v5 = vrot.slane %v9385_v31, 1 }
 0x2d6   :  { %v9446_v3 = vsel %vm8454_vm2, %v9380_v26, %v21794_v41  ;;  %v9609_v14 = vsel %vm8454_vm2, %v9543_v27, %v21796_v52  ;;  %v8728_v39 = vmax.f32 %v8726_v7, %v8727_v4  ;;  %v8400_v60 = vmax.f32 %v8398_v58, %v8399_v48  ;;  %v8654_v7 = vld [vmem:[#allocation2 + $0xb4] sm:$0x3] }
 0x2d7   :  { %v8891_v16 = vmax.f32 %v8889_v13, %v8890_v49  ;;  %v9549_v19 = vrot.slane %v9548_v24, 1  ;;  %v8569_v1 = vrot.slane %v8568_v29, 2  ;;  %v9062_v21 = vsel %vm8325_vm1, %v8980_v61, -inf }
 0x2d8   :  { %v21832_v46 = vsel %vm8454_vm2, %v8395_v10, %v21802_v50  ;;  %v21836_v41 = vsel %vm8454_vm2, %v8565_v47, %v21806_v62  ;;  %v8732_v6 = vrot.slane %v8731_v54, 2  ;;  %v8895_v52 = vrot.slane %v8894_v18, 2 }
 0x2d9   :  { %v9061_v40 = vmax.f32 %v9059_v12, %v9060_v8  ;;  %v9224_v43 = vmax.f32 %v9222_v36, %v9223_v53  ;;  %v9387_v38 = vmax.f32 %v9385_v31, %v9386_v5  ;;  %v9225_v34 = vsel %vm8325_vm1, %v9143_v22, -inf }
 0x2da   :  { %v8401_v2 = vrot.slane %v8400_v60, 1  ;;  %v9063_v51 = vrot.slane %v9062_v21, 4  ;;  %v9388_v63 = vsel %vm8325_vm1, %v9306_v30, -inf  ;;  %v9551_v57 = vsel %vm8325_vm1, %v9469_v56, -inf }
 0x2db   :  { %v21843_v50 = vsel %vm8454_vm2, %v8728_v39, %v21808_v0  ;;  %v21847_v62 = vsel %vm8454_vm2, %v8891_v16, %v21810_v59  ;;  %v9550_v25 = vmax.f32 %v9548_v24, %v9549_v19  ;;  %v8570_v45 = vmax.f32 %v8568_v29, %v8569_v1 }
 0x2dc   :  { %v8733_v58 = vmax.f32 %v8731_v54, %v8732_v6  ;;  %v8896_v55 = vmax.f32 %v8894_v18, %v8895_v52  ;;  %v9226_v13 = vrot.slane %v9225_v34, 4  ;;  %v8403_v28 = vsel %vm8325_vm1, %v8320_v37, -inf }
 0x2dd   :  { %v21851_v17 = vsel %vm8456_vm3, %v9061_v40, %v9120_v44  ;;  %v21854_v0 = vsel %vm8456_vm3, %v9224_v43, %v9283_v11  ;;  %v9389_v32 = vrot.slane %v9388_v63, 4  ;;  %v9552_v59 = vrot.slane %v9551_v57, 4 }
 0x2de   :  { %v21857_v23 = vsel %vm8456_vm3, %v9387_v38, %v9446_v3  ;;  %v8402_v12 = vmax.f32 %v8400_v60, %v8401_v2  ;;  %v9064_v36 = vmax.f32 %v9062_v21, %v9063_v51  ;;  %v8573_v31 = vsel %vm8325_vm1, %v8491_v9, -inf }
 0x2df   :  { %v8404_v26 = vrot.slane %v8403_v28, 4  ;;  %v8736_v27 = vsel %vm8325_vm1, %v8654_v7, -inf  ;;  %v8899_v4 = vsel %vm8325_vm1, %v8817_v15, -inf  ;;  %v21864_v44 = vsel %vm8456_vm3, %v9550_v25, %v9609_v14 }
 0x2e0   :  { %v8571_v49 = vrot.slane %v8570_v45, 1  ;;  %v9227_v24 = vmax.f32 %v9225_v34, %v9226_v13  ;;  %v9390_v47 = vmax.f32 %v9388_v63, %v9389_v32  ;;  %v9553_v54 = vmax.f32 %v9551_v57, %v9552_v59 }
 0x2e1   :  { %v8574_v18 = vrot.slane %v8573_v31, 4  ;;  %v9065_v8 = vrot.slane %v9064_v36, 2  ;;  %v8737_v53 = vrot.slane %v8736_v27, 4  ;;  %v8900_v5 = vrot.slane %v8899_v4, 4 }
 0x2e2   :  { %v8734_v39 = vrot.slane %v8733_v58, 1  ;;  %v8405_v60 = vmax.f32 %v8403_v28, %v8404_v26  ;;  %v8897_v30 = vrot.slane %v8896_v55, 1  ;;  %v9228_v16 = vrot.slane %v9227_v24, 2 }
 0x2e3   :  { %v9391_v56 = vrot.slane %v9390_v47, 2  ;;  %v9554_v6 = vrot.slane %v9553_v54, 2  ;;  %v8575_v52 = vmax.f32 %v8573_v31, %v8574_v18  ;;  %v9066_v38 = vmax.f32 %v9064_v36, %v9065_v8 }
 0x2e4   :  { %v8738_v34 = vmax.f32 %v8736_v27, %v8737_v53  ;;  %v8901_v37 = vmax.f32 %v8899_v4, %v8900_v5  ;;  %v21871_v51 = vsel %vm8456_vm3, %v8402_v12, %v21832_v46  ;;  %v8572_v63 = vmax.f32 %v8570_v45, %v8571_v49 }
 0x2e5   :  { %v8406_v57 = vrot.slane %v8405_v60, 2  ;;  %v8735_v9 = vmax.f32 %v8733_v58, %v8734_v39  ;;  %v8898_v7 = vmax.f32 %v8896_v55, %v8897_v30  ;;  %v9229_v13 = vmax.f32 %v9227_v24, %v9228_v16 }
 0x2e6   :  { %v21875_v32 = vmax.f32 %v9553_v54, %v9554_v6  ;;  %v8576_v59 = vrot.slane %v8575_v52, 2  ;;  %v9067_v12 = vrot.slane %v9066_v38, 1  ;;  %v8739_v45 = vrot.slane %v8738_v34, 2 }
 0x2e7   :  { %v8902_v36 = vrot.slane %v8901_v37, 2  ;;  %v21881_v58 = vsel %vm8456_vm3, %v8572_v63, %v21836_v41  ;;  %v8407_v55 = vmax.f32 %v8405_v60, %v8406_v57  ;;  %v21885_v4 = vsel %vm8456_vm3, %v8735_v9, %v21843_v50 }
 0x2e8   :  { %v8577_v54 = vmax.f32 %v8575_v52, %v8576_v59  ;;  %v9068_v41 = vmax.f32 %v9066_v38, %v9067_v12  ;;  %v8958_v6 = vsel %vm8456_vm3, %v8898_v7, %v21847_v62 }
 0x2e9   :  { %v8903_v8 = vmax.f32 %v8901_v37, %v8902_v36  ;;  %v8408_v50 = vrot.slane %v8407_v55, 1 }
 0x2eb   :  { %v8904_v63 = vrot.slane %v8903_v8, 1  ;;  %v8409_v36 = vmax.f32 %v8407_v55, %v8408_v50 }
 0x35b   :  { %v17488_v35 = vpop.f32.mrb[32].mxu1 }
 0x35c   :  { %v8125_v33 = vpop.f32.mrb[33].mxu1  ;;  %v8221_v48 = vadd.f32 %v21741_v20, %v17488_v35  ;;  %v9392_v35 = vmax.f32 %v9390_v47, %v9391_v56  ;;  %v9556_v47 = vrot.slane %v21875_v32, 1 }
 0x35d   :  { %v8220_v29 = vadd.f32 %v21741_v20, %v8125_v33 }
 0x35e   :  { %v8237_v14 = vmax.f32 %v8221_v48, 0.0  ;;  %v9230_v48 = vrot.slane %v9229_v13, 1 }
 0x35f   :  { %v17491_v10 = vpop.f32.mrb[34].mxu1  ;;  %v8236_v19 = vmax.f32 %v8220_v29, 0.0 }
 0x360   :  { %v8223_v61 = vadd.f32 %v21741_v20, %v17491_v10  ;;  %v8135_v11 = vpop.f32.mrb[35].mxu1  ;;  %v9393_v10 = vrot.slane %v9392_v35, 1  ;;  %v9231_v52 = vmax.f32 %v9229_v13, %v9230_v48 }
 0x361   :  { %v8222_v3 = vadd.f32 %v21741_v20, %v8135_v11  ;;  %v8740_v11 = vmax.f32 %v8738_v34, %v8739_v45  ;;  %v9557_v45 = vmax.f32 %v21875_v32, %v9556_v47 }
 0x362   :  { %v8239_v22 = vmax.f32 %v8223_v61, 0.0  ;;  %v9394_v37 = vmax.f32 %v9392_v35, %v9393_v10 }
 0x363   :  { %v8238_v1 = vmax.f32 %v8222_v3, 0.0  ;;  %v17494_v21 = vpop.f32.mrb[36].mxu1 }
 0x364   :  { %v8253_v40 = vmax.f32 %v8237_v14, %v8239_v22  ;;  %v8145_v43 = vpop.f32.mrb[37].mxu1  ;;  %v8225_v25 = vadd.f32 %v21741_v20, %v17494_v21 }
 0x365   :  { %v8252_v2 = vmax.f32 %v8236_v19, %v8238_v1  ;;  %v8224_v28 = vadd.f32 %v21741_v20, %v8145_v43 }
 0x366   :  { %8262 = vst [vmem:[#allocation2 + $0xc8] sm:$0xff] %v8253_v40  ;;  %v8241_v26 = vmax.f32 %v8225_v25, 0.0  ;;  %v8578_v40 = vrot.slane %v8577_v54, 1 }
 0x367   :  { %8261 = vst [vmem:[#allocation2 + $0xc0] sm:$0xff] %v8252_v2  ;;  %v17497_v15 = vpop.f32.mrb[38].mxu1  ;;  %v8240_v49 = vmax.f32 %v8224_v28, 0.0  ;;  %v8741_v2 = vrot.slane %v8740_v11, 1  ;;  %v21901_v28 = vsel %vm8458_vm4, %v9068_v41, %v21851_v17 }
 0x368   :  { %v8227_v33 = vadd.f32 %v21741_v20, %v17497_v15  ;;  %v8155_v46 = vpop.f32.mrb[39].mxu1 }
 0x369   :  { %v8226_v31 = vadd.f32 %v21741_v20, %v8155_v46  ;;  %v8742_v48 = vmax.f32 %v8740_v11, %v8741_v2 }
 0x36a   :  { %v8243_v27 = vmax.f32 %v8227_v33, 0.0 }
 0x36b   :  { %v8242_v24 = vmax.f32 %v8226_v31, 0.0  ;;  %v17500_v29 = vpop.f32.mrb[40].mxu1  ;;  %v8579_v31 = vmax.f32 %v8577_v54, %v8578_v40 }
 0x36c   :  { %v8255_v18 = vmax.f32 %v8241_v26, %v8243_v27  ;;  %v21888_v61 = vpop.f32.mrb[41].mxu1  ;;  %v21915_v27 = vsel %vm8458_vm4, %v9231_v52, %v21854_v0  ;;  %v21928_v0 = vsel %vm8458_vm4, %v9557_v45, %v21864_v44 }
 0x36d   :  { %v8981_v53 = vld [vmem:[#allocation2 + $0xc8] sm:$0x3]  ;;  %v9144_v5 = vld [vmem:[#allocation2 + $0xca] sm:$0x3]  ;;  %v9307_v3 = vld [vmem:[#allocation2 + $0xcc] sm:$0x3]  ;;  %v8254_v39 = vmax.f32 %v8240_v49, %v8242_v24  ;;  %v8905_v49 = vmax.f32 %v8903_v8, %v8904_v63  ;;  %v21918_v24 = vadd.f32 %v21741_v20, %v17500_v29  ;;  %v21932_v29 = vsel %vm8458_vm4, %v8409_v36, %v21871_v51 }
 0x36e   :  { %v9069_v60 = vsel %vm8325_vm1, %v8981_v53, -inf  ;;  %v9232_v14 = vsel %vm8325_vm1, %v9144_v5, -inf  ;;  %v9395_v22 = vsel %vm8325_vm1, %v9307_v3, -inf  ;;  %v9470_v30 = vld [vmem:[#allocation2 + $0xce] sm:$0x3]  ;;  %8264 = vst [vmem:[#allocation2 + $0xd8] sm:$0xff] %v8255_v18  ;;  %v21924_v3 = vsel %vm8458_vm4, %v9394_v37, %v21857_v23 }
 0x36f   :  { %v9070_v16 = vrot.slane %v9069_v60, 4  ;;  %v9233_v19 = vrot.slane %v9232_v14, 4  ;;  %v9396_v1 = vrot.slane %v9395_v22, 4  ;;  %v9558_v21 = vsel %vm8325_vm1, %v9470_v30, -inf  ;;  %v8321_v56 = vld [vmem:[#allocation2 + $0xc0] sm:$0x3] }
 0x370   :  { %8263 = vst [vmem:[#allocation2 + $0xd0] sm:$0xff] %v8254_v39  ;;  %v8410_v43 = vsel %vm8325_vm1, %v8321_v56, -inf  ;;  %v8492_v38 = vld [vmem:[#allocation2 + $0xc2] sm:$0x3]  ;;  %v8655_v34 = vld [vmem:[#allocation2 + $0xc4] sm:$0x3]  ;;  %v21936_v11 = vsel %vm8458_vm4, %v8579_v31, %v21881_v58  ;;  %v21943_v23 = vsel %vm8458_vm4, %v8905_v49, %v8958_v6  ;;  %v21948_v51 = vadd.f32 %v21741_v20, %v21888_v61 }
 0x371   :  { %v8411_v57 = vrot.slane %v8410_v43, 4  ;;  %v8818_v25 = vld [vmem:[#allocation2 + $0xc6] sm:$0x3]  ;;  %v21897_v9 = vpop.f32.mrb[42].mxu1  ;;  %v9071_v15 = vmax.f32 %v9069_v60, %v9070_v16  ;;  %v9234_v59 = vmax.f32 %v9232_v14, %v9233_v19  ;;  %v9559_v62 = vrot.slane %v9558_v21, 4 }
 0x372   :  { %v21903_v7 = vpop.f32.mrb[43].mxu1  ;;  %v9397_v13 = vmax.f32 %v9395_v22, %v9396_v1  ;;  %v8580_v46 = vsel %vm8325_vm1, %v8492_v38, -inf  ;;  %v8743_v35 = vsel %vm8325_vm1, %v8655_v34, -inf  ;;  %v8906_v17 = vsel %vm8325_vm1, %v8818_v25, -inf }
 0x373   :  { %v8412_v33 = vmax.f32 %v8410_v43, %v8411_v57  ;;  %v21907_v12 = vpop.f32.mrb[44].mxu1  ;;  %v9072_v10 = vrot.slane %v9071_v15, 2  ;;  %v9560_v18 = vmax.f32 %v9558_v21, %v9559_v62  ;;  %v8581_v41 = vrot.slane %v8580_v46, 4 }
 0x374   :  { %v21911_v26 = vpop.f32.mrb[45].mxu1  ;;  %v8744_v53 = vrot.slane %v8743_v35, 4  ;;  %v9235_v32 = vrot.slane %v9234_v59, 2  ;;  %v9398_v55 = vrot.slane %v9397_v13, 2  ;;  %v8907_v54 = vrot.slane %v8906_v17, 4 }
 0x375   :  { %v8413_v47 = vrot.slane %v8412_v33, 2  ;;  %v8982_v8 = vld [vmem:[#allocation2 + $0xd8] sm:$0x3]  ;;  %v9145_v39 = vld [vmem:[#allocation2 + $0xda] sm:$0x3]  ;;  %v21940_v60 = vsel %vm8458_vm4, %v8742_v48, %v21885_v4  ;;  %v8245_v44 = vmax.f32 %v21918_v24, 0.0  ;;  %v9073_v58 = vmax.f32 %v9071_v15, %v9072_v10 }
 0x376   :  { %v9308_v50 = vld [vmem:[#allocation2 + $0xdc] sm:$0x3]  ;;  %v9561_v22 = vrot.slane %v9560_v18, 2  ;;  %v8582_v30 = vmax.f32 %v8580_v46, %v8581_v41  ;;  %v8745_v16 = vmax.f32 %v8743_v35, %v8744_v53  ;;  %v9471_v19 = vld [vmem:[#allocation2 + $0xde] sm:$0x3]  ;;  %v8908_v21 = vmax.f32 %v8906_v17, %v8907_v54 }
 0x377   :  { %v21920_v5 = vpop.f32.mrb[46].mxu1  ;;  %v8322_v1 = vld [vmem:[#allocation2 + $0xd0] sm:$0x3]  ;;  %v9076_v4 = vsel %vm8325_vm1, %v8982_v8, -inf  ;;  %v9239_v56 = vsel %vm8325_vm1, %v9145_v39, -inf  ;;  %v9402_v6 = vsel %vm8325_vm1, %v9308_v50, -inf  ;;  %v21955_v52 = vmax.f32 %v9234_v59, %v9235_v32 }
 0x378   :  { %v21950_v14 = vpop.f32.mrb[47].mxu1  ;;  %v21957_v40 = vmax.f32 %v9397_v13, %v9398_v55  ;;  %v8414_v61 = vmax.f32 %v8412_v33, %v8413_v47  ;;  %v9077_v43 = vrot.slane %v9076_v4, 4  ;;  %v8493_v38 = vld [vmem:[#allocation2 + $0xd2] sm:$0x3]  ;;  %v8656_v34 = vld [vmem:[#allocation2 + $0xd4] sm:$0x3]  ;;  %v21961_v62 = vmax.f32 %v9560_v18, %v9561_v22 }
 0x379   :  { %v9240_v37 = vrot.slane %v9239_v56, 4  ;;  %v9403_v2 = vrot.slane %v9402_v6, 4  ;;  %v9565_v63 = vsel %vm8325_vm1, %v9471_v19, -inf  ;;  %v8417_v57 = vsel %vm8325_vm1, %v8322_v1, -inf  ;;  %v8819_v25 = vld [vmem:[#allocation2 + $0xd6] sm:$0x3] }
 0x37a   :  { %v9074_v15 = vrot.slane %v9073_v58, 1  ;;  %v8583_v46 = vrot.slane %v8582_v30, 2  ;;  %v9078_v35 = vmax.f32 %v9076_v4, %v9077_v43  ;;  %v8746_v59 = vrot.slane %v8745_v16, 2 }
 0x37b   :  { %v8909_v45 = vrot.slane %v8908_v21, 2  ;;  %v9566_v13 = vrot.slane %v9565_v63, 4  ;;  %v8418_v36 = vrot.slane %v8417_v57, 4  ;;  %v9237_v33 = vrot.slane %v21955_v52, 1 }
 0x37c   :  { %v8587_v31 = vsel %vm8325_vm1, %v8493_v38, -inf  ;;  %v8750_v17 = vsel %vm8325_vm1, %v8656_v34, -inf  ;;  %v8913_v48 = vsel %vm8325_vm1, %v8819_v25, -inf  ;;  %v8415_v49 = vrot.slane %v8414_v61, 1 }
 0x37d   :  { %v9241_v10 = vmax.f32 %v9239_v56, %v9240_v37  ;;  %v9404_v41 = vmax.f32 %v9402_v6, %v9403_v2  ;;  %v8419_v53 = vmax.f32 %v8417_v57, %v8418_v36  ;;  %v9079_v18 = vrot.slane %v9078_v35, 2 }
 0x37e   :  { %v8588_v32 = vrot.slane %v8587_v31, 4  ;;  %v8751_v55 = vrot.slane %v8750_v17, 4  ;;  %v8914_v47 = vrot.slane %v8913_v48, 4  ;;  %v8584_v54 = vmax.f32 %v8582_v30, %v8583_v46 }
 0x37f   :  { %v8747_v8 = vmax.f32 %v8745_v16, %v8746_v59  ;;  %v8910_v39 = vmax.f32 %v8908_v21, %v8909_v45  ;;  %v9567_v50 = vmax.f32 %v9565_v63, %v9566_v13  ;;  %v8420_v22 = vrot.slane %v8419_v53, 2 }
 0x380   :  { %v8589_v19 = vmax.f32 %v8587_v31, %v8588_v32  ;;  %v8752_v1 = vmax.f32 %v8750_v17, %v8751_v55  ;;  %v8915_v4 = vmax.f32 %v8913_v48, %v8914_v47  ;;  %v9400_v43 = vrot.slane %v21957_v40, 1 }
 0x381   :  { %v9563_v38 = vrot.slane %v21961_v62, 1  ;;  %v9242_v34 = vrot.slane %v9241_v10, 2  ;;  %v9405_v56 = vrot.slane %v9404_v41, 2  ;;  %v9080_v6 = vmax.f32 %v9078_v35, %v9079_v18 }
 0x382   :  { %v8590_v37 = vrot.slane %v8589_v19, 2  ;;  %v8753_v2 = vrot.slane %v8752_v1, 2  ;;  %v8916_v57 = vrot.slane %v8915_v4, 2  ;;  %v21969_v25 = vmax.f32 %v9073_v58, %v9074_v15  ;;  %v18624_v58 = vld [vmem:[%s23170_s2] ss:$0 sm:$0xff] }
 0x383   :  { %v8416_v30 = vmax.f32 %v8414_v61, %v8415_v49  ;;  %v8585_v16 = vrot.slane %v8584_v54, 1  ;;  %v8748_v21 = vrot.slane %v8747_v8, 1  ;;  %v8911_v63 = vrot.slane %v8910_v39, 1 }
 0x384   :  { %v9568_v46 = vrot.slane %v9567_v50, 2  ;;  %v8421_v59 = vmax.f32 %v8419_v53, %v8420_v22  ;;  %v8591_v45 = vmax.f32 %v8589_v19, %v8590_v37  ;;  %v9243_v13 = vmax.f32 %v9241_v10, %v9242_v34 }
 0x385   :  { %v9406_v36 = vmax.f32 %v9404_v41, %v9405_v56  ;;  %v8231_v31 = vadd.f32 %v21741_v20, %v21897_v9  ;;  %v8230_v35 = vadd.f32 %v21741_v20, %v21903_v7  ;;  %v9081_v17 = vrot.slane %v9080_v6, 1 }
 0x386   :  { %v8754_v48 = vmax.f32 %v8752_v1, %v8753_v2  ;;  %v8917_v18 = vmax.f32 %v8915_v4, %v8916_v57  ;;  %v8233_v61 = vadd.f32 %v18624_v58, %v21907_v12  ;;  %v8244_v15 = vmax.f32 %v21948_v51, 0.0 }
 0x387   :  { %v8247_v49 = vmax.f32 %v8231_v31, 0.0  ;;  %v8246_v10 = vmax.f32 %v8230_v35, 0.0  ;;  %v8235_v41 = vadd.f32 %v18624_v58, %v21920_v5  ;;  %v9569_v53 = vmax.f32 %v9567_v50, %v9568_v46 }
 0x388   :  { %v8422_v9 = vrot.slane %v8421_v59, 1  ;;  %v8592_v32 = vrot.slane %v8591_v45, 1  ;;  %v8232_v20 = vadd.f32 %v18624_v58, %v21911_v26  ;;  %v8249_v47 = vmax.f32 %v8233_v61, 0.0 }
 0x389   :  { %v8257_v7 = vmax.f32 %v8245_v44, %v8247_v49  ;;  %v8256_v55 = vmax.f32 %v8244_v15, %v8246_v10  ;;  %v8251_v22 = vmax.f32 %v8235_v41, 0.0  ;;  %v9244_v19 = vrot.slane %v9243_v13, 1 }
 0x38a   :  { %v8755_v1 = vrot.slane %v8754_v48, 1  ;;  %v8918_v12 = vrot.slane %v8917_v18, 1  ;;  %v8234_v51 = vadd.f32 %v18624_v58, %v21950_v14  ;;  %v8586_v4 = vmax.f32 %v8584_v54, %v8585_v16 }
 0x38b   :  { %v8749_v34 = vmax.f32 %v8747_v8, %v8748_v21  ;;  %v9407_v56 = vrot.slane %v9406_v36, 1  ;;  %8266 = vst [vmem:[#allocation2 + $0xe8] sm:$0xff] %v8257_v7  ;;  %8265 = vst [vmem:[#allocation2 + $0xe0] sm:$0xff] %v8256_v55  ;;  %v8259_v5 = vmax.f32 %v8249_v47, %v8251_v22  ;;  %v9570_v50 = vrot.slane %v9569_v53, 1 }
 0x38c   :  { %v8423_v37 = vmax.f32 %v8421_v59, %v8422_v9  ;;  %v8248_v26 = vmax.f32 %v8232_v20, 0.0  ;;  %v8250_v2 = vmax.f32 %v8234_v51, 0.0  ;;  %v9238_v24 = vmax.f32 %v21955_v52, %v9237_v33 }
 0x38d   :  { %v8912_v44 = vmax.f32 %v8910_v39, %v8911_v63  ;;  %v9082_v57 = vmax.f32 %v9080_v6, %v9081_v17  ;;  %v8593_v46 = vmax.f32 %v8591_v45, %v8592_v32  ;;  %8268 = vst [vmem:[#allocation2 + $0xf8] sm:$0xff] %v8259_v5  ;;  %v9245_v31 = vmax.f32 %v9243_v13, %v9244_v19 }
 0x38e   :  { %v8756_v14 = vmax.f32 %v8754_v48, %v8755_v1  ;;  %v8919_v54 = vmax.f32 %v8917_v18, %v8918_v12  ;;  %v8258_v8 = vmax.f32 %v8248_v26, %v8250_v2  ;;  %v9401_v16 = vmax.f32 %v21957_v40, %v9400_v43 }
 0x38f   :  { %v9564_v21 = vmax.f32 %v21961_v62, %v9563_v38  ;;  %v9408_v35 = vmax.f32 %v9406_v36, %v9407_v56  ;;  %v8471_v59 = vsel %vm8460_vm5, %v8416_v30, %v21932_v29  ;;  %v21992_v58 = vmax.f32 %v9569_v53, %v9570_v50 }
 0x390   :  { %8267 = vst [vmem:[#allocation2 + $0xf0] sm:$0xff] %v8258_v8  ;;  %v21995_v52 = vsel %vm8462_vm6, %v8423_v37, %v8471_v59  ;;  %v8634_v33 = vsel %vm8460_vm5, %v8586_v4, %v21936_v11  ;;  %v8797_v39 = vsel %vm8460_vm5, %v8749_v34, %v21940_v60  ;;  %v8960_v62 = vsel %vm8460_vm5, %v8912_v44, %v21943_v23 }
 0x391   :  { %v22002_v40 = vsel %vm8462_vm6, %v8593_v46, %v8634_v33  ;;  %v9123_v29 = vsel %vm8460_vm5, %v21969_v25, %v21901_v28  ;;  %v9286_v43 = vsel %vm8460_vm5, %v9238_v24, %v21915_v27  ;;  %v22012_v11 = vsel %vm8462_vm6, %v8756_v14, %v8797_v39 }
 0x392   :  { %v8983_v38 = vld [vmem:[#allocation2 + $0xe8] sm:$0x3]  ;;  %v9146_v6 = vld [vmem:[#allocation2 + $0xea] sm:$0x3]  ;;  %v9309_v30 = vld [vmem:[#allocation2 + $0xec] sm:$0x3]  ;;  %v22015_v60 = vsel %vm8462_vm6, %v8919_v54, %v8960_v62  ;;  %v22018_v63 = vsel %vm8462_vm6, %v9082_v57, %v9123_v29  ;;  %v22021_v23 = vsel %vm8462_vm6, %v9245_v31, %v9286_v43  ;;  %v9449_v13 = vsel %vm8460_vm5, %v9401_v16, %v21924_v3 }
 0x393   :  { %v9083_v28 = vsel %vm8325_vm1, %v8983_v38, -inf  ;;  %v9246_v25 = vsel %vm8325_vm1, %v9146_v6, -inf  ;;  %v9409_v27 = vsel %vm8325_vm1, %v9309_v30, -inf  ;;  %v9472_v45 = vld [vmem:[#allocation2 + $0xee] sm:$0x3]  ;;  %v22031_v53 = vsel %vm8462_vm6, %v9408_v35, %v9449_v13 }
 0x394   :  { %v9084_v36 = vrot.slane %v9083_v28, 4  ;;  %v9247_v17 = vrot.slane %v9246_v25, 4  ;;  %v9410_v48 = vrot.slane %v9409_v27, 4  ;;  %v9572_v18 = vsel %vm8325_vm1, %v9472_v45, -inf  ;;  %v8323_v61 = vld [vmem:[#allocation2 + $0xe0] sm:$0x3] }
 0x395   :  { %v9573_v15 = vrot.slane %v9572_v18, 4  ;;  %v8424_v49 = vsel %vm8325_vm1, %v8323_v61, -inf  ;;  %v8494_v10 = vld [vmem:[#allocation2 + $0xe2] sm:$0x3]  ;;  %v8657_v41 = vld [vmem:[#allocation2 + $0xe4] sm:$0x3]  ;;  %v9612_v9 = vsel %vm8460_vm5, %v9564_v21, %v21928_v0 }
 0x396   :  { %v9085_v32 = vmax.f32 %v9083_v28, %v9084_v36  ;;  %v9248_v20 = vmax.f32 %v9246_v25, %v9247_v17  ;;  %v9411_v3 = vmax.f32 %v9409_v27, %v9410_v48  ;;  %v8425_v7 = vrot.slane %v8424_v49, 4  ;;  %v8820_v55 = vld [vmem:[#allocation2 + $0xe6] sm:$0x3]  ;;  %v8984_v14 = vld [vmem:[#allocation2 + $0xf8] sm:$0x3] }
 0x397   :  { %v9574_v47 = vmax.f32 %v9572_v18, %v9573_v15  ;;  %v8594_v22 = vsel %vm8325_vm1, %v8494_v10, -inf  ;;  %v8757_v19 = vsel %vm8325_vm1, %v8657_v41, -inf  ;;  %v8920_v1 = vsel %vm8325_vm1, %v8820_v55, -inf  ;;  %v9147_v35 = vld [vmem:[#allocation2 + $0xfa] sm:$0x3] }
 0x398   :  { %v9086_v12 = vrot.slane %v9085_v32, 2  ;;  %v9249_v51 = vrot.slane %v9248_v20, 2  ;;  %v9412_v4 = vrot.slane %v9411_v3, 2  ;;  %v8426_v34 = vmax.f32 %v8424_v49, %v8425_v7  ;;  %v9310_v29 = vld [vmem:[#allocation2 + $0xfc] sm:$0x3] }
 0x399   :  { %v9575_v56 = vrot.slane %v9574_v47, 2  ;;  %v8595_v5 = vrot.slane %v8594_v22, 4  ;;  %v8758_v50 = vrot.slane %v8757_v19, 4  ;;  %v8921_v0 = vrot.slane %v8920_v1, 4  ;;  %v9473_v13 = vld [vmem:[#allocation2 + $0xfe] sm:$0x3] }
 0x39a   :  { %v9087_v37 = vmax.f32 %v9085_v32, %v9086_v12  ;;  %v9250_v26 = vmax.f32 %v9248_v20, %v9249_v51  ;;  %v9413_v2 = vmax.f32 %v9411_v3, %v9412_v4  ;;  %v8427_v24 = vrot.slane %v8426_v34, 2  ;;  %v8324_v36 = vld [vmem:[#allocation2 + $0xf0] sm:$0x3]  ;;  %v8495_v15 = vld [vmem:[#allocation2 + $0xf2] sm:$0x3] }
 0x39b   :  { %v9576_v44 = vmax.f32 %v9574_v47, %v9575_v56  ;;  %v8596_v57 = vmax.f32 %v8594_v22, %v8595_v5  ;;  %v8759_v46 = vmax.f32 %v8757_v19, %v8758_v50  ;;  %v8922_v31 = vmax.f32 %v8920_v1, %v8921_v0  ;;  %v8821_v55 = vld [vmem:[#allocation2 + $0xf6] sm:$0x3] }
 0x39c   :  { %v9088_v54 = vrot.slane %v9087_v37, 1  ;;  %v9251_v8 = vrot.slane %v9250_v26, 1  ;;  %v9414_v16 = vrot.slane %v9413_v2, 1  ;;  %v8428_v21 = vmax.f32 %v8426_v34, %v8427_v24 }
 0x39d   :  { %v9577_v59 = vrot.slane %v9576_v44, 1  ;;  %v8597_v33 = vrot.slane %v8596_v57, 2  ;;  %v8760_v39 = vrot.slane %v8759_v46, 2  ;;  %v8923_v62 = vrot.slane %v8922_v31, 2 }
 0x39e   :  { %v22038_v43 = vmax.f32 %v9087_v37, %v9088_v54  ;;  %v22040_v38 = vmax.f32 %v9250_v26, %v9251_v8  ;;  %v8429_v6 = vrot.slane %v8428_v21, 1  ;;  %v22044_v30 = vsel %vm8462_vm6, %v21992_v58, %v9612_v9  ;;  %v8658_v9 = vld [vmem:[#allocation2 + $0xf4] sm:$0x3] }
 0x39f   :  { %v22046_v28 = vmax.f32 %v9413_v2, %v9414_v16  ;;  %v8598_v25 = vmax.f32 %v8596_v57, %v8597_v33  ;;  %v8761_v27 = vmax.f32 %v8759_v46, %v8760_v39  ;;  %v8924_v45 = vmax.f32 %v8922_v31, %v8923_v62 }
 0x3a0   :  { %v22048_v17 = vmax.f32 %v9576_v44, %v9577_v59  ;;  %v9090_v48 = vsel %vm8325_vm1, %v8984_v14, -inf  ;;  %v9253_v18 = vsel %vm8325_vm1, %v9147_v35, -inf  ;;  %v9416_v61 = vsel %vm8325_vm1, %v9310_v29, -inf }
 0x3a1   :  { %v8430_v49 = vmax.f32 %v8428_v21, %v8429_v6  ;;  %v8599_v10 = vrot.slane %v8598_v25, 1  ;;  %v8762_v58 = vrot.slane %v8761_v27, 1  ;;  %v9091_v41 = vrot.slane %v9090_v48, 4 }
 0x3a2   :  { %v9254_v32 = vrot.slane %v9253_v18, 4  ;;  %v9417_v20 = vrot.slane %v9416_v61, 4  ;;  %v9579_v3 = vsel %vm8325_vm1, %v9473_v13, -inf  ;;  %v8431_v7 = vsel %vm8325_vm1, %v8324_v36, -inf }
 0x3a3   :  { %v8600_v47 = vmax.f32 %v8598_v25, %v8599_v10  ;;  %v8763_v22 = vmax.f32 %v8761_v27, %v8762_v58  ;;  %v8925_v19 = vrot.slane %v8924_v45, 1  ;;  %v9092_v1 = vmax.f32 %v9090_v48, %v9091_v41 }
 0x3a4   :  { %v9255_v12 = vmax.f32 %v9253_v18, %v9254_v32  ;;  %v9418_v51 = vmax.f32 %v9416_v61, %v9417_v20  ;;  %v9580_v4 = vrot.slane %v9579_v3, 4  ;;  %v8432_v34 = vrot.slane %v8431_v7, 4 }
 0x3a5   :  { %v9093_v56 = vrot.slane %v9092_v1, 2  ;;  %v8601_v5 = vsel %vm8325_vm1, %v8495_v15, -inf  ;;  %v8764_v50 = vsel %vm8325_vm1, %v8658_v9, -inf  ;;  %v8927_v0 = vsel %vm8325_vm1, %v8821_v55, -inf }
 0x3a6   :  { %v9256_v37 = vrot.slane %v9255_v12, 2  ;;  %v9419_v26 = vrot.slane %v9418_v51, 2  ;;  %v9581_v2 = vmax.f32 %v9579_v3, %v9580_v4  ;;  %v8433_v24 = vmax.f32 %v8431_v7, %v8432_v34 }
 0x3a7   :  { %v9094_v44 = vmax.f32 %v9092_v1, %v9093_v56  ;;  %v8602_v57 = vrot.slane %v8601_v5, 4  ;;  %v8765_v46 = vrot.slane %v8764_v50, 4  ;;  %v8928_v31 = vrot.slane %v8927_v0, 4 }
 0x3a8   :  { %v9257_v14 = vmax.f32 %v9255_v12, %v9256_v37  ;;  %v9420_v54 = vmax.f32 %v9418_v51, %v9419_v26  ;;  %v9582_v8 = vrot.slane %v9581_v2, 2  ;;  %v8434_v16 = vrot.slane %v8433_v24, 2  ;;  %v22118_v26 = vld [vmem:[#allocation3] sm:$0xff] }
 0x3a9   :  { %v9095_v21 = vrot.slane %v9094_v44, 1  ;;  %v8603_v35 = vmax.f32 %v8601_v5, %v8602_v57  ;;  %v8766_v59 = vmax.f32 %v8764_v50, %v8765_v46  ;;  %v8929_v33 = vmax.f32 %v8927_v0, %v8928_v31  ;;  %v9624_v57 = vld [vmem:[#allocation3 + $0x30] sm:$0xff]  ;;  %v9625_v46 = vld [vmem:[#allocation3 + $0x40] sm:$0xff]  ;;  %17748 = vmatprep.mubr.msk.f32.mxu1 %vm18654_vm9, %v22118_v26 }
 0x3aa   :  { %v9258_v39 = vrot.slane %v9257_v14, 1  ;;  %v9421_v62 = vrot.slane %v9420_v54, 1  ;;  %v9583_v29 = vmax.f32 %v9581_v2, %v9582_v8  ;;  %v8435_v6 = vmax.f32 %v8433_v24, %v8434_v16  ;;  %v9622_v2 = vld [vmem:[#allocation3 + $0x10] sm:$0xff]  ;;  %v15589_v24 = vld [vmem:[%s23171_s3 + $0x18] sm:$0xff]  ;;  %v10048_v8 = vld [vmem:[#allocation3 + $0x80] sm:$0xff] }
 0x3ab   :  { %v8926_v25 = vmax.f32 %v8924_v45, %v8925_v19  ;;  %v8604_v27 = vrot.slane %v8603_v35, 2  ;;  %v8767_v13 = vrot.slane %v8766_v59, 2  ;;  %v8930_v36 = vrot.slane %v8929_v33, 2  ;;  %v9626_v31 = vld [vmem:[#allocation3 + $0x50] sm:$0xff]  ;;  %v10269_v16 = vld [vmem:[#allocation3 + $0x1] sm:$0xff] }
 0x3ac   :  { %v9096_v48 = vmax.f32 %v9094_v44, %v9095_v21  ;;  %v9259_v18 = vmax.f32 %v9257_v14, %v9258_v39  ;;  %v9584_v61 = vrot.slane %v9583_v29, 1  ;;  %v8436_v15 = vrot.slane %v8435_v6, 1  ;;  %v9623_v44 = vld [vmem:[#allocation3 + $0x20] sm:$0xff]  ;;  %v10270_v21 = vld [vmem:[#allocation3 + $0x11] sm:$0xff] }
 0x3ad   :  { %v9422_v10 = vmax.f32 %v9420_v54, %v9421_v62  ;;  %v8605_v58 = vmax.f32 %v8603_v35, %v8604_v27  ;;  %v8768_v41 = vmax.f32 %v8766_v59, %v8767_v13  ;;  %v8931_v9 = vmax.f32 %v8929_v33, %v8930_v36  ;;  %v9627_v14 = vld [vmem:[#allocation3 + $0x60] sm:$0xff]  ;;  %v9628_v54 = vld [vmem:[#allocation3 + $0x70] sm:$0xff]  ;;  %v15623_v35 = vld [vmem:[%s23171_s3 + $0x28] sm:$0xff] }
 0x3ae   :  { %v9585_v32 = vmax.f32 %v9583_v29, %v9584_v61  ;;  %v8437_v20 = vmax.f32 %v8435_v6, %v8436_v15  ;;  %v8473_v3 = vsel %vm8464_vm7, %v8430_v49, %v21995_v52  ;;  %v8636_v7 = vsel %vm8464_vm7, %v8600_v47, %v22002_v40  ;;  %v10271_v59 = vld [vmem:[#allocation3 + $0x21] sm:$0xff]  ;;  %v10272_v33 = vld [vmem:[#allocation3 + $0x31] sm:$0xff] }
 0x3af   :  { %v8606_v45 = vrot.slane %v8605_v58, 1  ;;  %v8769_v55 = vrot.slane %v8768_v41, 1  ;;  %v8932_v19 = vrot.slane %v8931_v9, 1  ;;  %v8799_v1 = vsel %vm8464_vm7, %v8763_v22, %v22012_v11  ;;  %v10273_v39 = vld [vmem:[#allocation3 + $0x41] sm:$0xff]  ;;  %v10274_v62 = vld [vmem:[#allocation3 + $0x51] sm:$0xff] }
 0x3b0   :  { %v22065_v12 = vsel %vm8466_vm8, %v8437_v20, %v8473_v3  ;;  %v9125_v51 = vsel %vm8464_vm7, %v22038_v43, %v22018_v63  ;;  %v9288_v52 = vsel %vm8464_vm7, %v22040_v38, %v22021_v23  ;;  %v9451_v40 = vsel %vm8464_vm7, %v22046_v28, %v22031_v53  ;;  %v10275_v29 = vld [vmem:[#allocation3 + $0x61] sm:$0xff]  ;;  %v15640_v27 = vld [vmem:[%s23171_s3 + $0x30] sm:$0xff]  ;;  %v15657_v36 = vld [vmem:[%s23171_s3 + $0x38] sm:$0xff] }
 0x3b1   :  { %v8607_v49 = vmax.f32 %v8605_v58, %v8606_v45  ;;  %v8770_v47 = vmax.f32 %v8768_v41, %v8769_v55  ;;  %v8933_v4 = vmax.f32 %v8931_v9, %v8932_v19  ;;  %8479 = vst [vmem:[#allocation3 + $0xb1] sm:$0xff] %v22065_v12  ;;  %v22078_v11 = vsel %vm8466_vm8, %v9096_v48, %v9125_v51  ;;  %v10277_v6 = vld [vmem:[#allocation3 + $0xa1] sm:$0xff]  ;;  %v10730_v48 = vld [vmem:[#allocation3 + $0x91] sm:$0xff] }
 0x3b2   :  { %v8962_v22 = vsel %vm8464_vm7, %v8926_v25, %v22015_v60  ;;  %9131 = vst [vmem:[#allocation3 + $0xf1] sm:$0xff] %v22078_v11  ;;  %v22084_v63 = vsel %vm8466_vm8, %v9259_v18, %v9288_v52  ;;  %v22087_v23 = vsel %vm8466_vm8, %v9422_v10, %v9451_v40  ;;  %v9614_v53 = vsel %vm8464_vm7, %v22048_v17, %v22044_v30  ;;  %v10276_v25 = vld [vmem:[#allocation3 + $0x71] sm:$0xff]  ;;  %v10503_v13 = vld [vmem:[#allocation3 + $0x81] sm:$0xff] }
 0x3b3   :  { %v22093_v43 = vsel %vm8466_vm8, %v8607_v49, %v8636_v7  ;;  %v22096_v38 = vsel %vm8466_vm8, %v8770_v47, %v8799_v1  ;;  %v22099_v60 = vsel %vm8466_vm8, %v8933_v4, %v8962_v22  ;;  %9294 = vst [vmem:[#allocation3 + $0x101] sm:$0xff] %v22084_v63  ;;  %9457 = vst [vmem:[#allocation3 + $0x111] sm:$0xff] %v22087_v23  ;;  %v10738_v18 = vld [vmem:[#allocation3 + $0x131] sm:$0xff]  ;;  %v10950_v61 = vld [vmem:[#allocation3 + $0x2] sm:$0xff] }
 0x3b4   :  { %v22104_v28 = vsel %vm8466_vm8, %v9585_v32, %v9614_v53  ;;  %8642 = vst [vmem:[#allocation3 + $0xc1] sm:$0xff] %v22093_v43  ;;  %8805 = vst [vmem:[#allocation3 + $0xd1] sm:$0xff] %v22096_v38  ;;  %v10951_v15 = vld [vmem:[#allocation3 + $0x12] sm:$0xff]  ;;  %v15674_v10 = vld [vmem:[%s23171_s3 + $0x40] sm:$0xff] }
 0x3b5   :  { %8968 = vst [vmem:[#allocation3 + $0xe1] sm:$0xff] %v22099_v60  ;;  %9620 = vst [vmem:[#allocation3 + $0x121] sm:$0xff] %v22104_v28  ;;  %v10952_v58 = vld [vmem:[#allocation3 + $0x22] sm:$0xff]  ;;  %v10953_v41 = vld [vmem:[#allocation3 + $0x32] sm:$0xff] }
 0x3b6   :  { %v10954_v9 = vld [vmem:[#allocation3 + $0x42] sm:$0xff]  ;;  %v10955_v32 = vld [vmem:[#allocation3 + $0x52] sm:$0xff] }
 0x3b7   :  { %v10956_v20 = vld [vmem:[#allocation3 + $0x62] sm:$0xff]  ;;  %v10957_v7 = vld [vmem:[#allocation3 + $0x72] sm:$0xff] }
 0x3b8   :  { %v9646_v30 = vld [vmem:[#allocation3 + $0xb0] sm:$0xff]  ;;  %v10958_v3 = vld [vmem:[#allocation3 + $0xa2] sm:$0xff] }
 0x3b9   :  { %17524 = vmatprep.mubr.msk.f32.mxu0 %vm75_vm0, %v9646_v30  ;;  %v9650_v5 = vld [vmem:[#allocation3 + $0xf0] sm:$0xff]  ;;  %v11184_v40 = vld [vmem:[#allocation3 + $0x82] sm:$0xff] }
 0x3ba   :  { %v9651_v50 = vld [vmem:[#allocation3 + $0x100] sm:$0xff]  ;;  %v9652_v0 = vld [vmem:[#allocation3 + $0x110] sm:$0xff]  ;;  %v11788_v53 = vld [vmem:[#allocation4 + $0x48] sm:$0x3] }
 0x3bb   :  { %v9647_v17 = vld [vmem:[#allocation3 + $0xc0] sm:$0xff]  ;;  %v9648_v34 = vld [vmem:[#allocation3 + $0xd0] sm:$0xff] }
 0x3bc   :  { %17525 = vmatmul.mubr.msk.f32.gmra.mrb[40].mxu0 %vm75_vm0, %v9647_v17  ;;  %v9649_v56 = vld [vmem:[#allocation3 + $0xe0] sm:$0xff]  ;;  %v10959_v45 = vld [vmem:[#allocation3 + $0xb2] sm:$0xff] }
 0x3bd   :  { %17527 = vmatprep.mubr.msk.f32.mxu0 %vm75_vm0, %v9648_v34  ;;  %v9653_v37 = vld [vmem:[#allocation3 + $0x120] sm:$0xff]  ;;  %v10961_v19 = vld [vmem:[#allocation3 + $0xd2] sm:$0xff] }
 0x3be   :  { %v10960_v55 = vld [vmem:[#allocation3 + $0xc2] sm:$0xff]  ;;  %v10965_v52 = vld [vmem:[#allocation3 + $0x112] sm:$0xff] }
 0x3bf   :  { %v10962_v1 = vld [vmem:[#allocation3 + $0xe2] sm:$0xff]  ;;  %v11411_v47 = vld [vmem:[#allocation3 + $0x92] sm:$0xff] }
 0x3c0   :  { %17528 = vmatmul.mubr.msk.f32.gmra.mrb[42].mxu0 %vm75_vm0, %v9649_v56  ;;  %v10964_v51 = vld [vmem:[#allocation3 + $0x102] sm:$0xff]  ;;  %v11419_v4 = vld [vmem:[#allocation3 + $0x132] sm:$0xff] }
 0x3c1   :  { %17530 = vmatprep.mubr.msk.f32.mxu0 %vm75_vm0, %v9650_v5  ;;  %v11192_v49 = vld [vmem:[#allocation3 + $0x122] sm:$0xff]  ;;  %v15692_v22 = vld [vmem:[%s23173_s5 + $0x10] sm:$0xff] }
 0x3c4   :  { %17531 = vmatmul.mubr.msk.f32.gmra.mrb[44].mxu0 %vm75_vm0, %v9651_v50 }
 0x3c5   :  { %17533 = vmatprep.mubr.msk.f32.mxu0 %vm75_vm0, %v9652_v0 }
 0x3c8   :  { %17534 = vmatmul.mubr.msk.f32.gmra.mrb[46].mxu0 %vm75_vm0, %v9653_v37 }
 0x3c9   :  { %17538 = vmatprep.mubr.msk.f32.mxu0 %vm75_vm0, %v22118_v26 }
 0x3cc   :  { %17539 = vmatmul.mubr.msk.f32.vlgmr.msra.gmra.mrb[32].mxu0 %vm75_vm0, %v9622_v2 }
 0x3cd   :  { %17541 = vmatprep.mubr.msk.f32.mxu0 %vm75_vm0, %v9623_v44  ;;  %17563 = vmatpush3.msra.mxu0 %v21818_v42  ;;  %v15606_v42 = vld [vmem:[%s23171_s3 + $0x20] sm:$0xff] }
 0x3ce   :  { %17588 = vmatprep.subr.mxu0 %v15589_v24 }
 0x3d0   :  { %17542 = vmatmul.mubr.msk.f32.gmra.mrb[34].mxu0 %vm75_vm0, %v9624_v57 }
 0x3d1   :  { %17544 = vmatprep.mubr.msk.f32.mxu0 %vm75_vm0, %v9625_v46 }
 0x3d4   :  { %17545 = vmatmul.mubr.msk.f32.gmra.mrb[36].mxu0 %vm75_vm0, %v9626_v31 }
 0x3d5   :  { %17547 = vmatprep.mubr.msk.f32.mxu0 %vm75_vm0, %v9627_v14 }
 0x3d8   :  { %17548 = vmatmul.mubr.msk.f32.gmra.mrb[38].mxu0 %vm75_vm0, %v9628_v54 }
 0x3d9   :  { %17550 = vmatprep.mubr.msk.f32.mxu0 %vm75_vm0, %v22118_v26 }
 0x3dc   :  { %17551 = vmatmul.mubr.msk.f32.gmra.mrb[40].mxu0 %vm75_vm0, %v9646_v30  ;;  %v12342_v30 = vld [vmem:[#allocation4 + $0x42] sm:$0x3] }
 0x3dd   :  { %17553 = vmatprep.mubr.msk.f32.mxu0 %vm75_vm0, %v9647_v17 }
 0x3e0   :  { %17554 = vmatmul.mubr.msk.f32.gmra.mrb[42].mxu0 %vm75_vm0, %v9648_v34 }
 0x3e1   :  { %17556 = vmatprep.mubr.msk.f32.mxu0 %vm75_vm0, %v9649_v56 }
 0x3e4   :  { %17557 = vmatmul.mubr.msk.f32.gmra.mrb[44].mxu0 %vm75_vm0, %v9650_v5 }
 0x3e5   :  { %17559 = vmatprep.mubr.msk.f32.mxu0 %vm75_vm0, %v9651_v50 }
 0x3e8   :  { %17560 = vmatmul.mubr.msk.f32.gmra.mrb[46].mxu0 %vm75_vm0, %v9652_v0 }
 0x3e9   :  { %17564 = vmatprep.mubr.msk.f32.mxu0 %vm75_vm0, %v9623_v44 }
 0x3ec   :  { %17565 = vmatmul.mubr.msk.f32.vlgmr.msra.gmra.mrb[32].mxu0 %vm75_vm0, %v9624_v57  ;;  %v22312_v57 = vsel %vm11726_vm10, %v12342_v30, -inf }
 0x3ed   :  { %17567 = vmatprep.mubr.msk.f32.mxu0 %vm75_vm0, %v9625_v46  ;;  %17589 = vmatpush3.msra.mxu0 %v15589_v24  ;;  %v11793_v46 = vld [vmem:[#allocation4 + $0xe8] sm:$0x3] }
 0x3ee   :  { %17614 = vmatprep.subr.mxu0 %v15606_v42 }
 0x3f0   :  { %17568 = vmatmul.mubr.msk.f32.gmra.mrb[34].mxu0 %vm75_vm0, %v9626_v31  ;;  %v11808_v31 = vsel %vm11726_vm10, %v11788_v53, -inf }
 0x3f1   :  { %17570 = vmatprep.mubr.msk.f32.mxu0 %vm75_vm0, %v9627_v14 }
 0x3f4   :  { %17571 = vmatmul.mubr.msk.f32.gmra.mrb[36].mxu0 %vm75_vm0, %v9628_v54 }
 0x3f5   :  { %17573 = vmatprep.mubr.msk.f32.mxu0 %vm75_vm0, %v10048_v8  ;;  %v11809_v8 = vrot.slane %v11808_v31, 4 }
 0x3f8   :  { %17574 = vmatmul.mubr.msk.f32.gmra.mrb[38].mxu0 %vm75_vm0, %v22118_v26 }
 0x3f9   :  { %17576 = vmatprep.mubr.msk.f32.mxu0 %vm75_vm0, %v9647_v17  ;;  %v11790_v17 = vld [vmem:[#allocation4 + $0x88] sm:$0x3] }
 0x3fc   :  { %17577 = vmatmul.mubr.msk.f32.gmra.mrb[40].mxu0 %vm75_vm0, %v9648_v34  ;;  %v11722_v34 = vld [vmem:[#allocation4 + $0x80] sm:$0x3] }
 0x3fd   :  { %17579 = vmatprep.mubr.msk.f32.mxu0 %vm75_vm0, %v9649_v56  ;;  %v22306_v2 = vsel %vm11726_vm10, %v11722_v34, -inf }
 0x3fe   :  { %v11756_v54 = vrot.slane %v22306_v2, 4 }
 0x400   :  { %17580 = vmatmul.mubr.msk.f32.gmra.mrb[42].mxu0 %vm75_vm0, %v9650_v5 }
 0x401   :  { %17582 = vmatprep.mubr.msk.f32.mxu0 %vm75_vm0, %v9651_v50  ;;  %v11791_v50 = vld [vmem:[#allocation4 + $0xa8] sm:$0x3] }
 0x404   :  { %17583 = vmatmul.mubr.msk.f32.gmra.mrb[44].mxu0 %vm75_vm0, %v9652_v0  ;;  %v11723_v0 = vld [vmem:[#allocation4 + $0xa0] sm:$0x3] }
 0x405   :  { %17585 = vmatprep.mubr.msk.f32.mxu0 %vm75_vm0, %v9653_v37  ;;  %v22309_v44 = vsel %vm11726_vm10, %v11723_v0, -inf }
 0x408   :  { %17586 = vmatmul.mubr.msk.f32.gmra.mrb[46].mxu0 %vm75_vm0, %v22118_v26  ;;  %v11792_v26 = vld [vmem:[#allocation4 + $0xc8] sm:$0x3] }
 0x409   :  { %17590 = vmatprep.mubr.msk.f32.mxu0 %vm75_vm0, %v10269_v16 }
 0x40c   :  { %17591 = vmatmul.mubr.msk.f32.vlgmr.msra.gmra.mrb[32].mxu0 %vm75_vm0, %v10270_v21 }
 0x40d   :  { %17593 = vmatprep.mubr.msk.f32.mxu0 %vm75_vm0, %v10271_v59  ;;  %17615 = vmatpush3.msra.mxu0 %v15606_v42  ;;  %v11763_v42 = vrot.slane %v22309_v44, 4 }
 0x40e   :  { %17640 = vmatprep.subr.mxu0 %v15623_v35 }
 0x410   :  { %17594 = vmatmul.mubr.msk.f32.gmra.mrb[34].mxu0 %vm75_vm0, %v10272_v33 }
 0x411   :  { %17596 = vmatprep.mubr.msk.f32.mxu0 %vm75_vm0, %v10273_v39 }
 0x414   :  { %17597 = vmatmul.mubr.msk.f32.gmra.mrb[36].mxu0 %vm75_vm0, %v10274_v62 }
 0x415   :  { %17599 = vmatprep.mubr.msk.f32.mxu0 %vm75_vm0, %v10275_v29 }
 0x418   :  { %17600 = vmatmul.mubr.msk.f32.gmra.mrb[38].mxu0 %vm75_vm0, %v10276_v25 }
 0x419   :  { %17602 = vmatprep.mubr.msk.f32.mxu0 %vm75_vm0, %v10277_v6 }
 0x41c   :  { %17603 = vmatmul.mubr.msk.f32.gmra.mrb[40].mxu0 %vm75_vm0, %v22065_v12 }
 0x41d   :  { %17605 = vmatprep.mubr.msk.f32.mxu0 %vm75_vm0, %v22093_v43 }
 0x420   :  { %17606 = vmatmul.mubr.msk.f32.gmra.mrb[42].mxu0 %vm75_vm0, %v22096_v38 }
 0x421   :  { %17608 = vmatprep.mubr.msk.f32.mxu0 %vm75_vm0, %v22099_v60 }
 0x424   :  { %17609 = vmatmul.mubr.msk.f32.gmra.mrb[44].mxu0 %vm75_vm0, %v22078_v11 }
 0x425   :  { %17611 = vmatprep.mubr.msk.f32.mxu0 %vm75_vm0, %v22084_v63 }
 0x428   :  { %17612 = vmatmul.mubr.msk.f32.gmra.mrb[46].mxu0 %vm75_vm0, %v22087_v23 }
 0x429   :  { %17616 = vmatprep.mubr.msk.f32.mxu0 %vm75_vm0, %v10270_v21  ;;  %v11822_v21 = vsel %vm11726_vm10, %v11790_v17, -inf  ;;  %v11725_v17 = vld [vmem:[#allocation4 + $0xe0] sm:$0x3] }
 0x42c   :  { %17617 = vmatmul.mubr.msk.f32.vlgmr.msra.gmra.mrb[32].mxu0 %vm75_vm0, %v10271_v59 }
 0x42d   :  { %17619 = vmatprep.mubr.msk.f32.mxu0 %vm75_vm0, %v10272_v33  ;;  %17641 = vmatpush3.msra.mxu0 %v15623_v35  ;;  %v11829_v35 = vsel %vm11726_vm10, %v11791_v50, -inf }
 0x42e   :  { %17666 = vmatprep.subr.mxu0 %v15640_v27 }
 0x430   :  { %17620 = vmatmul.mubr.msk.f32.gmra.mrb[34].mxu0 %vm75_vm0, %v10273_v39 }
 0x431   :  { %17622 = vmatprep.mubr.msk.f32.mxu0 %vm75_vm0, %v10274_v62 }
 0x434   :  { %17623 = vmatmul.mubr.msk.f32.gmra.mrb[36].mxu0 %vm75_vm0, %v10275_v29 }
 0x435   :  { %17625 = vmatprep.mubr.msk.f32.mxu0 %vm75_vm0, %v10276_v25 }
 0x438   :  { %17626 = vmatmul.mubr.msk.f32.gmra.mrb[38].mxu0 %vm75_vm0, %v10503_v13 }
 0x439   :  { %17628 = vmatprep.mubr.msk.f32.mxu0 %vm75_vm0, %v22065_v12  ;;  %v10963_v12 = vld [vmem:[#allocation3 + $0xf2] sm:$0xff] }
 0x43c   :  { %17629 = vmatmul.mubr.msk.f32.gmra.mrb[40].mxu0 %vm75_vm0, %v22093_v43 }
 0x43d   :  { %17631 = vmatprep.mubr.msk.f32.mxu0 %vm75_vm0, %v22096_v38 }
 0x440   :  { %17632 = vmatmul.mubr.msk.f32.gmra.mrb[42].mxu0 %vm75_vm0, %v22099_v60 }
 0x441   :  { %17634 = vmatprep.mubr.msk.f32.mxu0 %vm75_vm0, %v22078_v11 }
 0x444   :  { %17635 = vmatmul.mubr.msk.f32.gmra.mrb[44].mxu0 %vm75_vm0, %v22084_v63 }
 0x445   :  { %17637 = vmatprep.mubr.msk.f32.mxu0 %vm75_vm0, %v22087_v23 }
 0x448   :  { %17638 = vmatmul.mubr.msk.f32.gmra.mrb[46].mxu0 %vm75_vm0, %v22104_v28 }
 0x449   :  { %17642 = vmatprep.mubr.msk.f32.mxu0 %vm75_vm0, %v10271_v59 }
 0x44c   :  { %17643 = vmatmul.mubr.msk.f32.vlgmr.msra.gmra.mrb[32].mxu0 %vm75_vm0, %v10272_v33  ;;  %v11823_v33 = vrot.slane %v11822_v21, 4 }
 0x44d   :  { %17645 = vmatprep.mubr.msk.f32.mxu0 %vm75_vm0, %v10273_v39  ;;  %17667 = vmatpush3.msra.mxu0 %v15640_v27  ;;  %v11830_v39 = vrot.slane %v11829_v35, 4 }
 0x44e   :  { %17692 = vmatprep.subr.mxu0 %v15657_v36 }
 0x450   :  { %17646 = vmatmul.mubr.msk.f32.gmra.mrb[34].mxu0 %vm75_vm0, %v10274_v62  ;;  %v11836_v62 = vsel %vm11726_vm10, %v11792_v26, -inf }
 0x451   :  { %17648 = vmatprep.mubr.msk.f32.mxu0 %vm75_vm0, %v10275_v29  ;;  %v11810_v29 = vmax.f32 %v11808_v31, %v11809_v8  ;;  %v11837_v6 = vrot.slane %v11836_v62, 4  ;;  %v11764_v31 = vmax.f32 %v22309_v44, %v11763_v42  ;;  %v12033_v8 = vld [vmem:[#allocation4 + $0x90] sm:$0x3] }
 0x454   :  { %17649 = vmatmul.mubr.msk.f32.gmra.mrb[36].mxu0 %vm75_vm0, %v10276_v25  ;;  %v11843_v25 = vsel %vm11726_vm10, %v11793_v46, -inf  ;;  %v11757_v46 = vmax.f32 %v22306_v2, %v11756_v54  ;;  %v11765_v54 = vrot.slane %v11764_v31, 2 }
 0x455   :  { %17651 = vmatprep.mubr.msk.f32.mxu0 %vm75_vm0, %v10503_v13 }
 0x456   :  { %v11758_v44 = vrot.slane %v11757_v46, 2 }
 0x458   :  { %17652 = vmatmul.mubr.msk.f32.gmra.mrb[38].mxu0 %vm75_vm0, %v10730_v48  ;;  %v11831_v48 = vmax.f32 %v11829_v35, %v11830_v39  ;;  %v11776_v35 = vsel %vm11726_vm10, %v11725_v17, -inf }
 0x459   :  { %17654 = vmatprep.mubr.msk.f32.mxu0 %vm75_vm0, %v22093_v43  ;;  %v11720_v43 = vld [vmem:[#allocation4 + $0x40] sm:$0x3]  ;;  %v11777_v42 = vrot.slane %v11776_v35, 4 }
 0x45c   :  { %17655 = vmatmul.mubr.msk.f32.gmra.mrb[40].mxu0 %vm75_vm0, %v22096_v38  ;;  %v11789_v38 = vld [vmem:[#allocation4 + $0x68] sm:$0x3] }
 0x45d   :  { %17657 = vmatprep.mubr.msk.f32.mxu0 %vm75_vm0, %v22099_v60  ;;  %v11721_v60 = vld [vmem:[#allocation4 + $0x60] sm:$0x3]  ;;  %v11815_v16 = vsel %vm11726_vm10, %v11789_v38, -inf  ;;  %v22333_v38 = vld [vmem:[%s23173_s5 + $0x8] sm:$0xff] }
 0x45e   :  { %v11748_v5 = vsel %vm11726_vm10, %v11721_v60, -inf  ;;  %v11816_v59 = vrot.slane %v11815_v16, 4 }
 0x45f   :  { %v11749_v37 = vrot.slane %v11748_v5, 4 }
 0x460   :  { %17658 = vmatmul.mubr.msk.f32.gmra.mrb[42].mxu0 %vm75_vm0, %v22078_v11  ;;  %v23207_v11 = vmov 0.0|0.0   ;;  %v11817_v13 = vmax.f32 %v11815_v16, %v11816_v59  ;;  %v22357_v59 = vld [vmem:[%s23173_s5 + $0x20] sm:$0xff] }
 0x461   :  { %17660 = vmatprep.mubr.msk.f32.mxu0 %vm75_vm0, %v22084_v63  ;;  %17894 = vmatprep.subr.bf16.mxu1 %v23207_v11  ;;  %v15693_v63 = vld [vmem:[%s23173_s5 + $0x18] sm:$0xff]  ;;  %v11750_v14 = vmax.f32 %v11748_v5, %v11749_v37  ;;  %23297 = vst [vmem:[#allocation8_spill] sm:$0xff] %v22357_v59 }
 0x464   :  { %17661 = vmatmul.mubr.msk.f32.gmra.mrb[44].mxu0 %vm75_vm0, %v22087_v23  ;;  %v17895_v23 = vpack.c.bf16 %v15693_v63, %v15692_v22 }
 0x465   :  { %17663 = vmatprep.mubr.msk.f32.mxu0 %vm75_vm0, %v22104_v28  ;;  %v11741_v28 = vsel %vm11726_vm10, %v11720_v43, -inf  ;;  %v22328_v43 = vld [vmem:[%s23173_s5] sm:$0xff] }
 0x466   :  { %17896 = vmatpush3.bf16.msra.mxu1 %v17895_v23  ;;  %v11742_v56 = vrot.slane %v11741_v28, 4 }
 0x467   :  { %17897 = vmatprep.subr.bf16.mxu1 %v23207_v11 }
 0x468   :  { %17664 = vmatmul.mubr.msk.f32.gmra.mrb[46].mxu0 %vm75_vm0, %v10738_v18  ;;  %v11743_v24 = vmax.f32 %v11741_v28, %v11742_v56  ;;  %v11844_v18 = vrot.slane %v11843_v25, 4  ;;  %v12031_v56 = vld [vmem:[#allocation4 + $0x50] sm:$0x3] }
 0x469   :  { %17668 = vmatprep.mubr.msk.f32.mxu0 %vm75_vm0, %v10950_v61  ;;  %v11811_v61 = vrot.slane %v11810_v29, 2  ;;  %v12051_v2 = vsel %vm11726_vm10, %v12031_v56, -inf  ;;  %v22384_v56 = vld [vmem:[%s23173_s5 + $0x38] sm:$0xff] }
 0x46a   :  { %v11744_v27 = vrot.slane %v11743_v24, 2  ;;  %23300 = vst [vmem:[#allocation20_spill] sm:$0xff] %v22384_v56 }
 0x46c   :  { %17669 = vmatmul.mubr.msk.f32.vlgmr.msra.gmra.mrb[32].mxu0 %vm75_vm0, %v10951_v15 }
 0x46d   :  { %17671 = vmatprep.mubr.msk.f32.mxu0 %vm75_vm0, %v10952_v58  ;;  %17693 = vmatpush3.msra.mxu0 %v15657_v36  ;;  %v11824_v36 = vmax.f32 %v11822_v21, %v11823_v33  ;;  %v22362_v33 = vld [vmem:[%s23173_s5 + $0x28] sm:$0xff] }
 0x46e   :  { %17718 = vmatprep.subr.mxu0 %v15674_v10  ;;  %23298 = vst [vmem:[#allocation19_spill] sm:$0xff] %v22362_v33  ;;  %v12810_v33 = vld [vmem:[#allocation4 + $0xba] sm:$0x3] }
 0x470   :  { %17672 = vmatmul.mubr.msk.f32.gmra.mrb[34].mxu0 %vm75_vm0, %v10953_v41 }
 0x471   :  { %17674 = vmatprep.mubr.msk.f32.mxu0 %vm75_vm0, %v10954_v9 }
 0x474   :  { %17675 = vmatmul.mubr.msk.f32.gmra.mrb[36].mxu0 %vm75_vm0, %v10955_v32 }
 0x475   :  { %17677 = vmatprep.mubr.msk.f32.mxu0 %vm75_vm0, %v10956_v20 }
 0x478   :  { %17678 = vmatmul.mubr.msk.f32.gmra.mrb[38].mxu0 %vm75_vm0, %v10957_v7 }
 0x479   :  { %17680 = vmatprep.mubr.msk.f32.mxu0 %vm75_vm0, %v10958_v3  ;;  %v11724_v3 = vld [vmem:[#allocation4 + $0xc0] sm:$0x3] }
 0x47c   :  { %17681 = vmatmul.mubr.msk.f32.gmra.mrb[40].mxu0 %vm75_vm0, %v10959_v45 }
 0x47d   :  { %17683 = vmatprep.mubr.msk.f32.mxu0 %vm75_vm0, %v10960_v55 }
 0x480   :  { %17684 = vmatmul.mubr.msk.f32.gmra.mrb[42].mxu0 %vm75_vm0, %v10961_v19 }
 0x481   :  { %17686 = vmatprep.mubr.msk.f32.mxu0 %vm75_vm0, %v10962_v1 }
 0x484   :  { %17687 = vmatmul.mubr.msk.f32.gmra.mrb[44].mxu0 %vm75_vm0, %v10963_v12 }
 0x485   :  { %17689 = vmatprep.mubr.msk.f32.mxu0 %vm75_vm0, %v10964_v51 }
 0x488   :  { %17690 = vmatmul.mubr.msk.f32.gmra.mrb[46].mxu0 %vm75_vm0, %v10965_v52 }
 0x489   :  { %17694 = vmatprep.mubr.msk.f32.mxu0 %vm75_vm0, %v10951_v15  ;;  %v11838_v15 = vmax.f32 %v11836_v62, %v11837_v6  ;;  %v12034_v62 = vld [vmem:[#allocation4 + $0xb0] sm:$0x3]  ;;  %v12052_v6 = vrot.slane %v12051_v2, 4 }
 0x48c   :  { %17695 = vmatmul.mubr.msk.f32.vlgmr.msra.gmra.mrb[32].mxu0 %vm75_vm0, %v10952_v58 }
 0x48d   :  { %17697 = vmatprep.mubr.msk.f32.mxu0 %vm75_vm0, %v10953_v41  ;;  %17719 = vmatpush3.msra.mxu0 %v15674_v10  ;;  %v11745_v10 = vmax.f32 %v11743_v24, %v11744_v27  ;;  %v12065_v27 = vsel %vm11726_vm10, %v12033_v8, -inf  ;;  %v12187_v8 = vld [vmem:[#allocation4 + $0x58] sm:$0x3] }
 0x490   :  { %17698 = vmatmul.mubr.msk.f32.gmra.mrb[34].mxu0 %vm75_vm0, %v10954_v9 }
 0x491   :  { %17700 = vmatprep.mubr.msk.f32.mxu0 %vm75_vm0, %v10955_v32 }
 0x494   :  { %17701 = vmatmul.mubr.msk.f32.gmra.mrb[36].mxu0 %vm75_vm0, %v10956_v20 }
 0x495   :  { %17703 = vmatprep.mubr.msk.f32.mxu0 %vm75_vm0, %v10957_v7 }
 0x498   :  { %17704 = vmatmul.mubr.msk.f32.gmra.mrb[38].mxu0 %vm75_vm0, %v11184_v40 }
 0x499   :  { %17706 = vmatprep.mubr.msk.f32.mxu0 %vm75_vm0, %v10959_v45  ;;  %v11839_v45 = vrot.slane %v11838_v15, 2 }
 0x49c   :  { %17707 = vmatmul.mubr.msk.f32.gmra.mrb[40].mxu0 %vm75_vm0, %v10960_v55 }
 0x49d   :  { %17709 = vmatprep.mubr.msk.f32.mxu0 %vm75_vm0, %v10961_v19 }
 0x4a0   :  { %17710 = vmatmul.mubr.msk.f32.gmra.mrb[42].mxu0 %vm75_vm0, %v10962_v1 }
 0x4a1   :  { %17712 = vmatprep.mubr.msk.f32.mxu0 %vm75_vm0, %v10963_v12 }
 0x4a4   :  { %17713 = vmatmul.mubr.msk.f32.gmra.mrb[44].mxu0 %vm75_vm0, %v10964_v51 }
 0x4a5   :  { %17715 = vmatprep.mubr.msk.f32.mxu0 %vm75_vm0, %v10965_v52 }
 0x4a8   :  { %17716 = vmatmul.mubr.msk.f32.gmra.mrb[46].mxu0 %vm75_vm0, %v11192_v49 }
 0x4a9   :  { %17720 = vmatprep.mubr.msk.f32.mxu0 %vm75_vm0, %v10952_v58  ;;  %v11751_v58 = vrot.slane %v11750_v14, 2 }
 0x4ac   :  { %17721 = vmatmul.mubr.msk.f32.vlgmr.msra.gmra.mrb[32].mxu0 %vm75_vm0, %v10953_v41  ;;  %v11818_v41 = vrot.slane %v11817_v13, 2 }
 0x4ad   :  { %17723 = vmatprep.mubr.msk.f32.mxu0 %vm75_vm0, %v10954_v9  ;;  %v11825_v9 = vrot.slane %v11824_v36, 2 }
 0x4b0   :  { %17724 = vmatmul.mubr.msk.f32.gmra.mrb[34].mxu0 %vm75_vm0, %v10955_v32  ;;  %v11832_v32 = vrot.slane %v11831_v48, 2 }
 0x4b1   :  { %17726 = vmatprep.mubr.msk.f32.mxu0 %vm75_vm0, %v10956_v20  ;;  %v11845_v20 = vmax.f32 %v11843_v25, %v11844_v18 }
 0x4b4   :  { %17727 = vmatmul.mubr.msk.f32.gmra.mrb[36].mxu0 %vm75_vm0, %v10957_v7  ;;  %v11812_v7 = vmax.f32 %v11810_v29, %v11811_v61 }
 0x4b5   :  { %17729 = vmatprep.mubr.msk.f32.mxu0 %vm75_vm0, %v11184_v40 }
 0x4b6   :  { %v11813_v40 = vrot.slane %v11812_v7, 1 }
 0x4b8   :  { %17730 = vmatmul.mubr.msk.f32.gmra.mrb[38].mxu0 %vm75_vm0, %v11411_v47  ;;  %v22335_v60 = vmax.f32 %v11812_v7, %v11813_v40  ;;  %v12035_v7 = vld [vmem:[#allocation4 + $0xd0] sm:$0x3] }
 0x4b9   :  { %17732 = vmatprep.mubr.msk.f32.mxu0 %vm75_vm0, %v10960_v55  ;;  %v11746_v55 = vrot.slane %v11745_v10, 1 }
 0x4bb   :  { %v22322_v47 = vmax.f32 %v11745_v10, %v11746_v55  ;;  %v12066_v10 = vrot.slane %v12065_v27, 4 }
 0x4bc   :  { %17733 = vmatmul.mubr.msk.f32.gmra.mrb[40].mxu0 %vm75_vm0, %v10961_v19  ;;  %v11752_v19 = vmax.f32 %v11750_v14, %v11751_v58  ;;  %v12032_v14 = vld [vmem:[#allocation4 + $0x70] sm:$0x3]  ;;  %v12072_v58 = vsel %vm11726_vm10, %v12034_v62, -inf }
 0x4bd   :  { %17735 = vmatprep.mubr.msk.f32.mxu0 %vm75_vm0, %v10962_v1  ;;  %v11819_v1 = vmax.f32 %v11817_v13, %v11818_v41  ;;  %v12058_v25 = vsel %vm11726_vm10, %v12032_v14, -inf  ;;  %v11759_v13 = vmax.f32 %v11757_v46, %v11758_v44 }
 0x4be   :  { %v11753_v34 = vrot.slane %v11752_v19, 1  ;;  %v12059_v18 = vrot.slane %v12058_v25, 4 }
 0x4bf   :  { %v11820_v22 = vrot.slane %v11819_v1, 1  ;;  %v11760_v41 = vrot.slane %v11759_v13, 1 }
 0x4c0   :  { %17736 = vmatmul.mubr.msk.f32.gmra.mrb[42].mxu0 %vm75_vm0, %v10963_v12  ;;  %v11826_v12 = vmax.f32 %v11824_v36, %v11825_v9  ;;  %v22347_v24 = vmax.f32 %v11752_v19, %v11753_v34  ;;  %v11766_v36 = vmax.f32 %v11764_v31, %v11765_v54  ;;  %v12067_v19 = vmax.f32 %v12065_v27, %v12066_v10  ;;  %v22379_v34 = vld [vmem:[%s23173_s5 + $0x30] sm:$0xff]  ;;  %v12188_v54 = vld [vmem:[#allocation4 + $0x78] sm:$0x3] }
 0x4c1   :  { %17738 = vmatprep.mubr.msk.f32.mxu0 %vm75_vm0, %v10964_v51  ;;  %v11833_v51 = vmax.f32 %v11831_v48, %v11832_v32  ;;  %v22339_v5 = vmax.f32 %v11819_v1, %v11820_v22  ;;  %v11778_v48 = vmax.f32 %v11776_v35, %v11777_v42  ;;  %v12073_v1 = vrot.slane %v12072_v58, 4  ;;  %23299 = vst [vmem:[#allocation9_spill] sm:$0xff] %v22379_v34  ;;  %v12191_v10 = vld [vmem:[#allocation4 + $0xd8] sm:$0x3]  ;;  %v12657_v34 = vld [vmem:[#allocation4 + $0xf2] sm:$0x3] }
 0x4c2   :  { %v11827_v63 = vrot.slane %v11826_v12, 1  ;;  %v11767_v9 = vrot.slane %v11766_v36, 1  ;;  %v12068_v22 = vrot.slane %v12067_v19, 2 }
 0x4c3   :  { %v11834_v23 = vrot.slane %v11833_v51, 1  ;;  %v11779_v32 = vrot.slane %v11778_v48, 2 }
 0x4c4   :  { %17739 = vmatmul.mubr.msk.f32.gmra.mrb[44].mxu0 %vm75_vm0, %v10965_v52  ;;  %v11846_v52 = vrot.slane %v11845_v20, 2  ;;  %v22341_v50 = vmax.f32 %v11826_v12, %v11827_v63  ;;  %v22370_v12 = vmax.f32 %v11759_v13, %v11760_v41  ;;  %v12074_v63 = vmax.f32 %v12072_v58, %v12073_v1 }
 0x4c5   :  { %17741 = vmatprep.mubr.msk.f32.mxu0 %vm75_vm0, %v11192_v49  ;;  %v11840_v49 = vmax.f32 %v11838_v15, %v11839_v45  ;;  %v22343_v0 = vmax.f32 %v11833_v51, %v11834_v23  ;;  %v12053_v15 = vmax.f32 %v12051_v2, %v12052_v6  ;;  %v12036_v45 = vld [vmem:[#allocation4 + $0xf0] sm:$0x3]  ;;  %v22372_v51 = vmax.f32 %v11766_v36, %v11767_v9 }
 0x4c6   :  { %v11847_v53 = vmax.f32 %v11845_v20, %v11846_v52  ;;  %v12060_v20 = vmax.f32 %v12058_v25, %v12059_v18  ;;  %v11780_v52 = vmax.f32 %v11778_v48, %v11779_v32  ;;  %v12086_v17 = vsel %vm11726_vm10, %v12036_v45, -inf  ;;  %v12189_v25 = vld [vmem:[#allocation4 + $0x98] sm:$0x3] }
 0x4c7   :  { %v11841_v28 = vrot.slane %v11840_v49, 1  ;;  %v12054_v55 = vrot.slane %v12053_v15, 2  ;;  %v12069_v31 = vmax.f32 %v12067_v19, %v12068_v22  ;;  %v12075_v14 = vrot.slane %v12074_v63, 2  ;;  %v12190_v48 = vld [vmem:[#allocation4 + $0xb8] sm:$0x3] }
 0x4c8   :  { %17742 = vmatmul.mubr.msk.f32.gmra.mrb[46].mxu0 %vm75_vm0, %v11419_v4  ;;  %v11769_v4 = vsel %vm11726_vm10, %v11724_v3, -inf  ;;  %v11848_v37 = vrot.slane %v11847_v53, 1  ;;  %v12061_v40 = vrot.slane %v12060_v20, 2  ;;  %v11781_v23 = vrot.slane %v11780_v52, 1 }
 0x4c9   :  { %v22345_v26 = vmax.f32 %v11840_v49, %v11841_v28  ;;  %v11770_v21 = vrot.slane %v11769_v4, 4  ;;  %v12079_v28 = vsel %vm11726_vm10, %v12035_v7, -inf  ;;  %v12087_v44 = vrot.slane %v12086_v17, 4 }
 0x4ca   :  { %v22351_v16 = vmax.f32 %v11847_v53, %v11848_v37  ;;  %v12062_v53 = vmax.f32 %v12060_v20, %v12061_v40  ;;  %v12080_v2 = vrot.slane %v12079_v28, 4  ;;  %v12070_v62 = vrot.slane %v12069_v31, 1  ;;  %v12192_v20 = vld [vmem:[#allocation4 + $0xf8] sm:$0x3] }
 0x4cb   :  { %v11771_v29 = vmax.f32 %v11769_v4, %v11770_v21  ;;  %v12055_v4 = vmax.f32 %v12053_v15, %v12054_v55  ;;  %v22388_v21 = vmax.f32 %v11780_v52, %v11781_v23  ;;  %v12088_v36 = vmax.f32 %v12086_v17, %v12087_v44  ;;  %v22409_v44 = vld [vmem:[%s23173_s5 + $0x40] sm:$0xff] }
 0x4cc   :  { %v12063_v35 = vrot.slane %v12062_v53, 1  ;;  %v12081_v13 = vmax.f32 %v12079_v28, %v12080_v2  ;;  %v12207_v18 = vsel %vm11726_vm10, %v12187_v8, -inf  ;;  %v12214_v41 = vsel %vm11726_vm10, %v12188_v54, -inf  ;;  %23301 = vst [vmem:[#allocation10_spill] sm:$0xff] %v22409_v44  ;;  %v22414_v54 = vld [vmem:[%s23173_s5 + $0x48] sm:$0xff] }
 0x4cd   :  { %v11772_v61 = vrot.slane %v11771_v29, 2  ;;  %v12056_v46 = vrot.slane %v12055_v4, 1  ;;  %v12208_v58 = vrot.slane %v12207_v18, 4  ;;  %v12089_v32 = vrot.slane %v12088_v36, 2  ;;  %23302 = vst [vmem:[#allocation21_spill] sm:$0xff] %v22414_v54 }
 0x4ce   :  { %v22394_v27 = vmax.f32 %v12062_v53, %v12063_v35  ;;  %v12082_v9 = vrot.slane %v12081_v13, 2  ;;  %v12221_v7 = vsel %vm11726_vm10, %v12189_v25, -inf  ;;  %v12228_v1 = vsel %vm11726_vm10, %v12190_v48, -inf  ;;  %v12654_v44 = vld [vmem:[#allocation4 + $0x92] sm:$0x3] }
 0x4cf   :  { %v11773_v3 = vmax.f32 %v11771_v29, %v11772_v61  ;;  %v22390_v42 = vmax.f32 %v12055_v4, %v12056_v46  ;;  %v12076_v29 = vmax.f32 %v12074_v63, %v12075_v14  ;;  %v22397_v61 = vmax.f32 %v12069_v31, %v12070_v62 }
 0x4d0   :  { %v12209_v55 = vmax.f32 %v12207_v18, %v12208_v58  ;;  %v12222_v19 = vrot.slane %v12221_v7, 4  ;;  %v12083_v52 = vmax.f32 %v12081_v13, %v12082_v9  ;;  %v12090_v40 = vmax.f32 %v12088_v36, %v12089_v32  ;;  %v12344_v32 = vld [vmem:[#allocation4 + $0x82] sm:$0x3] }
 0x4d1   :  { %v11774_v49 = vrot.slane %v11773_v3, 1  ;;  %v12077_v15 = vrot.slane %v12076_v29, 1  ;;  %v12229_v4 = vrot.slane %v12228_v1, 4  ;;  %v12235_v23 = vsel %vm11726_vm10, %v12191_v10, -inf  ;;  %v12343_v10 = vld [vmem:[#allocation4 + $0x62] sm:$0x3] }
 0x4d2   :  { %v12210_v22 = vrot.slane %v12209_v55, 2  ;;  %v12223_v63 = vmax.f32 %v12221_v7, %v12222_v19  ;;  %v12242_v53 = vsel %vm11726_vm10, %v12192_v20, -inf  ;;  %v12084_v28 = vrot.slane %v12083_v52, 1 }
 0x4d3   :  { %v22386_v37 = vmax.f32 %v11773_v3, %v11774_v49  ;;  %v12215_v3 = vrot.slane %v12214_v41, 4  ;;  %v22401_v45 = vmax.f32 %v12076_v29, %v12077_v15  ;;  %v12091_v17 = vrot.slane %v12090_v40, 1 }
 0x4d4   :  { %v12230_v31 = vmax.f32 %v12228_v1, %v12229_v4  ;;  %v12211_v14 = vmax.f32 %v12209_v55, %v12210_v22  ;;  %v12224_v8 = vrot.slane %v12223_v63, 2  ;;  %v12236_v35 = vrot.slane %v12235_v23, 4  ;;  %v12345_v1 = vld [vmem:[#allocation4 + $0xa2] sm:$0x3] }
 0x4d5   :  { %v12216_v49 = vmax.f32 %v12214_v41, %v12215_v3  ;;  %v12243_v2 = vrot.slane %v12242_v53, 4  ;;  %v22416_v62 = vmax.f32 %v12083_v52, %v12084_v28  ;;  %v22418_v29 = vmax.f32 %v12090_v40, %v12091_v17  ;;  %v12347_v28 = vld [vmem:[#allocation4 + $0xe2] sm:$0x3] }
 0x4d6   :  { %v12231_v13 = vrot.slane %v12230_v31, 2  ;;  %v12212_v36 = vrot.slane %v12211_v14, 1  ;;  %v12225_v48 = vmax.f32 %v12223_v63, %v12224_v8  ;;  %v12237_v18 = vmax.f32 %v12235_v23, %v12236_v35 }
 0x4d7   :  { %v12217_v46 = vrot.slane %v12216_v49, 2  ;;  %23303 = vst [vmem:[#allocation11_spill] sm:$0xff] %v22416_v62  ;;  %23304 = vst [vmem:[#allocation22_spill] sm:$0xff] %v22418_v29  ;;  %v12244_v15 = vmax.f32 %v12242_v53, %v12243_v2  ;;  %v12363_v20 = vrot.slane %v22312_v57, 4  ;;  %v12369_v4 = vsel %vm11726_vm10, %v12343_v10, -inf  ;;  %v22440_v10 = vld [vmem:[%s23173_s5 + $0x50] sm:$0xff] }
 0x4d8   :  { %v12232_v41 = vmax.f32 %v12230_v31, %v12231_v13  ;;  %v22423_v3 = vmax.f32 %v12211_v14, %v12212_v36  ;;  %v12226_v7 = vrot.slane %v12225_v48, 1  ;;  %v12238_v55 = vrot.slane %v12237_v18, 2  ;;  %v12346_v53 = vld [vmem:[#allocation4 + $0xc2] sm:$0x3]  ;;  %v12497_v13 = vld [vmem:[#allocation4 + $0x4a] sm:$0x3] }
 0x4d9   :  { %v12218_v25 = vmax.f32 %v12216_v49, %v12217_v46  ;;  %v12245_v19 = vrot.slane %v12244_v15, 2  ;;  %v12364_v49 = vmax.f32 %v22312_v57, %v12363_v20  ;;  %v12370_v17 = vrot.slane %v12369_v4, 4  ;;  %23309 = vst [vmem:[#allocation25_spill] sm:$0xff] %v22440_v10 }
 0x4da   :  { %23305 = vst [vmem:[#allocation12_spill] sm:$0xff] %v22423_v3  ;;  %v12233_v40 = vrot.slane %v12232_v41, 1  ;;  %v22429_v22 = vmax.f32 %v12225_v48, %v12226_v7  ;;  %v12239_v63 = vmax.f32 %v12237_v18, %v12238_v55  ;;  %v12376_v14 = vsel %vm11726_vm10, %v12344_v32, -inf }
 0x4db   :  { %v12219_v58 = vrot.slane %v12218_v25, 1  ;;  %v12246_v23 = vmax.f32 %v12244_v15, %v12245_v19  ;;  %v12365_v31 = vrot.slane %v12364_v49, 2  ;;  %v12383_v8 = vsel %vm11726_vm10, %v12345_v1, -inf }
 0x4dc   :  { %23307 = vst [vmem:[#allocation26_spill] sm:$0xff] %v22429_v22  ;;  %v22431_v46 = vmax.f32 %v12232_v41, %v12233_v40  ;;  %v12240_v35 = vrot.slane %v12239_v63, 1  ;;  %v12377_v57 = vrot.slane %v12376_v14, 4  ;;  %v12384_v48 = vrot.slane %v12383_v8, 4 }
 0x4dd   :  { %v22425_v52 = vmax.f32 %v12218_v25, %v12219_v58  ;;  %v12247_v2 = vrot.slane %v12246_v23, 1  ;;  %v12371_v25 = vmax.f32 %v12369_v4, %v12370_v17  ;;  %v12366_v36 = vmax.f32 %v12364_v49, %v12365_v31  ;;  %v22445_v58 = vld [vmem:[%s23173_s5 + $0x58] sm:$0xff]  ;;  %v12498_v49 = vld [vmem:[#allocation4 + $0x6a] sm:$0x3] }
 0x4de   :  { %23308 = vst [vmem:[#allocation24_spill] sm:$0xff] %v22431_v46  ;;  %v12390_v18 = vsel %vm11726_vm10, %v12346_v53, -inf  ;;  %v12397_v15 = vsel %vm11726_vm10, %v12347_v28, -inf  ;;  %23310 = vst [vmem:[#allocation27_spill] sm:$0xff] %v22445_v58  ;;  %v22447_v41 = vmax.f32 %v12239_v63, %v12240_v35  ;;  %v12378_v7 = vmax.f32 %v12376_v14, %v12377_v57  ;;  %v12653_v58 = vld [vmem:[#allocation4 + $0x72] sm:$0x3] }
 0x4df   :  { %23306 = vst [vmem:[#allocation23_spill] sm:$0xff] %v22425_v52  ;;  %v22449_v32 = vmax.f32 %v12246_v23, %v12247_v2  ;;  %v12372_v20 = vrot.slane %v12371_v25, 2  ;;  %v12367_v55 = vrot.slane %v12366_v36, 1  ;;  %v12385_v19 = vmax.f32 %v12383_v8, %v12384_v48  ;;  %v12499_v2 = vld [vmem:[#allocation4 + $0x8a] sm:$0x3] }
 0x4e0   :  { %23311 = vst [vmem:[#allocation13_spill] sm:$0xff] %v22447_v41  ;;  %v12391_v1 = vrot.slane %v12390_v18, 4  ;;  %v12398_v40 = vrot.slane %v12397_v15, 4  ;;  %v12379_v53 = vrot.slane %v12378_v7, 2  ;;  %v12517_v17 = vsel %vm11726_vm10, %v12497_v13, -inf }
 0x4e1   :  { %23312 = vst [vmem:[#allocation28_spill] sm:$0xff] %v22449_v32  ;;  %v12373_v4 = vmax.f32 %v12371_v25, %v12372_v20  ;;  %v22454_v31 = vmax.f32 %v12366_v36, %v12367_v55  ;;  %v12386_v63 = vrot.slane %v12385_v19, 2  ;;  %v12518_v57 = vrot.slane %v12517_v17, 4  ;;  %v12500_v20 = vld [vmem:[#allocation4 + $0xaa] sm:$0x3] }
 0x4e2   :  { %v12392_v35 = vmax.f32 %v12390_v18, %v12391_v1  ;;  %v12399_v23 = vmax.f32 %v12397_v15, %v12398_v40  ;;  %v12380_v14 = vmax.f32 %v12378_v7, %v12379_v53  ;;  %v12524_v8 = vsel %vm11726_vm10, %v12498_v49, -inf  ;;  %v12501_v1 = vld [vmem:[#allocation4 + $0xca] sm:$0x3]  ;;  %v12808_v32 = vld [vmem:[#allocation4 + $0x7a] sm:$0x3] }
 0x4e3   :  { %v12374_v9 = vrot.slane %v12373_v4, 1  ;;  %v12387_v48 = vmax.f32 %v12385_v19, %v12386_v63  ;;  %v12525_v39 = vrot.slane %v12524_v8, 4  ;;  %v12519_v13 = vmax.f32 %v12517_v17, %v12518_v57  ;;  %v12809_v41 = vld [vmem:[#allocation4 + $0x9a] sm:$0x3] }
 0x4e4   :  { %v12393_v6 = vrot.slane %v12392_v35, 2  ;;  %v12400_v25 = vrot.slane %v12399_v23, 2  ;;  %v12381_v28 = vrot.slane %v12380_v14, 1  ;;  %v12531_v36 = vsel %vm11726_vm10, %v12499_v2, -inf }
 0x4e5   :  { %v22457_v11 = vmax.f32 %v12373_v4, %v12374_v9  ;;  %v12388_v55 = vrot.slane %v12387_v48, 1  ;;  %v12526_v40 = vmax.f32 %v12524_v8, %v12525_v39  ;;  %v12520_v53 = vrot.slane %v12519_v13, 2  ;;  %v12502_v4 = vld [vmem:[#allocation4 + $0xea] sm:$0x3]  ;;  %v22469_v39 = vld [vmem:[%s23173_s5 + $0x60] sm:$0xff] }
 0x4e6   :  { %v12394_v18 = vmax.f32 %v12392_v35, %v12393_v6  ;;  %v12401_v15 = vmax.f32 %v12399_v23, %v12400_v25  ;;  %v22460_v7 = vmax.f32 %v12380_v14, %v12381_v28  ;;  %v12532_v49 = vrot.slane %v12531_v36, 4  ;;  %23313 = vst [vmem:[#allocation29_spill] sm:$0xff] %v22469_v39  ;;  %v22474_v28 = vld [vmem:[%s23173_s5 + $0x68] sm:$0xff] }
 0x4e7   :  { %v12538_v19 = vsel %vm11726_vm10, %v12500_v20, -inf  ;;  %v22463_v63 = vmax.f32 %v12387_v48, %v12388_v55  ;;  %v12527_v10 = vrot.slane %v12526_v40, 2  ;;  %v12521_v17 = vmax.f32 %v12519_v13, %v12520_v53  ;;  %23314 = vst [vmem:[#allocation14_spill] sm:$0xff] %v22474_v28  ;;  %v12652_v48 = vld [vmem:[#allocation4 + $0x52] sm:$0x3] }
 0x4e8   :  { %v12395_v30 = vrot.slane %v12394_v18, 1  ;;  %v12402_v9 = vrot.slane %v12401_v15, 1  ;;  %v12533_v57 = vmax.f32 %v12531_v36, %v12532_v49  ;;  %v12539_v2 = vrot.slane %v12538_v19, 4 }
 0x4e9   :  { %v12545_v6 = vsel %vm11726_vm10, %v12501_v1, -inf  ;;  %v12528_v14 = vmax.f32 %v12526_v40, %v12527_v10  ;;  %v12522_v25 = vrot.slane %v12521_v17, 1  ;;  %v12552_v36 = vsel %vm11726_vm10, %v12502_v4, -inf }
 0x4ea   :  { %v22476_v35 = vmax.f32 %v12394_v18, %v12395_v30  ;;  %v22478_v23 = vmax.f32 %v12401_v15, %v12402_v9  ;;  %v12546_v8 = vrot.slane %v12545_v6, 4  ;;  %v12534_v20 = vrot.slane %v12533_v57, 2 }
 0x4eb   :  { %v12540_v13 = vmax.f32 %v12538_v19, %v12539_v2  ;;  %v12529_v55 = vrot.slane %v12528_v14, 1  ;;  %v12553_v53 = vrot.slane %v12552_v36, 4  ;;  %v22483_v30 = vmax.f32 %v12521_v17, %v12522_v25  ;;  %v12655_v2 = vld [vmem:[#allocation4 + $0xb2] sm:$0x3] }
 0x4ec   :  { %v12547_v1 = vmax.f32 %v12545_v6, %v12546_v8  ;;  %v12535_v18 = vmax.f32 %v12533_v57, %v12534_v20  ;;  %v12672_v10 = vsel %vm11726_vm10, %v12652_v48, -inf  ;;  %v12679_v8 = vsel %vm11726_vm10, %v12653_v58, -inf  ;;  %v12656_v17 = vld [vmem:[#allocation4 + $0xd2] sm:$0x3] }
 0x4ed   :  { %v12541_v15 = vrot.slane %v12540_v13, 2  ;;  %v22486_v40 = vmax.f32 %v12528_v14, %v12529_v55  ;;  %v12554_v19 = vmax.f32 %v12552_v36, %v12553_v53  ;;  %v12673_v4 = vrot.slane %v12672_v10, 4 }
 0x4ee   :  { %v12548_v9 = vrot.slane %v12547_v1, 2  ;;  %v12536_v54 = vrot.slane %v12535_v18, 1  ;;  %v12686_v49 = vsel %vm11726_vm10, %v12654_v44, -inf  ;;  %v12680_v57 = vrot.slane %v12679_v8, 4 }
 0x4ef   :  { %v12542_v6 = vmax.f32 %v12540_v13, %v12541_v15  ;;  %v12555_v28 = vrot.slane %v12554_v19, 2  ;;  %v12674_v25 = vmax.f32 %v12672_v10, %v12673_v4  ;;  %v12687_v14 = vrot.slane %v12686_v49, 4 }
 0x4f0   :  { %v12549_v39 = vmax.f32 %v12547_v1, %v12548_v9  ;;  %v22490_v20 = vmax.f32 %v12535_v18, %v12536_v54  ;;  %v12693_v55 = vsel %vm11726_vm10, %v12655_v2, -inf  ;;  %v12681_v13 = vmax.f32 %v12679_v8, %v12680_v57  ;;  %v22501_v2 = vld [vmem:[%s23173_s5 + $0x70] sm:$0xff] }
 0x4f1   :  { %v12543_v48 = vrot.slane %v12542_v6, 1  ;;  %v12556_v53 = vmax.f32 %v12554_v19, %v12555_v28  ;;  %v12675_v56 = vrot.slane %v12674_v25, 2  ;;  %v12688_v58 = vmax.f32 %v12686_v49, %v12687_v14  ;;  %23316 = vst [vmem:[#allocation15_spill] sm:$0xff] %v22501_v2  ;;  %v22506_v28 = vld [vmem:[%s23173_s5 + $0x78] sm:$0xff] }
 0x4f2   :  { %v12550_v36 = vrot.slane %v12549_v39, 1  ;;  %v12694_v44 = vrot.slane %v12693_v55, 4  ;;  %v12700_v1 = vsel %vm11726_vm10, %v12656_v17, -inf  ;;  %v12682_v18 = vrot.slane %v12681_v13, 2  ;;  %23317 = vst [vmem:[#allocation16_spill] sm:$0xff] %v22506_v28 }
 0x4f3   :  { %v22493_v15 = vmax.f32 %v12542_v6, %v12543_v48  ;;  %v12557_v10 = vrot.slane %v12556_v53, 1  ;;  %v12676_v54 = vmax.f32 %v12674_v25, %v12675_v56  ;;  %v12689_v19 = vrot.slane %v12688_v58, 2 }
 0x4f4   :  { %v22496_v9 = vmax.f32 %v12549_v39, %v12550_v36  ;;  %v12695_v49 = vmax.f32 %v12693_v55, %v12694_v44  ;;  %v12701_v4 = vrot.slane %v12700_v1, 4  ;;  %v12707_v6 = vsel %vm11726_vm10, %v12657_v34, -inf  ;;  %v12807_v39 = vld [vmem:[#allocation4 + $0x5a] sm:$0x3] }
 0x4f5   :  { %v22509_v8 = vmax.f32 %v12556_v53, %v12557_v10  ;;  %v12677_v56 = vrot.slane %v12676_v54, 1  ;;  %v12683_v17 = vmax.f32 %v12681_v13, %v12682_v18  ;;  %v12708_v25 = vrot.slane %v12707_v6, 4  ;;  %v12811_v36 = vld [vmem:[#allocation4 + $0xda] sm:$0x3] }
 0x4f6   :  { %23315 = vst [vmem:[#allocation30_spill] sm:$0xff] %v22496_v9  ;;  %v12690_v57 = vmax.f32 %v12688_v58, %v12689_v19  ;;  %v12696_v48 = vrot.slane %v12695_v49, 2  ;;  %v12702_v14 = vmax.f32 %v12700_v1, %v12701_v4  ;;  %v12827_v34 = vsel %vm11726_vm10, %v12807_v39, -inf }
 0x4f7   :  { %23318 = vst [vmem:[#allocation31_spill] sm:$0xff] %v22509_v8  ;;  %v22513_v46 = vmax.f32 %v12676_v54, %v12677_v56  ;;  %v12684_v55 = vrot.slane %v12683_v17, 1  ;;  %v12709_v44 = vmax.f32 %v12707_v6, %v12708_v25  ;;  %v12828_v13 = vrot.slane %v12827_v34, 4 }
 0x4f8   :  { %v12691_v59 = vrot.slane %v12690_v57, 1  ;;  %v12697_v53 = vmax.f32 %v12695_v49, %v12696_v48  ;;  %v12703_v10 = vrot.slane %v12702_v14, 2  ;;  %v12834_v1 = vsel %vm11726_vm10, %v12808_v32, -inf }
 0x4f9   :  { %23319 = vst [vmem:[#allocation17_spill] sm:$0xff] %v22513_v46  ;;  %v22516_v18 = vmax.f32 %v12683_v17, %v12684_v55  ;;  %v12710_v58 = vrot.slane %v12709_v44, 2  ;;  %v12841_v19 = vsel %vm11726_vm10, %v12809_v41, -inf  ;;  %v12829_v6 = vmax.f32 %v12827_v34, %v12828_v13  ;;  %v12812_v55 = vld [vmem:[#allocation4 + $0xfa] sm:$0x3] }
 0x4fa   :  { %v22520_v4 = vmax.f32 %v12690_v57, %v12691_v59  ;;  %v12698_v54 = vrot.slane %v12697_v53, 1  ;;  %v12704_v56 = vmax.f32 %v12702_v14, %v12703_v10  ;;  %v12835_v39 = vrot.slane %v12834_v1, 4  ;;  %v12962_v10 = vld [vmem:[#allocation4 + $0x44] sm:$0x3] }
 0x4fb   :  { %23320 = vst [vmem:[#allocation33_spill] sm:$0xff] %v22516_v18  ;;  %v12711_v25 = vmax.f32 %v12709_v44, %v12710_v58  ;;  %v12842_v2 = vrot.slane %v12841_v19, 4  ;;  %v12848_v49 = vsel %vm11726_vm10, %v12810_v33, -inf  ;;  %v12830_v28 = vrot.slane %v12829_v6, 2  ;;  %v22531_v33 = vld [vmem:[%s23173_s5 + $0x80] sm:$0xff] }
 0x4fc   :  { %23321 = vst [vmem:[#allocation18_spill] sm:$0xff] %v22520_v4  ;;  %v22523_v48 = vmax.f32 %v12697_v53, %v12698_v54  ;;  %v12705_v17 = vrot.slane %v12704_v56, 1  ;;  %v12849_v18 = vrot.slane %v12848_v49, 4  ;;  %v12836_v22 = vmax.f32 %v12834_v1, %v12835_v39  ;;  %23324 = vst [vmem:[#allocation34_spill] sm:$0xff] %v22531_v33  ;;  %v22536_v53 = vld [vmem:[%s23173_s5 + $0x88] sm:$0xff] }
 0x4fd   :  { %v12712_v32 = vrot.slane %v12711_v25, 1  ;;  %v12843_v41 = vmax.f32 %v12841_v19, %v12842_v2  ;;  %v12855_v59 = vsel %vm11726_vm10, %v12811_v36, -inf  ;;  %v12831_v14 = vmax.f32 %v12829_v6, %v12830_v28  ;;  %23325 = vst [vmem:[#allocation37_spill] sm:$0xff] %v22536_v53  ;;  %v12963_v54 = vld [vmem:[#allocation4 + $0x64] sm:$0x3] }
 0x4fe   :  { %23322 = vst [vmem:[#allocation32_spill] sm:$0xff] %v22523_v48  ;;  %v22526_v57 = vmax.f32 %v12704_v56, %v12705_v17  ;;  %v12850_v34 = vmax.f32 %v12848_v49, %v12849_v18  ;;  %v12856_v44 = vrot.slane %v12855_v59, 4  ;;  %v12837_v2 = vrot.slane %v12836_v22, 2 }
 0x4ff   :  { %v22538_v13 = vmax.f32 %v12711_v25, %v12712_v32  ;;  %v12844_v36 = vrot.slane %v12843_v41, 2  ;;  %v12862_v58 = vsel %vm11726_vm10, %v12812_v55, -inf  ;;  %v12832_v28 = vrot.slane %v12831_v14, 1  ;;  %v22547_v25 = vld [vmem:[%s23172_s4] ss:$0 sm:$0xff] }
 0x500   :  { %23323 = vst [vmem:[#allocation35_spill] sm:$0xff] %v22526_v57  ;;  %v12851_v18 = vrot.slane %v12850_v34, 2  ;;  %v12857_v1 = vmax.f32 %v12855_v59, %v12856_v44  ;;  %v12863_v19 = vrot.slane %v12862_v58, 4  ;;  %v12838_v56 = vmax.f32 %v12836_v22, %v12837_v2 }
 0x501   :  { %23326 = vst [vmem:[#allocation36_spill] sm:$0xff] %v22538_v13  ;;  %v12845_v6 = vmax.f32 %v12843_v41, %v12844_v36  ;;  %v12982_v49 = vsel %vm11726_vm10, %v12962_v10, -inf  ;;  %v22549_v17 = vmax.f32 %v12831_v14, %v12832_v28  ;;  %v12989_v22 = vsel %vm11726_vm10, %v12963_v54, -inf  ;;  %v12964_v10 = vld [vmem:[#allocation4 + $0x84] sm:$0x3] }
 0x502   :  { %v12852_v55 = vmax.f32 %v12850_v34, %v12851_v18  ;;  %v12858_v32 = vrot.slane %v12857_v1, 2  ;;  %v12864_v13 = vmax.f32 %v12862_v58, %v12863_v19  ;;  %v12839_v59 = vrot.slane %v12838_v56, 1  ;;  %v12965_v54 = vld [vmem:[#allocation4 + $0xa4] sm:$0x3] }
 0x503   :  { %23327 = vst [vmem:[#allocation38_spill] sm:$0xff] %v22549_v17  ;;  %v12846_v44 = vrot.slane %v12845_v6, 1  ;;  %v12983_v57 = vrot.slane %v12982_v49, 4  ;;  %v12990_v33 = vrot.slane %v12989_v22, 4  ;;  %v12996_v46 = vsel %vm11726_vm10, %v12964_v10, -inf }
 0x504   :  { %v12853_v2 = vrot.slane %v12852_v55, 1  ;;  %v12859_v36 = vmax.f32 %v12857_v1, %v12858_v32  ;;  %v12865_v39 = vrot.slane %v12864_v13, 2  ;;  %v22553_v4 = vmax.f32 %v12838_v56, %v12839_v59 }
 0x505   :  { %v22555_v14 = vmax.f32 %v12845_v6, %v12846_v44  ;;  %v12984_v34 = vmax.f32 %v12982_v49, %v12983_v57  ;;  %v12991_v32 = vmax.f32 %v12989_v22, %v12990_v33  ;;  %v12966_v6 = vld [vmem:[#allocation4 + $0xc4] sm:$0x3]  ;;  %v12997_v59 = vrot.slane %v12996_v46, 4 }
 0x506   :  { %23328 = vst [vmem:[#allocation39_spill] sm:$0xff] %v22553_v4  ;;  %v22558_v28 = vmax.f32 %v12852_v55, %v12853_v2  ;;  %v12860_v18 = vrot.slane %v12859_v36, 1  ;;  %v12866_v19 = vmax.f32 %v12864_v13, %v12865_v39  ;;  %v12967_v49 = vld [vmem:[#allocation4 + $0xe4] sm:$0x3]  ;;  %v13003_v13 = vsel %vm11726_vm10, %v12965_v54, -inf }
 0x507   :  { %23329 = vst [vmem:[#allocation40_spill] sm:$0xff] %v22555_v14  ;;  %v12985_v1 = vrot.slane %v12984_v34, 2  ;;  %v12992_v44 = vrot.slane %v12991_v32, 2  ;;  %v12998_v22 = vmax.f32 %v12996_v46, %v12997_v59  ;;  %v22576_v46 = vld [vmem:[%s23173_s5 + $0x90] sm:$0xff] }
 0x508   :  { %23330 = vst [vmem:[#allocation41_spill] sm:$0xff] %v22558_v28  ;;  %v22561_v52 = vmax.f32 %v12859_v36, %v12860_v18  ;;  %v12867_v56 = vrot.slane %v12866_v19, 1  ;;  %v13010_v28 = vsel %vm11726_vm10, %v12966_v6, -inf  ;;  %23334 = vst [vmem:[#allocation45_spill] sm:$0xff] %v22576_v46 }
 0x509   :  { %v12986_v55 = vmax.f32 %v12984_v34, %v12985_v1  ;;  %v12993_v10 = vmax.f32 %v12991_v32, %v12992_v44  ;;  %v13017_v34 = vsel %vm11726_vm10, %v12967_v49, -inf  ;;  %v22581_v32 = vld [vmem:[%s23173_s5 + $0x98] sm:$0xff] }
 0x50a   :  { %23331 = vst [vmem:[#allocation42_spill] sm:$0xff] %v22561_v52  ;;  %v22566_v39 = vmax.f32 %v12866_v19, %v12867_v56  ;;  %23335 = vst [vmem:[#allocation46_spill] sm:$0xff] %v22581_v32  ;;  %v13018_v44 = vrot.slane %v13017_v34, 4 }
 0x50b   :  { %v12987_v36 = vrot.slane %v12986_v55, 1  ;;  %v12994_v19 = vrot.slane %v12993_v10, 1 }
 0x50c   :  { %23332 = vst [vmem:[#allocation43_spill] sm:$0xff] %v22566_v39 }
 0x50d   :  { %v22584_v49 = vmax.f32 %v12993_v10, %v12994_v19  ;;  %v22596_v10 = vld [vmem:[%s23173_s5 + $0xa8] sm:$0xff] }
 0x50e   :  { %23338 = vst [vmem:[#allocation49_spill] sm:$0xff] %v22596_v10 }
 0x50f   :  { %23336 = vst [vmem:[#allocation47_spill] sm:$0xff] %v22584_v49 }
 0x57f   :  { %v17722_v41 = vpop.f32.mrb[32].mxu0 }
 0x580   :  { %v11639_v53 = vadd.f32 %v17722_v41, %v22547_v25  ;;  %v11536_v48 = vpop.f32.mrb[33].mxu0 }
 0x581   :  { %v11638_v58 = vadd.f32 %v22547_v25, %v11536_v48 }
 0x582   :  { %v11655_v17 = vmax.f32 %v11639_v53, 0.0 }
 0x583   :  { %v11654_v8 = vmax.f32 %v11638_v58, 0.0  ;;  %v17725_v41 = vpop.f32.mrb[34].mxu0  ;;  %v13004_v58 = vrot.slane %v13003_v13, 4 }
 0x584   :  { %v11641_v57 = vadd.f32 %v17725_v41, %v22547_v25  ;;  %v11546_v48 = vpop.f32.mrb[35].mxu0  ;;  %v12999_v41 = vrot.slane %v12998_v22, 2 }
 0x585   :  { %v11702_v53 = vmax.f32 %v11654_v8, %v11655_v17  ;;  %v11640_v33 = vadd.f32 %v22547_v25, %v11546_v48  ;;  %v22571_v17 = vmax.f32 %v12986_v55, %v12987_v36  ;;  %v13005_v1 = vmax.f32 %v13003_v13, %v13004_v58  ;;  %v22589_v13 = vld [vmem:[%s23173_s5 + $0xa0] sm:$0xff]  ;;  %v22601_v58 = vld [vmem:[%s23173_s5 + $0xb0] sm:$0xff] }
 0x586   :  { %v11657_v2 = vmax.f32 %v11641_v57, 0.0  ;;  %v13000_v59 = vmax.f32 %v12998_v22, %v12999_v41  ;;  %v13117_v57 = vld [vmem:[#allocation4 + $0x4c] sm:$0x3]  ;;  %23337 = vst [vmem:[#allocation48_spill] sm:$0xff] %v22589_v13  ;;  %23339 = vst [vmem:[#allocation50_spill] sm:$0xff] %v22601_v58 }
 0x587   :  { %11710 = vst [vmem:[#allocation4] sm:$0xff] %v11702_v53  ;;  %v11656_v18 = vmax.f32 %v11640_v33, 0.0  ;;  %v17728_v52 = vpop.f32.mrb[36].mxu0  ;;  %23333 = vst [vmem:[#allocation44_spill] sm:$0xff] %v22571_v17  ;;  %v13006_v55 = vrot.slane %v13005_v1, 2  ;;  %v22612_v19 = vsel %vm11726_vm10, %v13117_v57, -inf }
 0x588   :  { %v11643_v54 = vadd.f32 %v17728_v52, %v22547_v25  ;;  %v11556_v8 = vpop.f32.mrb[37].mxu0  ;;  %v13011_v52 = vrot.slane %v13010_v28, 4  ;;  %v13001_v36 = vrot.slane %v13000_v59, 1  ;;  %23342 = vst [vmem:[#allocation53_spill] sm:$0xff] %v22612_v19 }
 0x589   :  { %v11703_v56 = vmax.f32 %v11656_v18, %v11657_v2  ;;  %v11642_v6 = vadd.f32 %v22547_v25, %v11556_v8  ;;  %v22606_v18 = vld [vmem:[%s23173_s5 + $0xb8] sm:$0xff]  ;;  %v22609_v8 = vmax.f32 %v13017_v34, %v13018_v44 }
 0x58a   :  { %v11659_v48 = vmax.f32 %v11643_v54, 0.0  ;;  %v13012_v2 = vmax.f32 %v13010_v28, %v13011_v52  ;;  %23340 = vst [vmem:[#allocation51_spill] sm:$0xff] %v22606_v18  ;;  %v13007_v54 = vmax.f32 %v13005_v1, %v13006_v55  ;;  %v22615_v52 = vmax.f32 %v13000_v59, %v13001_v36 }
 0x58b   :  { %11711 = vst [vmem:[#allocation4 + $0x8] sm:$0xff] %v11703_v56  ;;  %v11658_v53 = vmax.f32 %v11642_v6, 0.0  ;;  %v17731_v33 = vpop.f32.mrb[38].mxu0  ;;  %23341 = vst [vmem:[#allocation52_spill] sm:$0xff] %v22609_v8 }
 0x58c   :  { %v11645_v28 = vadd.f32 %v17731_v33, %v22547_v25  ;;  %v11566_v41 = vpop.f32.mrb[39].mxu0  ;;  %23343 = vst [vmem:[#allocation54_spill] sm:$0xff] %v22615_v52  ;;  %v13013_v22 = vrot.slane %v13012_v2, 2  ;;  %v13008_v49 = vrot.slane %v13007_v54, 1 }
 0x58d   :  { %v11704_v56 = vmax.f32 %v11658_v53, %v11659_v48  ;;  %v11644_v6 = vadd.f32 %v22547_v25, %v11566_v41 }
 0x58e   :  { %v11661_v46 = vmax.f32 %v11645_v28, 0.0  ;;  %v11718_v32 = vld [vmem:[#allocation4] sm:$0x3]  ;;  %v12340_v39 = vld [vmem:[#allocation4 + $0x2] sm:$0x3]  ;;  %v22623_v44 = vmax.f32 %v13012_v2, %v13013_v22 }
 0x58f   :  { %11712 = vst [vmem:[#allocation4 + $0x10] sm:$0xff] %v11704_v56  ;;  %v11660_v1 = vmax.f32 %v11644_v6, 0.0  ;;  %v17734_v57 = vpop.f32.mrb[40].mxu0  ;;  %v11727_v48 = vsel %vm11726_vm10, %v11718_v32, -inf  ;;  %v12348_v55 = vsel %vm11726_vm10, %v12340_v39, -inf  ;;  %v22628_v6 = vmax.f32 %v13007_v54, %v13008_v49 }
 0x590   :  { %v12960_v59 = vld [vmem:[#allocation4 + $0x4] sm:$0x3]  ;;  %23344 = vst [vmem:[#allocation55_spill] sm:$0xff] %v22623_v44  ;;  %v11647_v53 = vadd.f32 %v17734_v57, %v22547_v25  ;;  %v11576_v36 = vpop.f32.mrb[41].mxu0  ;;  %v11728_v28 = vrot.slane %v11727_v48, 4  ;;  %v12349_v41 = vrot.slane %v12348_v55, 4 }
 0x591   :  { %v12968_v33 = vsel %vm11726_vm10, %v12960_v59, -inf  ;;  %v11705_v13 = vmax.f32 %v11660_v1, %v11661_v46  ;;  %v11646_v34 = vadd.f32 %v22547_v25, %v11576_v36  ;;  %23345 = vst [vmem:[#allocation56_spill] sm:$0xff] %v22628_v6 }
 0x592   :  { %v12969_v56 = vrot.slane %v12968_v33, 4  ;;  %v11663_v58 = vmax.f32 %v11647_v53, 0.0  ;;  %v11786_v32 = vld [vmem:[#allocation4 + $0x8] sm:$0x3]  ;;  %v11729_v18 = vmax.f32 %v11727_v48, %v11728_v28  ;;  %v12350_v39 = vmax.f32 %v12348_v55, %v12349_v41  ;;  %v12495_v10 = vld [vmem:[#allocation4 + $0xa] sm:$0x3] }
 0x593   :  { %11713 = vst [vmem:[#allocation4 + $0x18] sm:$0xff] %v11705_v13  ;;  %v11662_v22 = vmax.f32 %v11646_v34, 0.0  ;;  %v17737_v57 = vpop.f32.mrb[42].mxu0  ;;  %v11794_v52 = vsel %vm11726_vm10, %v11786_v32, -inf  ;;  %v12503_v59 = vsel %vm11726_vm10, %v12495_v10, -inf }
 0x594   :  { %v22633_v46 = vmax.f32 %v12968_v33, %v12969_v56  ;;  %v11649_v1 = vadd.f32 %v17737_v57, %v22547_v25  ;;  %v11586_v49 = vpop.f32.mrb[43].mxu0  ;;  %v11795_v54 = vrot.slane %v11794_v52, 4  ;;  %v11730_v53 = vrot.slane %v11729_v18, 2 }
 0x595   :  { %v12351_v36 = vrot.slane %v12350_v39, 2  ;;  %v11706_v48 = vmax.f32 %v11662_v22, %v11663_v58  ;;  %v11648_v55 = vadd.f32 %v22547_v25, %v11586_v49  ;;  %v12504_v28 = vrot.slane %v12503_v59, 4 }
 0x596   :  { %v12971_v13 = vrot.slane %v22633_v46, 2  ;;  %v11665_v34 = vmax.f32 %v11649_v1, 0.0  ;;  %v11796_v41 = vmax.f32 %v11794_v52, %v11795_v54  ;;  %v11731_v2 = vmax.f32 %v11729_v18, %v11730_v53  ;;  %v12029_v32 = vld [vmem:[#allocation4 + $0x10] sm:$0x3]  ;;  %v12650_v10 = vld [vmem:[#allocation4 + $0x12] sm:$0x3] }
 0x597   :  { %v12352_v6 = vmax.f32 %v12350_v39, %v12351_v36  ;;  %11714 = vst [vmem:[#allocation4 + $0x20] sm:$0xff] %v11706_v48  ;;  %v11664_v33 = vmax.f32 %v11648_v55, 0.0  ;;  %v17740_v56 = vpop.f32.mrb[44].mxu0  ;;  %v12037_v57 = vsel %vm11726_vm10, %v12029_v32, -inf  ;;  %v12505_v17 = vmax.f32 %v12503_v59, %v12504_v28 }
 0x598   :  { %v12658_v14 = vsel %vm11726_vm10, %v12650_v10, -inf  ;;  %v11651_v58 = vadd.f32 %v17740_v56, %v22547_v25  ;;  %v11596_v22 = vpop.f32.mrb[45].mxu0  ;;  %v11797_v49 = vrot.slane %v11796_v41, 2  ;;  %v11732_v4 = vrot.slane %v11731_v2, 1 }
 0x599   :  { %v12038_v19 = vrot.slane %v12037_v57, 4  ;;  %v11707_v1 = vmax.f32 %v11664_v33, %v11665_v34  ;;  %v11650_v18 = vadd.f32 %v22547_v25, %v11596_v22  ;;  %v12353_v52 = vrot.slane %v12352_v6, 1 }
 0x59a   :  { %v12506_v39 = vrot.slane %v12505_v17, 2  ;;  %v11667_v54 = vmax.f32 %v11651_v58, 0.0  ;;  %v11798_v53 = vmax.f32 %v11796_v41, %v11797_v49  ;;  %v22642_v36 = vmax.f32 %v11731_v2, %v11732_v4  ;;  %v12185_v55 = vld [vmem:[#allocation4 + $0x18] sm:$0x3]  ;;  %v12805_v41 = vld [vmem:[#allocation4 + $0x1a] sm:$0x3] }
 0x59b   :  { %v12039_v48 = vmax.f32 %v12037_v57, %v12038_v19  ;;  %11715 = vst [vmem:[#allocation4 + $0x28] sm:$0xff] %v11707_v1  ;;  %v11666_v59 = vmax.f32 %v11650_v18, 0.0  ;;  %v17743_v28 = vpop.f32.mrb[46].mxu0  ;;  %v12193_v32 = vsel %vm11726_vm10, %v12185_v55, -inf  ;;  %v22645_v10 = vmax.f32 %v12352_v6, %v12353_v52 }
 0x59c   :  { %v12507_v56 = vmax.f32 %v12505_v17, %v12506_v39  ;;  %v11653_v34 = vadd.f32 %v17743_v28, %v22547_v25  ;;  %v11606_v33 = vpop.f32.mrb[47].mxu0  ;;  %v11799_v22 = vrot.slane %v11798_v53, 1  ;;  %v12194_v44 = vrot.slane %v12193_v32, 4 }
 0x59d   :  { %v12040_v8 = vrot.slane %v12039_v48, 2  ;;  %v11708_v58 = vmax.f32 %v11666_v59, %v11667_v54  ;;  %v11652_v4 = vadd.f32 %v22547_v25, %v11606_v33  ;;  %v12659_v19 = vrot.slane %v12658_v14, 4 }
 0x59e   :  { %v12508_v2 = vrot.slane %v12507_v56, 1  ;;  %v11669_v57 = vmax.f32 %v11653_v34, 0.0  ;;  %v22649_v49 = vmax.f32 %v11798_v53, %v11799_v22  ;;  %v11719_v1 = vld [vmem:[#allocation4 + $0x20] sm:$0x3]  ;;  %v12195_v6 = vmax.f32 %v12193_v32, %v12194_v44  ;;  %v12341_v52 = vld [vmem:[#allocation4 + $0x22] sm:$0x3] }
 0x59f   :  { %v12041_v18 = vmax.f32 %v12039_v48, %v12040_v8  ;;  %11716 = vst [vmem:[#allocation4 + $0x30] sm:$0xff] %v11708_v58  ;;  %v11668_v17 = vmax.f32 %v11652_v4, 0.0  ;;  %v11734_v39 = vsel %vm11726_vm10, %v11719_v1, -inf  ;;  %v12355_v55 = vsel %vm11726_vm10, %v12341_v52, -inf }
 0x5a0   :  { %v22653_v28 = vmax.f32 %v12507_v56, %v12508_v2  ;;  %v11735_v54 = vrot.slane %v11734_v39, 4  ;;  %v12196_v59 = vrot.slane %v12195_v6, 2  ;;  %v12356_v33 = vrot.slane %v12355_v55, 4 }
 0x5a1   :  { %v12042_v25 = vrot.slane %v12041_v18, 1  ;;  %v11709_v29 = vmax.f32 %v11668_v17, %v11669_v57  ;;  %v12660_v34 = vmax.f32 %v12658_v14, %v12659_v19  ;;  %v12813_v53 = vsel %vm11726_vm10, %v12805_v41, -inf }
 0x5a2   :  { %v22657_v8 = vmax.f32 %v22633_v46, %v12971_v13  ;;  %v11787_v44 = vld [vmem:[#allocation4 + $0x28] sm:$0x3]  ;;  %v11736_v48 = vmax.f32 %v11734_v39, %v11735_v54  ;;  %v12197_v22 = vmax.f32 %v12195_v6, %v12196_v59  ;;  %v12357_v58 = vmax.f32 %v12355_v55, %v12356_v33  ;;  %v12496_v4 = vld [vmem:[#allocation4 + $0x2a] sm:$0x3] }
 0x5a3   :  { %v22659_v32 = vmax.f32 %v12041_v18, %v12042_v25  ;;  %11717 = vst [vmem:[#allocation4 + $0x38] sm:$0xff] %v11709_v29  ;;  %v11801_v56 = vsel %vm11726_vm10, %v11787_v44, -inf  ;;  %v12510_v2 = vsel %vm11726_vm10, %v12496_v4, -inf  ;;  %v12661_v1 = vrot.slane %v12660_v34, 2 }
 0x5a4   :  { %v12814_v57 = vrot.slane %v12813_v53, 4  ;;  %v11802_v14 = vrot.slane %v11801_v56, 4  ;;  %v11737_v19 = vrot.slane %v11736_v48, 2  ;;  %v12198_v41 = vrot.slane %v12197_v22, 1 }
 0x5a5   :  { %v12358_v52 = vrot.slane %v12357_v58, 2  ;;  %v12511_v46 = vrot.slane %v12510_v2, 4  ;;  %v12662_v13 = vmax.f32 %v12660_v34, %v12661_v1  ;;  %v12973_v18 = vrot.slane %v22657_v8, 1 }
 0x5a6   :  { %v12815_v17 = vmax.f32 %v12813_v53, %v12814_v57  ;;  %v11803_v39 = vmax.f32 %v11801_v56, %v11802_v14  ;;  %v11738_v6 = vmax.f32 %v11736_v48, %v11737_v19  ;;  %v12030_v55 = vld [vmem:[#allocation4 + $0x30] sm:$0x3]  ;;  %v22664_v54 = vmax.f32 %v12197_v22, %v12198_v41  ;;  %v12651_v25 = vld [vmem:[#allocation4 + $0x32] sm:$0x3] }
 0x5a7   :  { %v12359_v29 = vmax.f32 %v12357_v58, %v12358_v52  ;;  %v12044_v59 = vsel %vm11726_vm10, %v12030_v55, -inf  ;;  %v12512_v33 = vmax.f32 %v12510_v2, %v12511_v46  ;;  %v12663_v44 = vrot.slane %v12662_v13, 1 }
 0x5a8   :  { %v12665_v4 = vsel %vm11726_vm10, %v12651_v25, -inf  ;;  %v11804_v9 = vrot.slane %v11803_v39, 2  ;;  %v11739_v3 = vrot.slane %v11738_v6, 1  ;;  %v12045_v62 = vrot.slane %v12044_v59, 4 }
 0x5a9   :  { %v12360_v34 = vrot.slane %v12359_v29, 1  ;;  %v12513_v53 = vrot.slane %v12512_v33, 2  ;;  %v22668_v1 = vmax.f32 %v12662_v13, %v12663_v44  ;;  %v12666_v56 = vrot.slane %v12665_v4, 4 }
 0x5aa   :  { %v12816_v48 = vrot.slane %v12815_v17, 2  ;;  %v11805_v57 = vmax.f32 %v11803_v39, %v11804_v9  ;;  %v11740_v22 = vmax.f32 %v11738_v6, %v11739_v3  ;;  %v12046_v14 = vmax.f32 %v12044_v59, %v12045_v62  ;;  %v12186_v58 = vld [vmem:[#allocation4 + $0x38] sm:$0x3] }
 0x5ab   :  { %v12361_v19 = vmax.f32 %v12359_v29, %v12360_v34  ;;  %v12200_v41 = vsel %vm11726_vm10, %v12186_v58, -inf  ;;  %v12514_v2 = vmax.f32 %v12512_v33, %v12513_v53  ;;  %v12667_v52 = vmax.f32 %v12665_v4, %v12666_v56 }
 0x5ac   :  { %v22671_v46 = vmax.f32 %v12815_v17, %v12816_v48  ;;  %v11806_v55 = vrot.slane %v11805_v57, 1  ;;  %v11949_v25 = vsel %vm8454_vm2, %v11740_v22, %v22642_v36  ;;  %v12047_v13 = vrot.slane %v12046_v14, 2 }
 0x5ad   :  { %v12201_v44 = vrot.slane %v12200_v41, 4  ;;  %v11950_v9 = vsel %vm8456_vm3, %v22322_v47, %v11949_v25  ;;  %v12415_v62 = vsel %vm8454_vm2, %v12361_v19, %v22645_v10  ;;  %v12515_v3 = vrot.slane %v12514_v2, 1  ;;  %v23349_v25 = vld [vmem:[#allocation12_spill] sm:$0xff] }
 0x5ae   :  { %v12668_v39 = vrot.slane %v12667_v52, 2  ;;  %v11807_v6 = vmax.f32 %v11805_v57, %v11806_v55  ;;  %v11951_v17 = vsel %vm8458_vm4, %v22347_v24, %v11950_v9  ;;  %v12048_v29 = vmax.f32 %v12046_v14, %v12047_v13 }
 0x5af   :  { %v12202_v59 = vmax.f32 %v12200_v41, %v12201_v44  ;;  %v11952_v33 = vsel %vm8460_vm5, %v22370_v12, %v11951_v17  ;;  %v12416_v36 = vsel %vm8456_vm3, %v22454_v31, %v12415_v62  ;;  %v12516_v4 = vmax.f32 %v12514_v2, %v12515_v3  ;;  %v23350_v44 = vld [vmem:[#allocation30_spill] sm:$0xff]  ;;  %v23352_v3 = vld [vmem:[#allocation23_spill] sm:$0xff] }
 0x5b0   :  { %v12669_v34 = vmax.f32 %v12667_v52, %v12668_v39  ;;  %v11861_v47 = vsel %vm8454_vm2, %v11807_v6, %v22649_v49  ;;  %v11953_v10 = vsel %vm8462_vm6, %v22372_v51, %v11952_v33  ;;  %v12049_v53 = vrot.slane %v12048_v29, 1  ;;  %v23351_v62 = vld [vmem:[#allocation22_spill] sm:$0xff]  ;;  %v23353_v6 = vld [vmem:[#allocation31_spill] sm:$0xff] }
 0x5b1   :  { %v12203_v56 = vrot.slane %v12202_v59, 2  ;;  %v11862_v24 = vsel %vm8456_vm3, %v22335_v60, %v11861_v47  ;;  %v11954_v48 = vsel %vm8464_vm7, %v22386_v37, %v11953_v10  ;;  %v12417_v12 = vsel %vm8458_vm4, %v22457_v11, %v12416_v36  ;;  %v23355_v33 = vld [vmem:[#allocation26_spill] sm:$0xff]  ;;  %v23357_v10 = vld [vmem:[#allocation19_spill] sm:$0xff] }
 0x5b2   :  { %v12570_v31 = vsel %vm8454_vm2, %v12516_v4, %v22653_v28  ;;  %v11863_v49 = vsel %vm8458_vm4, %v22339_v5, %v11862_v24  ;;  %v11955_v51 = vsel %vm8466_vm8, %v22388_v21, %v11954_v48  ;;  %v12050_v57 = vmax.f32 %v12048_v29, %v12049_v53  ;;  %v23354_v29 = vld [vmem:[#allocation17_spill] sm:$0xff]  ;;  %v23358_v53 = vld [vmem:[#allocation8_spill] sm:$0xff] }
 0x5b3   :  { %v12204_v22 = vmax.f32 %v12202_v59, %v12203_v56  ;;  %v11864_v60 = vsel %vm8460_vm5, %v22341_v50, %v11863_v49  ;;  %v12418_v37 = vsel %vm8460_vm5, %v22460_v7, %v12417_v12  ;;  %v12571_v11 = vsel %vm8456_vm3, %v22483_v30, %v12570_v31  ;;  %v23360_v24 = vld [vmem:[#allocation24_spill] sm:$0xff]  ;;  %v23361_v12 = vld [vmem:[#allocation18_spill] sm:$0xff] }
 0x5b4   :  { %v12670_v14 = vrot.slane %v12669_v34, 1  ;;  %v11865_v28 = vsel %vm8462_vm6, %v22343_v0, %v11864_v60  ;;  %v12104_v5 = vsel %vm8454_vm2, %v12050_v57, %v22659_v32  ;;  %v12419_v21 = vsel %vm8462_vm6, %v22463_v63, %v12418_v37  ;;  %v12806_v0 = vld [vmem:[#allocation4 + $0x3a] sm:$0x3]  ;;  %v23362_v57 = vld [vmem:[#allocation13_spill] sm:$0xff]  ;;  %v23363_v60 = vld [vmem:[#allocation32_spill] sm:$0xff] }
 0x5b5   :  { %v12205_v58 = vrot.slane %v12204_v22, 1  ;;  %v11866_v50 = vsel %vm8464_vm7, %v22345_v26, %v11865_v28  ;;  %v12105_v7 = vsel %vm8456_vm3, %v22390_v42, %v12104_v5  ;;  %v12420_v30 = vsel %vm8464_vm7, %v22476_v35, %v12419_v21  ;;  %v13116_v28 = vld [vmem:[#allocation4 + $0x2c] sm:$0x3]  ;;  %v23364_v5 = vld [vmem:[#allocation28_spill] sm:$0xff]  ;;  %v23365_v21 = vld [vmem:[#allocation35_spill] sm:$0xff] }
 0x5b6   :  { %v12572_v19 = vsel %vm8458_vm4, %v22486_v40, %v12571_v11  ;;  %v11867_v32 = vsel %vm8466_vm8, %v22351_v16, %v11866_v50  ;;  %v12106_v41 = vsel %vm8458_vm4, %v22394_v27, %v12105_v7  ;;  %v22727_v26 = vsel %vm8466_vm8, %v22478_v23, %v12420_v30  ;;  %v22738_v27 = vld [vmem:[#allocation3] sm:$0xff] }
 0x5b7   :  { %v12206_v63 = vmax.f32 %v12204_v22, %v12205_v58  ;;  %17749 = vmatmul.mubr.msk.f32.vlgmr.msra.gmra.mrb[48].mxu1 %vm11868_vm11, %v11867_v32  ;;  %v12107_v42 = vsel %vm8460_vm5, %v22397_v61, %v12106_v41  ;;  %v12573_v35 = vsel %vm8460_vm5, %v22490_v20, %v12572_v19  ;;  %v12671_v40 = vmax.f32 %v12669_v34, %v12670_v14  ;;  %v23368_v30 = vld [vmem:[#allocation52_spill] sm:$0xff] }
 0x5b8   :  { %v12818_v2 = vrot.slane %v22671_v46, 1  ;;  %v23346_v16 = vpack.c.bf16 %v22333_v38, %v22328_v43  ;;  %17755 = vmatprep.mubr.msk.f32.mxu1 %vm18654_vm9, %v22738_v27  ;;  %v12108_v23 = vsel %vm8462_vm6, %v22401_v45, %v12107_v42  ;;  %v12574_v20 = vsel %vm8462_vm6, %v22493_v15, %v12573_v35  ;;  %v23348_v43 = vld [vmem:[#allocation11_spill] sm:$0xff]  ;;  %v23369_v32 = vld [vmem:[#allocation36_spill] sm:$0xff] }
 0x5b9   :  { %v12260_v61 = vsel %vm8454_vm2, %v12206_v63, %v22664_v54  ;;  %v12820_v52 = vsel %vm11726_vm10, %v12806_v0, -inf  ;;  %v23347_v55 = vmov 0.0|0.0   ;;  %v12109_v38 = vsel %vm8464_vm7, %v23348_v43, %v12108_v23  ;;  %v12961_v54 = vld [vmem:[#allocation4 + $0x24] sm:$0x3]  ;;  %v13118_v0 = vld [vmem:[#allocation4 + $0x6c] sm:$0x3] }
 0x5ba   :  { %17899 = vmatpush3.bf16.msra.mxu1 %v23346_v16  ;;  %v12261_v13 = vsel %vm8456_vm3, %v23349_v25, %v12260_v61  ;;  %v12575_v9 = vsel %vm8464_vm7, %v23350_v44, %v12574_v20  ;;  %v12725_v45 = vsel %vm8454_vm2, %v12671_v40, %v22668_v1  ;;  %v12110_v15 = vsel %vm8466_vm8, %v23351_v62, %v12109_v38  ;;  %v23356_v1 = vld [vmem:[#allocation33_spill] sm:$0xff]  ;;  %v23370_v40 = vld [vmem:[#allocation20_spill] sm:$0xff] }
 0x5bb   :  { %17900 = vmatprep.subr.bf16.mxu1 %v23347_v55  ;;  %v12262_v39 = vsel %vm8458_vm4, %v23352_v3, %v12261_v13  ;;  %v22764_v17 = vsel %vm8466_vm8, %v23353_v6, %v12575_v9  ;;  %v12726_v59 = vsel %vm8456_vm3, %v23354_v29, %v12725_v45  ;;  %v22774_v34 = vmax.f32 %v22671_v46, %v12818_v2  ;;  %v23371_v2 = vld [vmem:[#allocation9_spill] sm:$0xff] }
 0x5bc   :  { %v12263_v36 = vsel %vm8460_vm5, %v23355_v33, %v12262_v39  ;;  %v12727_v4 = vsel %vm8458_vm4, %v23356_v1, %v12726_v59  ;;  %v12821_v47 = vrot.slane %v12820_v52, 4  ;;  %v23359_v56 = vpack.c.bf16 %v23357_v10, %v23358_v53  ;;  %v13119_v61 = vld [vmem:[#allocation4 + $0x8c] sm:$0x3] }
 0x5bd   :  { %17756 = vmatmul.mubr.msk.f32.vlgmr.msra.gmra.mrb[50].mxu1 %vm11868_vm11, %v11955_v51  ;;  %v12264_v48 = vsel %vm8462_vm6, %v23360_v24, %v12263_v36  ;;  %v12728_v31 = vsel %vm8460_vm5, %v23361_v12, %v12727_v4  ;;  %v22788_v49 = vmax.f32 %v22657_v8, %v12973_v18  ;;  %v12975_v46 = vsel %vm11726_vm10, %v12961_v54, -inf  ;;  %v13115_v51 = vld [vmem:[#allocation4 + $0xc] sm:$0x3]  ;;  %v23366_v18 = vld [vmem:[#allocation55_spill] sm:$0xff]  ;;  %v23375_v36 = vld [vmem:[#allocation10_spill] sm:$0xff] }
 0x5be   :  { %17902 = vmatpush3.bf16.msra.mxu1 %v23359_v56  ;;  %17762 = vmatprep.mubr.msk.f32.mxu1 %vm18654_vm9, %v22738_v27  ;;  %v12265_v22 = vsel %vm8464_vm7, %v23362_v57, %v12264_v48  ;;  %v12729_v37 = vsel %vm8462_vm6, %v23363_v60, %v12728_v31  ;;  %v12822_v11 = vmax.f32 %v12820_v52, %v12821_v47  ;;  %v12976_v14 = vrot.slane %v12975_v46, 4  ;;  %v23373_v43 = vld [vmem:[#allocation53_spill] sm:$0xff] }
 0x5bf   :  { %17903 = vmatprep.subr.bf16.mxu1 %v23347_v55  ;;  %v12266_v58 = vsel %vm8466_vm8, %v23364_v5, %v12265_v22  ;;  %v12730_v8 = vsel %vm8464_vm7, %v23365_v21, %v12729_v37  ;;  %v23367_v50 = vrot.slane %v23366_v18, 1  ;;  %v13020_v19 = vrot.slane %v23368_v30, 2  ;;  %v13120_v6 = vld [vmem:[#allocation4 + $0xac] sm:$0x3] }
 0x5c0   :  { %v22809_v41 = vsel %vm8466_vm8, %v23369_v32, %v12730_v8  ;;  %v12823_v63 = vrot.slane %v12822_v11, 2  ;;  %v12977_v42 = vmax.f32 %v12975_v46, %v12976_v14  ;;  %v13123_v35 = vsel %vm11726_vm10, %v13115_v51, -inf  ;;  %v23374_v33 = vld [vmem:[#allocation21_spill] sm:$0xff]  ;;  %v23377_v14 = vld [vmem:[#allocation27_spill] sm:$0xff]  ;;  %v23382_v32 = vld [vmem:[#allocation40_spill] sm:$0xff] }
 0x5c1   :  { %v22803_v7 = vmax.f32 %v23366_v18, %v23367_v50  ;;  %17763 = vmatmul.mubr.msk.f32.vlgmr.msra.gmra.mrb[52].mxu1 %vm11868_vm11, %v12110_v15  ;;  %v23372_v16 = vpack.c.bf16 %v23370_v40, %v23371_v2  ;;  %v13021_v23 = vmax.f32 %v23368_v30, %v13020_v19  ;;  %v13124_v20 = vrot.slane %v13123_v35, 4  ;;  %v13121_v40 = vld [vmem:[#allocation4 + $0xcc] sm:$0x3] }
 0x5c2   :  { %17769 = vmatprep.mubr.msk.f32.mxu1 %vm18654_vm9, %v22738_v27  ;;  %v13130_v52 = vsel %vm11726_vm10, %v13116_v28, -inf  ;;  %v13138_v38 = vrot.slane %v23373_v43, 4  ;;  %v12824_v25 = vmax.f32 %v12822_v11, %v12823_v63  ;;  %v12978_v13 = vrot.slane %v12977_v42, 2  ;;  %v23378_v28 = vld [vmem:[#allocation25_spill] sm:$0xff] }
 0x5c3   :  { %17905 = vmatpush3.bf16.msra.mxu1 %v23372_v16  ;;  %v13131_v44 = vrot.slane %v13130_v52, 4  ;;  %v13144_v9 = vsel %vm11726_vm10, %v13118_v0, -inf  ;;  %v13022_v45 = vrot.slane %v13021_v23, 1  ;;  %v13125_v54 = vmax.f32 %v13123_v35, %v13124_v20  ;;  %v23385_v20 = vld [vmem:[#allocation47_spill] sm:$0xff] }
 0x5c4   :  { %17906 = vmatprep.subr.bf16.mxu1 %v23347_v55  ;;  %v13139_v62 = vmax.f32 %v23373_v43, %v13138_v38  ;;  %v13145_v15 = vrot.slane %v13144_v9, 4  ;;  %v12825_v3 = vrot.slane %v12824_v25, 1  ;;  %v12979_v39 = vmax.f32 %v12977_v42, %v12978_v13  ;;  %v23383_v42 = vld [vmem:[#allocation44_spill] sm:$0xff]  ;;  %v23386_v38 = vld [vmem:[#allocation14_spill] sm:$0xff] }
 0x5c5   :  { %v13132_v29 = vmax.f32 %v13130_v52, %v13131_v44  ;;  %v13151_v59 = vsel %vm11726_vm10, %v13119_v61, -inf  ;;  %v23376_v1 = vpack.c.bf16 %v23374_v33, %v23375_v36  ;;  %v13023_v4 = vmax.f32 %v13021_v23, %v13022_v45  ;;  %v23384_v23 = vld [vmem:[#allocation41_spill] sm:$0xff]  ;;  %v23389_v44 = vld [vmem:[#allocation42_spill] sm:$0xff] }
 0x5c6   :  { %17770 = vmatmul.mubr.msk.f32.vlgmr.msra.gmra.mrb[54].mxu1 %vm11868_vm11, %v12266_v58  ;;  %v13126_v47 = vrot.slane %v13125_v54, 2  ;;  %v13140_v10 = vrot.slane %v13139_v62, 2  ;;  %v13146_v53 = vmax.f32 %v13144_v9, %v13145_v15  ;;  %v12826_v56 = vmax.f32 %v12824_v25, %v12825_v3  ;;  %v23380_v58 = vld [vmem:[#allocation38_spill] sm:$0xff]  ;;  %v23387_v25 = vld [vmem:[#allocation29_spill] sm:$0xff] }
 0x5c7   :  { %17908 = vmatpush3.bf16.msra.mxu1 %v23376_v1  ;;  %17776 = vmatprep.mubr.msk.f32.mxu1 %vm18654_vm9, %v22738_v27  ;;  %v12980_v24 = vrot.slane %v12979_v39, 1  ;;  %v13133_v48 = vrot.slane %v13132_v29, 2  ;;  %v13152_v12 = vrot.slane %v13151_v59, 4  ;;  %v13158_v57 = vsel %vm11726_vm10, %v13120_v6, -inf  ;;  %v23390_v45 = vld [vmem:[#allocation54_spill] sm:$0xff] }
 0x5c8   :  { %17909 = vmatprep.subr.bf16.mxu1 %v23347_v55  ;;  %v13127_v31 = vmax.f32 %v13125_v54, %v13126_v47  ;;  %v13141_v46 = vmax.f32 %v13139_v62, %v13140_v10  ;;  %v13147_v51 = vrot.slane %v13146_v53, 2  ;;  %v12880_v22 = vsel %vm8454_vm2, %v12826_v56, %v22774_v34  ;;  %v13122_v54 = vld [vmem:[#allocation4 + $0xec] sm:$0x3]  ;;  %v13270_v3 = vld [vmem:[#allocation4 + $0x14] sm:$0x3] }
 0x5c9   :  { %v12981_v60 = vmax.f32 %v12979_v39, %v12980_v24  ;;  %v13134_v37 = vmax.f32 %v13132_v29, %v13133_v48  ;;  %v13153_v11 = vmax.f32 %v13151_v59, %v13152_v12  ;;  %v23379_v5 = vpack.c.bf16 %v23377_v14, %v23378_v28  ;;  %v23391_v39 = vld [vmem:[#allocation43_spill] sm:$0xff]  ;;  %v23392_v29 = vld [vmem:[#allocation56_spill] sm:$0xff]  ;;  %v13271_v56 = vld [vmem:[#allocation4 + $0x34] sm:$0x3] }
 0x5ca   :  { %17777 = vmatmul.mubr.msk.f32.vlgmr.msra.gmra.mrb[56].mxu1 %vm11868_vm11, %v22727_v26  ;;  %v12881_v21 = vsel %vm8456_vm3, %v23380_v58, %v12880_v22  ;;  %v13128_v8 = vrot.slane %v13127_v31, 1  ;;  %v13142_v18 = vrot.slane %v13141_v46, 1  ;;  %v13148_v50 = vmax.f32 %v13146_v53, %v13147_v51  ;;  %v23381_v26 = vld [vmem:[#allocation39_spill] sm:$0xff]  ;;  %v13272_v24 = vld [vmem:[#allocation4 + $0x54] sm:$0x3]  ;;  %v23393_v51 = vld [vmem:[#allocation16_spill] sm:$0xff] }
 0x5cb   :  { %17911 = vmatpush3.bf16.msra.mxu1 %v23379_v5  ;;  %17783 = vmatprep.mubr.msk.f32.mxu1 %vm18654_vm9, %v22738_v27  ;;  %v12882_v34 = vsel %vm8458_vm4, %v23381_v26, %v12881_v21  ;;  %v13035_v30 = vsel %vm8454_vm2, %v12981_v60, %v22788_v49  ;;  %v13135_v19 = vrot.slane %v13134_v37, 1  ;;  %v13154_v0 = vrot.slane %v13153_v11, 2  ;;  %v23394_v22 = vld [vmem:[#allocation15_spill] sm:$0xff]  ;;  %v13274_v26 = vld [vmem:[#allocation4 + $0x94] sm:$0x3] }
 0x5cc   :  { %17912 = vmatprep.subr.bf16.mxu1 %v23347_v55  ;;  %v12883_v63 = vsel %vm8460_vm5, %v23382_v32, %v12882_v34  ;;  %v13036_v35 = vsel %vm8456_vm3, %v23383_v42, %v13035_v30  ;;  %v13129_v2 = vmax.f32 %v13127_v31, %v13128_v8  ;;  %v13143_v16 = vmax.f32 %v13141_v46, %v13142_v18  ;;  %v23397_v32 = vld [vmem:[#allocation34_spill] sm:$0xff] }
 0x5cd   :  { %v12884_v61 = vsel %vm8462_vm6, %v23384_v23, %v12883_v63  ;;  %v13037_v49 = vsel %vm8458_vm4, %v23385_v20, %v13036_v35  ;;  %v13136_v52 = vmax.f32 %v13134_v37, %v13135_v19  ;;  %v13149_v43 = vrot.slane %v13148_v50, 1 }
 0x5ce   :  { %17784 = vmatmul.mubr.msk.f32.vlgmr.msra.gmra.mrb[58].mxu1 %vm11868_vm11, %v22764_v17  ;;  %v23388_v13 = vpack.c.bf16 %v23386_v38, %v23387_v25  ;;  %v12885_v9 = vsel %vm8464_vm7, %v23389_v44, %v12884_v61  ;;  %v13038_v17 = vsel %vm8460_vm5, %v23390_v45, %v13037_v49  ;;  %v13155_v62 = vmax.f32 %v13153_v11, %v13154_v0  ;;  %v23396_v0 = vld [vmem:[#allocation37_spill] sm:$0xff]  ;;  %v13275_v25 = vld [vmem:[#allocation4 + $0xb4] sm:$0x3] }
 0x5cf   :  { %17790 = vmatprep.mubr.msk.f32.mxu1 %vm18654_vm9, %v22738_v27  ;;  %v13159_v15 = vrot.slane %v13158_v57, 4  ;;  %v12886_v6 = vsel %vm8466_vm8, %v23391_v39, %v12885_v9  ;;  %v13039_v59 = vsel %vm8462_vm6, %v23392_v29, %v13038_v17  ;;  %v13150_v33 = vmax.f32 %v13148_v50, %v13149_v43  ;;  %v23399_v17 = vld [vmem:[#allocation46_spill] sm:$0xff] }
 0x5d0   :  { %17914 = vmatpush3.bf16.msra.mxu1 %v23388_v13  ;;  %v13165_v36 = vsel %vm11726_vm10, %v13121_v40, -inf  ;;  %v13040_v1 = vsel %vm8464_vm7, %v22803_v7, %v13039_v59  ;;  %v13156_v47 = vrot.slane %v13155_v62, 1  ;;  %v13172_v12 = vsel %vm11726_vm10, %v13122_v54, -inf  ;;  %v23400_v54 = vld [vmem:[#allocation45_spill] sm:$0xff]  ;;  %v13276_v29 = vld [vmem:[#allocation4 + $0xd4] sm:$0x3] }
 0x5d1   :  { %17915 = vmatprep.subr.bf16.mxu1 %v23347_v55  ;;  %v13160_v10 = vmax.f32 %v13158_v57, %v13159_v15  ;;  %v13166_v53 = vrot.slane %v13165_v36, 4  ;;  %v13041_v48 = vsel %vm8466_vm8, %v13023_v4, %v13040_v1  ;;  %v13190_v31 = vsel %vm8454_vm2, %v13136_v52, %v13129_v2  ;;  %v13273_v4 = vld [vmem:[#allocation4 + $0x74] sm:$0x3] }
 0x5d2   :  { %v13278_v46 = vsel %vm11726_vm10, %v13270_v3, -inf  ;;  %v23395_v60 = vpack.c.bf16 %v23393_v51, %v23394_v22  ;;  %v13157_v7 = vmax.f32 %v13155_v62, %v13156_v47  ;;  %v13173_v11 = vrot.slane %v13172_v12, 4  ;;  %v13425_v51 = vld [vmem:[#allocation4 + $0x1c] sm:$0x3] }
 0x5d3   :  { %17791 = vmatmul.mubr.msk.f32.vlgmr.msra.gmra.mrb[60].mxu1 %vm11868_vm11, %v22809_v41  ;;  %v13161_v57 = vrot.slane %v13160_v10, 2  ;;  %v13167_v37 = vmax.f32 %v13165_v36, %v13166_v53  ;;  %v13191_v41 = vsel %vm8456_vm3, %v13143_v16, %v13190_v31  ;;  %v13279_v14 = vrot.slane %v13278_v46, 4 }
 0x5d4   :  { %17917 = vmatpush3.bf16.msra.mxu1 %v23395_v60  ;;  %17797 = vmatprep.mubr.msk.f32.mxu1 %vm18654_vm9, %v22738_v27  ;;  %v13285_v28 = vsel %vm11726_vm10, %v13271_v56, -inf  ;;  %v13292_v5 = vsel %vm11726_vm10, %v13272_v24, -inf  ;;  %v13174_v8 = vmax.f32 %v13172_v12, %v13173_v11  ;;  %v13192_v18 = vsel %vm8458_vm4, %v13150_v33, %v13191_v41  ;;  %v13277_v24 = vld [vmem:[#allocation4 + $0xf4] sm:$0x3] }
 0x5d5   :  { %17918 = vmatprep.subr.bf16.mxu1 %v23347_v55  ;;  %v13162_v58 = vmax.f32 %v13160_v10, %v13161_v57  ;;  %v13168_v21 = vrot.slane %v13167_v37, 2  ;;  %v13193_v50 = vsel %vm8460_vm5, %v13157_v7, %v13192_v18  ;;  %v13280_v34 = vmax.f32 %v13278_v46, %v13279_v14  ;;  %v23402_v14 = vld [vmem:[#allocation49_spill] sm:$0xff]  ;;  %v13426_v18 = vld [vmem:[#allocation4 + $0x3c] sm:$0x3] }
 0x5d6   :  { %v13286_v30 = vrot.slane %v13285_v28, 4  ;;  %v13293_v19 = vrot.slane %v13292_v5, 4  ;;  %v23398_v63 = vpack.c.bf16 %v23396_v0, %v23397_v32  ;;  %v13175_v40 = vrot.slane %v13174_v8, 2  ;;  %v13427_v0 = vld [vmem:[#allocation4 + $0x5c] sm:$0x3] }
 0x5d7   :  { %17798 = vmatmul.mubr.msk.f32.vlgmr.msra.gmra.mrb[62].mxu1 %vm11868_vm11, %v12886_v6  ;;  %v13163_v42 = vrot.slane %v13162_v58, 1  ;;  %v13169_v35 = vmax.f32 %v13167_v37, %v13168_v21  ;;  %v13299_v2 = vsel %vm11726_vm10, %v13273_v4, -inf  ;;  %v13281_v16 = vrot.slane %v13280_v34, 2 }
 0x5d8   :  { %17920 = vmatpush3.bf16.msra.mxu1 %v23398_v63  ;;  %17804 = vmatprep.mubr.msk.f32.mxu1 %vm18654_vm9, %v22738_v27  ;;  %v13287_v23 = vmax.f32 %v13285_v28, %v13286_v30  ;;  %v13294_v61 = vmax.f32 %v13292_v5, %v13293_v19  ;;  %v13300_v20 = vrot.slane %v13299_v2, 4  ;;  %v13176_v43 = vmax.f32 %v13174_v8, %v13175_v40  ;;  %v23403_v28 = vld [vmem:[#allocation48_spill] sm:$0xff] }
 0x5d9   :  { %17921 = vmatprep.subr.bf16.mxu1 %v23347_v55  ;;  %v13164_v49 = vmax.f32 %v13162_v58, %v13163_v42  ;;  %v13170_v52 = vrot.slane %v13169_v35, 1  ;;  %v13306_v38 = vsel %vm11726_vm10, %v13274_v26, -inf  ;;  %v13282_v13 = vmax.f32 %v13280_v34, %v13281_v16 }
 0x5da   :  { %v13288_v44 = vrot.slane %v13287_v23, 2  ;;  %v13295_v9 = vrot.slane %v13294_v61, 2  ;;  %v13301_v45 = vmax.f32 %v13299_v2, %v13300_v20  ;;  %v23401_v62 = vpack.c.bf16 %v23399_v17, %v23400_v54 }
 0x5db   :  { %17805 = vmatmul.mubr.msk.f32.vlgmr.msra.gmra.mrb[64].mxu1 %vm11868_vm11, %v13041_v48  ;;  %v13171_v15 = vmax.f32 %v13169_v35, %v13170_v52  ;;  %v13177_v3 = vrot.slane %v13176_v43, 1  ;;  %v13194_v39 = vsel %vm8462_vm6, %v13164_v49, %v13193_v50  ;;  %v13307_v6 = vrot.slane %v13306_v38, 4  ;;  %v13428_v35 = vld [vmem:[#allocation4 + $0x7c] sm:$0x3] }
 0x5dc   :  { %17923 = vmatpush3.bf16.msra.mxu1 %v23401_v62  ;;  %17811 = vmatprep.mubr.msk.f32.mxu1 %vm18654_vm9, %v22738_v27  ;;  %v13283_v59 = vrot.slane %v13282_v13, 1  ;;  %v13289_v33 = vmax.f32 %v13287_v23, %v13288_v44  ;;  %v13296_v36 = vmax.f32 %v13294_v61, %v13295_v9  ;;  %v13302_v1 = vrot.slane %v13301_v45, 2 }
 0x5dd   :  { %17924 = vmatprep.subr.bf16.mxu1 %v23347_v55  ;;  %v13178_v47 = vmax.f32 %v13176_v43, %v13177_v3  ;;  %v13195_v10 = vsel %vm8464_vm7, %v13171_v15, %v13194_v39  ;;  %v13308_v53 = vmax.f32 %v13306_v38, %v13307_v6  ;;  %v13313_v56 = vsel %vm11726_vm10, %v13275_v25, -inf }
 0x5de   :  { %v13284_v48 = vmax.f32 %v13282_v13, %v13283_v59  ;;  %v13290_v12 = vrot.slane %v13289_v33, 1  ;;  %v13297_v31 = vrot.slane %v13296_v36, 1  ;;  %v13303_v46 = vmax.f32 %v13301_v45, %v13302_v1  ;;  %v13429_v13 = vld [vmem:[#allocation4 + $0x9c] sm:$0x3] }
 0x5df   :  { %v13196_v22 = vsel %vm8466_vm8, %v13178_v47, %v13195_v10  ;;  %v13309_v60 = vrot.slane %v13308_v53, 2  ;;  %v13314_v7 = vrot.slane %v13313_v56, 4  ;;  %v13320_v57 = vsel %vm11726_vm10, %v13276_v29, -inf  ;;  %v13430_v10 = vld [vmem:[#allocation4 + $0xbc] sm:$0x3] }
 0x5e0   :  { %17812 = vmatmul.mubr.msk.f32.vlgmr.msra.gmra.mrb[66].mxu1 %vm11868_vm11, %v13196_v22  ;;  %v13291_v37 = vmax.f32 %v13289_v33, %v13290_v12  ;;  %v13298_v11 = vmax.f32 %v13296_v36, %v13297_v31  ;;  %v13304_v41 = vrot.slane %v13303_v46, 1  ;;  %v13321_v4 = vrot.slane %v13320_v57, 4  ;;  %v13431_v22 = vld [vmem:[#allocation4 + $0xdc] sm:$0x3] }
 0x5e1   :  { %v23404_v5 = vpack.c.bf16 %v23402_v14, %v23403_v28  ;;  %17818 = vmatprep.mubr.msk.f32.mxu1 %vm18654_vm9, %v22738_v27  ;;  %v13310_v58 = vmax.f32 %v13308_v53, %v13309_v60  ;;  %v13315_v21 = vmax.f32 %v13313_v56, %v13314_v7  ;;  %v13327_v8 = vsel %vm11726_vm10, %v13277_v24, -inf  ;;  %v13432_v60 = vld [vmem:[#allocation4 + $0xfc] sm:$0x3] }
 0x5e2   :  { %v13433_v50 = vsel %vm11726_vm10, %v13425_v51, -inf  ;;  %v13305_v26 = vmax.f32 %v13303_v46, %v13304_v41  ;;  %v13322_v34 = vmax.f32 %v13320_v57, %v13321_v4  ;;  %v13328_v30 = vrot.slane %v13327_v8, 4 }
 0x5e3   :  { %17926 = vmatpush3.bf16.msra.mxu1 %v23404_v5  ;;  %v13345_v19 = vsel %vm8454_vm2, %v13291_v37, %v13284_v48  ;;  %v13311_v32 = vrot.slane %v13310_v58, 1  ;;  %v13316_v63 = vrot.slane %v13315_v21, 2  ;;  %v13434_v40 = vrot.slane %v13433_v50, 4 }
 0x5e4   :  { %17927 = vmatprep.subr.bf16.mxu1 %v23347_v55  ;;  %v13346_v42 = vsel %vm8456_vm3, %v13298_v11, %v13345_v19  ;;  %v13323_v2 = vrot.slane %v13322_v34, 2  ;;  %v13329_v16 = vmax.f32 %v13327_v8, %v13328_v30  ;;  %v13440_v61 = vsel %vm11726_vm10, %v13426_v18, -inf  ;;  %v22942_v8 = vld [vmem:[%s23173_s5 + $0xc8] sm:$0xff]  ;;  %v13580_v30 = vld [vmem:[#allocation4 + $0x6] sm:$0x3]  ;;  %v23405_v19 = vld [vmem:[#allocation51_spill] sm:$0xff] }
 0x5e5   :  { %v13347_v23 = vsel %vm8458_vm4, %v13305_v26, %v13346_v42  ;;  %v13312_v20 = vmax.f32 %v13310_v58, %v13311_v32  ;;  %v13317_v49 = vmax.f32 %v13315_v21, %v13316_v63  ;;  %v13435_v52 = vmax.f32 %v13433_v50, %v13434_v40  ;;  %v22937_v21 = vld [vmem:[%s23173_s5 + $0xc0] sm:$0xff] }
 0x5e6   :  { %v13441_v43 = vrot.slane %v13440_v61, 4  ;;  %v13324_v38 = vmax.f32 %v13322_v34, %v13323_v2  ;;  %v13330_v25 = vrot.slane %v13329_v16, 2  ;;  %v13447_v44 = vsel %vm11726_vm10, %v13427_v0, -inf  ;;  %v23406_v0 = vld [vmem:[#allocation50_spill] sm:$0xff]  ;;  %v13581_v2 = vld [vmem:[#allocation4 + $0x26] sm:$0x3] }
 0x5e7   :  { %v13454_v9 = vsel %vm11726_vm10, %v13428_v35, -inf  ;;  %v13318_v45 = vrot.slane %v13317_v49, 1  ;;  %v13348_v17 = vsel %vm8460_vm5, %v13312_v20, %v13347_v23  ;;  %v13436_v54 = vrot.slane %v13435_v52, 2 }
 0x5e8   :  { %v13442_v62 = vmax.f32 %v13440_v61, %v13441_v43  ;;  %v13325_v15 = vrot.slane %v13324_v38, 1  ;;  %v13331_v3 = vmax.f32 %v13329_v16, %v13330_v25  ;;  %v13448_v39 = vrot.slane %v13447_v44, 4 }
 0x5e9   :  { %v13455_v6 = vrot.slane %v13454_v9, 4  ;;  %v13319_v29 = vmax.f32 %v13317_v49, %v13318_v45  ;;  %v13437_v59 = vmax.f32 %v13435_v52, %v13436_v54  ;;  %v13461_v36 = vsel %vm11726_vm10, %v13429_v13, -inf }
 0x5ea   :  { %v13443_v33 = vrot.slane %v13442_v62, 2  ;;  %v13326_v1 = vmax.f32 %v13324_v38, %v13325_v15  ;;  %v13332_v47 = vrot.slane %v13331_v3, 1  ;;  %v13449_v53 = vmax.f32 %v13447_v44, %v13448_v39  ;;  %v13582_v44 = vld [vmem:[#allocation4 + $0x46] sm:$0x3] }
 0x5eb   :  { %v13456_v56 = vmax.f32 %v13454_v9, %v13455_v6  ;;  %v13349_v24 = vsel %vm8462_vm6, %v13319_v29, %v13348_v17  ;;  %v13438_v48 = vrot.slane %v13437_v59, 1  ;;  %v13462_v31 = vrot.slane %v13461_v36, 4  ;;  %v13583_v29 = vld [vmem:[#allocation4 + $0x66] sm:$0x3] }
 0x5ec   :  { %v13444_v12 = vmax.f32 %v13442_v62, %v13443_v33  ;;  %v13333_v46 = vmax.f32 %v13331_v3, %v13332_v47  ;;  %v13350_v51 = vsel %vm8464_vm7, %v13326_v1, %v13349_v24  ;;  %v13450_v7 = vrot.slane %v13449_v53, 2 }
 0x5ed   :  { %v13457_v57 = vrot.slane %v13456_v56, 2  ;;  %v13439_v37 = vmax.f32 %v13437_v59, %v13438_v48  ;;  %v13463_v41 = vmax.f32 %v13461_v36, %v13462_v31  ;;  %v13468_v4 = vsel %vm11726_vm10, %v13430_v10, -inf }
 0x5ee   :  { %v13445_v11 = vrot.slane %v13444_v12, 1  ;;  %v13351_v14 = vsel %vm8466_vm8, %v13333_v46, %v13350_v51  ;;  %v13451_v28 = vmax.f32 %v13449_v53, %v13450_v7  ;;  %v13469_v58 = vrot.slane %v13468_v4, 4 }
 0x5ef   :  { %v13458_v5 = vmax.f32 %v13456_v56, %v13457_v57  ;;  %17819 = vmatmul.mubr.msk.f32.vlgmr.msra.gmra.mrb[68].mxu1 %vm11868_vm11, %v13351_v14  ;;  %v13464_v50 = vrot.slane %v13463_v41, 2  ;;  %v13475_v26 = vsel %vm11726_vm10, %v13431_v22, -inf  ;;  %v13482_v34 = vsel %vm11726_vm10, %v13432_v60, -inf  ;;  %v13584_v56 = vld [vmem:[#allocation4 + $0x86] sm:$0x3] }
 0x5f0   :  { %v13446_v18 = vmax.f32 %v13444_v12, %v13445_v11  ;;  %v23407_v32 = vpack.c.bf16 %v23405_v19, %v23406_v0  ;;  %17825 = vmatprep.mubr.msk.f32.mxu1 %vm18654_vm9, %v22738_v27  ;;  %v13452_v63 = vrot.slane %v13451_v28, 1  ;;  %v13470_v35 = vmax.f32 %v13468_v4, %v13469_v58  ;;  %v13585_v60 = vld [vmem:[#allocation4 + $0xa6] sm:$0x3] }
 0x5f1   :  { %v13459_v42 = vrot.slane %v13458_v5, 1  ;;  %v13476_v40 = vrot.slane %v13475_v26, 4  ;;  %v13465_v16 = vmax.f32 %v13463_v41, %v13464_v50  ;;  %v13483_v23 = vrot.slane %v13482_v34, 4  ;;  %v13587_v19 = vld [vmem:[#allocation4 + $0xe6] sm:$0x3] }
 0x5f2   :  { %17929 = vmatpush3.bf16.msra.mxu1 %v23407_v32  ;;  %v13500_v61 = vsel %vm8454_vm2, %v13446_v18, %v13439_v37  ;;  %v17931_v20 = vpack.c.bf16 %v22942_v8, %v22937_v21  ;;  %v13453_v49 = vmax.f32 %v13451_v28, %v13452_v63  ;;  %v13471_v43 = vrot.slane %v13470_v35, 2 }
 0x5f3   :  { %17930 = vmatprep.subr.bf16.mxu1 %v23347_v55  ;;  %v13460_v52 = vmax.f32 %v13458_v5, %v13459_v42  ;;  %v13477_v38 = vmax.f32 %v13475_v26, %v13476_v40  ;;  %v13466_v25 = vrot.slane %v13465_v16, 1  ;;  %v13484_v13 = vmax.f32 %v13482_v34, %v13483_v23  ;;  %v13586_v5 = vld [vmem:[#allocation4 + $0xc6] sm:$0x3]  ;;  %v22971_v42 = vld [vmem:[%s23173_s5 + $0xd0] sm:$0xff] }
 0x5f4   :  { %v13588_v9 = vsel %vm11726_vm10, %v13580_v30, -inf  ;;  %v13595_v45 = vsel %vm11726_vm10, %v13581_v2, -inf  ;;  %v13472_v17 = vmax.f32 %v13470_v35, %v13471_v43  ;;  %v13501_v62 = vsel %vm8456_vm3, %v13453_v49, %v13500_v61  ;;  %v22976_v35 = vld [vmem:[%s23173_s5 + $0xd8] sm:$0xff] }
 0x5f5   :  { %v13478_v54 = vrot.slane %v13477_v38, 2  ;;  %v13589_v15 = vrot.slane %v13588_v9, 4  ;;  %v13467_v3 = vmax.f32 %v13465_v16, %v13466_v25  ;;  %v13485_v39 = vrot.slane %v13484_v13, 2 }
 0x5f6   :  { %v13502_v6 = vsel %vm8458_vm4, %v13460_v52, %v13501_v62  ;;  %v13596_v59 = vrot.slane %v13595_v45, 4  ;;  %v13473_v33 = vrot.slane %v13472_v17, 1  ;;  %v13602_v47 = vsel %vm11726_vm10, %v13582_v44, -inf  ;;  %v13736_v62 = vld [vmem:[#allocation4 + $0x2e] sm:$0x3] }
 0x5f7   :  { %v13479_v36 = vmax.f32 %v13477_v38, %v13478_v54  ;;  %v13590_v1 = vmax.f32 %v13588_v9, %v13589_v15  ;;  %v13486_v10 = vmax.f32 %v13484_v13, %v13485_v39  ;;  %v13503_v53 = vsel %vm8460_vm5, %v13467_v3, %v13502_v6  ;;  %v13735_v38 = vld [vmem:[#allocation4 + $0xe] sm:$0x3] }
 0x5f8   :  { %v13597_v24 = vmax.f32 %v13595_v45, %v13596_v59  ;;  %v13603_v48 = vrot.slane %v13602_v47, 4  ;;  %v13474_v12 = vmax.f32 %v13472_v17, %v13473_v33  ;;  %v13609_v51 = vsel %vm11726_vm10, %v13583_v29, -inf }
 0x5f9   :  { %v13480_v31 = vrot.slane %v13479_v36, 1  ;;  %v13591_v46 = vrot.slane %v13590_v1, 2  ;;  %v13487_v22 = vrot.slane %v13486_v10, 1  ;;  %v13610_v37 = vrot.slane %v13609_v51, 4 }
 0x5fa   :  { %v13598_v7 = vrot.slane %v13597_v24, 2  ;;  %v13604_v57 = vmax.f32 %v13602_v47, %v13603_v48  ;;  %v13504_v41 = vsel %vm8462_vm6, %v13474_v12, %v13503_v53  ;;  %v13616_v14 = vsel %vm11726_vm10, %v13584_v56, -inf }
 0x5fb   :  { %v13481_v11 = vmax.f32 %v13479_v36, %v13480_v31  ;;  %v13592_v4 = vmax.f32 %v13590_v1, %v13591_v46  ;;  %v13488_v28 = vmax.f32 %v13486_v10, %v13487_v22  ;;  %v13611_v8 = vmax.f32 %v13609_v51, %v13610_v37  ;;  %v13737_v1 = vld [vmem:[#allocation4 + $0x4e] sm:$0x3] }
 0x5fc   :  { %v13599_v58 = vmax.f32 %v13597_v24, %v13598_v7  ;;  %v13605_v21 = vrot.slane %v13604_v57, 2  ;;  %v13617_v26 = vrot.slane %v13616_v14, 4  ;;  %v13623_v34 = vsel %vm11726_vm10, %v13585_v60, -inf  ;;  %v13738_v31 = vld [vmem:[#allocation4 + $0x6e] sm:$0x3] }
 0x5fd   :  { %v13505_v18 = vsel %vm8464_vm7, %v13481_v11, %v13504_v41  ;;  %v13593_v50 = vrot.slane %v13592_v4, 1  ;;  %v13612_v63 = vrot.slane %v13611_v8, 2  ;;  %v13624_v16 = vrot.slane %v13623_v34, 4  ;;  %v13739_v11 = vld [vmem:[#allocation4 + $0x8e] sm:$0x3] }
 0x5fe   :  { %v13506_v30 = vsel %vm8466_vm8, %v13488_v28, %v13505_v18  ;;  %v13600_v0 = vrot.slane %v13599_v58, 1  ;;  %v13606_v32 = vmax.f32 %v13604_v57, %v13605_v21  ;;  %v13618_v2 = vmax.f32 %v13616_v14, %v13617_v26  ;;  %v13740_v18 = vld [vmem:[#allocation4 + $0xae] sm:$0x3] }
 0x5ff   :  { %17826 = vmatmul.mubr.msk.f32.vlgmr.msra.gmra.mrb[70].mxu1 %vm11868_vm11, %v13506_v30  ;;  %v13594_v40 = vmax.f32 %v13592_v4, %v13593_v50  ;;  %v13630_v23 = vsel %vm11726_vm10, %v13586_v5, -inf  ;;  %v13613_v52 = vmax.f32 %v13611_v8, %v13612_v63  ;;  %v13625_v13 = vmax.f32 %v13623_v34, %v13624_v16 }
 0x600   :  { %17932 = vmatpush3.bf16.msra.mxu1 %v17931_v20  ;;  %17832 = vmatprep.mubr.msk.f32.mxu1 %vm18654_vm9, %v22738_v27  ;;  %v13601_v61 = vmax.f32 %v13599_v58, %v13600_v0  ;;  %v13607_v49 = vrot.slane %v13606_v32, 1  ;;  %v13631_v43 = vrot.slane %v13630_v23, 4  ;;  %v13619_v25 = vrot.slane %v13618_v2, 2 }
 0x601   :  { %v13637_v44 = vsel %vm11726_vm10, %v13587_v19, -inf  ;;  %17933 = vmatprep.subr.bf16.mxu1 %v23347_v55  ;;  %v17934_v9 = vpack.c.bf16 %v22976_v35, %v22971_v42  ;;  %v13614_v17 = vrot.slane %v13613_v52, 1  ;;  %v13626_v3 = vrot.slane %v13625_v13, 2 }
 0x602   :  { %v13608_v45 = vmax.f32 %v13606_v32, %v13607_v49  ;;  %v13632_v20 = vmax.f32 %v13630_v23, %v13631_v43  ;;  %v13638_v54 = vrot.slane %v13637_v44, 4  ;;  %v13620_v15 = vmax.f32 %v13618_v2, %v13619_v25 }
 0x603   :  { %v13655_v39 = vsel %vm8454_vm2, %v13601_v61, %v13594_v40  ;;  %v13743_v6 = vsel %vm11726_vm10, %v13735_v38, -inf  ;;  %v13615_v29 = vmax.f32 %v13613_v52, %v13614_v17  ;;  %v13627_v10 = vmax.f32 %v13625_v13, %v13626_v3  ;;  %v13741_v40 = vld [vmem:[#allocation4 + $0xce] sm:$0x3] }
 0x604   :  { %v13633_v59 = vrot.slane %v13632_v20, 2  ;;  %v13639_v33 = vmax.f32 %v13637_v44, %v13638_v54  ;;  %v13656_v36 = vsel %vm8456_vm3, %v13608_v45, %v13655_v39  ;;  %v13621_v47 = vrot.slane %v13620_v15, 1  ;;  %v13742_v38 = vld [vmem:[#allocation4 + $0xee] sm:$0x3]  ;;  %v23002_v45 = vld [vmem:[%s23173_s5 + $0xe0] sm:$0xff] }
 0x605   :  { %v13744_v53 = vrot.slane %v13743_v6, 4  ;;  %v13750_v56 = vsel %vm11726_vm10, %v13736_v62, -inf  ;;  %v13657_v12 = vsel %vm8458_vm4, %v13615_v29, %v13656_v36  ;;  %v13628_v22 = vrot.slane %v13627_v10, 1  ;;  %v23007_v17 = vld [vmem:[%s23173_s5 + $0xe8] sm:$0xff] }
 0x606   :  { %v13634_v24 = vmax.f32 %v13632_v20, %v13633_v59  ;;  %v13640_v48 = vrot.slane %v13639_v33, 2  ;;  %v13751_v46 = vrot.slane %v13750_v56, 4  ;;  %v13622_v51 = vmax.f32 %v13620_v15, %v13621_v47  ;;  %v13890_v59 = vld [vmem:[#allocation4 + $0x16] sm:$0x3] }
 0x607   :  { %v13745_v60 = vmax.f32 %v13743_v6, %v13744_v53  ;;  %v13757_v7 = vsel %vm11726_vm10, %v13737_v1, -inf  ;;  %v13629_v14 = vmax.f32 %v13627_v10, %v13628_v22  ;;  %v13764_v58 = vsel %vm11726_vm10, %v13738_v31, -inf  ;;  %v13891_v53 = vld [vmem:[#allocation4 + $0x36] sm:$0x3] }
 0x608   :  { %v13635_v57 = vrot.slane %v13634_v24, 1  ;;  %v13641_v37 = vmax.f32 %v13639_v33, %v13640_v48  ;;  %v13752_v41 = vmax.f32 %v13750_v56, %v13751_v46  ;;  %v13758_v4 = vrot.slane %v13757_v7, 4 }
 0x609   :  { %v13658_v28 = vsel %vm8460_vm5, %v13622_v51, %v13657_v12  ;;  %v13746_v5 = vrot.slane %v13745_v60, 2  ;;  %v13765_v19 = vrot.slane %v13764_v58, 4  ;;  %v13771_v0 = vsel %vm11726_vm10, %v13739_v11, -inf }
 0x60a   :  { %v13636_v21 = vmax.f32 %v13634_v24, %v13635_v57  ;;  %v13642_v8 = vrot.slane %v13641_v37, 1  ;;  %v13753_v50 = vrot.slane %v13752_v41, 2  ;;  %v13759_v26 = vmax.f32 %v13757_v7, %v13758_v4 }
 0x60b   :  { %v13659_v34 = vsel %vm8462_vm6, %v13629_v14, %v13658_v28  ;;  %v13747_v30 = vmax.f32 %v13745_v60, %v13746_v5  ;;  %v13766_v61 = vmax.f32 %v13764_v58, %v13765_v19  ;;  %v13772_v49 = vrot.slane %v13771_v0, 4  ;;  %v13892_v60 = vld [vmem:[#allocation4 + $0x56] sm:$0x3] }
 0x60c   :  { %v13643_v32 = vmax.f32 %v13641_v37, %v13642_v8  ;;  %v13660_v63 = vsel %vm8464_vm7, %v13636_v21, %v13659_v34  ;;  %v13754_v2 = vmax.f32 %v13752_v41, %v13753_v50  ;;  %v13760_v16 = vrot.slane %v13759_v26, 2  ;;  %v13893_v28 = vld [vmem:[#allocation4 + $0x76] sm:$0x3] }
 0x60d   :  { %v13748_v23 = vrot.slane %v13747_v30, 1  ;;  %v13778_v52 = vsel %vm11726_vm10, %v13740_v18, -inf  ;;  %v13767_v54 = vrot.slane %v13766_v61, 2  ;;  %v13773_v62 = vmax.f32 %v13771_v0, %v13772_v49 }
 0x60e   :  { %v13661_v43 = vsel %vm8466_vm8, %v13643_v32, %v13660_v63  ;;  %v13755_v25 = vrot.slane %v13754_v2, 1  ;;  %v13761_v13 = vmax.f32 %v13759_v26, %v13760_v16  ;;  %v13779_v44 = vrot.slane %v13778_v52, 4 }
 0x60f   :  { %17833 = vmatmul.mubr.msk.f32.vlgmr.msra.gmra.mrb[72].mxu1 %vm11868_vm11, %v13661_v43  ;;  %v13749_v20 = vmax.f32 %v13747_v30, %v13748_v23  ;;  %v13785_v15 = vsel %vm11726_vm10, %v13741_v40, -inf  ;;  %v13768_v33 = vmax.f32 %v13766_v61, %v13767_v54  ;;  %v13774_v36 = vrot.slane %v13773_v62, 2  ;;  %v13894_v30 = vld [vmem:[#allocation4 + $0x96] sm:$0x3] }
 0x610   :  { %17935 = vmatpush3.bf16.msra.mxu1 %v17934_v9  ;;  %17839 = vmatprep.mubr.msk.f32.mxu1 %vm18654_vm9, %v22738_v27  ;;  %v13756_v3 = vmax.f32 %v13754_v2, %v13755_v25  ;;  %v13762_v39 = vrot.slane %v13761_v13, 1  ;;  %v13780_v6 = vmax.f32 %v13778_v52, %v13779_v44  ;;  %v13786_v29 = vrot.slane %v13785_v15, 4  ;;  %v13895_v61 = vld [vmem:[#allocation4 + $0xb6] sm:$0x3] }
 0x611   :  { %v13792_v1 = vsel %vm11726_vm10, %v13742_v38, -inf  ;;  %17936 = vmatprep.subr.bf16.mxu1 %v23347_v55  ;;  %v17937_v47 = vpack.c.bf16 %v23007_v17, %v23002_v45  ;;  %v13769_v56 = vrot.slane %v13768_v33, 1  ;;  %v13775_v24 = vmax.f32 %v13773_v62, %v13774_v36 }
 0x612   :  { %v13763_v10 = vmax.f32 %v13761_v13, %v13762_v39  ;;  %v13781_v42 = vrot.slane %v13780_v6, 2  ;;  %v13787_v35 = vmax.f32 %v13785_v15, %v13786_v29  ;;  %v13793_v9 = vrot.slane %v13792_v1, 4 }
 0x613   :  { %v13810_v48 = vsel %vm8454_vm2, %v13756_v3, %v13749_v20  ;;  %v13898_v12 = vsel %vm11726_vm10, %v13890_v59, -inf  ;;  %v13770_v7 = vmax.f32 %v13768_v33, %v13769_v56  ;;  %v13776_v57 = vrot.slane %v13775_v24, 1  ;;  %v13896_v20 = vld [vmem:[#allocation4 + $0xd6] sm:$0x3] }
 0x614   :  { %v13782_v31 = vmax.f32 %v13780_v6, %v13781_v42  ;;  %v13788_v46 = vrot.slane %v13787_v35, 2  ;;  %v13794_v51 = vmax.f32 %v13792_v1, %v13793_v9  ;;  %v13811_v22 = vsel %vm8456_vm3, %v13763_v10, %v13810_v48  ;;  %v13897_v59 = vld [vmem:[#allocation4 + $0xf6] sm:$0x3]  ;;  %v23041_v42 = vld [vmem:[%s23173_s5 + $0xf8] sm:$0xff] }
 0x615   :  { %v13899_v37 = vrot.slane %v13898_v12, 4  ;;  %v13905_v11 = vsel %vm11726_vm10, %v13891_v53, -inf  ;;  %v13777_v58 = vmax.f32 %v13775_v24, %v13776_v57  ;;  %v13812_v21 = vsel %vm8458_vm4, %v13770_v7, %v13811_v22  ;;  %v23036_v10 = vld [vmem:[%s23173_s5 + $0xf0] sm:$0xff] }
 0x616   :  { %v13783_v41 = vrot.slane %v13782_v31, 1  ;;  %v13789_v4 = vmax.f32 %v13787_v35, %v13788_v46  ;;  %v13795_v14 = vrot.slane %v13794_v51, 2  ;;  %v13906_v5 = vrot.slane %v13905_v11, 4  ;;  %v14045_v46 = vld [vmem:[#allocation4 + $0x1e] sm:$0x3] }
 0x617   :  { %v13900_v8 = vmax.f32 %v13898_v12, %v13899_v37  ;;  %v13912_v18 = vsel %vm11726_vm10, %v13892_v60, -inf  ;;  %v13813_v0 = vsel %vm8460_vm5, %v13777_v58, %v13812_v21  ;;  %v13919_v40 = vsel %vm11726_vm10, %v13893_v28, -inf  ;;  %v14046_v37 = vld [vmem:[#allocation4 + $0x3e] sm:$0x3] }
 0x618   :  { %v13784_v50 = vmax.f32 %v13782_v31, %v13783_v41  ;;  %v13790_v26 = vrot.slane %v13789_v4, 1  ;;  %v13796_v34 = vmax.f32 %v13794_v51, %v13795_v14  ;;  %v13907_v19 = vmax.f32 %v13905_v11, %v13906_v5  ;;  %v14047_v21 = vld [vmem:[#allocation4 + $0x5e] sm:$0x3] }
 0x619   :  { %v13901_v32 = vrot.slane %v13900_v8, 2  ;;  %v13913_v63 = vrot.slane %v13912_v18, 4  ;;  %v13920_v38 = vrot.slane %v13919_v40, 4  ;;  %v13926_v25 = vsel %vm11726_vm10, %v13894_v30, -inf }
 0x61a   :  { %v13791_v2 = vmax.f32 %v13789_v4, %v13790_v26  ;;  %v13797_v16 = vrot.slane %v13796_v34, 1  ;;  %v13814_v23 = vsel %vm8462_vm6, %v13784_v50, %v13813_v0  ;;  %v13908_v49 = vrot.slane %v13907_v19, 2 }
 0x61b   :  { %v13902_v52 = vmax.f32 %v13900_v8, %v13901_v32  ;;  %v13914_v43 = vmax.f32 %v13912_v18, %v13913_v63  ;;  %v13927_v62 = vrot.slane %v13926_v25, 4  ;;  %v13921_v39 = vmax.f32 %v13919_v40, %v13920_v38  ;;  %v14048_v32 = vld [vmem:[#allocation4 + $0x7e] sm:$0x3] }
 0x61c   :  { %v13798_v13 = vmax.f32 %v13796_v34, %v13797_v16  ;;  %v13815_v44 = vsel %vm8464_vm7, %v13791_v2, %v13814_v23  ;;  %v13909_v54 = vmax.f32 %v13907_v19, %v13908_v49  ;;  %v13933_v6 = vsel %vm11726_vm10, %v13895_v61, -inf }
 0x61d   :  { %v13903_v15 = vrot.slane %v13902_v52, 1  ;;  %v13915_v3 = vrot.slane %v13914_v43, 2  ;;  %v13928_v36 = vmax.f32 %v13926_v25, %v13927_v62  ;;  %v13934_v1 = vrot.slane %v13933_v6, 4 }
 0x61e   :  { %v13816_v29 = vsel %vm8466_vm8, %v13798_v13, %v13815_v44  ;;  %v13910_v33 = vrot.slane %v13909_v54, 1  ;;  %v13922_v53 = vrot.slane %v13921_v39, 2  ;;  %v13940_v56 = vsel %vm11726_vm10, %v13896_v20, -inf }
 0x61f   :  { %17840 = vmatmul.mubr.msk.f32.vlgmr.msra.gmra.mrb[74].mxu1 %vm11868_vm11, %v13816_v29  ;;  %v13904_v35 = vmax.f32 %v13902_v52, %v13903_v15  ;;  %v13916_v9 = vmax.f32 %v13914_v43, %v13915_v3  ;;  %v13929_v48 = vrot.slane %v13928_v36, 2  ;;  %v13935_v12 = vmax.f32 %v13933_v6, %v13934_v1  ;;  %v14049_v43 = vld [vmem:[#allocation4 + $0x9e] sm:$0x3] }
 0x620   :  { %17938 = vmatpush3.bf16.msra.mxu1 %v17937_v47  ;;  %17846 = vmatprep.mubr.msk.f32.mxu1 %vm18654_vm9, %v22738_v27  ;;  %v13911_v24 = vmax.f32 %v13909_v54, %v13910_v33  ;;  %v13941_v31 = vrot.slane %v13940_v56, 4  ;;  %v13923_v22 = vmax.f32 %v13921_v39, %v13922_v53  ;;  %v13947_v60 = vsel %vm11726_vm10, %v13897_v59, -inf  ;;  %v14050_v15 = vld [vmem:[#allocation4 + $0xbe] sm:$0x3] }
 0x621   :  { %v13917_v51 = vrot.slane %v13916_v9, 1  ;;  %17939 = vmatprep.subr.bf16.mxu1 %v23347_v55  ;;  %v17940_v7 = vpack.c.bf16 %v23041_v42, %v23036_v10  ;;  %v13930_v57 = vmax.f32 %v13928_v36, %v13929_v48  ;;  %v13936_v45 = vrot.slane %v13935_v12, 2  ;;  %v14051_v1 = vld [vmem:[#allocation4 + $0xde] sm:$0x3] }
 0x622   :  { %v13942_v17 = vmax.f32 %v13940_v56, %v13941_v31  ;;  %v13948_v47 = vrot.slane %v13947_v60, 4  ;;  %v13924_v11 = vrot.slane %v13923_v22, 1  ;;  %v13965_v41 = vsel %vm8454_vm2, %v13911_v24, %v13904_v35  ;;  %v14052_v31 = vld [vmem:[#allocation4 + $0xfe] sm:$0x3] }
 0x623   :  { %v13918_v27 = vmax.f32 %v13916_v9, %v13917_v51  ;;  %v14053_v4 = vsel %vm11726_vm10, %v14045_v46, -inf  ;;  %v13931_v14 = vrot.slane %v13930_v57, 1  ;;  %v13937_v28 = vmax.f32 %v13935_v12, %v13936_v45 }
 0x624   :  { %v13943_v5 = vrot.slane %v13942_v17, 2  ;;  %v13949_v58 = vmax.f32 %v13947_v60, %v13948_v47  ;;  %v13925_v8 = vmax.f32 %v13923_v22, %v13924_v11  ;;  %v14054_v50 = vrot.slane %v14053_v4, 4 }
 0x625   :  { %v13966_v18 = vsel %vm8456_vm3, %v13918_v27, %v13965_v41  ;;  %v14060_v26 = vsel %vm11726_vm10, %v14046_v37, -inf  ;;  %v13932_v34 = vmax.f32 %v13930_v57, %v13931_v14  ;;  %v13938_v30 = vrot.slane %v13937_v28, 1 }
 0x626   :  { %v13944_v19 = vmax.f32 %v13942_v17, %v13943_v5  ;;  %v13950_v0 = vrot.slane %v13949_v58, 2  ;;  %v13967_v63 = vsel %vm8458_vm4, %v13925_v8, %v13966_v18  ;;  %v14055_v40 = vmax.f32 %v14053_v4, %v14054_v50  ;;  %v23072_v17 = vld [vmem:[#allocation3] sm:$0xff] }
 0x627   :  { %v14061_v2 = vrot.slane %v14060_v26, 4  ;;  %v14067_v16 = vsel %vm11726_vm10, %v14047_v21, -inf  ;;  %v13939_v23 = vmax.f32 %v13937_v28, %v13938_v30  ;;  %v13968_v52 = vsel %vm8460_vm5, %v13932_v34, %v13967_v63 }
 0x628   :  { %v13945_v61 = vrot.slane %v13944_v19, 1  ;;  %v13951_v49 = vmax.f32 %v13949_v58, %v13950_v0  ;;  %v14056_v38 = vrot.slane %v14055_v40, 2  ;;  %v14068_v13 = vrot.slane %v14067_v16, 4 }
 0x629   :  { %v14062_v25 = vmax.f32 %v14060_v26, %v14061_v2  ;;  %v14074_v44 = vsel %vm11726_vm10, %v14048_v32, -inf  ;;  %v13969_v62 = vsel %vm8462_vm6, %v13939_v23, %v13968_v52  ;;  %v14081_v59 = vsel %vm11726_vm10, %v14049_v43, -inf }
 0x62a   :  { %v13946_v20 = vmax.f32 %v13944_v19, %v13945_v61  ;;  %v13952_v54 = vrot.slane %v13951_v49, 1  ;;  %v14075_v3 = vrot.slane %v14074_v44, 4  ;;  %v14057_v39 = vmax.f32 %v14055_v40, %v14056_v38 }
 0x62b   :  { %v14063_v6 = vrot.slane %v14062_v25, 2  ;;  %v14069_v29 = vmax.f32 %v14067_v16, %v14068_v13  ;;  %v14082_v9 = vrot.slane %v14081_v59, 4  ;;  %v14088_v48 = vsel %vm11726_vm10, %v14050_v15, -inf  ;;  %v14211_v15 = vld [vmem:[%s23175_s7 + $0x10] sm:$0xff] }
 0x62c   :  { %v13953_v33 = vmax.f32 %v13951_v49, %v13952_v54  ;;  %v13970_v36 = vsel %vm8464_vm7, %v13946_v20, %v13969_v62  ;;  %v14076_v35 = vmax.f32 %v14074_v44, %v14075_v3  ;;  %v14058_v53 = vrot.slane %v14057_v39, 1  ;;  %v14209_v20 = vld [vmem:[%s23175_s7] sm:$0xff]  ;;  %v14210_v54 = vld [vmem:[%s23175_s7 + $0x8] sm:$0xff]  ;;  %v14212_v3 = vld [vmem:[%s23175_s7 + $0x18] sm:$0xff] }
 0x62d   :  { %v14064_v56 = vmax.f32 %v14062_v25, %v14063_v6  ;;  %v14070_v24 = vrot.slane %v14069_v29, 2  ;;  %v14083_v51 = vmax.f32 %v14081_v59, %v14082_v9  ;;  %v14089_v22 = vrot.slane %v14088_v48, 4 }
 0x62e   :  { %v13971_v12 = vsel %vm8466_vm8, %v13953_v33, %v13970_v36  ;;  %v14077_v46 = vrot.slane %v14076_v35, 2  ;;  %v14095_v45 = vsel %vm11726_vm10, %v14051_v1, -inf  ;;  %v14059_v41 = vmax.f32 %v14057_v39, %v14058_v53  ;;  %v14213_v53 = vld [vmem:[%s23175_s7 + $0x20] sm:$0xff] }
 0x62f   :  { %17847 = vmatmul.mubr.msk.f32.vlgmr.msra.gmra.mrb[76].mxu1 %vm11868_vm11, %v13971_v12  ;;  %v14065_v60 = vrot.slane %v14064_v56, 1  ;;  %v14071_v57 = vmax.f32 %v14069_v29, %v14070_v24  ;;  %v14084_v37 = vrot.slane %v14083_v51, 2  ;;  %v14090_v27 = vmax.f32 %v14088_v48, %v14089_v22  ;;  %v14215_v24 = vld [vmem:[%s23175_s7 + $0x30] sm:$0xff]  ;;  %v14216_v12 = vld [vmem:[%s23175_s7 + $0x38] sm:$0xff] }
 0x630   :  { %17941 = vmatpush3.bf16.msra.mxu1 %v17940_v7  ;;  %17853 = vmatprep.mubr.msk.f32.mxu1 %vm18654_vm9, %v23072_v17  ;;  %v14078_v47 = vmax.f32 %v14076_v35, %v14077_v46  ;;  %v14096_v11 = vrot.slane %v14095_v45, 4  ;;  %v14102_v28 = vsel %vm11726_vm10, %v14052_v31, -inf  ;;  %v17943_v62 = vpack.c.bf16 %v14210_v54, %v14209_v20 }
 0x631   :  { %v14066_v4 = vmax.f32 %v14064_v56, %v14065_v60  ;;  %v14072_v14 = vrot.slane %v14071_v57, 1  ;;  %17942 = vmatprep.subr.bf16.mxu1 %v23347_v55  ;;  %v14085_v58 = vmax.f32 %v14083_v51, %v14084_v37  ;;  %v14091_v10 = vrot.slane %v14090_v27, 2  ;;  %v14214_v56 = vld [vmem:[%s23175_s7 + $0x28] sm:$0xff] }
 0x632   :  { %v14079_v5 = vrot.slane %v14078_v47, 1  ;;  %v14097_v42 = vmax.f32 %v14095_v45, %v14096_v11  ;;  %v14103_v21 = vrot.slane %v14102_v28, 4  ;;  %v17946_v39 = vpack.c.bf16 %v14212_v3, %v14211_v15  ;;  %v14301_v15 = vld [vmem:[%s23177_s9 + $0x10] sm:$0xff]  ;;  %v14302_v3 = vld [vmem:[%s23177_s9 + $0x18] sm:$0xff] }
 0x633   :  { %v14073_v7 = vmax.f32 %v14071_v57, %v14072_v14  ;;  %v14120_v8 = vsel %vm8454_vm2, %v14066_v4, %v14059_v41  ;;  %v14086_v50 = vrot.slane %v14085_v58, 1  ;;  %v14092_v26 = vmax.f32 %v14090_v27, %v14091_v10 }
 0x634   :  { %v14080_v18 = vmax.f32 %v14078_v47, %v14079_v5  ;;  %v14098_v34 = vrot.slane %v14097_v42, 2  ;;  %v14104_v30 = vmax.f32 %v14102_v28, %v14103_v21  ;;  %v17949_v48 = vpack.c.bf16 %v14214_v56, %v14213_v53 }
 0x635   :  { %v14121_v19 = vsel %vm8456_vm3, %v14073_v7, %v14120_v8  ;;  %v14087_v0 = vmax.f32 %v14085_v58, %v14086_v50  ;;  %v14093_v32 = vrot.slane %v14092_v26, 1  ;;  %v17952_v22 = vpack.c.bf16 %v14216_v12, %v14215_v24 }
 0x636   :  { %v14099_v63 = vmax.f32 %v14097_v42, %v14098_v34  ;;  %v14122_v40 = vsel %vm8458_vm4, %v14080_v18, %v14121_v19  ;;  %v14105_v2 = vrot.slane %v14104_v30, 2 }
 0x637   :  { %v14094_v16 = vmax.f32 %v14092_v26, %v14093_v32  ;;  %v14123_v61 = vsel %vm8460_vm5, %v14087_v0, %v14122_v40 }
 0x638   :  { %v14100_v23 = vrot.slane %v14099_v63, 1  ;;  %v14106_v49 = vmax.f32 %v14104_v30, %v14105_v2 }
 0x639   :  { %v14124_v43 = vsel %vm8462_vm6, %v14094_v16, %v14123_v61 }
 0x63a   :  { %v14101_v52 = vmax.f32 %v14099_v63, %v14100_v23  ;;  %v14107_v38 = vrot.slane %v14106_v49, 1 }
 0x63c   :  { %v14125_v25 = vsel %vm8464_vm7, %v14101_v52, %v14124_v43  ;;  %v14108_v13 = vmax.f32 %v14106_v49, %v14107_v38  ;;  %v15738_v43 = vld [vmem:[%s23174_s6] ss:$0 sm:$0xff] }
 0x63e   :  { %v14126_v44 = vsel %vm8466_vm8, %v14108_v13, %v14125_v25  ;;  %v14299_v13 = vld [vmem:[%s23177_s9] sm:$0xff] }
 0x63f   :  { %17854 = vmatmul.mubr.msk.f32.vlgmr.msra.gmra.mrb[78].mxu1 %vm11868_vm11, %v14126_v44  ;;  %v14300_v44 = vld [vmem:[%s23177_s9 + $0x8] sm:$0xff] }
 0x640   :  { %17872 = vmatprep.mubr.msk.f32.mxu1 %vm18654_vm9, %v23072_v17  ;;  %17944 = vmatpush3.bf16.msra.mxu1 %v17943_v62  ;;  %v17955_v54 = vpack.c.bf16 %v14300_v44, %v14299_v13 }
 0x641   :  { %17945 = vmatprep.subr.bf16.mxu1 %v23347_v55 }
 0x644   :  { %17947 = vmatpush3.bf16.msra.mxu1 %v17946_v39  ;;  %v17958_v39 = vpack.c.bf16 %v14302_v3, %v14301_v15 }
 0x645   :  { %17948 = vmatprep.subr.bf16.mxu1 %v23347_v55 }
 0x648   :  { %17950 = vmatpush3.bf16.msra.mxu1 %v17949_v48 }
 0x649   :  { %17951 = vmatprep.subr.bf16.mxu1 %v23347_v55 }
 0x64c   :  { %17953 = vmatpush3.bf16.msra.mxu1 %v17952_v22 }
 0x64d   :  { %17954 = vmatprep.subr.bf16.mxu1 %v23347_v55 }
 0x68a   :  { %v11937_v6 = vpop.f32.mrb[48].mxu1 }
 0x68b   :  { %v17750_v29 = vpop.f32.mrb[49].mxu1 }
 0x68c   :  { %v14304_v29 = vld [vmem:[%s23177_s9 + $0x28] sm:$0xff] }
 0x690   :  { %v12024_v59 = vpop.f32.mrb[50].mxu1 }
 0x691   :  { %v12025_v33 = vadd.f32 %v12024_v59, %v11937_v6  ;;  %v17757_v36 = vpop.f32.mrb[51].mxu1  ;;  %v14303_v6 = vld [vmem:[%s23177_s9 + $0x20] sm:$0xff] }
 0x692   :  { %v17961_v59 = vpack.c.bf16 %v14304_v29, %v14303_v6 }
 0x694   :  { %v12179_v1 = vpop.f32.mrb[52].mxu1 }
 0x695   :  { %v12183_v35 = vadd.f32 %v12179_v1, %v12025_v33  ;;  %v17764_v9 = vpop.f32.mrb[53].mxu1  ;;  %v14306_v33 = vld [vmem:[%s23177_s9 + $0x38] sm:$0xff]  ;;  %v15739_v1 = vld [vmem:[%s23176_s8] ss:$0 sm:$0xff] }
 0x699   :  { %v12335_v31 = vpop.f32.mrb[54].mxu1 }
 0x69a   :  { %v12339_v46 = vadd.f32 %v12335_v31, %v12183_v35  ;;  %v17771_v51 = vpop.f32.mrb[55].mxu1 }
 0x69d   :  { %v12490_v60 = vpop.f32.mrb[56].mxu1 }
 0x69e   :  { %v12494_v57 = vadd.f32 %v12490_v60, %v12339_v46  ;;  %v17778_v45 = vpop.f32.mrb[57].mxu1 }
 0x6a1   :  { %v12645_v47 = vpop.f32.mrb[58].mxu1 }
 0x6a2   :  { %v12649_v37 = vadd.f32 %v12645_v47, %v12494_v57  ;;  %v17785_v27 = vpop.f32.mrb[59].mxu1 }
 0x6a6   :  { %v12800_v11 = vpop.f32.mrb[60].mxu1 }
 0x6a7   :  { %v12804_v41 = vadd.f32 %v12800_v11, %v12649_v37  ;;  %v17792_v4 = vpop.f32.mrb[61].mxu1 }
 0x6aa   :  { %v12955_v14 = vpop.f32.mrb[62].mxu1 }
 0x6ab   :  { %v12959_v28 = vadd.f32 %v12955_v14, %v12804_v41  ;;  %v17799_v5 = vpop.f32.mrb[63].mxu1 }
 0x6ae   :  { %v13110_v58 = vpop.f32.mrb[64].mxu1 }
 0x6af   :  { %v13114_v10 = vadd.f32 %v13110_v58, %v12959_v28  ;;  %v17806_v42 = vpop.f32.mrb[65].mxu1 }
 0x6b3   :  { %v13265_v7 = vpop.f32.mrb[66].mxu1 }
 0x6b4   :  { %v13269_v21 = vadd.f32 %v13265_v7, %v13114_v10  ;;  %v17813_v8 = vpop.f32.mrb[67].mxu1 }
 0x6c2   :  { %v13420_v18 = vpop.f32.mrb[68].mxu1 }
 0x6c3   :  { %v13424_v50 = vadd.f32 %v13420_v18, %v13269_v21  ;;  %v17820_v26 = vpop.f32.mrb[69].mxu1 }
 0x6d2   :  { %v13575_v34 = vpop.f32.mrb[70].mxu1 }
 0x6d3   :  { %v13579_v30 = vadd.f32 %v13575_v34, %v13424_v50  ;;  %v17827_v19 = vpop.f32.mrb[71].mxu1 }
 0x6e2   :  { %v13730_v0 = vpop.f32.mrb[72].mxu1 }
 0x6e3   :  { %v13734_v32 = vadd.f32 %v13730_v0, %v13579_v30  ;;  %v17834_v63 = vpop.f32.mrb[73].mxu1 }
 0x6f2   :  { %v13885_v40 = vpop.f32.mrb[74].mxu1 }
 0x6f3   :  { %v13889_v2 = vadd.f32 %v13885_v40, %v13734_v32  ;;  %v17841_v16 = vpop.f32.mrb[75].mxu1 }
 0x702   :  { %v14040_v23 = vpop.f32.mrb[76].mxu1 }
 0x703   :  { %v14044_v61 = vadd.f32 %v14040_v23, %v13889_v2  ;;  %v17848_v49 = vpop.f32.mrb[77].mxu1 }
 0x712   :  { %v14195_v52 = vpop.f32.mrb[78].mxu1 }
 0x713   :  { %v14199_v38 = vadd.f32 %v14195_v52, %v14044_v61  ;;  %v17855_v25 = vpop.f32.mrb[79].mxu1 }
 0x715   :  { %v14207_v20 = vadd.f32 %v15738_v43, %v14199_v38 }
 0x717   :  { %v14208_v62 = vmax.f32 %v14207_v20, 0.0 }
 0x719   :  { %17873 = vmatmul.mubr.msk.f32.vlgmr.msra.gmra.mrb[80].mxu1 %vm14224_vm12, %v14208_v62 }
 0x71a   :  { %17956 = vmatpush3.bf16.msra.mxu1 %v17955_v54  ;;  %17891 = vmatprep.mubr.msk.f32.mxu1 %vm18654_vm9, %v23072_v17  ;;  %v14305_v17 = vld [vmem:[%s23177_s9 + $0x30] sm:$0xff]  ;;  %s18628_s9 = scalar_lea.vmem %s14395_s16, 32 }
 0x71b   :  { %17957 = vmatprep.subr.bf16.mxu1 %v23347_v55  ;;  %v17964_v36 = vpack.c.bf16 %v14306_v33, %v14305_v17  ;;  %p18629_p0 = scmp.ne.s32.totalorder %s14395_s16, %s18628_s9  ;;  %p18634_p2 = scmp.lt.s32.totalorder %s18628_s9, %s18628_s9 }
 0x71d   :  { %p18635_p3 = por %p18634_p2, %p18633_p1 }
 0x71e   :  { %17959 = vmatpush3.bf16.msra.mxu1 %v17958_v39 }
 0x71f   :  { %17960 = vmatprep.subr.bf16.mxu1 %v23347_v55  ;;  %p18636_p4 = pnand %p18635_p3, %p18629_p0 }
 0x722   :  { %17962 = vmatpush3.bf16.msra.mxu1 %v17961_v59 }
 0x723   :  { %17963 = vmatprep.subr.bf16.mxu1 %v23347_v55  ;;  %v15741_v55 = vld [vmem:[%s23178_s10] ss:$0 sm:$0xff] }
 0x726   :  { %17965 = vmatpush3.bf16.msra.mxu1 %v17964_v36 }
 0x7ec   :  { %v14294_v35 = vpop.f32.mrb[80].mxu1 }
 0x7ed   :  { %v14295_v9 = vadd.f32 %v15739_v1, %v14294_v35  ;;  %v17874_v53 = vpop.f32.mrb[81].mxu1 }
 0x7ef   :  { %v14298_v56 = vmax.f32 %v14295_v9, 0.0 }
 0x7f1   :  { %17892 = vmatmul.mubr.msk.f32.vlgmr.msra.gmra.mrb[82].mxu1 %vm14224_vm12, %v14298_v56 }
 0x8c4   :  { %v14383_v24 = vpop.f32.mrb[82].mxu1 }
 0x8c5   :  { %v14384_v48 = vadd.f32 %v15741_v55, %v14383_v24  ;;  %v17893_v12 = vpop.f32.mrb[83].mxu1 }
 0x8c7   :  { %14387 = vst [vmem:[#allocation5] sm:$0x3] %v14384_v48 }
 0x8c8   :  { %18639 = shalt.err (!%p18636_p4)
}
 0x8c9   :  { %s18640_s18 = scalar_lea.hbm %s23179_s11, 32 }
 0x8ca   :  { %p18641_p5 = scmp.ne.s32.totalorder %s23179_s11, %s18640_s18  ;;  %p18644_p6 = scmp.lt.u32.totalorder %s18640_s18, %s23179_s11 }
 0x8cc   :  { %p18646_p7 = pnand %p18644_p6, %p18641_p5 }
 0x8ce   :  { %18649 = shalt.err (!%p18646_p7)
}
 0x8cf   :  { %14397 = dma.vmem_to_hbm [thread:$0]  %s14395_s16, 32, %s23179_s11, [#allocation6]  }
 0x8d0   :  { %18650 = dma.done.wait [#allocation6], 32  }
 0x8d1   :  { %18651 = vsyncadd [#allocation6], 4294967264 }
 0x8d2   :  { %14401 = vsyncpa [#allocation6], 1 }

</bundles_post_ra>
